<compile_context>
chip_gen: v6e
topology: v6e:2x2x1
jax: 0.10.0
libtpu: 0.0.40
codegen_flags: <defaults>
</compile_context>

<pallas_src>
import jax
import jax.numpy as jnp
from jax import lax
from jax.experimental import pallas as pl
from jax.experimental.pallas import tpu as pltpu


# ----------------------------------------------------------------------------
# Spectral norm (forward-time weight normalization), as in SpectralNorm._update_u_v
# ----------------------------------------------------------------------------
def _l2normalize(v, eps=1e-12):
    return v / (jnp.linalg.norm(v) + eps)


def spectral_norm_weight(w_bar, u, v, power_iterations=1):
    h = w_bar.shape[0]
    wm = w_bar.reshape(h, -1)
    for _ in range(power_iterations):
        v = _l2normalize(wm.T @ u)
        u = _l2normalize(wm @ v)
    sigma = u @ (wm @ v)
    return w_bar / sigma


# ----------------------------------------------------------------------------
# Pallas kernel: relu -> conv3x3 -> +bias -> relu -> conv3x3 -> +bias -> +x
# One batch element per grid step. Each conv = one im2col MXU matmul
# (H*W, 9*Cin) @ (9*Cin, Cout), bf16 operands, f32 accumulation.
# ----------------------------------------------------------------------------
def dresblock_kernel(x_ref, w1_ref, b1_ref, w2_ref, b2_ref, out_ref,
                     pad_ref, patch_ref):
    _, H, W, C = x_ref.shape

    def conv3x3(w, b):
        # Copy the nine shifted taps from the zero-padded scratch into the im2col
        # scratch (lane-concatenated along the last dim), then one MXU matmul.
        for dy in range(3):
            for dx in range(3):
                tap = dy * 3 + dx
                patch_ref[:, :, pl.ds(tap * C, C)] = pad_ref[pl.ds(dy, H),
                                                             pl.ds(dx, W), :]
        patch = patch_ref[...].reshape(H * W, 9 * C)                   # bf16
        acc = jnp.dot(patch, w, preferred_element_type=jnp.float32)    # (H*W, C) f32
        return acc + b                                                 # f32, bias fused

    # Zero the padded scratch once; the 1-pixel border stays zero for both convs
    # (only the interior is overwritten between them).
    pad_ref[...] = jnp.zeros_like(pad_ref)

    # conv1: relu(x) -> padded scratch (bf16 MXU operand), im2col matmul, bias, relu
    pad_ref[pl.ds(1, H), pl.ds(1, W), :] = (
        jnp.maximum(x_ref[0], 0.0).astype(pad_ref.dtype))
    r1 = jnp.maximum(conv3x3(w1_ref[...], b1_ref[...]), 0.0)           # (H*W, C) f32

    # conv2: r1 -> padded scratch, im2col matmul, bias
    pad_ref[pl.ds(1, H), pl.ds(1, W), :] = (
        r1.reshape(H, W, C).astype(pad_ref.dtype))
    res = conv3x3(w2_ref[...], b2_ref[...]).reshape(H, W, C)           # f32

    # Residual add: re-read x here so it is not held live across both convs.
    out_ref[0] = (x_ref[0] + res).astype(out_ref.dtype)


# ----------------------------------------------------------------------------
# Wrapper: NCHW in / NCHW out, parameter prep + pallas_call
# ----------------------------------------------------------------------------
def dresblock_forward(x_nchw, params):
    w1 = spectral_norm_weight(params["w1_bar"], params["u1"], params["v1"])
    w2 = spectral_norm_weight(params["w2_bar"], params["u2"], params["v2"])

    B, C, H, W = x_nchw.shape
    x = jnp.transpose(x_nchw, (0, 2, 3, 1)).astype(jnp.float32)        # NHWC

    # torch weight (Cout, Cin, 3, 3) -> (3, 3, Cin, Cout) -> (9*Cin, Cout), bf16 for MXU.
    # Row order (dy*3+dx)*Cin + cin matches the im2col patch layout in the kernel.
    w1_k = jnp.transpose(w1, (2, 3, 1, 0)).reshape(9 * C, C).astype(jnp.bfloat16)
    w2_k = jnp.transpose(w2, (2, 3, 1, 0)).reshape(9 * C, C).astype(jnp.bfloat16)
    b1_k = params["b1"].reshape(1, C).astype(jnp.float32)
    b2_k = params["b2"].reshape(1, C).astype(jnp.float32)

    out = pl.pallas_call(
        dresblock_kernel,
        out_shape=jax.ShapeDtypeStruct((B, H, W, C), jnp.float32),
        grid_spec=pltpu.PrefetchScalarGridSpec(
            num_scalar_prefetch=0,
            grid=(B,),
            in_specs=[
                pl.BlockSpec((1, H, W, C), lambda b: (b, 0, 0, 0)),
                pl.BlockSpec((9 * C, C), lambda b: (0, 0)),
                pl.BlockSpec((1, C), lambda b: (0, 0)),
                pl.BlockSpec((9 * C, C), lambda b: (0, 0)),
                pl.BlockSpec((1, C), lambda b: (0, 0)),
            ],
            out_specs=pl.BlockSpec((1, H, W, C), lambda b: (b, 0, 0, 0)),
            scratch_shapes=[
                pltpu.VMEM((H + 2, W + 2, C), jnp.bfloat16),   # zero-padded activation
                pltpu.VMEM((H, W, 9 * C), jnp.bfloat16),       # im2col patch matrix
            ],
        ),
        compiler_params=pltpu.CompilerParams(
            dimension_semantics=("parallel",),
            vmem_limit_bytes=32 * 1024 * 1024,
        ),
    )(x, w1_k, b1_k, w2_k, b2_k)

    return jnp.transpose(out, (0, 3, 1, 2))                            # back to NCHW


# ----------------------------------------------------------------------------
# Pure-JAX reference (NCHW, lax.conv, f32) for correctness checking
# ----------------------------------------------------------------------------
def dresblock_reference(x, params):
    w1 = spectral_norm_weight(params["w1_bar"], params["u1"], params["v1"])
    w2 = spectral_norm_weight(params["w2_bar"], params["u2"], params["v2"])

    def conv(h, w, b):
        y = lax.conv_general_dilated(
            h, w, window_strides=(1, 1), padding=((1, 1), (1, 1)),
            dimension_numbers=("NCHW", "OIHW", "NCHW"),
            precision=lax.Precision.HIGHEST)
        return y + b.reshape(1, -1, 1, 1)

    r = jnp.maximum(x, 0.0)
    r = conv(r, w1, params["b1"])
    r = jnp.maximum(r, 0.0)
    r = conv(r, w2, params["b2"])
    return x + r


# ----------------------------------------------------------------------------
if __name__ == "__main__":
    B, C, H, W = 2, 4, 16, 16

    key = jax.random.PRNGKey(0)
    kx, kw1, kb1, ku1, kv1, kw2, kb2, ku2, kv2 = jax.random.split(key, 9)

    params = {
        "w1_bar": 0.1 * jax.random.normal(kw1, (C, C, 3, 3), jnp.float32),
        "b1":     0.1 * jax.random.normal(kb1, (C,), jnp.float32),
        "u1":     _l2normalize(jax.random.normal(ku1, (C,), jnp.float32)),
        "v1":     _l2normalize(jax.random.normal(kv1, (C * 3 * 3,), jnp.float32)),
        "w2_bar": 0.1 * jax.random.normal(kw2, (C, C, 3, 3), jnp.float32),
        "b2":     0.1 * jax.random.normal(kb2, (C,), jnp.float32),
        "u2":     _l2normalize(jax.random.normal(ku2, (C,), jnp.float32)),
        "v2":     _l2normalize(jax.random.normal(kv2, (C * 3 * 3,), jnp.float32)),
    }

    x = jax.random.normal(kx, (B, C, H, W), jnp.float32)

    out = jax.block_until_ready(dresblock_forward(x, params))
    ref = jax.block_until_ready(dresblock_reference(x, params))

    assert out.shape == (B, C, H, W)
    # Kernel uses bf16 MXU operands with f32 accumulation; reference is full f32,
    # so the tolerance absorbs bf16 rounding of weights/activations.
    assert jnp.allclose(out, ref, atol=5e-2, rtol=5e-2), "mismatch vs reference"

    print("KERNEL_OK")
</pallas_src>

<mosaic_0001>
module attributes {stable_mosaic.version = 11 : i64} {
  func.func @dresblock_kernel(%arg0: i32, %arg1: memref<1x16x16x4xf32, #tpu.memory_space<vmem>>, %arg2: memref<36x4xbf16, #tpu.memory_space<vmem>>, %arg3: memref<1x4xf32, #tpu.memory_space<vmem>>, %arg4: memref<36x4xbf16, #tpu.memory_space<vmem>>, %arg5: memref<1x4xf32, #tpu.memory_space<vmem>>, %arg6: memref<1x16x16x4xf32, #tpu.memory_space<vmem>>, %arg7: memref<18x18x4xbf16, #tpu.memory_space<vmem>>, %arg8: memref<16x16x36xbf16, #tpu.memory_space<vmem>>) attributes {dimension_semantics = [#tpu.dimension_semantics<parallel>], iteration_bounds = array<i64: 2>, scalar_prefetch = 0 : i64, scratch_operands = 2 : i64, tpu.core_type = #tpu.core_type<tc>, window_params = [{transform_indices = @transform_0, window_bounds = array<i64: 1, 16, 16, 4>}, {pipeline_mode = #tpu.pipeline_mode<synchronous>, transform_indices = @transform_1, window_bounds = array<i64: 36, 4>}, {pipeline_mode = #tpu.pipeline_mode<synchronous>, transform_indices = @transform_2, window_bounds = array<i64: 1, 4>}, {pipeline_mode = #tpu.pipeline_mode<synchronous>, transform_indices = @transform_3, window_bounds = array<i64: 36, 4>}, {pipeline_mode = #tpu.pipeline_mode<synchronous>, transform_indices = @transform_4, window_bounds = array<i64: 1, 4>}, {transform_indices = @transform_5, window_bounds = array<i64: 1, 16, 16, 4>}]} {
    %cst = arith.constant 0.000000e+00 : bf16
    %0 = vector.broadcast %cst : bf16 to vector<18x18x4xbf16>
    %c0 = arith.constant 0 : index
    %c0_0 = arith.constant 0 : index
    %c0_1 = arith.constant 0 : index
    %1 = vector.load %arg7[%c0, %c0_0, %c0_1] : memref<18x18x4xbf16, #tpu.memory_space<vmem>>, vector<18x18x4xbf16>
    tpu.vector_store %arg7[%c0, %c0_0, %c0_1], %0 {strides = array<i32>} : memref<18x18x4xbf16, #tpu.memory_space<vmem>>, vector<18x18x4xbf16>,
    %c0_2 = arith.constant 0 : index
    %c0_3 = arith.constant 0 : index
    %c0_4 = arith.constant 0 : index
    %c0_5 = arith.constant 0 : index
    %2 = vector.load %arg1[%c0_2, %c0_3, %c0_4, %c0_5] : memref<1x16x16x4xf32, #tpu.memory_space<vmem>>, vector<1x16x16x4xf32>
    %3 = vector.shape_cast %2 : vector<1x16x16x4xf32> to vector<16x16x4xf32>
    %cst_6 = arith.constant 0.000000e+00 : f32
    %4 = vector.broadcast %cst_6 : f32 to vector<16x16x4xf32>
    %5 = arith.maximumf %3, %4 : vector<16x16x4xf32>
    %6 = arith.truncf %5 : vector<16x16x4xf32> to vector<16x16x4xbf16>
    %c1 = arith.constant 1 : index
    %c1_7 = arith.constant 1 : index
    %c0_8 = arith.constant 0 : index
    %7 = vector.load %arg7[%c1, %c1_7, %c0_8] : memref<18x18x4xbf16, #tpu.memory_space<vmem>>, vector<16x16x4xbf16>
    tpu.vector_store %arg7[%c1, %c1_7, %c0_8], %6 {strides = array<i32>} : memref<18x18x4xbf16, #tpu.memory_space<vmem>>, vector<16x16x4xbf16>,
    %c0_9 = arith.constant 0 : index
    %c0_10 = arith.constant 0 : index
    %8 = vector.load %arg2[%c0_9, %c0_10] : memref<36x4xbf16, #tpu.memory_space<vmem>>, vector<36x4xbf16>
    %c0_11 = arith.constant 0 : index
    %c0_12 = arith.constant 0 : index
    %9 = vector.load %arg3[%c0_11, %c0_12] : memref<1x4xf32, #tpu.memory_space<vmem>>, vector<1x4xf32>
    %c0_13 = arith.constant 0 : index
    %c0_14 = arith.constant 0 : index
    %c0_15 = arith.constant 0 : index
    %10 = vector.load %arg7[%c0_13, %c0_14, %c0_15] : memref<18x18x4xbf16, #tpu.memory_space<vmem>>, vector<16x16x4xbf16>
    %c0_16 = arith.constant 0 : index
    %c0_17 = arith.constant 0 : index
    %c0_18 = arith.constant 0 : index
    %11 = vector.load %arg8[%c0_16, %c0_17, %c0_18] : memref<16x16x36xbf16, #tpu.memory_space<vmem>>, vector<16x16x4xbf16>
    tpu.vector_store %arg8[%c0_16, %c0_17, %c0_18], %10 {strides = array<i32>} : memref<16x16x36xbf16, #tpu.memory_space<vmem>>, vector<16x16x4xbf16>,
    %c0_19 = arith.constant 0 : index
    %c1_20 = arith.constant 1 : index
    %c0_21 = arith.constant 0 : index
    %12 = vector.load %arg7[%c0_19, %c1_20, %c0_21] : memref<18x18x4xbf16, #tpu.memory_space<vmem>>, vector<16x16x4xbf16>
    %c0_22 = arith.constant 0 : index
    %c0_23 = arith.constant 0 : index
    %c4 = arith.constant 4 : index
    %13 = vector.load %arg8[%c0_22, %c0_23, %c4] : memref<16x16x36xbf16, #tpu.memory_space<vmem>>, vector<16x16x4xbf16>
    tpu.vector_store %arg8[%c0_22, %c0_23, %c4], %12 {strides = array<i32>} : memref<16x16x36xbf16, #tpu.memory_space<vmem>>, vector<16x16x4xbf16>,
    %c0_24 = arith.constant 0 : index
    %c2 = arith.constant 2 : index
    %c0_25 = arith.constant 0 : index
    %14 = vector.load %arg7[%c0_24, %c2, %c0_25] : memref<18x18x4xbf16, #tpu.memory_space<vmem>>, vector<16x16x4xbf16>
    %c0_26 = arith.constant 0 : index
    %c0_27 = arith.constant 0 : index
    %c8 = arith.constant 8 : index
    %15 = vector.load %arg8[%c0_26, %c0_27, %c8] : memref<16x16x36xbf16, #tpu.memory_space<vmem>>, vector<16x16x4xbf16>
    tpu.vector_store %arg8[%c0_26, %c0_27, %c8], %14 {strides = array<i32>} : memref<16x16x36xbf16, #tpu.memory_space<vmem>>, vector<16x16x4xbf16>,
    %c1_28 = arith.constant 1 : index
    %c0_29 = arith.constant 0 : index
    %c0_30 = arith.constant 0 : index
    %16 = vector.load %arg7[%c1_28, %c0_29, %c0_30] : memref<18x18x4xbf16, #tpu.memory_space<vmem>>, vector<16x16x4xbf16>
    %c0_31 = arith.constant 0 : index
    %c0_32 = arith.constant 0 : index
    %c12 = arith.constant 12 : index
    %17 = vector.load %arg8[%c0_31, %c0_32, %c12] : memref<16x16x36xbf16, #tpu.memory_space<vmem>>, vector<16x16x4xbf16>
    tpu.vector_store %arg8[%c0_31, %c0_32, %c12], %16 {strides = array<i32>} : memref<16x16x36xbf16, #tpu.memory_space<vmem>>, vector<16x16x4xbf16>,
    %c1_33 = arith.constant 1 : index
    %c1_34 = arith.constant 1 : index
    %c0_35 = arith.constant 0 : index
    %18 = vector.load %arg7[%c1_33, %c1_34, %c0_35] : memref<18x18x4xbf16, #tpu.memory_space<vmem>>, vector<16x16x4xbf16>
    %c0_36 = arith.constant 0 : index
    %c0_37 = arith.constant 0 : index
    %c16 = arith.constant 16 : index
    %19 = vector.load %arg8[%c0_36, %c0_37, %c16] : memref<16x16x36xbf16, #tpu.memory_space<vmem>>, vector<16x16x4xbf16>
    tpu.vector_store %arg8[%c0_36, %c0_37, %c16], %18 {strides = array<i32>} : memref<16x16x36xbf16, #tpu.memory_space<vmem>>, vector<16x16x4xbf16>,
    %c1_38 = arith.constant 1 : index
    %c2_39 = arith.constant 2 : index
    %c0_40 = arith.constant 0 : index
    %20 = vector.load %arg7[%c1_38, %c2_39, %c0_40] : memref<18x18x4xbf16, #tpu.memory_space<vmem>>, vector<16x16x4xbf16>
    %c0_41 = arith.constant 0 : index
    %c0_42 = arith.constant 0 : index
    %c20 = arith.constant 20 : index
    %21 = vector.load %arg8[%c0_41, %c0_42, %c20] : memref<16x16x36xbf16, #tpu.memory_space<vmem>>, vector<16x16x4xbf16>
    tpu.vector_store %arg8[%c0_41, %c0_42, %c20], %20 {strides = array<i32>} : memref<16x16x36xbf16, #tpu.memory_space<vmem>>, vector<16x16x4xbf16>,
    %c2_43 = arith.constant 2 : index
    %c0_44 = arith.constant 0 : index
    %c0_45 = arith.constant 0 : index
    %22 = vector.load %arg7[%c2_43, %c0_44, %c0_45] : memref<18x18x4xbf16, #tpu.memory_space<vmem>>, vector<16x16x4xbf16>
    %c0_46 = arith.constant 0 : index
    %c0_47 = arith.constant 0 : index
    %c24 = arith.constant 24 : index
    %23 = vector.load %arg8[%c0_46, %c0_47, %c24] : memref<16x16x36xbf16, #tpu.memory_space<vmem>>, vector<16x16x4xbf16>
    tpu.vector_store %arg8[%c0_46, %c0_47, %c24], %22 {strides = array<i32>} : memref<16x16x36xbf16, #tpu.memory_space<vmem>>, vector<16x16x4xbf16>,
    %c2_48 = arith.constant 2 : index
    %c1_49 = arith.constant 1 : index
    %c0_50 = arith.constant 0 : index
    %24 = vector.load %arg7[%c2_48, %c1_49, %c0_50] : memref<18x18x4xbf16, #tpu.memory_space<vmem>>, vector<16x16x4xbf16>
    %c0_51 = arith.constant 0 : index
    %c0_52 = arith.constant 0 : index
    %c28 = arith.constant 28 : index
    %25 = vector.load %arg8[%c0_51, %c0_52, %c28] : memref<16x16x36xbf16, #tpu.memory_space<vmem>>, vector<16x16x4xbf16>
    tpu.vector_store %arg8[%c0_51, %c0_52, %c28], %24 {strides = array<i32>} : memref<16x16x36xbf16, #tpu.memory_space<vmem>>, vector<16x16x4xbf16>,
    %c2_53 = arith.constant 2 : index
    %c2_54 = arith.constant 2 : index
    %c0_55 = arith.constant 0 : index
    %26 = vector.load %arg7[%c2_53, %c2_54, %c0_55] : memref<18x18x4xbf16, #tpu.memory_space<vmem>>, vector<16x16x4xbf16>
    %c0_56 = arith.constant 0 : index
    %c0_57 = arith.constant 0 : index
    %c32 = arith.constant 32 : index
    %27 = vector.load %arg8[%c0_56, %c0_57, %c32] : memref<16x16x36xbf16, #tpu.memory_space<vmem>>, vector<16x16x4xbf16>
    tpu.vector_store %arg8[%c0_56, %c0_57, %c32], %26 {strides = array<i32>} : memref<16x16x36xbf16, #tpu.memory_space<vmem>>, vector<16x16x4xbf16>,
    %c0_58 = arith.constant 0 : index
    %c0_59 = arith.constant 0 : index
    %c0_60 = arith.constant 0 : index
    %28 = vector.load %arg8[%c0_58, %c0_59, %c0_60] : memref<16x16x36xbf16, #tpu.memory_space<vmem>>, vector<16x16x36xbf16>
    %29 = vector.shape_cast %28 : vector<16x16x36xbf16> to vector<256x36xbf16>
    %cst_61 = arith.constant dense<0.000000e+00> : vector<256x4xf32>
    %30 = tpu.matmul %29, %8, %cst_61 {dimension_numbers = #tpu.dot_dimension_numbers<[1], [0], [0], [1], [0, 0, 1, 1], [], []>} : vector<256x36xbf16>, vector<36x4xbf16>, vector<256x4xf32> -> vector<256x4xf32>
    %31 = vector.broadcast %9 : vector<1x4xf32> to vector<256x4xf32>
    %32 = arith.addf %30, %31 : vector<256x4xf32>
    %cst_62 = arith.constant 0.000000e+00 : f32
    %33 = vector.broadcast %cst_62 : f32 to vector<256x4xf32>
    %34 = arith.maximumf %32, %33 : vector<256x4xf32>
    %35 = vector.shape_cast %34 : vector<256x4xf32> to vector<16x16x4xf32>
    %36 = arith.truncf %35 : vector<16x16x4xf32> to vector<16x16x4xbf16>
    %c1_63 = arith.constant 1 : index
    %c1_64 = arith.constant 1 : index
    %c0_65 = arith.constant 0 : index
    %37 = vector.load %arg7[%c1_63, %c1_64, %c0_65] : memref<18x18x4xbf16, #tpu.memory_space<vmem>>, vector<16x16x4xbf16>
    tpu.vector_store %arg7[%c1_63, %c1_64, %c0_65], %36 {strides = array<i32>} : memref<18x18x4xbf16, #tpu.memory_space<vmem>>, vector<16x16x4xbf16>,
    %c0_66 = arith.constant 0 : index
    %c0_67 = arith.constant 0 : index
    %38 = vector.load %arg4[%c0_66, %c0_67] : memref<36x4xbf16, #tpu.memory_space<vmem>>, vector<36x4xbf16>
    %c0_68 = arith.constant 0 : index
    %c0_69 = arith.constant 0 : index
    %39 = vector.load %arg5[%c0_68, %c0_69] : memref<1x4xf32, #tpu.memory_space<vmem>>, vector<1x4xf32>
    %c0_70 = arith.constant 0 : index
    %c0_71 = arith.constant 0 : index
    %c0_72 = arith.constant 0 : index
    %40 = vector.load %arg7[%c0_70, %c0_71, %c0_72] : memref<18x18x4xbf16, #tpu.memory_space<vmem>>, vector<16x16x4xbf16>
    %c0_73 = arith.constant 0 : index
    %c0_74 = arith.constant 0 : index
    %c0_75 = arith.constant 0 : index
    %41 = vector.load %arg8[%c0_73, %c0_74, %c0_75] : memref<16x16x36xbf16, #tpu.memory_space<vmem>>, vector<16x16x4xbf16>
    tpu.vector_store %arg8[%c0_73, %c0_74, %c0_75], %40 {strides = array<i32>} : memref<16x16x36xbf16, #tpu.memory_space<vmem>>, vector<16x16x4xbf16>,
    %c0_76 = arith.constant 0 : index
    %c1_77 = arith.constant 1 : index
    %c0_78 = arith.constant 0 : index
    %42 = vector.load %arg7[%c0_76, %c1_77, %c0_78] : memref<18x18x4xbf16, #tpu.memory_space<vmem>>, vector<16x16x4xbf16>
    %c0_79 = arith.constant 0 : index
    %c0_80 = arith.constant 0 : index
    %c4_81 = arith.constant 4 : index
    %43 = vector.load %arg8[%c0_79, %c0_80, %c4_81] : memref<16x16x36xbf16, #tpu.memory_space<vmem>>, vector<16x16x4xbf16>
    tpu.vector_store %arg8[%c0_79, %c0_80, %c4_81], %42 {strides = array<i32>} : memref<16x16x36xbf16, #tpu.memory_space<vmem>>, vector<16x16x4xbf16>,
    %c0_82 = arith.constant 0 : index
    %c2_83 = arith.constant 2 : index
    %c0_84 = arith.constant 0 : index
    %44 = vector.load %arg7[%c0_82, %c2_83, %c0_84] : memref<18x18x4xbf16, #tpu.memory_space<vmem>>, vector<16x16x4xbf16>
    %c0_85 = arith.constant 0 : index
    %c0_86 = arith.constant 0 : index
    %c8_87 = arith.constant 8 : index
    %45 = vector.load %arg8[%c0_85, %c0_86, %c8_87] : memref<16x16x36xbf16, #tpu.memory_space<vmem>>, vector<16x16x4xbf16>
    tpu.vector_store %arg8[%c0_85, %c0_86, %c8_87], %44 {strides = array<i32>} : memref<16x16x36xbf16, #tpu.memory_space<vmem>>, vector<16x16x4xbf16>,
    %c1_88 = arith.constant 1 : index
    %c0_89 = arith.constant 0 : index
    %c0_90 = arith.constant 0 : index
    %46 = vector.load %arg7[%c1_88, %c0_89, %c0_90] : memref<18x18x4xbf16, #tpu.memory_space<vmem>>, vector<16x16x4xbf16>
    %c0_91 = arith.constant 0 : index
    %c0_92 = arith.constant 0 : index
    %c12_93 = arith.constant 12 : index
    %47 = vector.load %arg8[%c0_91, %c0_92, %c12_93] : memref<16x16x36xbf16, #tpu.memory_space<vmem>>, vector<16x16x4xbf16>
    tpu.vector_store %arg8[%c0_91, %c0_92, %c12_93], %46 {strides = array<i32>} : memref<16x16x36xbf16, #tpu.memory_space<vmem>>, vector<16x16x4xbf16>,
    %c1_94 = arith.constant 1 : index
    %c1_95 = arith.constant 1 : index
    %c0_96 = arith.constant 0 : index
    %48 = vector.load %arg7[%c1_94, %c1_95, %c0_96] : memref<18x18x4xbf16, #tpu.memory_space<vmem>>, vector<16x16x4xbf16>
    %c0_97 = arith.constant 0 : index
    %c0_98 = arith.constant 0 : index
    %c16_99 = arith.constant 16 : index
    %49 = vector.load %arg8[%c0_97, %c0_98, %c16_99] : memref<16x16x36xbf16, #tpu.memory_space<vmem>>, vector<16x16x4xbf16>
    tpu.vector_store %arg8[%c0_97, %c0_98, %c16_99], %48 {strides = array<i32>} : memref<16x16x36xbf16, #tpu.memory_space<vmem>>, vector<16x16x4xbf16>,
    %c1_100 = arith.constant 1 : index
    %c2_101 = arith.constant 2 : index
    %c0_102 = arith.constant 0 : index
    %50 = vector.load %arg7[%c1_100, %c2_101, %c0_102] : memref<18x18x4xbf16, #tpu.memory_space<vmem>>, vector<16x16x4xbf16>
    %c0_103 = arith.constant 0 : index
    %c0_104 = arith.constant 0 : index
    %c20_105 = arith.constant 20 : index
    %51 = vector.load %arg8[%c0_103, %c0_104, %c20_105] : memref<16x16x36xbf16, #tpu.memory_space<vmem>>, vector<16x16x4xbf16>
    tpu.vector_store %arg8[%c0_103, %c0_104, %c20_105], %50 {strides = array<i32>} : memref<16x16x36xbf16, #tpu.memory_space<vmem>>, vector<16x16x4xbf16>,
    %c2_106 = arith.constant 2 : index
    %c0_107 = arith.constant 0 : index
    %c0_108 = arith.constant 0 : index
    %52 = vector.load %arg7[%c2_106, %c0_107, %c0_108] : memref<18x18x4xbf16, #tpu.memory_space<vmem>>, vector<16x16x4xbf16>
    %c0_109 = arith.constant 0 : index
    %c0_110 = arith.constant 0 : index
    %c24_111 = arith.constant 24 : index
    %53 = vector.load %arg8[%c0_109, %c0_110, %c24_111] : memref<16x16x36xbf16, #tpu.memory_space<vmem>>, vector<16x16x4xbf16>
    tpu.vector_store %arg8[%c0_109, %c0_110, %c24_111], %52 {strides = array<i32>} : memref<16x16x36xbf16, #tpu.memory_space<vmem>>, vector<16x16x4xbf16>,
    %c2_112 = arith.constant 2 : index
    %c1_113 = arith.constant 1 : index
    %c0_114 = arith.constant 0 : index
    %54 = vector.load %arg7[%c2_112, %c1_113, %c0_114] : memref<18x18x4xbf16, #tpu.memory_space<vmem>>, vector<16x16x4xbf16>
    %c0_115 = arith.constant 0 : index
    %c0_116 = arith.constant 0 : index
    %c28_117 = arith.constant 28 : index
    %55 = vector.load %arg8[%c0_115, %c0_116, %c28_117] : memref<16x16x36xbf16, #tpu.memory_space<vmem>>, vector<16x16x4xbf16>
    tpu.vector_store %arg8[%c0_115, %c0_116, %c28_117], %54 {strides = array<i32>} : memref<16x16x36xbf16, #tpu.memory_space<vmem>>, vector<16x16x4xbf16>,
    %c2_118 = arith.constant 2 : index
    %c2_119 = arith.constant 2 : index
    %c0_120 = arith.constant 0 : index
    %56 = vector.load %arg7[%c2_118, %c2_119, %c0_120] : memref<18x18x4xbf16, #tpu.memory_space<vmem>>, vector<16x16x4xbf16>
    %c0_121 = arith.constant 0 : index
    %c0_122 = arith.constant 0 : index
    %c32_123 = arith.constant 32 : index
    %57 = vector.load %arg8[%c0_121, %c0_122, %c32_123] : memref<16x16x36xbf16, #tpu.memory_space<vmem>>, vector<16x16x4xbf16>
    tpu.vector_store %arg8[%c0_121, %c0_122, %c32_123], %56 {strides = array<i32>} : memref<16x16x36xbf16, #tpu.memory_space<vmem>>, vector<16x16x4xbf16>,
    %c0_124 = arith.constant 0 : index
    %c0_125 = arith.constant 0 : index
    %c0_126 = arith.constant 0 : index
    %58 = vector.load %arg8[%c0_124, %c0_125, %c0_126] : memref<16x16x36xbf16, #tpu.memory_space<vmem>>, vector<16x16x36xbf16>
    %59 = vector.shape_cast %58 : vector<16x16x36xbf16> to vector<256x36xbf16>
    %cst_127 = arith.constant dense<0.000000e+00> : vector<256x4xf32>
    %60 = tpu.matmul %59, %38, %cst_127 {dimension_numbers = #tpu.dot_dimension_numbers<[1], [0], [0], [1], [0, 0, 1, 1], [], []>} : vector<256x36xbf16>, vector<36x4xbf16>, vector<256x4xf32> -> vector<256x4xf32>
    %61 = vector.broadcast %39 : vector<1x4xf32> to vector<256x4xf32>
    %62 = arith.addf %60, %61 : vector<256x4xf32>
    %63 = vector.shape_cast %62 : vector<256x4xf32> to vector<16x16x4xf32>
    %c0_128 = arith.constant 0 : index
    %c0_129 = arith.constant 0 : index
    %c0_130 = arith.constant 0 : index
    %c0_131 = arith.constant 0 : index
    %64 = vector.load %arg1[%c0_128, %c0_129, %c0_130, %c0_131] : memref<1x16x16x4xf32, #tpu.memory_space<vmem>>, vector<1x16x16x4xf32>
    %65 = vector.shape_cast %64 : vector<1x16x16x4xf32> to vector<16x16x4xf32>
    %66 = arith.addf %65, %63 : vector<16x16x4xf32>
    %c0_132 = arith.constant 0 : index
    %c0_133 = arith.constant 0 : index
    %c0_134 = arith.constant 0 : index
    %c0_135 = arith.constant 0 : index
    %67 = vector.load %arg6[%c0_132, %c0_133, %c0_134, %c0_135] : memref<1x16x16x4xf32, #tpu.memory_space<vmem>>, vector<1x16x16x4xf32>
    %68 = vector.shape_cast %67 : vector<1x16x16x4xf32> to vector<16x16x4xf32>
    %69 = vector.shape_cast %66 : vector<16x16x4xf32> to vector<1x16x16x4xf32>
    tpu.vector_store %arg6[%c0_132, %c0_133, %c0_134, %c0_135], %69 {strides = array<i32>} : memref<1x16x16x4xf32, #tpu.memory_space<vmem>>, vector<1x16x16x4xf32>,
    return
  }
  func.func @transform_0(%arg0: i32) -> (i32, i32, i32, i32) {
    %c0_i32 = arith.constant 0 : i32
    %c0_i32_0 = arith.constant 0 : i32
    %c0_i32_1 = arith.constant 0 : i32
    %c0_i32_2 = arith.constant 0 : i32
    return %arg0, %c0_i32, %c0_i32_0, %c0_i32_1 : i32, i32, i32, i32
  }
  func.func @transform_1(%arg0: i32) -> (i32, i32) {
    %c0_i32 = arith.constant 0 : i32
    %c0_i32_0 = arith.constant 0 : i32
    %c0_i32_1 = arith.constant 0 : i32
    return %c0_i32, %c0_i32_0 : i32, i32
  }
  func.func @transform_2(%arg0: i32) -> (i32, i32) {
    %c0_i32 = arith.constant 0 : i32
    %c0_i32_0 = arith.constant 0 : i32
    %c0_i32_1 = arith.constant 0 : i32
    return %c0_i32, %c0_i32_0 : i32, i32
  }
  func.func @transform_3(%arg0: i32) -> (i32, i32) {
    %c0_i32 = arith.constant 0 : i32
    %c0_i32_0 = arith.constant 0 : i32
    %c0_i32_1 = arith.constant 0 : i32
    return %c0_i32, %c0_i32_0 : i32, i32
  }
  func.func @transform_4(%arg0: i32) -> (i32, i32) {
    %c0_i32 = arith.constant 0 : i32
    %c0_i32_0 = arith.constant 0 : i32
    %c0_i32_1 = arith.constant 0 : i32
    return %c0_i32, %c0_i32_0 : i32, i32
  }
  func.func @transform_5(%arg0: i32) -> (i32, i32, i32, i32) {
    %c0_i32 = arith.constant 0 : i32
    %c0_i32_0 = arith.constant 0 : i32
    %c0_i32_1 = arith.constant 0 : i32
    %c0_i32_2 = arith.constant 0 : i32
    return %arg0, %c0_i32, %c0_i32_0, %c0_i32_1 : i32, i32, i32, i32
  }
}

</mosaic_0001>

<bundles_post_ra>
// kernel: tpu_custom_call.1
= control target key start
LH: loop header
LB: loop body
LE: loop exit
PB: predicated region body
PF: predicated region fallthrough
CT: control target
= control target key end

     0   :  { %s9113_s18 = smov 0   ;;  %s11712_s0 = inlined_call_operand.vmem [shape: f32[2,16,16,4], index: 0, kind: input, shape index: {}]   ;;  %s11713_s1 = inlined_call_operand.vmem [shape: bf16[36,4], index: 1, kind: input, shape index: {}]   ;;  %s11714_s2 = inlined_call_operand.vmem [shape: f32[1,4], index: 2, kind: input, shape index: {}]   ;;  %s11715_s3 = inlined_call_operand.vmem [shape: bf16[36,4], index: 3, kind: input, shape index: {}]   ;;  %s11716_s4 = inlined_call_operand.vmem [shape: f32[1,4], index: 4, kind: input, shape index: {}]   ;;  %s11717_s5 = inlined_call_operand.vmem [shape: f32[2,16,16,4], index: 5, kind: output, shape index: {}]  }
   0x1 LB: > { %s8586_s19 = sadd.s32 4294967295, %s9072_s18   ;;  %p8590_p0 = scmp.ge.s32.totalorder %s9072_s18, 1  ;;  %s9072_s18 = sphi %s9113_s18, %s15_s18  }
   0x2   : > { %p187_p1 = scmp.lt.s32.totalorder %s9072_s18, 3 }
   0x4   : > { %p188_p2 = pnand %p8590_p0, %p187_p1 }
   0x5   : > { %p215_p3 = scmp.lt.s32.totalorder (!%p188_p2), %s8586_s19, 1  ;;  %s9075_s24 = smov (!%p188_p2), 4  }
   0x6   : > { %191 = sbr.rel (%p188_p2) target bundleno = 1760 (0x6e0), region = 40  ;;  %s9076_s25 = smov (!%p188_p2), 8  }
   0x7   : > { %s9077_s26 = smov (!%p188_p2), 12   ;;  %s9078_s27 = smov (!%p188_p2), 16  }
   0x8   : > { %s9079_s28 = smov (!%p188_p2), 20   ;;  %s9080_s29 = smov (!%p188_p2), 24  }
   0x9   : > { %s9081_s7 = smov (!%p188_p2), 28   ;;  %s9082_s12 = smov (!%p188_p2), 32  }
   0xb   : > { %vm226_vm0 = vcmask 27648   ;;  %v9074_v0 = vmov 0   ;;  %vm1001_vm1 = vsmask.f32 3328  ;;  %vm1002_vm2 = vsmask.f32 7440 }
   0xc   : > { %227 = vst.msk [vmem:[#allocation2] sm:$0xf] %vm226_vm0, %v9074_v0  ;;  %228 = vst.msk [vmem:[#allocation2 + $0x4] sm:$0xf] %vm226_vm0, %v9074_v0  ;;  %vm229_vm3 = vcmask 24576   ;;  %s11729_s19 = smov (!%p215_p3, %s8586_s19), 1 }
   0xd   : > { %231 = vst.msk [vmem:[#allocation2 + $0xc] sm:$0xf] %vm226_vm0, %v9074_v0  ;;  %232 = vst.msk [vmem:[#allocation2 + $0x10] sm:$0xf] %vm226_vm0, %v9074_v0  ;;  %vm442_vm4 = vsmask.f32 256 }
   0xe   : > { %234 = vst.msk [vmem:[#allocation2 + $0x18] sm:$0xf] %vm226_vm0, %v9074_v0  ;;  %235 = vst.msk [vmem:[#allocation2 + $0x1c] sm:$0xf] %vm226_vm0, %v9074_v0  ;;  %s8829_s20 = sshll.u32 %s11729_s19, 8  ;;  %vm1613_vm11 = vcmask 1042432  }
   0xf   : > { %237 = vst.msk [vmem:[#allocation2 + $0x24] sm:$0xf] %vm226_vm0, %v9074_v0  ;;  %238 = vst.msk [vmem:[#allocation2 + $0x28] sm:$0xf] %vm226_vm0, %v9074_v0  ;;  %s9187_s23 = scalar_lea.vmem %s11712_s0, %s8829_s20  ;;  %vm443_vm5 = vsmask.f32 4368  ;;  %s11530_s6 = scalar_lea.vmem %s11717_s5, %s8829_s20 }
  0x10   : > { %240 = vst.msk [vmem:[#allocation2 + $0x30] sm:$0xf] %vm226_vm0, %v9074_v0  ;;  %241 = vst.msk [vmem:[#allocation2 + $0x34] sm:$0xf] %vm226_vm0, %v9074_v0  ;;  %v282_v1 = vld [vmem:[%s9187_s23] sm:$0xff]  ;;  %v283_v2 = vld [vmem:[%s9187_s23 + $0x8] sm:$0xff] }
  0x11   : > { %243 = vst.msk [vmem:[#allocation2 + $0x3c] sm:$0xf] %vm226_vm0, %v9074_v0  ;;  %244 = vst.msk [vmem:[#allocation2 + $0x40] sm:$0xf] %vm226_vm0, %v9074_v0  ;;  %v284_v3 = vld [vmem:[%s9187_s23 + $0x10] sm:$0xff]  ;;  %v314_v6 = vmax.f32 %v282_v1, 0.0 }
  0x12   : > { %246 = vst.msk [vmem:[#allocation2 + $0x48] sm:$0xf] %vm226_vm0, %v9074_v0  ;;  %247 = vst.msk [vmem:[#allocation2 + $0x4c] sm:$0xf] %vm226_vm0, %v9074_v0  ;;  %v315_v7 = vmax.f32 %v283_v2, 0.0  ;;  %v285_v15 = vld [vmem:[%s9187_s23 + $0x18] sm:$0xff] }
  0x13   : > { %249 = vst.msk [vmem:[#allocation2 + $0x54] sm:$0xf] %vm226_vm0, %v9074_v0  ;;  %250 = vst.msk [vmem:[#allocation2 + $0x58] sm:$0xf] %vm226_vm0, %v9074_v0  ;;  %v953_v4 = vld [vmem:[#allocation2] sm:$0xf]  ;;  %v8831_v12 = vpack.c.bf16 %v314_v6, %v314_v6 }
  0x14   : > { %252 = vst.msk [vmem:[#allocation2 + $0x60] sm:$0xf] %vm226_vm0, %v9074_v0  ;;  %253 = vst.msk [vmem:[#allocation2 + $0x64] sm:$0xf] %vm226_vm0, %v9074_v0  ;;  %v954_v5 = vld [vmem:[#allocation2 + $0x4] sm:$0xf]  ;;  %v8832_v13 = vpack.c.bf16 %v315_v7, %v315_v7 }
  0x15   : > { %255 = vst.msk [vmem:[#allocation2 + $0x6c] sm:$0xf] %vm226_vm0, %v9074_v0  ;;  %256 = vst.msk [vmem:[#allocation2 + $0x70] sm:$0xf] %vm226_vm0, %v9074_v0  ;;  %v1005_v8 = vshrl.u32 %v953_v4, 16  ;;  %v1008_v9 = vshll.u32 %v953_v4, 16 }
  0x16   : > { %258 = vst.msk [vmem:[#allocation2 + $0x78] sm:$0xf] %vm226_vm0, %v9074_v0  ;;  %259 = vst.msk [vmem:[#allocation2 + $0x7c] sm:$0xf] %vm226_vm0, %v9074_v0  ;;  %v1014_v10 = vshll.u32 %v954_v5, 16  ;;  %v1018_v11 = vshrl.u32 %v954_v5, 16 }
  0x17   : > { %261 = vst.msk [vmem:[#allocation2 + $0x84] sm:$0xf] %vm226_vm0, %v9074_v0  ;;  %262 = vst.msk [vmem:[#allocation2 + $0x88] sm:$0xf] %vm226_vm0, %v9074_v0  ;;  %vm767_vm6 = vsmask.f32 7938 }
  0x18   : > { %264 = vst.msk [vmem:[#allocation2 + $0x90] sm:$0xf] %vm226_vm0, %v9074_v0  ;;  %265 = vst.msk [vmem:[#allocation2 + $0x94] sm:$0xf] %vm226_vm0, %v9074_v0  ;;  %v316_v16 = vmax.f32 %v284_v3, 0.0  ;;  %v1007_v17 = vrot.slane %v1005_v8, 4 }
  0x19   : > { %267 = vst.msk [vmem:[#allocation2 + $0x9c] sm:$0xf] %vm226_vm0, %v9074_v0  ;;  %268 = vst.msk [vmem:[#allocation2 + $0xa0] sm:$0xf] %vm226_vm0, %v9074_v0  ;;  %v1010_v18 = vrot.slane %v1008_v9, 5  ;;  %v1016_v19 = vrot.slane %v1014_v10, 5 }
  0x1a   : > { %270 = vst.msk [vmem:[#allocation2 + $0xa8] sm:$0xf] %vm226_vm0, %v9074_v0  ;;  %271 = vst.msk [vmem:[#allocation2 + $0xac] sm:$0xf] %vm226_vm0, %v9074_v0  ;;  %v1020_v20 = vrot.slane %v1018_v11, 4  ;;  %v446_v22 = vshrl.u32 %v8831_v12, 16  ;;  %v8833_v36 = vpack.c.bf16 %v316_v16, %v316_v16 }
  0x1b   : > { %273 = vst.msk [vmem:[#allocation2 + $0xb4] sm:$0xf] %vm226_vm0, %v9074_v0  ;;  %274 = vst.msk [vmem:[#allocation2 + $0xb8] sm:$0xf] %vm226_vm0, %v9074_v0  ;;  %v449_v23 = vshll.u32 %v8831_v12, 16  ;;  %v454_v24 = vshrl.u32 %v8832_v13, 16  ;;  %v1011_v26 = vor.u32 %v1010_v18, %v1007_v17 }
  0x1c   : > { %276 = vst.msk [vmem:[#allocation2 + $0xc0] sm:$0xf] %vm226_vm0, %v9074_v0  ;;  %277 = vst.msk [vmem:[#allocation2 + $0xc4] sm:$0xf] %vm226_vm0, %v9074_v0  ;;  %v457_v25 = vshll.u32 %v8832_v13, 16  ;;  %v1021_v28 = vor.u32 %v1020_v20, %v1016_v19  ;;  %v317_v30 = vmax.f32 %v285_v15, 0.0 }
  0x1d   : > { %279 = vst.msk [vmem:[#allocation2 + $0xcc] sm:$0xf] %vm226_vm0, %v9074_v0  ;;  %280 = vst.msk [vmem:[#allocation2 + $0xd0] sm:$0xf] %vm226_vm0, %v9074_v0  ;;  %v286_v31 = vld [vmem:[%s9187_s23 + $0x20] sm:$0xff]  ;;  %v448_v32 = vrot.slane %v446_v22, 7 }
  0x1e   : > { %230 = vst.msk [vmem:[#allocation2 + $0x8] sm:$0x1] %vm229_vm3, %v9074_v0  ;;  %233 = vst.msk [vmem:[#allocation2 + $0x14] sm:$0x1] %vm229_vm3, %v9074_v0  ;;  %v456_v33 = vrot.slane %v454_v24, 7  ;;  %v318_v37 = vmax.f32 %v286_v31, 0.0  ;;  %v8834_v43 = vpack.c.bf16 %v317_v30, %v317_v30 }
  0x1f   : > { %236 = vst.msk [vmem:[#allocation2 + $0x20] sm:$0x1] %vm229_vm3, %v9074_v0  ;;  %239 = vst.msk [vmem:[#allocation2 + $0x2c] sm:$0x1] %vm229_vm3, %v9074_v0  ;;  %v769_v35 = vld [vmem:[#allocation2 + $0xc] sm:$0xf]  ;;  %v451_v44 = vor.u32 %v449_v23, %v448_v32 }
  0x20   : > { %242 = vst.msk [vmem:[#allocation2 + $0x38] sm:$0x1] %vm229_vm3, %v9074_v0  ;;  %245 = vst.msk [vmem:[#allocation2 + $0x44] sm:$0x1] %vm229_vm3, %v9074_v0  ;;  %v1012_v38 = vrot.slane %v1011_v26, 4  ;;  %v1022_v40 = vrot.slane %v1021_v28, 4  ;;  %v459_v46 = vor.u32 %v457_v25, %v456_v33  ;;  %v8835_v62 = vpack.c.bf16 %v318_v37, %v318_v37 }
  0x21   : > { %248 = vst.msk [vmem:[#allocation2 + $0x50] sm:$0x1] %vm229_vm3, %v9074_v0  ;;  %251 = vst.msk [vmem:[#allocation2 + $0x5c] sm:$0x1] %vm229_vm3, %v9074_v0  ;;  %v452_v45 = vrot.slane %v448_v32, 4  ;;  %v461_v47 = vrot.slane %v456_v33, 4 }
  0x22   : > { %254 = vst.msk [vmem:[#allocation2 + $0x68] sm:$0x1] %vm229_vm3, %v9074_v0  ;;  %257 = vst.msk [vmem:[#allocation2 + $0x74] sm:$0x1] %vm229_vm3, %v9074_v0  ;;  %v287_v48 = vld [vmem:[%s9187_s23 + $0x28] sm:$0xff]  ;;  %v463_v51 = vshrl.u32 %v8833_v36, 16 }
  0x23   : > { %260 = vst.msk [vmem:[#allocation2 + $0x80] sm:$0x1] %vm229_vm3, %v9074_v0  ;;  %263 = vst.msk [vmem:[#allocation2 + $0x8c] sm:$0x1] %vm229_vm3, %v9074_v0  ;;  %v466_v52 = vshll.u32 %v8833_v36, 16  ;;  %v288_v53 = vld [vmem:[%s9187_s23 + $0x30] sm:$0xff] }
  0x24   : > { %266 = vst.msk [vmem:[#allocation2 + $0x98] sm:$0x1] %vm229_vm3, %v9074_v0  ;;  %269 = vst.msk [vmem:[#allocation2 + $0xa4] sm:$0x1] %vm229_vm3, %v9074_v0  ;;  %v289_v54 = vld [vmem:[%s9187_s23 + $0x38] sm:$0xff]  ;;  %v471_v58 = vshrl.u32 %v8834_v43, 16 }
  0x25   : > { %272 = vst.msk [vmem:[#allocation2 + $0xb0] sm:$0x1] %vm229_vm3, %v9074_v0  ;;  %275 = vst.msk [vmem:[#allocation2 + $0xbc] sm:$0x1] %vm229_vm3, %v9074_v0  ;;  %v955_v14 = vld [vmem:[#allocation2 + $0x8] sm:$0x1] }
  0x26   : > { %278 = vst.msk [vmem:[#allocation2 + $0xc8] sm:$0x1] %vm229_vm3, %v9074_v0  ;;  %281 = vst.msk [vmem:[#allocation2 + $0xd4] sm:$0x1] %vm229_vm3, %v9074_v0  ;;  %v1024_v29 = vshll.u32 %v955_v14, 16  ;;  %v465_v59 = vrot.slane %v463_v51, 7 }
  0x27   : > { %vm9195_vm7 = vmor %vm1001_vm1, %vm1002_vm2  ;;  %v775_v42 = vld [vmem:[#allocation2 + $0x14] sm:$0x1]  ;;  %v474_v60 = vshll.u32 %v8834_v43, 16  ;;  %v319_v61 = vmax.f32 %v287_v48, 0.0  ;;  %v473_v63 = vrot.slane %v471_v58, 7  ;;  %v320_v1 = vmax.f32 %v288_v53, 0.0 }
  0x28   : > { %vm9201_vm8 = vmor %vm442_vm4, %vm443_vm5  ;;  %v1026_v41 = vrot.slane %v1024_v29, 5  ;;  %v1017_v49 = vsel %vm9195_vm7, %v1012_v38, %v1016_v19  ;;  %v778_v0 = vld [vmem:[#allocation2 + $0x18] sm:$0xf]  ;;  %v321_v2 = vmax.f32 %v289_v54, 0.0  ;;  %v9234_v3 = vld [vmem:[%s9187_s23 + $0x40] sm:$0xff]  ;;  %v468_v4 = vor.u32 %v466_v52, %v465_v59 }
  0x29   : > { %vm9208_vm9 = vmand %vm226_vm0, %vm767_vm6  ;;  %1388 = vrot.lane.b32.xlu0 %v1017_v49, %s9075_s24  ;;  %v460_v55 = vsel %vm9201_vm8, %v452_v45, %v459_v46  ;;  %v469_v5 = vrot.slane %v465_v59, 4  ;;  %v782_v6 = vld [vmem:[#allocation2 + $0x20] sm:$0x1]  ;;  %v8836_v7 = vpack.c.bf16 %v319_v61, %v319_v61  ;;  %v480_v8 = vshrl.u32 %v8835_v62, 16  ;;  %v785_v25 = vld [vmem:[#allocation2 + $0x24] sm:$0xf] }
  0x2a   : > { %vm9214_vm10 = vmand %vm229_vm3, %vm442_vm4  ;;  %v1027_v50 = vsel %vm9195_vm7, %v1022_v40, %v1026_v41  ;;  %v770_v56 = vsel %vm9208_vm9, %v451_v44, %v769_v35  ;;  %772 = vst.msk [vmem:[#allocation2 + $0x10] sm:$0xf] %vm226_vm0, %v460_v55  ;;  %v476_v9 = vor.u32 %v474_v60, %v473_v63  ;;  %v478_v10 = vrot.slane %v473_v63, 4  ;;  %v789_v37 = vld [vmem:[#allocation2 + $0x2c] sm:$0x1] }
  0x2b   : > { %v776_v57 = vsel %vm9214_vm10, %v461_v47, %v775_v42  ;;  %771 = vst [vmem:[#allocation2 + $0xc] sm:$0xf] %v770_v56  ;;  %v483_v11 = vshll.u32 %v8835_v62, 16  ;;  %v8837_v12 = vpack.c.bf16 %v320_v1, %v320_v1  ;;  %v779_v13 = vsel %vm9208_vm9, %v468_v4, %v778_v0  ;;  %v792_v1 = vld [vmem:[#allocation2 + $0x30] sm:$0xf] }
  0x2c   : > { %777 = vst [vmem:[#allocation2 + $0x14] sm:$0x1] %v776_v57  ;;  %v482_v14 = vrot.slane %v480_v8, 7  ;;  %v488_v15 = vshrl.u32 %v8836_v7, 16  ;;  %v322_v16 = vmax.f32 %v9234_v3, 0.0  ;;  %v477_v17 = vsel %vm9201_vm8, %v469_v5, %v476_v9 }
  0x2d   : > { %1390 = vrot.lane.b32.xlu0 %v1027_v50, %s9075_s24  ;;  %780 = vst [vmem:[#allocation2 + $0x18] sm:$0xf] %v779_v13  ;;  %v783_v18 = vsel %vm9214_vm10, %v478_v10, %v782_v6  ;;  %v491_v19 = vshll.u32 %v8836_v7, 16  ;;  %v497_v20 = vshrl.u32 %v8837_v12, 16  ;;  %781 = vst.msk [vmem:[#allocation2 + $0x1c] sm:$0xf] %vm226_vm0, %v477_v17  ;;  %v8838_v31 = vpack.c.bf16 %v321_v2, %v321_v2 }
  0x2e   : > { %784 = vst [vmem:[#allocation2 + $0x20] sm:$0x1] %v783_v18  ;;  %v485_v22 = vor.u32 %v483_v11, %v482_v14  ;;  %v486_v23 = vrot.slane %v482_v14, 4  ;;  %v490_v24 = vrot.slane %v488_v15, 7  ;;  %v500_v26 = vshll.u32 %v8837_v12, 16  ;;  %v291_v7 = vld [vmem:[%s9187_s23 + $0x48] sm:$0xff] }
  0x2f   : > { %v499_v50 = vrot.slane %v497_v20, 7  ;;  %v505_v54 = vshrl.u32 %v8838_v31, 16  ;;  %v508_v55 = vshll.u32 %v8838_v31, 16  ;;  %vm1614_vm12 = vcmask 1046532  }
  0x30   : > { %v493_v40 = vor.u32 %v491_v19, %v490_v24  ;;  %v786_v41 = vsel %vm9208_vm9, %v485_v22, %v785_v25  ;;  %v495_v42 = vrot.slane %v490_v24, 4  ;;  %v796_v22 = vld [vmem:[#allocation2 + $0x38] sm:$0x1]  ;;  %vm9486_vm13 = vmor %vm1613_vm11, %vm1614_vm12  ;;  %vm1484_vm14 = vcmask 60448  }
  0x31   : > { %v957_v29 = vld [vmem:[#allocation2 + $0x10] sm:$0xf]  ;;  %787 = vst [vmem:[#allocation2 + $0x24] sm:$0xf] %v786_v41  ;;  %v502_v60 = vor.u32 %v500_v26, %v499_v50  ;;  %v503_v6 = vrot.slane %v499_v50, 4  ;;  %v507_v15 = vrot.slane %v505_v54, 7 }
  0x32   : > { %v956_v28 = vld [vmem:[#allocation2 + $0xc] sm:$0xf]  ;;  %v1038_v35 = vshll.u32 %v957_v29, 16  ;;  %v1042_v36 = vshrl.u32 %v957_v29, 16  ;;  %v494_v48 = vsel %vm9201_vm8, %v486_v23, %v493_v40  ;;  %v790_v49 = vsel %vm9214_vm10, %v495_v42, %v789_v37  ;;  %v292_v41 = vld [vmem:[%s9187_s23 + $0x50] sm:$0xff]  ;;  %v293_v42 = vld [vmem:[%s9187_s23 + $0x58] sm:$0xff] }
  0x33   : > { %v958_v30 = vld [vmem:[#allocation2 + $0x14] sm:$0x1]  ;;  %v1029_v32 = vshrl.u32 %v956_v28, 16  ;;  %v1032_v33 = vshll.u32 %v956_v28, 16  ;;  %788 = vst.msk [vmem:[#allocation2 + $0x28] sm:$0xf] %vm226_vm0, %v494_v48  ;;  %v793_v17 = vsel %vm9208_vm9, %v502_v60, %v792_v1  ;;  %v510_v28 = vor.u32 %v508_v55, %v507_v15 }
  0x34   : > { %v1048_v38 = vshll.u32 %v958_v30, 16  ;;  %v1040_v45 = vrot.slane %v1038_v35, 5  ;;  %v1044_v46 = vrot.slane %v1042_v36, 4  ;;  %v959_v53 = vld [vmem:[#allocation2 + $0x18] sm:$0xf]  ;;  %v323_v23 = vmax.f32 %v291_v7, 0.0 }
  0x35   : > { %v1031_v43 = vrot.slane %v1029_v32, 4  ;;  %v1034_v44 = vrot.slane %v1032_v33, 5  ;;  %791 = vst [vmem:[#allocation2 + $0x2c] sm:$0x1] %v790_v49  ;;  %v960_v56 = vld [vmem:[#allocation2 + $0x1c] sm:$0xf]  ;;  %v8839_v30 = vpack.c.bf16 %v322_v16, %v322_v16  ;;  %v511_v40 = vsel %vm9201_vm8, %v503_v6, %v510_v28 }
  0x36   : > { %v1050_v47 = vrot.slane %v1048_v38, 5  ;;  %v1045_v52 = vor.u32 %v1044_v46, %v1040_v45  ;;  %v1053_v57 = vshrl.u32 %v959_v53, 16  ;;  %v1056_v58 = vshll.u32 %v959_v53, 16  ;;  %v961_v59 = vld [vmem:[#allocation2 + $0x20] sm:$0x1]  ;;  %v295_v28 = vld [vmem:[%s9187_s23 + $0x68] sm:$0xff] }
  0x37   : > { %v1035_v51 = vor.u32 %v1034_v44, %v1031_v43  ;;  %v1062_v63 = vshll.u32 %v960_v56, 16  ;;  %v1066_v0 = vshrl.u32 %v960_v56, 16  ;;  %v1072_v5 = vshll.u32 %v961_v59, 16  ;;  %794 = vst [vmem:[#allocation2 + $0x30] sm:$0xf] %v793_v17 }
  0x38   : > { %v1046_v62 = vrot.slane %v1045_v52, 4  ;;  %v1055_v2 = vrot.slane %v1053_v57, 4  ;;  %v1058_v4 = vrot.slane %v1056_v58, 5  ;;  %v962_v14 = vld [vmem:[#allocation2 + $0x24] sm:$0xf]  ;;  %v512_v29 = vrot.slane %v507_v15, 4 }
  0x39   : > { %v1036_v61 = vrot.slane %v1035_v51, 4  ;;  %v1064_v10 = vrot.slane %v1062_v63, 5  ;;  %v1068_v11 = vrot.slane %v1066_v0, 4  ;;  %v1074_v13 = vrot.slane %v1072_v5, 5  ;;  %795 = vst.msk [vmem:[#allocation2 + $0x34] sm:$0xf] %vm226_vm0, %v511_v40 }
  0x3a   : > { %v1051_v9 = vsel %vm9195_vm7, %v1046_v62, %v1050_v47  ;;  %v1059_v12 = vor.u32 %v1058_v4, %v1055_v2  ;;  %v1077_v19 = vshrl.u32 %v962_v14, 16  ;;  %v1080_v20 = vshll.u32 %v962_v14, 16  ;;  %v963_v25 = vld [vmem:[#allocation2 + $0x28] sm:$0xf]  ;;  %v803_v6 = vld [vmem:[#allocation2 + $0x44] sm:$0x1] }
  0x3b   : > { %v1041_v8 = vsel %vm9195_vm7, %v1036_v61, %v1040_v45  ;;  %v1069_v18 = vor.u32 %v1068_v11, %v1064_v10  ;;  %v1086_v35 = vshll.u32 %v963_v25, 16  ;;  %v1090_v37 = vshrl.u32 %v963_v25, 16  ;;  %v799_v61 = vld [vmem:[#allocation2 + $0x3c] sm:$0xf]  ;;  %v806_v25 = vld [vmem:[#allocation2 + $0x48] sm:$0xf] }
  0x3c   : > { %1392 = vrot.lane.b32.xlu1 %v1041_v8, %s9075_s24  ;;  %v1060_v24 = vrot.slane %v1059_v12, 4  ;;  %v964_v26 = vld [vmem:[#allocation2 + $0x2c] sm:$0x1]  ;;  %v1079_v32 = vrot.slane %v1077_v19, 4  ;;  %v1082_v33 = vrot.slane %v1080_v20, 5  ;;  %v797_v44 = vsel %vm9214_vm10, %v512_v29, %v796_v22 }
  0x3d   : > { %v1070_v31 = vrot.slane %v1069_v18, 4  ;;  %v1096_v38 = vshll.u32 %v964_v26, 16  ;;  %v1088_v43 = vrot.slane %v1086_v35, 5  ;;  %v1092_v45 = vrot.slane %v1090_v37, 4  ;;  %798 = vst [vmem:[#allocation2 + $0x38] sm:$0x1] %v797_v44 }
  0x3e   : > { %v1065_v36 = vsel %vm9195_vm7, %v1060_v24, %v1064_v10  ;;  %v1083_v16 = vor.u32 %v1082_v33, %v1079_v32  ;;  %v8840_v47 = vpack.c.bf16 %v323_v23, %v323_v23  ;;  %v514_v48 = vshrl.u32 %v8839_v30, 16  ;;  %v965_v54 = vld [vmem:[#allocation2 + $0x30] sm:$0xf]  ;;  %v294_v26 = vld [vmem:[%s9187_s23 + $0x60] sm:$0xff]  ;;  %v297_v35 = vld [vmem:[%s9187_s23 + $0x78] sm:$0xff] }
  0x3f   : > { %1396 = vrot.lane.b32.xlu0 %v1065_v36, %s9075_s24  ;;  %v1075_v3 = vsel %vm9195_vm7, %v1070_v31, %v1074_v13  ;;  %v1098_v46 = vrot.slane %v1096_v38, 5  ;;  %v517_v50 = vshll.u32 %v8839_v30, 16  ;;  %v324_v51 = vmax.f32 %v292_v41, 0.0  ;;  %v296_v33 = vld [vmem:[%s9187_s23 + $0x70] sm:$0xff]  ;;  %v9295_v41 = vld [vmem:[%s9187_s23 + $0x80] sm:$0xff] }
  0x40   : > { %1394 = vrot.lane.b32.xlu1 %v1051_v9, %s9075_s24  ;;  %v1084_v49 = vrot.slane %v1083_v16, 4  ;;  %v325_v52 = vmax.f32 %v293_v42, 0.0  ;;  %v1093_v53 = vor.u32 %v1092_v45, %v1088_v43  ;;  %v516_v55 = vrot.slane %v514_v48, 7  ;;  %v966_v10 = vld [vmem:[#allocation2 + $0x34] sm:$0xf] }
  0x41   : > { %v522_v56 = vshrl.u32 %v8840_v47, 16  ;;  %v525_v57 = vshll.u32 %v8840_v47, 16  ;;  %v1101_v59 = vshrl.u32 %v965_v54, 16  ;;  %v1104_v60 = vshll.u32 %v965_v54, 16 }
  0x42   : > { %v1089_v58 = vsel %vm9195_vm7, %v1084_v49, %v1088_v43  ;;  %v8841_v62 = vpack.c.bf16 %v324_v51, %v324_v51  ;;  %v1094_v63 = vrot.slane %v1093_v53, 4  ;;  %v519_v0 = vor.u32 %v517_v50, %v516_v55  ;;  %v810_v49 = vld [vmem:[#allocation2 + $0x50] sm:$0x1] }
  0x43   : > { %1400 = vrot.lane.b32.xlu0 %v1089_v58, %s9075_s24  ;;  %v520_v1 = vrot.slane %v516_v55, 4  ;;  %v524_v2 = vrot.slane %v522_v56, 7  ;;  %v1103_v4 = vrot.slane %v1101_v59, 4  ;;  %v1106_v5 = vrot.slane %v1104_v60, 5 }
  0x44   : > { %1398 = vrot.lane.b32.xlu1 %v1075_v3, %s9075_s24  ;;  %v8842_v7 = vpack.c.bf16 %v325_v52, %v325_v52  ;;  %v531_v8 = vshrl.u32 %v8841_v62, 16  ;;  %v1099_v9 = vsel %vm9195_vm7, %v1094_v63, %v1098_v46  ;;  %v800_v12 = vsel %vm9208_vm9, %v519_v0, %v799_v61  ;;  %v967_v17 = vld [vmem:[#allocation2 + $0x38] sm:$0x1] }
  0x45   : > { %v527_v11 = vor.u32 %v525_v57, %v524_v2  ;;  %v529_v13 = vrot.slane %v524_v2, 4  ;;  %v1107_v14 = vor.u32 %v1106_v5, %v1103_v4  ;;  %v1110_v15 = vshll.u32 %v966_v10, 16  ;;  %801 = vst [vmem:[#allocation2 + $0x3c] sm:$0xf] %v800_v12 }
  0x46   : > { %v1114_v18 = vshrl.u32 %v966_v10, 16  ;;  %v533_v19 = vrot.slane %v531_v8, 7  ;;  %v1120_v20 = vshll.u32 %v967_v17, 16  ;;  %v534_v24 = vshll.u32 %v8841_v62, 16  ;;  %v813_v17 = vld [vmem:[#allocation2 + $0x54] sm:$0xf] }
  0x47   : > { %v528_v22 = vsel %vm9201_vm8, %v520_v1, %v527_v11  ;;  %v804_v23 = vsel %vm9214_vm10, %v529_v13, %v803_v6  ;;  %v1108_v29 = vrot.slane %v1107_v14, 4  ;;  %v1112_v30 = vrot.slane %v1110_v15, 5 }
  0x48   : > { %1402 = vrot.lane.b32.xlu1 %v1099_v9, %s9075_s24  ;;  %v1116_v31 = vrot.slane %v1114_v18, 4  ;;  %802 = vst.msk [vmem:[#allocation2 + $0x40] sm:$0xf] %vm226_vm0, %v528_v22  ;;  %805 = vst [vmem:[#allocation2 + $0x44] sm:$0x1] %v804_v23  ;;  %v537_v32 = vrot.slane %v533_v19, 4  ;;  %v536_v37 = vor.u32 %v534_v24, %v533_v19 }
  0x49   : > { %v1122_v36 = vrot.slane %v1120_v20, 5  ;;  %v539_v38 = vshrl.u32 %v8842_v7, 16  ;;  %v542_v40 = vshll.u32 %v8842_v7, 16  ;;  %v1113_v42 = vsel %vm9195_vm7, %v1108_v29, %v1112_v30 }
  0x4a   : > { %v1117_v3 = vor.u32 %v1116_v31, %v1112_v30  ;;  %v326_v16 = vmax.f32 %v294_v26, 0.0  ;;  %v327_v43 = vmax.f32 %v295_v28, 0.0  ;;  %1404 = vrot.lane.b32.xlu0 %v1113_v42, %s9075_s24  ;;  %v807_v45 = vsel %vm9208_vm9, %v536_v37, %v806_v25  ;;  %v817_v30 = vld [vmem:[#allocation2 + $0x5c] sm:$0x1] }
  0x4b   : > { %v541_v44 = vrot.slane %v539_v38, 7  ;;  %v328_v46 = vmax.f32 %v296_v33, 0.0  ;;  %v329_v47 = vmax.f32 %v297_v35, 0.0  ;;  %808 = vst [vmem:[#allocation2 + $0x48] sm:$0xf] %v807_v45  ;;  %v330_v52 = vmax.f32 %v9295_v41, 0.0 }
  0x4c   : > { %v1118_v48 = vrot.slane %v1117_v3, 4  ;;  %v8843_v50 = vpack.c.bf16 %v326_v16, %v326_v16  ;;  %v8844_v51 = vpack.c.bf16 %v327_v43, %v327_v43  ;;  %v968_v53 = vld [vmem:[#allocation2 + $0x3c] sm:$0xf]  ;;  %v299_v43 = vld [vmem:[%s9187_s23 + $0x88] sm:$0xff]  ;;  %vm1824_vm15 = vcmask 93248  }
  0x4d   : > { %v544_v54 = vor.u32 %v542_v40, %v541_v44  ;;  %v546_v55 = vrot.slane %v541_v44, 4  ;;  %v9303_v56 = vpack.c.bf16 %v328_v46, %v328_v46  ;;  %v9305_v57 = vpack.c.bf16 %v329_v47, %v329_v47 }
  0x4e   : > { %v1123_v58 = vsel %vm9195_vm7, %v1118_v48, %v1122_v36  ;;  %v1125_v59 = vshrl.u32 %v968_v53, 16  ;;  %v1128_v60 = vshll.u32 %v968_v53, 16  ;;  %v548_v61 = vshrl.u32 %v8843_v50, 16 }
  0x4f   : > { %1406 = vrot.lane.b32.xlu1 %v1123_v58, %s9075_s24  ;;  %v969_v62 = vld [vmem:[#allocation2 + $0x40] sm:$0xf]  ;;  %v970_v63 = vld [vmem:[#allocation2 + $0x44] sm:$0x1]  ;;  %v545_v0 = vsel %vm9201_vm8, %v537_v32, %v544_v54  ;;  %v811_v1 = vsel %vm9214_vm10, %v546_v55, %v810_v49  ;;  %v551_v2 = vshll.u32 %v8843_v50, 16  ;;  %v556_v4 = vshrl.u32 %v8844_v51, 16 }
  0x50   : > { %v1127_v5 = vrot.slane %v1125_v59, 4  ;;  %v1130_v6 = vrot.slane %v1128_v60, 5  ;;  %v1134_v7 = vshll.u32 %v969_v62, 16  ;;  %v1138_v8 = vshrl.u32 %v969_v62, 16  ;;  %809 = vst.msk [vmem:[#allocation2 + $0x4c] sm:$0xf] %vm226_vm0, %v545_v0 }
  0x51   : > { %812 = vst [vmem:[#allocation2 + $0x50] sm:$0x1] %v811_v1  ;;  %v1144_v9 = vshll.u32 %v970_v63, 16  ;;  %v550_v10 = vrot.slane %v548_v61, 7  ;;  %v558_v11 = vrot.slane %v556_v4, 7  ;;  %v559_v12 = vshll.u32 %v8844_v51, 16 }
  0x52   : > { %v1131_v13 = vor.u32 %v1130_v6, %v1127_v5  ;;  %v1136_v14 = vrot.slane %v1134_v7, 5  ;;  %v1140_v15 = vrot.slane %v1138_v8, 4  ;;  %v565_v18 = vshrl.u32 %v9303_v56, 16  ;;  %v971_v20 = vld [vmem:[#allocation2 + $0x48] sm:$0xf] }
  0x53   : > { %v1146_v19 = vrot.slane %v1144_v9, 5  ;;  %v553_v22 = vor.u32 %v551_v2, %v550_v10  ;;  %v554_v23 = vrot.slane %v550_v10, 4  ;;  %v561_v24 = vor.u32 %v559_v12, %v558_v11  ;;  %v820_v49 = vld [vmem:[#allocation2 + $0x60] sm:$0xf]  ;;  %v824_v2 = vld [vmem:[#allocation2 + $0x68] sm:$0x1] }
  0x54   : > { %v1132_v25 = vrot.slane %v1131_v13, 4  ;;  %v1141_v26 = vor.u32 %v1140_v15, %v1136_v14  ;;  %v1149_v28 = vshrl.u32 %v971_v20, 16  ;;  %v1152_v29 = vshll.u32 %v971_v20, 16  ;;  %v827_v20 = vld [vmem:[#allocation2 + $0x6c] sm:$0xf] }
  0x55   : > { %v562_v31 = vsel %vm9201_vm8, %v554_v23, %v561_v24  ;;  %v814_v32 = vsel %vm9208_vm9, %v553_v22, %v813_v17  ;;  %v563_v33 = vrot.slane %v558_v11, 4  ;;  %v567_v35 = vrot.slane %v565_v18, 7  ;;  %v300_v22 = vld [vmem:[%s9187_s23 + $0x90] sm:$0xff] }
  0x56   : > { %v1137_v36 = vsel %vm9195_vm7, %v1132_v25, %v1136_v14  ;;  %v1142_v37 = vrot.slane %v1141_v26, 4  ;;  %v1151_v38 = vrot.slane %v1149_v28, 4  ;;  %v1154_v40 = vrot.slane %v1152_v29, 5  ;;  %815 = vst [vmem:[#allocation2 + $0x54] sm:$0xf] %v814_v32  ;;  %v301_v28 = vld [vmem:[%s9187_s23 + $0x98] sm:$0xff] }
  0x57   : > { %816 = vst.msk [vmem:[#allocation2 + $0x58] sm:$0xf] %vm226_vm0, %v562_v31  ;;  %1408 = vrot.lane.b32.xlu0 %v1137_v36, %s9075_s24  ;;  %v972_v41 = vld [vmem:[#allocation2 + $0x4c] sm:$0xf]  ;;  %v818_v3 = vsel %vm9214_vm10, %v563_v33, %v817_v30  ;;  %v568_v16 = vshll.u32 %v9303_v56, 16  ;;  %v8847_v44 = vpack.c.bf16 %v330_v52, %v330_v52  ;;  %v573_v53 = vshrl.u32 %v9305_v57, 16 }
  0x58   : > { %v973_v42 = vld [vmem:[#allocation2 + $0x50] sm:$0x1]  ;;  %v1147_v45 = vsel %vm9195_vm7, %v1142_v37, %v1146_v19  ;;  %v1155_v46 = vor.u32 %v1154_v40, %v1151_v38  ;;  %v1158_v47 = vshll.u32 %v972_v41, 16  ;;  %v1162_v48 = vshrl.u32 %v972_v41, 16  ;;  %819 = vst [vmem:[#allocation2 + $0x5c] sm:$0x1] %v818_v3 }
  0x59   : > { %1410 = vrot.lane.b32.xlu1 %v1147_v45, %s9075_s24  ;;  %v1168_v50 = vshll.u32 %v973_v42, 16  ;;  %v570_v51 = vor.u32 %v568_v16, %v567_v35  ;;  %v576_v54 = vshll.u32 %v9305_v57, 16  ;;  %v331_v52 = vmax.f32 %v299_v43, 0.0  ;;  %v889_v33 = vld [vmem:[#allocation2] sm:$0xf] }
  0x5a   : > { %v1156_v55 = vrot.slane %v1155_v46, 4  ;;  %v1160_v56 = vrot.slane %v1158_v47, 5  ;;  %v1164_v58 = vrot.slane %v1162_v48, 4  ;;  %v571_v59 = vrot.slane %v567_v35, 4  ;;  %921 = vst.msk [vmem:[#allocation3] sm:$0xf] %vm226_vm0, %v889_v33 }
  0x5b   : > { %v575_v60 = vrot.slane %v573_v53, 7  ;;  %v821_v61 = vsel %vm9208_vm9, %v570_v51, %v820_v49  ;;  %v582_v62 = vshrl.u32 %v8847_v44, 16  ;;  %v1170_v1 = vrot.slane %v1168_v50, 5  ;;  %v891_v40 = vld [vmem:[#allocation2 + $0xc] sm:$0xf] }
  0x5c   : > { %v1161_v63 = vsel %vm9195_vm7, %v1156_v55, %v1160_v56  ;;  %v1165_v0 = vor.u32 %v1164_v58, %v1160_v56  ;;  %822 = vst [vmem:[#allocation2 + $0x60] sm:$0xf] %v821_v61  ;;  %v585_v4 = vshll.u32 %v8847_v44, 16  ;;  %v8848_v8 = vpack.c.bf16 %v331_v52, %v331_v52  ;;  %923 = vst.msk [vmem:[#allocation3 + $0x8] sm:$0xf] %vm226_vm0, %v891_v40 }
  0x5d   : > { %1412 = vrot.lane.b32.xlu0 %v1161_v63, %s9075_s24  ;;  %v974_v57 = vld [vmem:[#allocation2 + $0x54] sm:$0xf]  ;;  %v578_v6 = vor.u32 %v576_v54, %v575_v60  ;;  %v580_v7 = vrot.slane %v575_v60, 4  ;;  %v584_v9 = vrot.slane %v582_v62, 7  ;;  %v332_v38 = vmax.f32 %v300_v22, 0.0  ;;  %v302_v60 = vld [vmem:[%s9187_s23 + $0xa0] sm:$0xff] }
  0x5e   : > { %v975_v5 = vld [vmem:[#allocation2 + $0x58] sm:$0xf]  ;;  %v1166_v10 = vrot.slane %v1165_v0, 4  ;;  %v1173_v11 = vshrl.u32 %v974_v57, 16  ;;  %v1176_v12 = vshll.u32 %v974_v57, 16  ;;  %v590_v32 = vshrl.u32 %v8848_v8, 16 }
  0x5f   : > { %v1182_v13 = vshll.u32 %v975_v5, 16  ;;  %v976_v14 = vld [vmem:[#allocation2 + $0x5c] sm:$0x1]  ;;  %v1186_v15 = vshrl.u32 %v975_v5, 16  ;;  %v579_v17 = vsel %vm9201_vm8, %v571_v59, %v578_v6  ;;  %v825_v18 = vsel %vm9214_vm10, %v580_v7, %v824_v2  ;;  %v831_v47 = vld [vmem:[#allocation2 + $0x74] sm:$0x1] }
  0x60   : > { %v587_v19 = vor.u32 %v585_v4, %v584_v9  ;;  %v1171_v23 = vsel %vm9195_vm7, %v1166_v10, %v1170_v1  ;;  %v1175_v24 = vrot.slane %v1173_v11, 4  ;;  %v1178_v25 = vrot.slane %v1176_v12, 5  ;;  %823 = vst.msk [vmem:[#allocation2 + $0x64] sm:$0xf] %vm226_vm0, %v579_v17  ;;  %826 = vst [vmem:[#allocation2 + $0x68] sm:$0x1] %v825_v18 }
  0x61   : > { %v1184_v26 = vrot.slane %v1182_v13, 5  ;;  %1414 = vrot.lane.b32.xlu1 %v1171_v23, %s9075_s24  ;;  %v1188_v29 = vrot.slane %v1186_v15, 4  ;;  %v1192_v30 = vshll.u32 %v976_v14, 16  ;;  %v588_v31 = vrot.slane %v584_v9, 4  ;;  %v890_v54 = vld [vmem:[#allocation2 + $0x4] sm:$0xf] }
  0x62   : > { %v1179_v35 = vor.u32 %v1178_v25, %v1175_v24  ;;  %v593_v36 = vshll.u32 %v8848_v8, 16  ;;  %v828_v37 = vsel %vm9208_vm9, %v587_v19, %v827_v20  ;;  %v592_v16 = vrot.slane %v590_v32, 7  ;;  %v892_v55 = vld [vmem:[#allocation2 + $0x10] sm:$0xf]  ;;  %922 = vst.msk [vmem:[#allocation3 + $0x4] sm:$0xf] %vm226_vm0, %v890_v54 }
  0x63   : > { %v1189_v41 = vor.u32 %v1188_v29, %v1184_v26  ;;  %v1194_v42 = vrot.slane %v1192_v30, 5  ;;  %v977_v3 = vld [vmem:[#allocation2 + $0x60] sm:$0xf]  ;;  %829 = vst [vmem:[#allocation2 + $0x6c] sm:$0xf] %v828_v37  ;;  %v333_v43 = vmax.f32 %v301_v28, 0.0  ;;  %v8849_v48 = vpack.c.bf16 %v332_v38, %v332_v38 }
  0x64   : > { %v1180_v44 = vrot.slane %v1179_v35, 4  ;;  %v1197_v45 = vshrl.u32 %v977_v3, 16  ;;  %v1200_v46 = vshll.u32 %v977_v3, 16  ;;  %v595_v50 = vor.u32 %v593_v36, %v592_v16  ;;  %924 = vst.msk [vmem:[#allocation3 + $0xc] sm:$0xf] %vm226_vm0, %v892_v55  ;;  %v303_v11 = vld [vmem:[%s9187_s23 + $0xa8] sm:$0xff] }
  0x65   : > { %v1190_v49 = vrot.slane %v1189_v41, 4  ;;  %v597_v51 = vrot.slane %v592_v16, 4  ;;  %v8850_v53 = vpack.c.bf16 %v333_v43, %v333_v43  ;;  %v599_v59 = vshrl.u32 %v8849_v48, 16  ;;  %v834_v7 = vld [vmem:[#allocation2 + $0x78] sm:$0xf] }
  0x66   : > { %v1185_v56 = vsel %vm9195_vm7, %v1180_v44, %v1184_v26  ;;  %v1199_v58 = vrot.slane %v1197_v45, 4  ;;  %v1202_v52 = vrot.slane %v1200_v46, 5  ;;  %v596_v0 = vsel %vm9201_vm8, %v588_v31, %v595_v50  ;;  %v893_v29 = vld [vmem:[#allocation2 + $0x18] sm:$0xf]  ;;  %v894_v30 = vld [vmem:[#allocation2 + $0x1c] sm:$0xf] }
  0x67   : > { %1416 = vrot.lane.b32.xlu0 %v1185_v56, %s9075_s24  ;;  %v1195_v61 = vsel %vm9195_vm7, %v1190_v49, %v1194_v42  ;;  %v978_v62 = vld [vmem:[#allocation2 + $0x64] sm:$0xf]  ;;  %v979_v63 = vld [vmem:[#allocation2 + $0x68] sm:$0x1]  ;;  %v832_v1 = vsel %vm9214_vm10, %v597_v51, %v831_v47  ;;  %v602_v2 = vshll.u32 %v8849_v48, 16  ;;  %v601_v8 = vrot.slane %v599_v59, 7 }
  0x68   : > { %1418 = vrot.lane.b32.xlu1 %v1195_v61, %s9075_s24  ;;  %v1203_v4 = vor.u32 %v1202_v52, %v1199_v58  ;;  %v1206_v57 = vshll.u32 %v978_v62, 16  ;;  %v1210_v5 = vshrl.u32 %v978_v62, 16  ;;  %v1216_v6 = vshll.u32 %v979_v63, 16  ;;  %830 = vst.msk [vmem:[#allocation2 + $0x70] sm:$0xf] %vm226_vm0, %v596_v0  ;;  %v305_v52 = vld [vmem:[%s9187_s23 + $0xb8] sm:$0xff] }
  0x69   : > { %833 = vst [vmem:[#allocation2 + $0x74] sm:$0x1] %v832_v1  ;;  %v607_v9 = vshrl.u32 %v8850_v53, 16  ;;  %v610_v10 = vshll.u32 %v8850_v53, 16  ;;  %v334_v12 = vmax.f32 %v302_v60, 0.0  ;;  %v604_v22 = vor.u32 %v602_v2, %v601_v8  ;;  %v304_v53 = vld [vmem:[%s9187_s23 + $0xb0] sm:$0xff] }
  0x6a   : > { %v1204_v13 = vrot.slane %v1203_v4, 4  ;;  %v1208_v14 = vrot.slane %v1206_v57, 5  ;;  %v1212_v15 = vrot.slane %v1210_v5, 4  ;;  %v1218_v17 = vrot.slane %v1216_v6, 5  ;;  %v980_v18 = vld [vmem:[#allocation2 + $0x6c] sm:$0xf] }
  0x6b   : > { %v1221_v19 = vshrl.u32 %v980_v18, 16  ;;  %v1224_v20 = vshll.u32 %v980_v18, 16  ;;  %v605_v23 = vrot.slane %v601_v8, 4  ;;  %v609_v26 = vrot.slane %v607_v9, 7  ;;  %925 = vst.msk [vmem:[#allocation3 + $0x10] sm:$0xf] %vm226_vm0, %v893_v29 }
  0x6c   : > { %v1209_v24 = vsel %vm9195_vm7, %v1204_v13, %v1208_v14  ;;  %v1213_v25 = vor.u32 %v1212_v15, %v1208_v14  ;;  %v335_v28 = vmax.f32 %v303_v11, 0.0  ;;  %v835_v33 = vsel %vm9208_vm9, %v604_v22, %v834_v7  ;;  %926 = vst.msk [vmem:[#allocation3 + $0x14] sm:$0xf] %vm226_vm0, %v894_v30  ;;  %v895_v36 = vld [vmem:[#allocation2 + $0x24] sm:$0xf]  ;;  %v9387_v60 = vld [vmem:[%s9187_s23 + $0xc8] sm:$0xff] }
  0x6d   : > { %1420 = vrot.lane.b32.xlu0 %v1209_v24, %s9075_s24  ;;  %v1223_v31 = vrot.slane %v1221_v19, 4  ;;  %v1226_v32 = vrot.slane %v1224_v20, 5  ;;  %v8851_v35 = vpack.c.bf16 %v334_v12, %v334_v12  ;;  %v896_v37 = vld [vmem:[#allocation2 + $0x28] sm:$0xf]  ;;  %v612_v40 = vor.u32 %v610_v10, %v609_v26  ;;  %836 = vst [vmem:[#allocation2 + $0x78] sm:$0xf] %v835_v33 }
  0x6e   : > { %v1214_v38 = vrot.slane %v1213_v25, 4  ;;  %v614_v41 = vrot.slane %v609_v26, 4  ;;  %v838_v42 = vld [vmem:[#allocation2 + $0x80] sm:$0x1]  ;;  %v8852_v3 = vpack.c.bf16 %v335_v28, %v335_v28  ;;  %927 = vst.msk [vmem:[#allocation3 + $0x18] sm:$0xf] %vm226_vm0, %v895_v36 }
  0x6f   : > { %928 = vst.msk [vmem:[#allocation3 + $0x1c] sm:$0xf] %vm226_vm0, %v896_v37  ;;  %v981_v16 = vld [vmem:[#allocation2 + $0x70] sm:$0xf]  ;;  %v1227_v43 = vor.u32 %v1226_v32, %v1223_v31  ;;  %v616_v45 = vshrl.u32 %v8851_v35, 16  ;;  %v619_v46 = vshll.u32 %v8851_v35, 16  ;;  %v613_v55 = vsel %vm9201_vm8, %v605_v23, %v612_v40 }
  0x70   : > { %v982_v44 = vld [vmem:[#allocation2 + $0x74] sm:$0x1]  ;;  %v1219_v47 = vsel %vm9195_vm7, %v1214_v38, %v1218_v17  ;;  %v1230_v48 = vshll.u32 %v981_v16, 16  ;;  %v1234_v49 = vshrl.u32 %v981_v16, 16  ;;  %v841_v51 = vld [vmem:[#allocation2 + $0x84] sm:$0xf]  ;;  %v839_v56 = vsel %vm9214_vm10, %v614_v41, %v838_v42 }
  0x71   : > { %v1240_v50 = vshll.u32 %v982_v44, 16  ;;  %1422 = vrot.lane.b32.xlu1 %v1219_v47, %s9075_s24  ;;  %v1228_v54 = vrot.slane %v1227_v43, 4  ;;  %v618_v58 = vrot.slane %v616_v45, 7  ;;  %v306_v59 = vld [vmem:[%s9187_s23 + $0xc0] sm:$0xff]  ;;  %837 = vst.msk [vmem:[#allocation2 + $0x7c] sm:$0xf] %vm226_vm0, %v613_v55 }
  0x72   : > { %v1232_v61 = vrot.slane %v1230_v48, 5  ;;  %v1236_v62 = vrot.slane %v1234_v49, 4  ;;  %840 = vst [vmem:[#allocation2 + $0x80] sm:$0x1] %v839_v56  ;;  %v624_v0 = vshrl.u32 %v8852_v3, 16  ;;  %v627_v57 = vshll.u32 %v8852_v3, 16 }
  0x73   : > { %v1242_v63 = vrot.slane %v1240_v50, 5  ;;  %v897_v1 = vld [vmem:[#allocation2 + $0x30] sm:$0xf]  ;;  %v621_v2 = vor.u32 %v619_v46, %v618_v58  ;;  %v622_v4 = vrot.slane %v618_v58, 4  ;;  %v336_v5 = vmax.f32 %v304_v53, 0.0 }
  0x74   : > { %929 = vst.msk [vmem:[#allocation3 + $0x20] sm:$0xf] %vm226_vm0, %v897_v1  ;;  %v898_v6 = vld [vmem:[#allocation2 + $0x34] sm:$0xf]  ;;  %v1233_v7 = vsel %vm9195_vm7, %v1228_v54, %v1232_v61  ;;  %v1237_v8 = vor.u32 %v1236_v62, %v1232_v61  ;;  %v626_v9 = vrot.slane %v624_v0, 7  ;;  %v337_v10 = vmax.f32 %v305_v52, 0.0 }
  0x75   : > { %930 = vst.msk [vmem:[#allocation3 + $0x24] sm:$0xf] %vm226_vm0, %v898_v6  ;;  %1424 = vrot.lane.b32.xlu0 %v1233_v7, %s9075_s24  ;;  %v983_v11 = vld [vmem:[#allocation2 + $0x78] sm:$0xf]  ;;  %v842_v12 = vsel %vm9208_vm9, %v621_v2, %v841_v51  ;;  %v845_v13 = vld [vmem:[#allocation2 + $0x8c] sm:$0x1]  ;;  %v8853_v14 = vpack.c.bf16 %v336_v5, %v336_v5 }
  0x76   : > { %v338_v15 = vmax.f32 %v306_v59, 0.0  ;;  %v339_v17 = vmax.f32 %v9387_v60, 0.0  ;;  %v1238_v18 = vrot.slane %v1237_v8, 4  ;;  %v1245_v19 = vshrl.u32 %v983_v11, 16  ;;  %843 = vst [vmem:[#allocation2 + $0x84] sm:$0xf] %v842_v12 }
  0x77   : > { %v1248_v20 = vshll.u32 %v983_v11, 16  ;;  %v629_v22 = vor.u32 %v627_v57, %v626_v9  ;;  %v899_v23 = vld [vmem:[#allocation2 + $0x3c] sm:$0xf]  ;;  %v631_v24 = vrot.slane %v626_v9, 4  ;;  %v8854_v25 = vpack.c.bf16 %v337_v10, %v337_v10  ;;  %v900_v29 = vld [vmem:[#allocation2 + $0x40] sm:$0xf] }
  0x78   : > { %v633_v26 = vshrl.u32 %v8853_v14, 16  ;;  %v636_v28 = vshll.u32 %v8853_v14, 16  ;;  %931 = vst.msk [vmem:[#allocation3 + $0x28] sm:$0xf] %vm226_vm0, %v899_v23  ;;  %v1243_v30 = vsel %vm9195_vm7, %v1238_v18, %v1242_v63  ;;  %v1247_v31 = vrot.slane %v1245_v19, 4 }
  0x79   : > { %v1250_v32 = vrot.slane %v1248_v20, 5  ;;  %v630_v33 = vsel %vm9201_vm8, %v622_v4, %v629_v22  ;;  %932 = vst.msk [vmem:[#allocation3 + $0x2c] sm:$0xf] %vm226_vm0, %v900_v29  ;;  %1426 = vrot.lane.b32.xlu1 %v1243_v30, %s9075_s24  ;;  %v984_v35 = vld [vmem:[#allocation2 + $0x7c] sm:$0xf]  ;;  %v846_v37 = vsel %vm9214_vm10, %v631_v24, %v845_v13  ;;  %v641_v40 = vshrl.u32 %v8854_v25, 16 }
  0x7a   : > { %v985_v36 = vld [vmem:[#allocation2 + $0x80] sm:$0x1]  ;;  %844 = vst.msk [vmem:[#allocation2 + $0x88] sm:$0xf] %vm226_vm0, %v630_v33  ;;  %v635_v38 = vrot.slane %v633_v26, 7  ;;  %v8855_v41 = vpack.c.bf16 %v338_v15, %v338_v15  ;;  %v1254_v3 = vshll.u32 %v984_v35, 16  ;;  %v8856_v60 = vpack.c.bf16 %v339_v17, %v339_v17 }
  0x7b   : > { %v1251_v42 = vor.u32 %v1250_v32, %v1247_v31  ;;  %v1258_v16 = vshrl.u32 %v984_v35, 16  ;;  %v1264_v43 = vshll.u32 %v985_v36, 16  ;;  %847 = vst [vmem:[#allocation2 + $0x8c] sm:$0x1] %v846_v37  ;;  %v848_v44 = vld [vmem:[#allocation2 + $0x90] sm:$0xf] }
  0x7c   : > { %v638_v45 = vor.u32 %v636_v28, %v635_v38  ;;  %v639_v46 = vrot.slane %v635_v38, 4  ;;  %v643_v47 = vrot.slane %v641_v40, 7  ;;  %v644_v48 = vshll.u32 %v8854_v25, 16  ;;  %v852_v49 = vld [vmem:[#allocation2 + $0x98] sm:$0x1]  ;;  %v308_v24 = vld [vmem:[%s9187_s23 + $0xd0] sm:$0xff] }
  0x7d   : > { %v1252_v50 = vrot.slane %v1251_v42, 4  ;;  %v1256_v51 = vrot.slane %v1254_v3, 5  ;;  %v1260_v53 = vrot.slane %v1258_v16, 4  ;;  %v1266_v54 = vrot.slane %v1264_v43, 5  ;;  %v901_v55 = vld [vmem:[#allocation2 + $0x48] sm:$0xf] }
  0x7e   : > { %v986_v56 = vld [vmem:[#allocation2 + $0x84] sm:$0xf]  ;;  %v646_v58 = vor.u32 %v644_v48, %v643_v47  ;;  %v849_v52 = vsel %vm9208_vm9, %v638_v45, %v848_v44  ;;  %v648_v59 = vrot.slane %v643_v47, 4  ;;  %933 = vst.msk [vmem:[#allocation3 + $0x30] sm:$0xf] %vm226_vm0, %v901_v55  ;;  %v650_v57 = vshrl.u32 %v8855_v41, 16 }
  0x7f   : > { %v1257_v61 = vsel %vm9195_vm7, %v1252_v50, %v1256_v51  ;;  %v1261_v62 = vor.u32 %v1260_v53, %v1256_v51  ;;  %v1269_v63 = vshrl.u32 %v986_v56, 16  ;;  %v1272_v0 = vshll.u32 %v986_v56, 16  ;;  %850 = vst [vmem:[#allocation2 + $0x90] sm:$0xf] %v849_v52  ;;  %v902_v1 = vld [vmem:[#allocation2 + $0x4c] sm:$0xf] }
  0x80   : > { %1428 = vrot.lane.b32.xlu0 %v1257_v61, %s9075_s24  ;;  %v647_v2 = vsel %vm9201_vm8, %v639_v46, %v646_v58  ;;  %v853_v4 = vsel %vm9214_vm10, %v648_v59, %v852_v49  ;;  %v653_v5 = vshll.u32 %v8855_v41, 16  ;;  %934 = vst.msk [vmem:[#allocation3 + $0x34] sm:$0xf] %vm226_vm0, %v902_v1  ;;  %v903_v6 = vld [vmem:[#allocation2 + $0x54] sm:$0xf]  ;;  %v658_v11 = vshrl.u32 %v8856_v60, 16 }
  0x81   : > { %v1262_v7 = vrot.slane %v1261_v62, 4  ;;  %v987_v8 = vld [vmem:[#allocation2 + $0x88] sm:$0xf]  ;;  %v1271_v9 = vrot.slane %v1269_v63, 4  ;;  %v1274_v10 = vrot.slane %v1272_v0, 5  ;;  %v652_v15 = vrot.slane %v650_v57, 7 }
  0x82   : > { %851 = vst.msk [vmem:[#allocation2 + $0x94] sm:$0xf] %vm226_vm0, %v647_v2  ;;  %854 = vst [vmem:[#allocation2 + $0x98] sm:$0x1] %v853_v4  ;;  %v1278_v12 = vshll.u32 %v987_v8, 16  ;;  %v1282_v14 = vshrl.u32 %v987_v8, 16 }
  0x83   : > { %935 = vst.msk [vmem:[#allocation3 + $0x38] sm:$0xf] %vm226_vm0, %v903_v6  ;;  %v988_v13 = vld [vmem:[#allocation2 + $0x8c] sm:$0x1]  ;;  %v661_v17 = vshll.u32 %v8856_v60, 16  ;;  %v1267_v18 = vsel %vm9195_vm7, %v1262_v7, %v1266_v54  ;;  %v1275_v19 = vor.u32 %v1274_v10, %v1271_v9  ;;  %v660_v22 = vrot.slane %v658_v11, 7 }
  0x84   : > { %v1288_v20 = vshll.u32 %v988_v13, 16  ;;  %v855_v23 = vld [vmem:[#allocation2 + $0x9c] sm:$0xf]  ;;  %1430 = vrot.lane.b32.xlu1 %v1267_v18, %s9075_s24  ;;  %v1280_v26 = vrot.slane %v1278_v12, 5  ;;  %v1284_v28 = vrot.slane %v1282_v14, 4  ;;  %v655_v29 = vor.u32 %v653_v5, %v652_v15  ;;  %v310_v52 = vld [vmem:[%s9187_s23 + $0xe0] sm:$0xff] }
  0x85   : > { %v309_v25 = vld [vmem:[%s9187_s23 + $0xd8] sm:$0xff]  ;;  %v656_v30 = vrot.slane %v652_v15, 4  ;;  %v1276_v32 = vrot.slane %v1275_v19, 4  ;;  %v663_v35 = vor.u32 %v661_v17, %v660_v22  ;;  %v665_v36 = vrot.slane %v660_v22, 4  ;;  %v859_v37 = vld [vmem:[#allocation2 + $0xa4] sm:$0x1] }
  0x86   : > { %v904_v31 = vld [vmem:[#allocation2 + $0x58] sm:$0xf]  ;;  %v1290_v33 = vrot.slane %v1288_v20, 5  ;;  %v1285_v38 = vor.u32 %v1284_v28, %v1280_v26  ;;  %v989_v40 = vld [vmem:[#allocation2 + $0x90] sm:$0xf]  ;;  %v856_v41 = vsel %vm9208_vm9, %v655_v29, %v855_v23  ;;  %v340_v42 = vmax.f32 %v308_v24, 0.0 }
  0x87   : > { %936 = vst.msk [vmem:[#allocation3 + $0x3c] sm:$0xf] %vm226_vm0, %v904_v31  ;;  %v341_v3 = vmax.f32 %v309_v25, 0.0  ;;  %v1281_v16 = vsel %vm9195_vm7, %v1276_v32, %v1280_v26  ;;  %v1293_v43 = vshrl.u32 %v989_v40, 16  ;;  %v1296_v44 = vshll.u32 %v989_v40, 16  ;;  %v311_v4 = vld [vmem:[%s9187_s23 + $0xe8] sm:$0xff] }
  0x88   : > { %v664_v45 = vsel %vm9201_vm8, %v656_v30, %v663_v35  ;;  %857 = vst [vmem:[#allocation2 + $0x9c] sm:$0xf] %v856_v41  ;;  %v905_v46 = vld [vmem:[#allocation2 + $0x60] sm:$0xf]  ;;  %1432 = vrot.lane.b32.xlu0 %v1281_v16, %s9075_s24  ;;  %v1286_v47 = vrot.slane %v1285_v38, 4  ;;  %v860_v50 = vsel %vm9214_vm10, %v665_v36, %v859_v37  ;;  %v8857_v51 = vpack.c.bf16 %v340_v42, %v340_v42 }
  0x89   : > { %v990_v48 = vld [vmem:[#allocation2 + $0x94] sm:$0xf]  ;;  %v991_v49 = vld [vmem:[#allocation2 + $0x98] sm:$0x1]  ;;  %858 = vst.msk [vmem:[#allocation2 + $0xa0] sm:$0xf] %vm226_vm0, %v664_v45  ;;  %v8858_v53 = vpack.c.bf16 %v341_v3, %v341_v3 }
  0x8a   : > { %937 = vst.msk [vmem:[#allocation3 + $0x40] sm:$0xf] %vm226_vm0, %v905_v46  ;;  %v1295_v54 = vrot.slane %v1293_v43, 4  ;;  %v1298_v55 = vrot.slane %v1296_v44, 5  ;;  %v1302_v56 = vshll.u32 %v990_v48, 16  ;;  %v1306_v58 = vshrl.u32 %v990_v48, 16 }
  0x8b   : > { %861 = vst [vmem:[#allocation2 + $0xa4] sm:$0x1] %v860_v50  ;;  %v1291_v59 = vsel %vm9195_vm7, %v1286_v47, %v1290_v33  ;;  %v1312_v60 = vshll.u32 %v991_v49, 16  ;;  %v667_v61 = vshrl.u32 %v8857_v51, 16  ;;  %v670_v62 = vshll.u32 %v8857_v51, 16 }
  0x8c   : > { %1434 = vrot.lane.b32.xlu1 %v1291_v59, %s9075_s24  ;;  %v1299_v63 = vor.u32 %v1298_v55, %v1295_v54  ;;  %v1304_v0 = vrot.slane %v1302_v56, 5  ;;  %v1308_v1 = vrot.slane %v1306_v58, 4  ;;  %v675_v2 = vshrl.u32 %v8858_v53, 16  ;;  %v906_v57 = vld [vmem:[#allocation2 + $0x64] sm:$0xf] }
  0x8d   : > { %v669_v5 = vrot.slane %v667_v61, 7  ;;  %v678_v6 = vshll.u32 %v8858_v53, 16  ;;  %v342_v7 = vmax.f32 %v310_v52, 0.0  ;;  %938 = vst.msk [vmem:[#allocation3 + $0x44] sm:$0xf] %vm226_vm0, %v906_v57  ;;  %v1314_v10 = vrot.slane %v1312_v60, 5 }
  0x8e   : > { %v1300_v8 = vrot.slane %v1299_v63, 4  ;;  %v1309_v9 = vor.u32 %v1308_v1, %v1304_v0  ;;  %v677_v11 = vrot.slane %v675_v2, 7  ;;  %v862_v12 = vld [vmem:[#allocation2 + $0xa8] sm:$0xf]  ;;  %v343_v17 = vmax.f32 %v311_v4, 0.0 }
  0x8f   : > { %v992_v13 = vld [vmem:[#allocation2 + $0x9c] sm:$0xf]  ;;  %v672_v14 = vor.u32 %v670_v62, %v669_v5  ;;  %v673_v15 = vrot.slane %v669_v5, 4  ;;  %v8859_v18 = vpack.c.bf16 %v342_v7, %v342_v7  ;;  %v866_v36 = vld [vmem:[#allocation2 + $0xb0] sm:$0x1]  ;;  %vm2017_vm1 = vcmask 126048  }
  0x90   : > { %v1305_v19 = vsel %vm9195_vm7, %v1300_v8, %v1304_v0  ;;  %v1310_v20 = vrot.slane %v1309_v9, 4  ;;  %v993_v22 = vld [vmem:[#allocation2 + $0xa0] sm:$0xf]  ;;  %v1317_v23 = vshrl.u32 %v992_v13, 16  ;;  %v1320_v24 = vshll.u32 %v992_v13, 16 }
  0x91   : > { %1436 = vrot.lane.b32.xlu0 %v1305_v19, %s9075_s24  ;;  %v1326_v25 = vshll.u32 %v993_v22, 16  ;;  %v1330_v28 = vshrl.u32 %v993_v22, 16  ;;  %v680_v29 = vor.u32 %v678_v6, %v677_v11  ;;  %v863_v30 = vsel %vm9208_vm9, %v672_v14, %v862_v12  ;;  %v907_v42 = vld [vmem:[#allocation2 + $0x6c] sm:$0xf]  ;;  %v908_v44 = vld [vmem:[#allocation2 + $0x70] sm:$0xf] }
  0x92   : > { %v994_v26 = vld [vmem:[#allocation2 + $0xa4] sm:$0x1]  ;;  %v1315_v31 = vsel %vm9195_vm7, %v1310_v20, %v1314_v10  ;;  %v1319_v32 = vrot.slane %v1317_v23, 4  ;;  %v1322_v33 = vrot.slane %v1320_v24, 5  ;;  %864 = vst [vmem:[#allocation2 + $0xa8] sm:$0xf] %v863_v30  ;;  %v8860_v16 = vpack.c.bf16 %v343_v17, %v343_v17 }
  0x93   : > { %v1336_v35 = vshll.u32 %v994_v26, 16  ;;  %1438 = vrot.lane.b32.xlu1 %v1315_v31, %s9075_s24  ;;  %v1328_v37 = vrot.slane %v1326_v25, 5  ;;  %v1332_v38 = vrot.slane %v1330_v28, 4  ;;  %v681_v40 = vsel %vm9201_vm8, %v673_v15, %v680_v29  ;;  %939 = vst.msk [vmem:[#allocation3 + $0x48] sm:$0xf] %vm226_vm0, %v907_v42 }
  0x94   : > { %v682_v41 = vrot.slane %v677_v11, 4  ;;  %v1323_v3 = vor.u32 %v1322_v33, %v1319_v32  ;;  %865 = vst.msk [vmem:[#allocation2 + $0xac] sm:$0xf] %vm226_vm0, %v681_v40  ;;  %v684_v43 = vshrl.u32 %v8859_v18, 16  ;;  %v687_v48 = vshll.u32 %v8859_v18, 16 }
  0x95   : > { %v1333_v45 = vor.u32 %v1332_v38, %v1328_v37  ;;  %v1338_v46 = vrot.slane %v1336_v35, 5  ;;  %940 = vst.msk [vmem:[#allocation3 + $0x4c] sm:$0xf] %vm226_vm0, %v908_v44  ;;  %v909_v49 = vld [vmem:[#allocation2 + $0x78] sm:$0xf]  ;;  %v692_v53 = vshrl.u32 %v8860_v16, 16 }
  0x96   : > { %v867_v47 = vsel %vm9214_vm10, %v682_v41, %v866_v36  ;;  %v1324_v50 = vrot.slane %v1323_v3, 4  ;;  %v686_v51 = vrot.slane %v684_v43, 7  ;;  %v695_v54 = vshll.u32 %v8860_v16, 16  ;;  %941 = vst.msk [vmem:[#allocation3 + $0x50] sm:$0xf] %vm226_vm0, %v909_v49 }
  0x97   : > { %868 = vst [vmem:[#allocation2 + $0xb0] sm:$0x1] %v867_v47  ;;  %v910_v55 = vld [vmem:[#allocation2 + $0x7c] sm:$0xf]  ;;  %v1334_v56 = vrot.slane %v1333_v45, 4  ;;  %v694_v60 = vrot.slane %v692_v53, 7 }
  0x98   : > { %v869_v58 = vld [vmem:[#allocation2 + $0xb4] sm:$0xf]  ;;  %942 = vst.msk [vmem:[#allocation3 + $0x54] sm:$0xf] %vm226_vm0, %v910_v55  ;;  %v1329_v52 = vsel %vm9195_vm7, %v1324_v50, %v1328_v37  ;;  %v689_v59 = vor.u32 %v687_v48, %v686_v51  ;;  %v911_v61 = vld [vmem:[#allocation2 + $0x84] sm:$0xf] }
  0x99   : > { %1440 = vrot.lane.b32.xlu0 %v1329_v52, %s9075_s24  ;;  %v1339_v62 = vsel %vm9195_vm7, %v1334_v56, %v1338_v46  ;;  %v995_v63 = vld [vmem:[#allocation2 + $0xa8] sm:$0xf]  ;;  %v690_v0 = vrot.slane %v686_v51, 4  ;;  %943 = vst.msk [vmem:[#allocation3 + $0x58] sm:$0xf] %vm226_vm0, %v911_v61  ;;  %v697_v4 = vor.u32 %v695_v54, %v694_v60  ;;  %v699_v8 = vrot.slane %v694_v60, 4 }
  0x9a   : > { %1442 = vrot.lane.b32.xlu1 %v1339_v62, %s9075_s24  ;;  %v1341_v1 = vshrl.u32 %v995_v63, 16  ;;  %v1344_v2 = vshll.u32 %v995_v63, 16  ;;  %v870_v57 = vsel %vm9208_vm9, %v689_v59, %v869_v58  ;;  %v873_v5 = vld [vmem:[#allocation2 + $0xbc] sm:$0x1]  ;;  %v912_v6 = vld [vmem:[#allocation2 + $0x88] sm:$0xf] }
  0x9b   : > { %v996_v7 = vld [vmem:[#allocation2 + $0xac] sm:$0xf]  ;;  %871 = vst [vmem:[#allocation2 + $0xb4] sm:$0xf] %v870_v57  ;;  %944 = vst.msk [vmem:[#allocation3 + $0x5c] sm:$0xf] %vm226_vm0, %v912_v6  ;;  %v698_v14 = vsel %vm9201_vm8, %v690_v0, %v697_v4  ;;  %v874_v15 = vsel %vm9214_vm10, %v699_v8, %v873_v5  ;;  %v1389_v45 = vpop.permute.xlu0 %1388 }
  0x9c   : > { %v1343_v9 = vrot.slane %v1341_v1, 4  ;;  %v1346_v10 = vrot.slane %v1344_v2, 5  ;;  %v1350_v11 = vshll.u32 %v996_v7, 16  ;;  %v1354_v12 = vshrl.u32 %v996_v7, 16  ;;  %872 = vst.msk [vmem:[#allocation2 + $0xb8] sm:$0xf] %vm226_vm0, %v698_v14 }
  0x9d   : > { %875 = vst [vmem:[#allocation2 + $0xbc] sm:$0x1] %v874_v15  ;;  %v913_v22 = vld [vmem:[#allocation2 + $0x90] sm:$0xf]  ;;  %v914_v26 = vld [vmem:[#allocation2 + $0x94] sm:$0xf] }
  0x9e   : > { %v997_v13 = vld [vmem:[#allocation2 + $0xb0] sm:$0x1]  ;;  %v1347_v17 = vor.u32 %v1346_v10, %v1343_v9  ;;  %v1352_v18 = vrot.slane %v1350_v11, 5  ;;  %v1356_v19 = vrot.slane %v1354_v12, 4  ;;  %945 = vst.msk [vmem:[#allocation3 + $0x60] sm:$0xf] %vm226_vm0, %v913_v22 }
  0x9f   : > { %v1360_v20 = vshll.u32 %v997_v13, 16  ;;  %946 = vst.msk [vmem:[#allocation3 + $0x64] sm:$0xf] %vm226_vm0, %v914_v26  ;;  %v1518_v35 = vld [vmem:[#allocation2 + $0x4] sm:$0xf]  ;;  %v1391_v4 = vpop.permute.xlu0 %1390  ;;  %vm2578_vm2 = vcmask 158848  }
  0xa0   : > { %v1348_v23 = vrot.slane %v1347_v17, 4  ;;  %v1357_v24 = vor.u32 %v1356_v19, %v1352_v18  ;;  %v915_v36 = vld [vmem:[#allocation2 + $0x9c] sm:$0xf]  ;;  %v916_v37 = vld [vmem:[#allocation2 + $0xa0] sm:$0xf]  ;;  %v1618_v49 = vrot.slane %v1518_v35, 5 }
  0xa1   : > { %v1362_v25 = vrot.slane %v1360_v20, 5  ;;  %947 = vst.msk [vmem:[#allocation3 + $0x68] sm:$0xf] %vm226_vm0, %v915_v36  ;;  %948 = vst.msk [vmem:[#allocation3 + $0x6c] sm:$0xf] %vm226_vm0, %v916_v37  ;;  %v312_v37 = vld [vmem:[%s9187_s23 + $0xf0] sm:$0xff] }
  0xa2   : > { %v1353_v28 = vsel %vm9195_vm7, %v1348_v23, %v1352_v18  ;;  %v1358_v29 = vrot.slane %v1357_v24, 4  ;;  %v998_v30 = vld [vmem:[#allocation2 + $0xb4] sm:$0xf]  ;;  %v1517_v44 = vld [vmem:[#allocation2] sm:$0xe]  ;;  %v1620_v1 = vrot.slane %v1618_v49, 4 }
  0xa3   : > { %1444 = vrot.lane.b32.xlu0 %v1353_v28, %s9075_s24  ;;  %v1365_v31 = vshrl.u32 %v998_v30, 16  ;;  %v1368_v32 = vshll.u32 %v998_v30, 16  ;;  %v999_v38 = vld [vmem:[#allocation2 + $0xb8] sm:$0xf]  ;;  %v1521_v50 = vld [vmem:[#allocation2 + $0x10] sm:$0xf] }
  0xa4   : > { %v1363_v33 = vsel %vm9195_vm7, %v1358_v29, %v1362_v25  ;;  %v1000_v42 = vld [vmem:[#allocation2 + $0xbc] sm:$0x1]  ;;  %v1374_v3 = vshll.u32 %v999_v38, 16  ;;  %v1378_v16 = vshrl.u32 %v999_v38, 16  ;;  %v8627_v53 = vrot.slane %v1517_v44, 9 }
  0xa5   : > { %1446 = vrot.lane.b32.xlu1 %v1363_v33, %s9075_s24  ;;  %v1367_v40 = vrot.slane %v1365_v31, 4  ;;  %v1370_v41 = vrot.slane %v1368_v32, 5  ;;  %v1384_v43 = vshll.u32 %v1000_v42, 16  ;;  %v1519_v54 = vld [vmem:[#allocation2 + $0x8] sm:$0x1]  ;;  %v1625_v62 = vrot.slane %v1521_v50, 5 }
  0xa6   : > { %v1376_v47 = vrot.slane %v1374_v3, 5  ;;  %v1380_v48 = vrot.slane %v1378_v16, 4  ;;  %v917_v55 = vld [vmem:[#allocation2 + $0xa8] sm:$0xf]  ;;  %v1520_v59 = vld [vmem:[#allocation2 + $0xc] sm:$0xe]  ;;  %v1619_v5 = vsel %vm9486_vm13, %v8627_v53, %v1618_v49 }
  0xa7   : > { %v1371_v46 = vor.u32 %v1370_v41, %v1367_v40  ;;  %v1386_v58 = vrot.slane %v1384_v43, 5  ;;  %949 = vst.msk [vmem:[#allocation3 + $0x70] sm:$0xf] %vm226_vm0, %v917_v55  ;;  %v918_v60 = vld [vmem:[#allocation2 + $0xac] sm:$0xf]  ;;  %v1621_v2 = vrot.slane %v1519_v54, 5 }
  0xa8   : > { %v1381_v56 = vor.u32 %v1380_v48, %v1376_v47  ;;  %v1522_v63 = vld [vmem:[#allocation2 + $0x14] sm:$0x1]  ;;  %950 = vst.msk [vmem:[#allocation3 + $0x74] sm:$0xf] %vm226_vm0, %v918_v60  ;;  %v8628_v6 = vrot.slane %v1520_v59, 9  ;;  %v1627_v12 = vrot.slane %v1625_v62, 4 }
  0xa9   : > { %v1372_v51 = vrot.slane %v1371_v46, 4  ;;  %v919_v57 = vld [vmem:[#allocation2 + $0xb4] sm:$0xf]  ;;  %v1524_v7 = vld [vmem:[#allocation2 + $0x1c] sm:$0xf]  ;;  %v1628_v13 = vrot.slane %v1522_v63, 5  ;;  %v1622_v14 = vsel %vm9486_vm13, %v1620_v1, %v1621_v2 }
  0xaa   : > { %v1382_v0 = vrot.slane %v1381_v56, 4  ;;  %951 = vst.msk [vmem:[#allocation3 + $0x78] sm:$0xf] %vm226_vm0, %v919_v57  ;;  %v920_v9 = vld [vmem:[#allocation2 + $0xb8] sm:$0xf]  ;;  %v1632_v15 = vrot.slane %v1524_v7, 5  ;;  %v1626_v17 = vsel %vm9486_vm13, %v8628_v6, %v1625_v62 }
  0xab   : > { %v1377_v61 = vsel %vm9195_vm7, %v1372_v51, %v1376_v47  ;;  %v1523_v11 = vld [vmem:[#allocation2 + $0x18] sm:$0xe]  ;;  %952 = vst.msk [vmem:[#allocation3 + $0x7c] sm:$0xf] %vm226_vm0, %v920_v9  ;;  %v1525_v19 = vld [vmem:[#allocation2 + $0x20] sm:$0x1]  ;;  %v1629_v25 = vsel %vm9486_vm13, %v1627_v12, %v1628_v13 }
  0xac   : > { %1448 = vrot.lane.b32.xlu0 %v1377_v61, %s9075_s24  ;;  %v1387_v10 = vsel %vm9195_vm7, %v1382_v0, %v1386_v58  ;;  %v8629_v18 = vrot.slane %v1523_v11, 9  ;;  %v1527_v20 = vld [vmem:[#allocation2 + $0x28] sm:$0xf]  ;;  %v1526_v23 = vld [vmem:[#allocation2 + $0x24] sm:$0xe]  ;;  %v1634_v26 = vrot.slane %v1632_v15, 4 }
  0xad   : > { %1450 = vrot.lane.b32.xlu1 %v1387_v10, %s9075_s24  ;;  %v1635_v28 = vrot.slane %v1525_v19, 5  ;;  %v1639_v29 = vrot.slane %v1527_v20, 5  ;;  %v1530_v30 = vld [vmem:[#allocation2 + $0x34] sm:$0xf]  ;;  %v8630_v32 = vrot.slane %v1526_v23, 9  ;;  %v313_v41 = vld [vmem:[%s9187_s23 + $0xf8] sm:$0xff] }
  0xae   : > { %v1393_v8 = vpop.permute.xlu1 %1392  ;;  %v1633_v31 = vsel %vm9486_vm13, %v8629_v18, %v1632_v15  ;;  %v1528_v33 = vld [vmem:[#allocation2 + $0x2c] sm:$0x1]  ;;  %1485 = vst.msk [vmem:[#allocation3] sm:$0xf] %vm1484_vm14, %v1389_v45  ;;  %1486 = vst.msk [vmem:[#allocation3 + $0x4] sm:$0xf] %vm1484_vm14, %v1391_v4 }
  0xaf   : > { %1487 = vst.msk [vmem:[#allocation3 + $0x8] sm:$0xf] %vm1484_vm14, %v1393_v8  ;;  %v1529_v36 = vld [vmem:[#allocation2 + $0x30] sm:$0xe]  ;;  %v1646_v38 = vrot.slane %v1530_v30, 5  ;;  %v1636_v42 = vsel %vm9486_vm13, %v1634_v26, %v1635_v28  ;;  %v1641_v3 = vrot.slane %v1639_v29, 4  ;;  %v1640_v43 = vsel %vm9486_vm13, %v8630_v32, %v1639_v29 }
  0xb0   : > { %1728 = vrot.lane.b32.xlu0 %v1619_v5, %s9076_s25  ;;  %v1642_v16 = vrot.slane %v1528_v33, 5  ;;  %v8631_v44 = vrot.slane %v1529_v36, 9  ;;  %v1531_v45 = vld [vmem:[#allocation2 + $0x38] sm:$0x1]  ;;  %v1533_v46 = vld [vmem:[#allocation2 + $0x40] sm:$0xf] }
  0xb1   : > { %v1397_v24 = vpop.permute.xlu0 %1396  ;;  %1730 = vrot.lane.b32.xlu1 %v1622_v14, %s9076_s25  ;;  %v344_v47 = vmax.f32 %v312_v37, 0.0  ;;  %v1532_v48 = vld [vmem:[#allocation2 + $0x3c] sm:$0xe]  ;;  %v345_v50 = vmax.f32 %v313_v41, 0.0  ;;  %v1648_v51 = vrot.slane %v1646_v38, 4  ;;  %v1649_v55 = vrot.slane %v1531_v45, 5 }
  0xb2   : > { %v1395_v22 = vpop.permute.xlu1 %1394  ;;  %1489 = vst.msk [vmem:[#allocation3 + $0x10] sm:$0xf] %vm1484_vm14, %v1397_v24  ;;  %v1643_v54 = vsel %vm9486_vm13, %v1641_v3, %v1642_v16  ;;  %v1653_v56 = vrot.slane %v1533_v46, 5  ;;  %v1534_v58 = vld [vmem:[#allocation2 + $0x44] sm:$0x1]  ;;  %v1647_v60 = vsel %vm9486_vm13, %v8631_v44, %v1646_v38  ;;  %v8632_v61 = vrot.slane %v1532_v48, 9 }
  0xb3   : > { %1488 = vst.msk [vmem:[#allocation3 + $0xc] sm:$0xf] %vm1484_vm14, %v1395_v22  ;;  %v8861_v53 = vpack.c.bf16 %v344_v47, %v344_v47  ;;  %v8862_v59 = vpack.c.bf16 %v345_v50, %v345_v50  ;;  %v1536_v62 = vld [vmem:[#allocation2 + $0x4c] sm:$0xf]  ;;  %v1535_v1 = vld [vmem:[#allocation2 + $0x48] sm:$0xe]  ;;  %v1650_v8 = vsel %vm9486_vm13, %v1648_v51, %v1649_v55 }
  0xb4   : > { %1732 = vrot.lane.b32.xlu0 %v1626_v17, %s9076_s25  ;;  %v1656_v57 = vrot.slane %v1534_v58, 5  ;;  %v1537_v5 = vld [vmem:[#allocation2 + $0x50] sm:$0x1]  ;;  %v1655_v9 = vrot.slane %v1653_v56, 4  ;;  %v1660_v10 = vrot.slane %v1536_v62, 5  ;;  %v1654_v13 = vsel %vm9486_vm13, %v8632_v61, %v1653_v56 }
  0xb5   : > { %1734 = vrot.lane.b32.xlu1 %v1629_v25, %s9076_s25  ;;  %v1401_v40 = vpop.permute.xlu0 %1400  ;;  %v701_v63 = vshrl.u32 %v8861_v53, 16  ;;  %v704_v0 = vshll.u32 %v8861_v53, 16  ;;  %v709_v2 = vshrl.u32 %v8862_v59, 16  ;;  %v712_v4 = vshll.u32 %v8862_v59, 16  ;;  %v876_v11 = vld [vmem:[#allocation2 + $0xc0] sm:$0xf] }
  0xb6   : > { %v1399_v35 = vpop.permute.xlu1 %1398  ;;  %1491 = vst.msk [vmem:[#allocation3 + $0x18] sm:$0xf] %vm1484_vm14, %v1401_v40  ;;  %v8633_v14 = vrot.slane %v1535_v1, 9  ;;  %v1539_v15 = vld [vmem:[#allocation2 + $0x58] sm:$0xf]  ;;  %v1663_v22 = vrot.slane %v1537_v5, 5  ;;  %v1657_v25 = vsel %vm9486_vm13, %v1655_v9, %v1656_v57 }
  0xb7   : > { %1490 = vst.msk [vmem:[#allocation3 + $0x14] sm:$0xf] %vm1484_vm14, %v1399_v35  ;;  %v703_v7 = vrot.slane %v701_v63, 7  ;;  %v9540_v12 = vrot.slane %v709_v2, 7  ;;  %v1538_v19 = vld [vmem:[#allocation2 + $0x54] sm:$0xe] }
  0xb8   : > { %1736 = vrot.lane.b32.xlu0 %v1633_v31, %s9076_s25  ;;  %v1662_v26 = vrot.slane %v1660_v10, 4  ;;  %v1667_v28 = vrot.slane %v1539_v15, 5  ;;  %v1661_v30 = vsel %vm9486_vm13, %v8633_v14, %v1660_v10  ;;  %v8634_v31 = vrot.slane %v1538_v19, 9  ;;  %v1540_v32 = vld [vmem:[#allocation2 + $0x5c] sm:$0x1] }
  0xb9   : > { %1738 = vrot.lane.b32.xlu1 %v1636_v42, %s9076_s25  ;;  %v706_v17 = vor.u32 %v704_v0, %v703_v7  ;;  %v707_v18 = vrot.slane %v703_v7, 4  ;;  %v714_v20 = vor.u32 %v712_v4, %v9540_v12  ;;  %v1542_v33 = vld [vmem:[#allocation2 + $0x64] sm:$0xf]  ;;  %v1541_v35 = vld [vmem:[#allocation2 + $0x60] sm:$0xe]  ;;  %v1670_v38 = vrot.slane %v1540_v32, 5 }
  0xba   : > { %v1403_v49 = vpop.permute.xlu1 %1402  ;;  %v1664_v36 = vsel %vm9486_vm13, %v1662_v26, %v1663_v22  ;;  %v1669_v37 = vrot.slane %v1667_v28, 4  ;;  %v1674_v40 = vrot.slane %v1542_v33, 5  ;;  %v1668_v41 = vsel %vm9486_vm13, %v8634_v31, %v1667_v28  ;;  %v1543_v3 = vld [vmem:[#allocation2 + $0x68] sm:$0x1]  ;;  %v1545_v16 = vld [vmem:[#allocation2 + $0x70] sm:$0xf] }
  0xbb   : > { %1492 = vst.msk [vmem:[#allocation3 + $0x1c] sm:$0xf] %vm1484_vm14, %v1403_v49  ;;  %v877_v24 = vsel %vm9208_vm9, %v706_v17, %v876_v11  ;;  %v715_v29 = vsel %vm9201_vm8, %v707_v18, %v714_v20  ;;  %v8635_v42 = vrot.slane %v1541_v35, 9  ;;  %v1677_v47 = vrot.slane %v1543_v3, 5  ;;  %v1546_v51 = vld [vmem:[#allocation2 + $0x74] sm:$0x1] }
  0xbc   : > { %1740 = vrot.lane.b32.xlu0 %v1640_v43, %s9076_s25  ;;  %v1405_v6 = vpop.permute.xlu0 %1404  ;;  %878 = vst [vmem:[#allocation2 + $0xc0] sm:$0xf] %v877_v24  ;;  %879 = vst.msk [vmem:[#allocation2 + $0xc4] sm:$0xf] %vm226_vm0, %v715_v29  ;;  %v1544_v43 = vld [vmem:[#allocation2 + $0x6c] sm:$0xe]  ;;  %v1671_v45 = vsel %vm9486_vm13, %v1669_v37, %v1670_v38 }
  0xbd   : > { %1742 = vrot.lane.b32.xlu1 %v1643_v54, %s9076_s25  ;;  %1493 = vst.msk [vmem:[#allocation3 + $0x20] sm:$0xf] %vm1484_vm14, %v1405_v6  ;;  %v1676_v46 = vrot.slane %v1674_v40, 4  ;;  %v1681_v48 = vrot.slane %v1545_v16, 5  ;;  %v1675_v49 = vsel %vm9486_vm13, %v8635_v42, %v1674_v40  ;;  %v8636_v50 = vrot.slane %v1544_v43, 9 }
  0xbe   : > { %v1548_v53 = vld [vmem:[#allocation2 + $0x7c] sm:$0xf]  ;;  %v1547_v55 = vld [vmem:[#allocation2 + $0x78] sm:$0xe]  ;;  %v1684_v59 = vrot.slane %v1546_v51, 5  ;;  %vm2915_vm3 = vcmask 191648  }
  0xbf   : > { %v1678_v56 = vsel %vm9486_vm13, %v1676_v46, %v1677_v47  ;;  %v1683_v58 = vrot.slane %v1681_v48, 4  ;;  %v1682_v61 = vsel %vm9486_vm13, %v8636_v50, %v1681_v48  ;;  %v8637_v62 = vrot.slane %v1547_v55, 9  ;;  %v1549_v63 = vld [vmem:[#allocation2 + $0x80] sm:$0x1]  ;;  %v1551_v0 = vld [vmem:[#allocation2 + $0x88] sm:$0xf] }
  0xc0   : > { %1744 = vrot.lane.b32.xlu0 %v1647_v60, %s9076_s25  ;;  %v1688_v60 = vrot.slane %v1548_v53, 5  ;;  %v1550_v2 = vld [vmem:[#allocation2 + $0x84] sm:$0xe]  ;;  %v1691_v5 = vrot.slane %v1549_v63, 5  ;;  %v1695_v6 = vrot.slane %v1551_v0, 5  ;;  %vm4222_vm4 = vcmask 1041408  }
  0xc1   : > { %1746 = vrot.lane.b32.xlu1 %v1650_v8, %s9076_s25  ;;  %v1407_v23 = vpop.permute.xlu1 %1406  ;;  %v1685_v4 = vsel %vm9486_vm13, %v1683_v58, %v1684_v59  ;;  %v8638_v8 = vrot.slane %v1550_v2, 9  ;;  %v1552_v9 = vld [vmem:[#allocation2 + $0x8c] sm:$0x1]  ;;  %v1554_v10 = vld [vmem:[#allocation2 + $0x94] sm:$0xf]  ;;  %vm3109_vm5 = vcmask 224448  }
  0xc2   : > { %1494 = vst.msk [vmem:[#allocation3 + $0x24] sm:$0xf] %vm1484_vm14, %v1407_v23  ;;  %v1690_v57 = vrot.slane %v1688_v60, 4  ;;  %v1689_v7 = vsel %vm9486_vm13, %v8637_v62, %v1688_v60  ;;  %v1697_v15 = vrot.slane %v1695_v6, 4  ;;  %v1698_v17 = vrot.slane %v1552_v9, 5 }
  0xc3   : > { %v1702_v18 = vrot.slane %v1554_v10, 5  ;;  %v1696_v19 = vsel %vm9486_vm13, %v8638_v8, %v1695_v6  ;;  %v1555_v22 = vld [vmem:[#allocation2 + $0x98] sm:$0x1]  ;;  %v1557_v23 = vld [vmem:[#allocation2 + $0xa0] sm:$0xf]  ;;  %vm3670_vm6 = vcmask 257248  }
  0xc4   : > { %1748 = vrot.lane.b32.xlu0 %v1654_v13, %s9076_s25  ;;  %v1553_v13 = vld [vmem:[#allocation2 + $0x90] sm:$0xe]  ;;  %v1692_v14 = vsel %vm9486_vm13, %v1690_v57, %v1691_v5  ;;  %v1556_v24 = vld [vmem:[#allocation2 + $0x9c] sm:$0xe]  ;;  %v1699_v26 = vsel %vm9486_vm13, %v1697_v15, %v1698_v17  ;;  %v1705_v29 = vrot.slane %v1555_v22, 5  ;;  %vm4007_vm11 = vcmask 290048  }
  0xc5   : > { %1750 = vrot.lane.b32.xlu1 %v1657_v25, %s9076_s25  ;;  %v8639_v20 = vrot.slane %v1553_v13, 9  ;;  %v1704_v28 = vrot.slane %v1702_v18, 4  ;;  %v8640_v33 = vrot.slane %v1556_v24, 9  ;;  %v1558_v35 = vld [vmem:[#allocation2 + $0xa4] sm:$0x1]  ;;  %vm4173_vm12 = vcmask 293888  }
  0xc6   : > { %v1559_v37 = vld [vmem:[#allocation2 + $0xa8] sm:$0xe]  ;;  %v1561_v43 = vld [vmem:[#allocation2 + $0xb0] sm:$0x1]  ;;  %v1562_v46 = vld [vmem:[#allocation2 + $0xb4] sm:$0xe] }
  0xc7   : > { %v1703_v32 = vsel %vm9486_vm13, %v8639_v20, %v1702_v18  ;;  %v1706_v38 = vsel %vm9486_vm13, %v1704_v28, %v1705_v29  ;;  %v8641_v16 = vrot.slane %v1559_v37, 9  ;;  %v8642_v53 = vrot.slane %v1562_v46, 9  ;;  %v1857_v63 = vld [vmem:[#allocation2 + $0xc] sm:$0xf]  ;;  %v1859_v2 = vld [vmem:[#allocation2 + $0x18] sm:$0xf] }
  0xc8   : > { %1752 = vrot.lane.b32.xlu0 %v1661_v30, %s9076_s25  ;;  %v1709_v30 = vrot.slane %v1557_v23, 5  ;;  %v1860_v57 = vld [vmem:[#allocation2 + $0x1c] sm:$0xf]  ;;  %v1861_v5 = vld [vmem:[#allocation2 + $0x24] sm:$0xf] }
  0xc9   : > { %1754 = vrot.lane.b32.xlu1 %v1664_v36, %s9076_s25  ;;  %v1409_v44 = vpop.permute.xlu0 %1408  ;;  %v1560_v36 = vld [vmem:[#allocation2 + $0xac] sm:$0xf]  ;;  %v1862_v8 = vld [vmem:[#allocation2 + $0x28] sm:$0xf]  ;;  %v1863_v10 = vld [vmem:[#allocation2 + $0x30] sm:$0xf] }
  0xca   : > { %1495 = vst.msk [vmem:[#allocation3 + $0x28] sm:$0xf] %vm1484_vm14, %v1409_v44  ;;  %v1711_v40 = vrot.slane %v1709_v30, 4  ;;  %v1716_v42 = vrot.slane %v1560_v36, 5  ;;  %v1710_v3 = vsel %vm9486_vm13, %v8640_v33, %v1709_v30  ;;  %v1563_v44 = vld [vmem:[#allocation2 + $0xb8] sm:$0xf] }
  0xcb   : > { %v1411_v54 = vpop.permute.xlu1 %1410  ;;  %v1723_v50 = vrot.slane %v1563_v44, 5  ;;  %v880_v9 = vld [vmem:[#allocation2 + $0xc8] sm:$0x1]  ;;  %v1866_v17 = vld [vmem:[#allocation2 + $0x40] sm:$0xf] }
  0xcc   : > { %1756 = vrot.lane.b32.xlu0 %v1668_v41, %s9076_s25  ;;  %1496 = vst.msk [vmem:[#allocation3 + $0x2c] sm:$0xf] %vm1484_vm14, %v1411_v54  ;;  %v1712_v41 = vrot.slane %v1558_v35, 5  ;;  %v1718_v48 = vrot.slane %v1716_v42, 4  ;;  %v1717_v51 = vsel %vm9486_vm13, %v8641_v16, %v1716_v42  ;;  %v1564_v54 = vld [vmem:[#allocation2 + $0xbc] sm:$0x1] }
  0xcd   : > { %1758 = vrot.lane.b32.xlu1 %v1671_v45, %s9076_s25  ;;  %v1725_v58 = vrot.slane %v1723_v50, 4  ;;  %v1726_v59 = vrot.slane %v1564_v54, 5  ;;  %v1724_v60 = vsel %vm9486_vm13, %v8642_v53, %v1723_v50  ;;  %v1867_v18 = vld [vmem:[#allocation2 + $0x48] sm:$0xf]  ;;  %v1868_v20 = vld [vmem:[#allocation2 + $0x4c] sm:$0xf] }
  0xce   : > { %v1713_v47 = vsel %vm9486_vm13, %v1711_v40, %v1712_v41  ;;  %v1869_v22 = vld [vmem:[#allocation2 + $0x54] sm:$0xf]  ;;  %v1870_v24 = vld [vmem:[#allocation2 + $0x58] sm:$0xf]  ;;  %v1872_v28 = vld [vmem:[#allocation2 + $0x64] sm:$0xf] }
  0xcf   : > { %v1413_v1 = vpop.permute.xlu0 %1412  ;;  %v1727_v62 = vsel %vm9486_vm13, %v1725_v58, %v1726_v59  ;;  %v1873_v30 = vld [vmem:[#allocation2 + $0x6c] sm:$0xf]  ;;  %v1876_v33 = vld [vmem:[#allocation2 + $0x7c] sm:$0xf]  ;;  %v1877_v35 = vld [vmem:[#allocation2 + $0x84] sm:$0xf] }
  0xd0   : > { %1760 = vrot.lane.b32.xlu0 %v1675_v49, %s9076_s25  ;;  %1497 = vst.msk [vmem:[#allocation3 + $0x30] sm:$0xf] %vm1484_vm14, %v1413_v1  ;;  %v1719_v49 = vrot.slane %v1561_v43, 5  ;;  %v1858_v1 = vld [vmem:[#allocation2 + $0x10] sm:$0xf] }
  0xd1   : > { %1762 = vrot.lane.b32.xlu1 %v1678_v56, %s9076_s25  ;;  %v2050_v40 = vld [vmem:[#allocation2 + $0xc] sm:$0xf]  ;;  %v1879_v41 = vld [vmem:[#allocation2 + $0x90] sm:$0xf]  ;;  %v1880_v16 = vld [vmem:[#allocation2 + $0x94] sm:$0xf] }
  0xd2   : > { %v1720_v56 = vsel %vm9486_vm13, %v1718_v48, %v1719_v49  ;;  %v2099_v42 = vshrl.u32 %v2050_v40, 16  ;;  %v2051_v43 = vld [vmem:[#allocation2 + $0x10] sm:$0xf]  ;;  %v1881_v44 = vld [vmem:[#allocation2 + $0x9c] sm:$0xf] }
  0xd3   : > { %v1415_v11 = vpop.permute.xlu1 %1414  ;;  %v2054_v46 = vld [vmem:[#allocation2 + $0x1c] sm:$0xf]  ;;  %v2056_v48 = vld [vmem:[#allocation2 + $0x24] sm:$0xf]  ;;  %v2112_v53 = vshrl.u32 %v2051_v43, 16 }
  0xd4   : > { %1764 = vrot.lane.b32.xlu0 %v1682_v61, %s9076_s25  ;;  %1498 = vst.msk [vmem:[#allocation3 + $0x34] sm:$0xf] %vm1484_vm14, %v1415_v11  ;;  %v2101_v49 = vrot.slane %v2099_v42, 4  ;;  %v1882_v54 = vld [vmem:[#allocation2 + $0xa0] sm:$0xf]  ;;  %v2132_v58 = vshll.u32 %v2054_v46, 16 }
  0xd5   : > { %1766 = vrot.lane.b32.xlu1 %v1685_v4, %s9076_s25  ;;  %v2136_v59 = vshrl.u32 %v2054_v46, 16  ;;  %v2058_v42 = vld [vmem:[#allocation2 + $0x2c] sm:$0x1] }
  0xd8   : > { %1768 = vrot.lane.b32.xlu0 %v1689_v7, %s9076_s25  ;;  %v716_v7 = vrot.slane %v9540_v12, 4  ;;  %v1865_v12 = vld [vmem:[#allocation2 + $0x3c] sm:$0xf] }
  0xd9   : > { %1770 = vrot.lane.b32.xlu1 %v1692_v14, %s9076_s25  ;;  %v1417_v25 = vpop.permute.xlu0 %1416  ;;  %v1864_v14 = vld [vmem:[#allocation2 + $0x34] sm:$0xf] }
  0xda   : > { %1499 = vst.msk [vmem:[#allocation3 + $0x38] sm:$0xf] %vm1484_vm14, %v1417_v25  ;;  %v1419_v31 = vpop.permute.xlu1 %1418  ;;  %v881_v13 = vsel %vm9214_vm10, %v716_v7, %v880_v9  ;;  %v1871_v25 = vld [vmem:[#allocation2 + $0x60] sm:$0xf]  ;;  %v2059_v7 = vld [vmem:[#allocation2 + $0x30] sm:$0xf] }
  0xdb   : > { %1500 = vst.msk [vmem:[#allocation3 + $0x3c] sm:$0xf] %vm1484_vm14, %v1419_v31  ;;  %882 = vst [vmem:[#allocation2 + $0xc8] sm:$0x1] %v881_v13  ;;  %v1874_v31 = vld [vmem:[#allocation2 + $0x70] sm:$0xf] }
  0xdc   : > { %1772 = vrot.lane.b32.xlu0 %v1696_v19, %s9076_s25  ;;  %v2138_v13 = vrot.slane %v2136_v59, 4 }
  0xdd   : > { %1774 = vrot.lane.b32.xlu1 %v1699_v26, %s9076_s25 }
  0xdf   : > { %v1421_v45 = vpop.permute.xlu0 %1420 }
  0xe0   : > { %1776 = vrot.lane.b32.xlu0 %v1703_v32, %s9076_s25  ;;  %1501 = vst.msk [vmem:[#allocation3 + $0x40] sm:$0xf] %vm1484_vm14, %v1421_v45  ;;  %v1875_v32 = vld [vmem:[#allocation2 + $0x78] sm:$0xf] }
  0xe1   : > { %1778 = vrot.lane.b32.xlu1 %v1706_v38, %s9076_s25  ;;  %v1878_v38 = vld [vmem:[#allocation2 + $0x88] sm:$0xf]  ;;  %v2053_v45 = vld [vmem:[#allocation2 + $0x18] sm:$0xf] }
  0xe3   : > { %v1423_v55 = vpop.permute.xlu1 %1422 }
  0xe4   : > { %1780 = vrot.lane.b32.xlu0 %v1710_v3, %s9076_s25  ;;  %1502 = vst.msk [vmem:[#allocation3 + $0x44] sm:$0xf] %vm1484_vm14, %v1423_v55  ;;  %v2102_v3 = vshll.u32 %v2050_v40, 16  ;;  %v2123_v55 = vshrl.u32 %v2053_v45, 16 }
  0xe5   : > { %1782 = vrot.lane.b32.xlu1 %v1713_v47, %s9076_s25 }
  0xe6   : > { %v2104_v50 = vrot.slane %v2102_v3, 5  ;;  %v2125_v9 = vrot.slane %v2123_v55, 4 }
  0xe7   : > { %v1425_v61 = vpop.permute.xlu0 %1424 }
  0xe8   : > { %1784 = vrot.lane.b32.xlu0 %v1717_v51, %s9076_s25  ;;  %1503 = vst.msk [vmem:[#allocation3 + $0x48] sm:$0xf] %vm1484_vm14, %v1425_v61  ;;  %v2108_v51 = vshll.u32 %v2051_v43, 16  ;;  %v1883_v61 = vld [vmem:[#allocation2 + $0xa8] sm:$0xf] }
  0xe9   : > { %1786 = vrot.lane.b32.xlu1 %v1720_v56, %s9076_s25  ;;  %v2126_v56 = vshll.u32 %v2053_v45, 16  ;;  %v2063_v45 = vld [vmem:[#allocation2 + $0x40] sm:$0xf] }
  0xeb   : > { %v1427_v0 = vpop.permute.xlu1 %1426 }
  0xec   : > { %1788 = vrot.lane.b32.xlu0 %v1724_v60, %s9076_s25  ;;  %1504 = vst.msk [vmem:[#allocation3 + $0x4c] sm:$0xf] %vm1484_vm14, %v1427_v0 }
  0xed   : > { %1790 = vrot.lane.b32.xlu1 %v1727_v62, %s9076_s25  ;;  %v2147_v62 = vshrl.u32 %v2056_v48, 16 }
  0xf0   : > { %1921 = vrot.lane.b32.xlu0 %v1857_v63, %s9077_s26  ;;  %v2150_v63 = vshll.u32 %v2056_v48, 16  ;;  %v1888_v48 = vld [vmem:[#allocation2 + $0xc4] sm:$0xf] }
  0xf1   : > { %1923 = vrot.lane.b32.xlu1 %v1858_v1, %s9077_s26  ;;  %v1884_v1 = vld [vmem:[#allocation2 + $0xac] sm:$0xf] }
  0xf2   : > { %v1429_v4 = vpop.permute.xlu0 %1428 }
  0xf3   : > { %1505 = vst.msk [vmem:[#allocation3 + $0x50] sm:$0xf] %vm1484_vm14, %v1429_v4  ;;  %v1885_v4 = vld [vmem:[#allocation2 + $0xb4] sm:$0xf] }
  0xf4   : > { %1925 = vrot.lane.b32.xlu0 %v1859_v2, %s9077_s26  ;;  %v2057_v2 = vld [vmem:[#allocation2 + $0x28] sm:$0xf] }
  0xf5   : > { %1927 = vrot.lane.b32.xlu1 %v1860_v57, %s9077_s26  ;;  %v2105_v57 = vor.u32 %v2104_v50, %v2101_v49 }
  0xf6   : > { %v1431_v6 = vpop.permute.xlu1 %1430 }
  0xf7   : > { %1506 = vst.msk [vmem:[#allocation3 + $0x54] sm:$0xf] %vm1484_vm14, %v1431_v6  ;;  %v2114_v6 = vrot.slane %v2112_v53, 4 }
  0xf8   : > { %1929 = vrot.lane.b32.xlu0 %v1861_v5, %s9077_s26  ;;  %v9668_v5 = vrot.slane %v2108_v51, 5 }
  0xf9   : > { %1931 = vrot.lane.b32.xlu1 %v1862_v8, %s9077_s26  ;;  %v2052_v8 = vld [vmem:[#allocation2 + $0x14] sm:$0x1] }
  0xfa   : > { %v1433_v11 = vpop.permute.xlu0 %1432 }
  0xfb   : > { %1507 = vst.msk [vmem:[#allocation3 + $0x58] sm:$0xf] %vm1484_vm14, %v1433_v11  ;;  %v9671_v11 = vrot.slane %v2132_v58, 5 }
  0xfc   : > { %1933 = vrot.lane.b32.xlu0 %v1863_v10, %s9077_s26  ;;  %v2128_v10 = vrot.slane %v2126_v56, 5 }
  0xfd   : > { %1935 = vrot.lane.b32.xlu1 %v1864_v14, %s9077_s26 }
  0xfe   : > { %v1435_v15 = vpop.permute.xlu1 %1434 }
  0xff   : > { %1508 = vst.msk [vmem:[#allocation3 + $0x5c] sm:$0xf] %vm1484_vm14, %v1435_v15  ;;  %v2149_v15 = vrot.slane %v2147_v62, 4 }
 0x100   : > { %1937 = vrot.lane.b32.xlu0 %v1865_v12, %s9077_s26  ;;  %v2055_v12 = vld [vmem:[#allocation2 + $0x20] sm:$0x1] }
 0x101   : > { %1939 = vrot.lane.b32.xlu1 %v1866_v17, %s9077_s26  ;;  %v2152_v17 = vrot.slane %v2150_v63, 5 }
 0x103   : > { %v1437_v19 = vpop.permute.xlu0 %1436 }
 0x104   : > { %1941 = vrot.lane.b32.xlu0 %v1867_v18, %s9077_s26  ;;  %1509 = vst.msk [vmem:[#allocation3 + $0x60] sm:$0xf] %vm1484_vm14, %v1437_v19  ;;  %v2156_v18 = vshll.u32 %v2057_v2, 16  ;;  %v2160_v19 = vshrl.u32 %v2057_v2, 16 }
 0x105   : > { %v1439_v23 = vpop.permute.xlu1 %1438  ;;  %1943 = vrot.lane.b32.xlu1 %v1868_v20, %s9077_s26 }
 0x106   : > { %1510 = vst.msk [vmem:[#allocation3 + $0x64] sm:$0xf] %vm1484_vm14, %v1439_v23  ;;  %v2174_v23 = vshll.u32 %v2059_v7, 16  ;;  %v2162_v40 = vrot.slane %v2160_v19, 4  ;;  %v2068_v19 = vld [vmem:[#allocation2 + $0x54] sm:$0xf] }
 0x108   : > { %1945 = vrot.lane.b32.xlu0 %v1869_v22, %s9077_s26  ;;  %v2171_v22 = vshrl.u32 %v2059_v7, 16  ;;  %v2208_v7 = vshrl.u32 %v2063_v45, 16 }
 0x109   : > { %1947 = vrot.lane.b32.xlu1 %v1870_v24, %s9077_s26  ;;  %v2118_v24 = vshll.u32 %v2052_v8, 16 }
 0x10a   : > { %v2173_v3 = vrot.slane %v2171_v22, 4 }
 0x10b   : > { %v1441_v26 = vpop.permute.xlu0 %1440  ;;  %v2120_v51 = vrot.slane %v2118_v24, 5 }
 0x10c   : > { %1949 = vrot.lane.b32.xlu0 %v1871_v25, %s9077_s26  ;;  %1511 = vst.msk [vmem:[#allocation3 + $0x68] sm:$0xf] %vm1484_vm14, %v1441_v26  ;;  %v1443_v29 = vpop.permute.xlu1 %1442  ;;  %v2060_v25 = vld [vmem:[#allocation2 + $0x34] sm:$0xf]  ;;  %v1886_v26 = vld [vmem:[#allocation2 + $0xb8] sm:$0xf] }
 0x10d   : > { %1512 = vst.msk [vmem:[#allocation3 + $0x6c] sm:$0xf] %vm1484_vm14, %v1443_v29  ;;  %1951 = vrot.lane.b32.xlu1 %v1872_v28, %s9077_s26  ;;  %v2106_v28 = vrot.slane %v2105_v57, 4  ;;  %v2115_v29 = vor.u32 %v2114_v6, %v9668_v5  ;;  %v2180_v43 = vshll.u32 %v2060_v25, 16  ;;  %v2204_v6 = vshll.u32 %v2063_v45, 16 }
 0x10f   : > { %v2111_v49 = vsel %vm9195_vm7, %v2106_v28, %v9668_v5  ;;  %v2116_v50 = vrot.slane %v2115_v29, 4  ;;  %v9709_v29 = vrot.slane %v2204_v6, 5 }
 0x110   : > { %1953 = vrot.lane.b32.xlu0 %v1873_v30, %s9077_s26  ;;  %v2129_v30 = vor.u32 %v2128_v10, %v2125_v9 }
 0x111   : > { %1955 = vrot.lane.b32.xlu1 %v1874_v31, %s9077_s26  ;;  %v2142_v31 = vshll.u32 %v2055_v12, 16  ;;  %v2121_v8 = vsel %vm9195_vm7, %v2116_v50, %v2120_v51 }
 0x112   : > { %v2130_v53 = vrot.slane %v2129_v30, 4  ;;  %v2210_v30 = vrot.slane %v2208_v7, 4 }
 0x113   : > { %v2144_v58 = vrot.slane %v2142_v31, 5  ;;  %v2071_v31 = vld [vmem:[#allocation2 + $0x60] sm:$0xf] }
 0x114   : > { %1957 = vrot.lane.b32.xlu0 %v1875_v32, %s9077_s26  ;;  %v2062_v32 = vld [vmem:[#allocation2 + $0x3c] sm:$0xf]  ;;  %v2135_v9 = vsel %vm9195_vm7, %v2130_v53, %v9671_v11  ;;  %v2211_v50 = vor.u32 %v2210_v30, %v9709_v29  ;;  %v2072_v53 = vld [vmem:[#allocation2 + $0x64] sm:$0xf]  ;;  %v2077_v30 = vld [vmem:[#allocation2 + $0x78] sm:$0xf] }
 0x115   : > { %v1445_v36 = vpop.permute.xlu0 %1444  ;;  %1959 = vrot.lane.b32.xlu1 %v1876_v33, %s9077_s26  ;;  %v2195_v46 = vshrl.u32 %v2062_v32, 16  ;;  %v2280_v6 = vshrl.u32 %v2072_v53, 16 }
 0x116   : > { %1513 = vst.msk [vmem:[#allocation3 + $0x70] sm:$0xf] %vm1484_vm14, %v1445_v36  ;;  %v2139_v36 = vor.u32 %v2138_v13, %v9671_v11 }
 0x117   : > { %v1447_v37 = vpop.permute.xlu1 %1446  ;;  %v2197_v57 = vrot.slane %v2195_v46, 4  ;;  %v2267_v46 = vshrl.u32 %v2071_v31, 16 }
 0x118   : > { %1961 = vrot.lane.b32.xlu0 %v1877_v35, %s9077_s26  ;;  %1514 = vst.msk [vmem:[#allocation3 + $0x74] sm:$0xf] %vm1484_vm14, %v1447_v37  ;;  %v1887_v35 = vld [vmem:[#allocation2 + $0xc0] sm:$0xf]  ;;  %v2153_v37 = vor.u32 %v2152_v17, %v2149_v15  ;;  %v2140_v56 = vrot.slane %v2139_v36, 4  ;;  %v2243_v36 = vshrl.u32 %v2068_v19, 16 }
 0x119   : > { %1963 = vrot.lane.b32.xlu1 %v1878_v38, %s9077_s26  ;;  %v9679_v38 = vrot.slane %v2156_v18, 5 }
 0x11a   : > { %v2154_v63 = vrot.slane %v2153_v37, 4  ;;  %v2145_v22 = vsel %vm9195_vm7, %v2140_v56, %v2144_v58  ;;  %v2246_v37 = vshll.u32 %v2068_v19, 16  ;;  %v2245_v56 = vrot.slane %v2243_v36, 4 }
 0x11b   : > { %v2163_v59 = vor.u32 %v2162_v40, %v9679_v38 }
 0x11c   : > { %1965 = vrot.lane.b32.xlu0 %v1879_v41, %s9077_s26  ;;  %v2248_v58 = vrot.slane %v2246_v37, 5 }
 0x11d   : > { %1967 = vrot.lane.b32.xlu1 %v1880_v16, %s9077_s26  ;;  %v2176_v16 = vrot.slane %v2174_v23, 5  ;;  %v2159_v23 = vsel %vm9195_vm7, %v2154_v63, %v9679_v38  ;;  %v2164_v24 = vrot.slane %v2163_v59, 4  ;;  %v2074_v59 = vld [vmem:[#allocation2 + $0x6c] sm:$0xf] }
 0x11e   : > { %v1449_v47 = vpop.permute.xlu0 %1448 }
 0x11f   : > { %1515 = vst.msk [vmem:[#allocation3 + $0x78] sm:$0xf] %vm1484_vm14, %v1449_v47  ;;  %v1451_v60 = vpop.permute.xlu1 %1450  ;;  %v2198_v47 = vshll.u32 %v2062_v32, 16  ;;  %v2064_v32 = vld [vmem:[#allocation2 + $0x44] sm:$0x1] }
 0x120   : > { %1969 = vrot.lane.b32.xlu0 %v1881_v44, %s9077_s26  ;;  %1516 = vst.msk [vmem:[#allocation3 + $0x7c] sm:$0xf] %vm1484_vm14, %v1451_v60  ;;  %v2184_v44 = vshrl.u32 %v2060_v25, 16  ;;  %v2166_v60 = vshll.u32 %v2058_v42, 16  ;;  %v2069_v25 = vld [vmem:[#allocation2 + $0x58] sm:$0xf] }
 0x121   : > { %1971 = vrot.lane.b32.xlu1 %v1882_v54, %s9077_s26  ;;  %v2061_v54 = vld [vmem:[#allocation2 + $0x38] sm:$0x1]  ;;  %v2200_v5 = vrot.slane %v2198_v47, 5  ;;  %v2270_v47 = vshll.u32 %v2071_v31, 16  ;;  %v2214_v51 = vshll.u32 %v2064_v32, 16 }
 0x122   : > { %v1729_v0 = vpop.permute.xlu0 %1728  ;;  %v2186_v2 = vrot.slane %v2184_v44, 4  ;;  %v2168_v12 = vrot.slane %v2166_v60, 5  ;;  %v2190_v15 = vshll.u32 %v2061_v54, 16 }
 0x123   : > { %1825 = vst.msk [vmem:[#allocation3] sm:$0xf] %vm1824_vm15, %v1729_v0  ;;  %v1731_v14 = vpop.permute.xlu1 %1730  ;;  %v2177_v0 = vor.u32 %v2176_v16, %v2173_v3  ;;  %v2201_v28 = vor.u32 %v2200_v5, %v2197_v57  ;;  %v2252_v3 = vshll.u32 %v2069_v25, 16  ;;  %v2256_v16 = vshrl.u32 %v2069_v25, 16 }
 0x124   : > { %1973 = vrot.lane.b32.xlu0 %v1883_v61, %s9077_s26  ;;  %1826 = vst.msk [vmem:[#allocation3 + $0x4] sm:$0xf] %vm1824_vm15, %v1731_v14  ;;  %v2065_v61 = vld [vmem:[#allocation2 + $0x48] sm:$0xf]  ;;  %v2169_v44 = vsel %vm9195_vm7, %v2164_v24, %v2168_v12  ;;  %v2192_v45 = vrot.slane %v2190_v15, 5  ;;  %v2272_v57 = vrot.slane %v2270_v47, 5  ;;  %v2249_v12 = vor.u32 %v2248_v58, %v2245_v56 }
 0x125   : > { %1975 = vrot.lane.b32.xlu1 %v1884_v1, %s9077_s26  ;;  %v9690_v1 = vrot.slane %v2180_v43, 5  ;;  %v2219_v10 = vshrl.u32 %v2065_v61, 16  ;;  %v2222_v13 = vshll.u32 %v2065_v61, 16  ;;  %v2202_v54 = vrot.slane %v2201_v28, 4  ;;  %v2075_v15 = vld [vmem:[#allocation2 + $0x70] sm:$0xf] }
 0x126   : > { %v1733_v20 = vpop.permute.xlu0 %1732  ;;  %v9725_v63 = vrot.slane %v2252_v3, 5  ;;  %v2276_v5 = vshll.u32 %v2072_v53, 16  ;;  %v2216_v7 = vrot.slane %v2214_v51, 5  ;;  %v2282_v28 = vrot.slane %v2280_v6, 4  ;;  %v2079_v6 = vld [vmem:[#allocation2 + $0x80] sm:$0x1] }
 0x127   : > { %1827 = vst.msk [vmem:[#allocation3 + $0x8] sm:$0xf] %vm1824_vm15, %v1733_v20  ;;  %v1735_v33 = vpop.permute.xlu1 %1734  ;;  %v2187_v11 = vor.u32 %v2186_v2, %v9690_v1  ;;  %v2070_v2 = vld [vmem:[#allocation2 + $0x5c] sm:$0x1]  ;;  %v2300_v32 = vshll.u32 %v2075_v15, 16  ;;  %v2250_v36 = vrot.slane %v2249_v12, 4 }
 0x128   : > { %1977 = vrot.lane.b32.xlu0 %v1885_v4, %s9077_s26  ;;  %1828 = vst.msk [vmem:[#allocation3 + $0xc] sm:$0xf] %vm1824_vm15, %v1735_v33  ;;  %v2066_v4 = vld [vmem:[#allocation2 + $0x4c] sm:$0xf]  ;;  %v2221_v33 = vrot.slane %v2219_v10, 4 }
 0x129   : > { %1979 = vrot.lane.b32.xlu1 %v1886_v26, %s9077_s26  ;;  %v2228_v17 = vshll.u32 %v2066_v4, 16  ;;  %v2232_v18 = vshrl.u32 %v2066_v4, 16  ;;  %v2178_v26 = vrot.slane %v2177_v0, 4  ;;  %v2258_v0 = vrot.slane %v2256_v16, 4  ;;  %v2078_v16 = vld [vmem:[#allocation2 + $0x7c] sm:$0xf] }
 0x12a   : > { %v1737_v41 = vpop.permute.xlu0 %1736  ;;  %v2269_v4 = vrot.slane %v2267_v46, 4  ;;  %v9754_v51 = vrot.slane %v2300_v32, 5  ;;  %v2255_v56 = vsel %vm9195_vm7, %v2250_v36, %v9725_v63  ;;  %v2084_v12 = vld [vmem:[#allocation2 + $0x94] sm:$0xf]  ;;  %v2087_v36 = vld [vmem:[#allocation2 + $0xa0] sm:$0xf] }
 0x12b   : > { %1829 = vst.msk [vmem:[#allocation3 + $0x10] sm:$0xf] %vm1824_vm15, %v1737_v41  ;;  %v1739_v55 = vpop.permute.xlu1 %1738  ;;  %v9712_v40 = vrot.slane %v2228_v17, 5  ;;  %v2067_v41 = vld [vmem:[#allocation2 + $0x50] sm:$0x1]  ;;  %v2234_v42 = vrot.slane %v2232_v18, 4 }
 0x12c   : > { %1981 = vrot.lane.b32.xlu0 %v1887_v35, %s9077_s26  ;;  %1830 = vst.msk [vmem:[#allocation3 + $0x14] sm:$0xf] %vm1824_vm15, %v1739_v55  ;;  %v2224_v35 = vrot.slane %v2222_v13, 5  ;;  %v2238_v55 = vshll.u32 %v2067_v41, 16  ;;  %v2207_v13 = vsel %vm9195_vm7, %v2202_v54, %v9709_v29  ;;  %v2273_v25 = vor.u32 %v2272_v57, %v2269_v4  ;;  %v2083_v4 = vld [vmem:[#allocation2 + $0x90] sm:$0xf] }
 0x12d   : > { %1983 = vrot.lane.b32.xlu1 %v1888_v48, %s9077_s26  ;;  %v2183_v48 = vsel %vm9195_vm7, %v2178_v26, %v9690_v1  ;;  %v9738_v26 = vrot.slane %v2276_v5, 5  ;;  %v2376_v32 = vshrl.u32 %v2084_v12, 16 }
 0x12e   : > { %v1741_v62 = vpop.permute.xlu0 %1740  ;;  %v2225_v61 = vor.u32 %v2224_v35, %v2221_v33  ;;  %v2304_v33 = vshrl.u32 %v2075_v15, 16 }
 0x12f   : > { %1831 = vst.msk [vmem:[#allocation3 + $0x18] sm:$0xf] %vm1824_vm15, %v1741_v62  ;;  %v1743_v14 = vpop.permute.xlu1 %1742  ;;  %v2235_v62 = vor.u32 %v2234_v42, %v9712_v40 }
 0x130   : > { %2482 = vrot.lane.b32.xlu0 %v2111_v49, %s9078_s27  ;;  %1832 = vst.msk [vmem:[#allocation3 + $0x1c] sm:$0xf] %vm1824_vm15, %v1743_v14  ;;  %v2188_v49 = vrot.slane %v2187_v11, 4  ;;  %v2212_v14 = vrot.slane %v2211_v50, 4  ;;  %v2226_v18 = vrot.slane %v2225_v61, 4  ;;  %v2259_v11 = vor.u32 %v2258_v0, %v9725_v63 }
 0x131   : > { %2484 = vrot.lane.b32.xlu1 %v2121_v8, %s9078_s27  ;;  %v2291_v8 = vshrl.u32 %v2074_v59, 16  ;;  %v2236_v19 = vrot.slane %v2235_v62, 4  ;;  %v2080_v50 = vld [vmem:[#allocation2 + $0x84] sm:$0xf]  ;;  %v2306_v53 = vrot.slane %v2304_v33, 4 }
 0x132   : > { %v1745_v20 = vpop.permute.xlu0 %1744  ;;  %v2193_v10 = vsel %vm9195_vm7, %v2188_v49, %v2192_v45  ;;  %v2217_v35 = vsel %vm9195_vm7, %v2212_v14, %v2216_v7  ;;  %v2231_v42 = vsel %vm9195_vm7, %v2226_v18, %v9712_v40  ;;  %v2260_v47 = vrot.slane %v2259_v11, 4 }
 0x133   : > { %1833 = vst.msk [vmem:[#allocation3 + $0x20] sm:$0xf] %vm1824_vm15, %v1745_v20  ;;  %v1747_v38 = vpop.permute.xlu1 %1746  ;;  %v2240_v20 = vrot.slane %v2238_v55, 5  ;;  %v2293_v29 = vrot.slane %v2291_v8, 4  ;;  %v2283_v49 = vor.u32 %v2282_v28, %v9738_v26  ;;  %v2081_v55 = vld [vmem:[#allocation2 + $0x88] sm:$0xf] }
 0x134   : > { %2486 = vrot.lane.b32.xlu0 %v2135_v9, %s9078_s27  ;;  %1834 = vst.msk [vmem:[#allocation3 + $0x24] sm:$0xf] %vm1824_vm15, %v1747_v38  ;;  %v2294_v9 = vshll.u32 %v2074_v59, 16  ;;  %v2076_v38 = vld [vmem:[#allocation2 + $0x74] sm:$0x1]  ;;  %v2324_v59 = vshll.u32 %v2078_v16, 16 }
 0x135   : > { %2488 = vrot.lane.b32.xlu1 %v2145_v22, %s9078_s27  ;;  %v2262_v22 = vshll.u32 %v2070_v2, 16  ;;  %v2241_v46 = vsel %vm9195_vm7, %v2236_v19, %v2240_v20  ;;  %v2310_v54 = vshll.u32 %v2076_v38, 16  ;;  %v2342_v2 = vshll.u32 %v2080_v50, 16  ;;  %v2086_v20 = vld [vmem:[#allocation2 + $0x9c] sm:$0xf] }
 0x136   : > { %v1749_v43 = vpop.permute.xlu0 %1748  ;;  %v2296_v31 = vrot.slane %v2294_v9, 5  ;;  %v2348_v7 = vshll.u32 %v2081_v55, 16  ;;  %v2352_v8 = vshrl.u32 %v2081_v55, 16  ;;  %v2284_v9 = vrot.slane %v2283_v49, 4  ;;  %v2085_v55 = vld [vmem:[#allocation2 + $0x98] sm:$0x1] }
 0x137   : > { %1835 = vst.msk [vmem:[#allocation3 + $0x28] sm:$0xf] %vm1824_vm15, %v1749_v43  ;;  %v1751_v60 = vpop.permute.xlu1 %1750  ;;  %v2264_v3 = vrot.slane %v2262_v22, 5  ;;  %v2315_v43 = vshrl.u32 %v2077_v30, 16  ;;  %v9771_v14 = vrot.slane %v2310_v54, 5  ;;  %v9774_v15 = vrot.slane %v2324_v59, 5 }
 0x138   : > { %2490 = vrot.lane.b32.xlu0 %v2159_v23, %s9078_s27  ;;  %1836 = vst.msk [vmem:[#allocation3 + $0x2c] sm:$0xf] %vm1824_vm15, %v1751_v60  ;;  %v2073_v23 = vld [vmem:[#allocation2 + $0x68] sm:$0x1]  ;;  %v2297_v40 = vor.u32 %v2296_v31, %v2293_v29  ;;  %v2328_v60 = vshrl.u32 %v2078_v16, 16  ;;  %v2363_v18 = vshrl.u32 %v2083_v4, 16 }
 0x139   : > { %2492 = vrot.lane.b32.xlu1 %v2169_v44, %s9078_s27  ;;  %v2286_v37 = vshll.u32 %v2073_v23, 16  ;;  %v2318_v44 = vshll.u32 %v2077_v30, 16  ;;  %v2317_v62 = vrot.slane %v2315_v43, 4  ;;  %v2265_v5 = vsel %vm9195_vm7, %v2260_v47, %v2264_v3  ;;  %v2082_v30 = vld [vmem:[#allocation2 + $0x8c] sm:$0x1] }
 0x13a   : > { %v1753_v1 = vpop.permute.xlu0 %1752  ;;  %v2366_v19 = vshll.u32 %v2083_v4, 16  ;;  %v9777_v28 = vrot.slane %v2348_v7, 5  ;;  %v2354_v29 = vrot.slane %v2352_v8, 4  ;;  %v2372_v31 = vshll.u32 %v2084_v12, 16 }
 0x13b   : > { %1837 = vst.msk [vmem:[#allocation3 + $0x30] sm:$0xf] %vm1824_vm15, %v1753_v1  ;;  %v1755_v17 = vpop.permute.xlu1 %1754  ;;  %v9760_v58 = vrot.slane %v2286_v37, 5  ;;  %v2320_v0 = vrot.slane %v2318_v44, 5  ;;  %v2339_v1 = vshrl.u32 %v2080_v50, 16  ;;  %v2387_v37 = vshrl.u32 %v2086_v20, 16 }
 0x13c   : > { %2494 = vrot.lane.b32.xlu0 %v2183_v48, %s9078_s27  ;;  %1838 = vst.msk [vmem:[#allocation3 + $0x34] sm:$0xf] %vm1824_vm15, %v1755_v17  ;;  %v2274_v48 = vrot.slane %v2273_v25, 4  ;;  %v2330_v17 = vrot.slane %v2328_v60, 4  ;;  %v2344_v25 = vrot.slane %v2342_v2, 5  ;;  %v2390_v38 = vshll.u32 %v2086_v20, 16 }
 0x13d   : > { %2496 = vrot.lane.b32.xlu1 %v2193_v10, %s9078_s27  ;;  %v2298_v10 = vrot.slane %v2297_v40, 4  ;;  %v2321_v23 = vor.u32 %v2320_v0, %v2317_v62  ;;  %v2341_v11 = vrot.slane %v2339_v1, 4  ;;  %v2289_v33 = vsel %vm9195_vm7, %v2284_v9, %v9760_v58  ;;  %v2090_v62 = vld [vmem:[#allocation2 + $0xac] sm:$0xf] }
 0x13e   : > { %v1757_v24 = vpop.permute.xlu0 %1756  ;;  %v2279_v63 = vsel %vm9195_vm7, %v2274_v48, %v9738_v26  ;;  %v2365_v3 = vrot.slane %v2363_v18, 4  ;;  %v2368_v16 = vrot.slane %v2366_v19, 5  ;;  %v2358_v47 = vshll.u32 %v2082_v30, 16  ;;  %v2089_v48 = vld [vmem:[#allocation2 + $0xa8] sm:$0xf] }
 0x13f   : > { %1839 = vst.msk [vmem:[#allocation3 + $0x38] sm:$0xf] %vm1824_vm15, %v1757_v24  ;;  %v1759_v41 = vpop.permute.xlu1 %1758  ;;  %v2334_v24 = vshll.u32 %v2079_v6, 16  ;;  %v2322_v44 = vrot.slane %v2321_v23, 4  ;;  %v2355_v50 = vor.u32 %v2354_v29, %v9777_v28  ;;  %v9791_v40 = vrot.slane %v2372_v31, 5 }
 0x140   : > { %2498 = vrot.lane.b32.xlu0 %v2207_v13, %s9078_s27  ;;  %1840 = vst.msk [vmem:[#allocation3 + $0x3c] sm:$0xf] %vm1824_vm15, %v1759_v41  ;;  %v2307_v13 = vor.u32 %v2306_v53, %v9754_v51  ;;  %v2303_v41 = vsel %vm9195_vm7, %v2298_v10, %v9754_v51  ;;  %v2378_v53 = vrot.slane %v2376_v32, 4  ;;  %v2396_v54 = vshll.u32 %v2087_v36, 16  ;;  %v2092_v10 = vld [vmem:[#allocation2 + $0xb4] sm:$0xf] }
 0x141   : > { %2500 = vrot.lane.b32.xlu1 %v2217_v35, %s9078_s27  ;;  %v2392_v58 = vrot.slane %v2390_v38, 5  ;;  %v2400_v59 = vshrl.u32 %v2087_v36, 16  ;;  %v2411_v0 = vshrl.u32 %v2089_v48, 16  ;;  %v2414_v1 = vshll.u32 %v2089_v48, 16 }
 0x142   : > { %v1761_v45 = vpop.permute.xlu0 %1760  ;;  %v2308_v35 = vrot.slane %v2307_v13, 4  ;;  %v2327_v4 = vsel %vm9195_vm7, %v2322_v44, %v9774_v15  ;;  %v2356_v6 = vrot.slane %v2355_v50, 4  ;;  %v2379_v7 = vor.u32 %v2378_v53, %v9791_v40 }
 0x143   : > { %1841 = vst.msk [vmem:[#allocation3 + $0x40] sm:$0xf] %vm1824_vm15, %v1761_v45  ;;  %v1763_v61 = vpop.permute.xlu1 %1762  ;;  %v2336_v45 = vrot.slane %v2334_v24, 5  ;;  %v2382_v8 = vshll.u32 %v2085_v55, 16  ;;  %v9804_v9 = vrot.slane %v2396_v54, 5  ;;  %v2402_v12 = vrot.slane %v2400_v59, 4 }
 0x144   : > { %2502 = vrot.lane.b32.xlu0 %v2231_v42, %s9078_s27  ;;  %1842 = vst.msk [vmem:[#allocation3 + $0x44] sm:$0xf] %vm1824_vm15, %v1763_v61  ;;  %v2331_v42 = vor.u32 %v2330_v17, %v9774_v15  ;;  %v2313_v51 = vsel %vm9195_vm7, %v2308_v35, %v9771_v14  ;;  %v2369_v61 = vor.u32 %v2368_v16, %v2365_v3  ;;  %v2088_v14 = vld [vmem:[#allocation2 + $0xa4] sm:$0x1]  ;;  %v2420_v15 = vshll.u32 %v2090_v62, 16 }
 0x145   : > { %2504 = vrot.lane.b32.xlu1 %v2241_v46, %s9078_s27  ;;  %v2345_v46 = vor.u32 %v2344_v25, %v2341_v11  ;;  %v2424_v17 = vshrl.u32 %v2090_v62, 16  ;;  %v2413_v20 = vrot.slane %v2411_v0, 4  ;;  %v2093_v11 = vld [vmem:[#allocation2 + $0xb8] sm:$0xf]  ;;  %v2435_v25 = vshrl.u32 %v2092_v10, 16 }
 0x146   : > { %v1765_v57 = vpop.permute.xlu0 %1764  ;;  %v2332_v60 = vrot.slane %v2331_v42, 4  ;;  %v2370_v19 = vrot.slane %v2369_v61, 4  ;;  %v2380_v31 = vrot.slane %v2379_v7, 4  ;;  %v2384_v32 = vrot.slane %v2382_v8, 5  ;;  %v2095_v35 = vld [vmem:[#allocation2 + $0xc0] sm:$0xf] }
 0x147   : > { %1843 = vst.msk [vmem:[#allocation3 + $0x48] sm:$0xf] %vm1824_vm15, %v1765_v57  ;;  %v1767_v22 = vpop.permute.xlu1 %1766  ;;  %v2346_v57 = vrot.slane %v2345_v46, 4  ;;  %v2426_v38 = vrot.slane %v2424_v17, 4  ;;  %v2091_v3 = vld [vmem:[#allocation2 + $0xb0] sm:$0x1] }
 0x148   : > { %2506 = vrot.lane.b32.xlu0 %v2255_v56, %s9078_s27  ;;  %1844 = vst.msk [vmem:[#allocation3 + $0x4c] sm:$0xf] %vm1824_vm15, %v1767_v22  ;;  %v2389_v56 = vrot.slane %v2387_v37, 4  ;;  %v2337_v18 = vsel %vm9195_vm7, %v2332_v60, %v2336_v45  ;;  %v2416_v22 = vrot.slane %v2414_v1, 5  ;;  %v2422_v37 = vrot.slane %v2420_v15, 5 }
 0x149   : > { %2508 = vrot.lane.b32.xlu1 %v2265_v5, %s9078_s27  ;;  %v2360_v5 = vrot.slane %v2358_v47, 5  ;;  %v2351_v24 = vsel %vm9195_vm7, %v2346_v57, %v9777_v28  ;;  %v2403_v28 = vor.u32 %v2402_v12, %v9804_v9  ;;  %v2444_v16 = vshll.u32 %v2093_v11, 16  ;;  %v2096_v47 = vld [vmem:[#allocation2 + $0xc4] sm:$0xf]  ;;  %v2094_v59 = vld [vmem:[#allocation2 + $0xbc] sm:$0x1] }
 0x14a   : > { %v1769_v26 = vpop.permute.xlu0 %1768  ;;  %v2393_v13 = vor.u32 %v2392_v58, %v2389_v56  ;;  %v2417_v42 = vor.u32 %v2416_v22, %v2413_v20  ;;  %v2437_v45 = vrot.slane %v2435_v25, 4  ;;  %v2459_v48 = vshrl.u32 %v2095_v35, 16 }
 0x14b   : > { %1845 = vst.msk [vmem:[#allocation3 + $0x50] sm:$0xf] %vm1824_vm15, %v1769_v26  ;;  %v1771_v43 = vpop.permute.xlu1 %1770  ;;  %v2438_v26 = vshll.u32 %v2092_v10, 16  ;;  %v2361_v29 = vsel %vm9195_vm7, %v2356_v6, %v2360_v5  ;;  %v2385_v53 = vsel %vm9195_vm7, %v2380_v31, %v2384_v32  ;;  %v2427_v55 = vor.u32 %v2426_v38, %v2422_v37  ;;  %v2611_v32 = vld [vmem:[#allocation2 + $0xc] sm:$0xe] }
 0x14c   : > { %2510 = vrot.lane.b32.xlu0 %v2279_v63, %s9078_s27  ;;  %1846 = vst.msk [vmem:[#allocation3 + $0x54] sm:$0xf] %vm1824_vm15, %v1771_v43  ;;  %v2394_v36 = vrot.slane %v2393_v13, 4  ;;  %v2448_v43 = vshrl.u32 %v2093_v11, 16  ;;  %v2430_v56 = vshll.u32 %v2091_v3, 16  ;;  %v2446_v58 = vrot.slane %v2444_v16, 5 }
 0x14d   : > { %2512 = vrot.lane.b32.xlu1 %v2289_v33, %s9078_s27  ;;  %v2406_v33 = vshll.u32 %v2088_v14, 16  ;;  %v2440_v46 = vrot.slane %v2438_v26, 5  ;;  %v2468_v61 = vshll.u32 %v2096_v47, 16  ;;  %v2472_v62 = vshrl.u32 %v2096_v47, 16  ;;  %v2615_v3 = vld [vmem:[#allocation2 + $0x1c] sm:$0xf] }
 0x14e   : > { %v1773_v49 = vpop.permute.xlu0 %1772  ;;  %v2450_v60 = vrot.slane %v2448_v43, 4  ;;  %v2418_v1 = vrot.slane %v2417_v42, 4  ;;  %v2432_v6 = vrot.slane %v2430_v56, 5  ;;  %v2454_v7 = vshll.u32 %v2094_v59, 16  ;;  %v2613_v42 = vld [vmem:[#allocation2 + $0x14] sm:$0x1] }
 0x14f   : > { %1847 = vst.msk [vmem:[#allocation3 + $0x58] sm:$0xf] %vm1824_vm15, %v1773_v49  ;;  %v1775_v2 = vpop.permute.xlu1 %1774  ;;  %v2462_v49 = vshll.u32 %v2095_v35, 16  ;;  %v2408_v54 = vrot.slane %v2406_v33, 5  ;;  %v2428_v8 = vrot.slane %v2427_v55, 4  ;;  %v2470_v10 = vrot.slane %v2468_v61, 5 }
 0x150   : > { %2514 = vrot.lane.b32.xlu0 %v2303_v41, %s9078_s27  ;;  %1848 = vst.msk [vmem:[#allocation3 + $0x5c] sm:$0xf] %vm1824_vm15, %v1775_v2  ;;  %v2375_v41 = vsel %vm9195_vm7, %v2370_v19, %v9791_v40  ;;  %v2399_v40 = vsel %vm9195_vm7, %v2394_v36, %v9804_v9  ;;  %v2441_v2 = vor.u32 %v2440_v46, %v2437_v45  ;;  %v2474_v13 = vrot.slane %v2472_v62, 4  ;;  %v2614_v43 = vld [vmem:[#allocation2 + $0x18] sm:$0xe] }
 0x151   : > { %2516 = vrot.lane.b32.xlu1 %v2313_v51, %s9078_s27  ;;  %v2404_v51 = vrot.slane %v2403_v28, 4  ;;  %v2464_v57 = vrot.slane %v2462_v49, 5  ;;  %v2451_v9 = vor.u32 %v2450_v60, %v2446_v58  ;;  %v2423_v12 = vsel %vm9195_vm7, %v2418_v1, %v2422_v37  ;;  %v2621_v1 = vld [vmem:[#allocation2 + $0x34] sm:$0xf] }
 0x152   : > { %v1777_v63 = vpop.permute.xlu0 %1776  ;;  %v2442_v15 = vrot.slane %v2441_v2, 4  ;;  %v2456_v20 = vrot.slane %v2454_v7, 5  ;;  %v2433_v22 = vsel %vm9195_vm7, %v2428_v8, %v2432_v6  ;;  %v2712_v46 = vrot.slane %v2613_v42, 5 }
 0x153   : > { %1849 = vst.msk [vmem:[#allocation3 + $0x60] sm:$0xf] %vm1824_vm15, %v1777_v63  ;;  %v1779_v23 = vpop.permute.xlu1 %1778  ;;  %v2409_v63 = vsel %vm9195_vm7, %v2404_v51, %v2408_v54  ;;  %v2716_v47 = vrot.slane %v2615_v3, 5  ;;  %v2618_v54 = vld [vmem:[#allocation2 + $0x28] sm:$0xf]  ;;  %v2730_v6 = vrot.slane %v2621_v1, 5 }
 0x154   : > { %2518 = vrot.lane.b32.xlu0 %v2327_v4, %s9078_s27  ;;  %1850 = vst.msk [vmem:[#allocation3 + $0x64] sm:$0xf] %vm1824_vm15, %v1779_v23  ;;  %v2461_v4 = vrot.slane %v2459_v48, 4  ;;  %v2452_v23 = vrot.slane %v2451_v9, 4  ;;  %v2447_v26 = vsel %vm9195_vm7, %v2442_v15, %v2446_v58  ;;  %v2617_v51 = vld [vmem:[#allocation2 + $0x24] sm:$0xe] }
 0x155   : > { %2520 = vrot.lane.b32.xlu1 %v2337_v18, %s9078_s27  ;;  %v2097_v18 = vld [vmem:[#allocation2 + $0xc8] sm:$0x1]  ;;  %v2718_v56 = vrot.slane %v2716_v47, 4  ;;  %v2723_v59 = vrot.slane %v2618_v54, 5  ;;  %v8645_v62 = vrot.slane %v2617_v51, 9 }
 0x156   : > { %v1781_v30 = vpop.permute.xlu0 %1780  ;;  %v2465_v17 = vor.u32 %v2464_v57, %v2461_v4  ;;  %v2478_v11 = vshll.u32 %v2097_v18, 16  ;;  %v2457_v33 = vsel %vm9195_vm7, %v2452_v23, %v2456_v20  ;;  %v2620_v4 = vld [vmem:[#allocation2 + $0x30] sm:$0xe] }
 0x157   : > { %1851 = vst.msk [vmem:[#allocation3 + $0x68] sm:$0xf] %vm1824_vm15, %v1781_v30  ;;  %v1783_v44 = vpop.permute.xlu1 %1782  ;;  %v2724_v8 = vsel %vm9486_vm13, %v8645_v62, %v2723_v59  ;;  %v8646_v9 = vrot.slane %v2620_v4, 9  ;;  %v2635_v62 = vld [vmem:[#allocation2 + $0x6c] sm:$0xe] }
 0x158   : > { %2522 = vrot.lane.b32.xlu0 %v2351_v24, %s9078_s27  ;;  %1852 = vst.msk [vmem:[#allocation3 + $0x6c] sm:$0xf] %vm1824_vm15, %v1783_v44  ;;  %v2475_v24 = vor.u32 %v2474_v13, %v2470_v10  ;;  %v2466_v30 = vrot.slane %v2465_v17, 4  ;;  %v2480_v36 = vrot.slane %v2478_v11, 5  ;;  %v2624_v13 = vld [vmem:[#allocation2 + $0x40] sm:$0xf] }
 0x159   : > { %2524 = vrot.lane.b32.xlu1 %v2361_v29, %s9078_s27  ;;  %v2612_v29 = vld [vmem:[#allocation2 + $0x10] sm:$0xf]  ;;  %v2732_v17 = vrot.slane %v2730_v6, 4  ;;  %v2627_v11 = vld [vmem:[#allocation2 + $0x4c] sm:$0xf] }
 0x15a   : > { %v1785_v50 = vpop.permute.xlu0 %1784  ;;  %v2476_v35 = vrot.slane %v2475_v24, 4  ;;  %v2709_v28 = vrot.slane %v2612_v29, 5  ;;  %v2471_v38 = vsel %vm9195_vm7, %v2466_v30, %v2470_v10  ;;  %v2622_v10 = vld [vmem:[#allocation2 + $0x38] sm:$0x1]  ;;  %v2625_v24 = vld [vmem:[#allocation2 + $0x44] sm:$0x1] }
 0x15b   : > { %1853 = vst.msk [vmem:[#allocation3 + $0x70] sm:$0xf] %vm1824_vm15, %v1785_v50  ;;  %v1787_v0 = vpop.permute.xlu1 %1786  ;;  %v8644_v50 = vrot.slane %v2614_v43, 9  ;;  %v2733_v18 = vrot.slane %v2622_v10, 5 }
 0x15c   : > { %2526 = vrot.lane.b32.xlu0 %v2375_v41, %s9078_s27  ;;  %1854 = vst.msk [vmem:[#allocation3 + $0x74] sm:$0xf] %vm1824_vm15, %v1787_v0  ;;  %v8643_v41 = vrot.slane %v2611_v32, 9  ;;  %v2481_v44 = vsel %vm9195_vm7, %v2476_v35, %v2480_v36  ;;  %v2711_v45 = vrot.slane %v2709_v28, 4  ;;  %v2619_v0 = vld [vmem:[#allocation2 + $0x2c] sm:$0x1] }
 0x15d   : > { %2528 = vrot.lane.b32.xlu1 %v2385_v53, %s9078_s27  ;;  %v2616_v53 = vld [vmem:[#allocation2 + $0x20] sm:$0x1]  ;;  %v2717_v61 = vsel %vm9486_vm13, %v8644_v50, %v2716_v47  ;;  %v2734_v30 = vsel %vm9486_vm13, %v2732_v17, %v2733_v18  ;;  %v2744_v32 = vrot.slane %v2627_v11, 5  ;;  %v2631_v47 = vld [vmem:[#allocation2 + $0x5c] sm:$0x1] }
 0x15e   : > { %v1789_v5 = vpop.permute.xlu0 %1788  ;;  %v2710_v49 = vsel %vm9486_vm13, %v8643_v41, %v2709_v28  ;;  %v2713_v55 = vsel %vm9486_vm13, %v2711_v45, %v2712_v46  ;;  %v2719_v58 = vrot.slane %v2616_v53, 5  ;;  %v2628_v28 = vld [vmem:[#allocation2 + $0x50] sm:$0x1]  ;;  %v2629_v41 = vld [vmem:[#allocation2 + $0x54] sm:$0xe] }
 0x15f   : > { %1855 = vst.msk [vmem:[#allocation3 + $0x78] sm:$0xf] %vm1824_vm15, %v1789_v5  ;;  %v1791_v14 = vpop.permute.xlu1 %1790  ;;  %v2725_v5 = vrot.slane %v2723_v59, 4  ;;  %v2746_v3 = vrot.slane %v2744_v32, 4  ;;  %v8649_v46 = vrot.slane %v2629_v41, 9 }
 0x160   : > { %2530 = vrot.lane.b32.xlu0 %v2399_v40, %s9078_s27  ;;  %1856 = vst.msk [vmem:[#allocation3 + $0x7c] sm:$0xf] %vm1824_vm15, %v1791_v14  ;;  %v2720_v57 = vsel %vm9486_vm13, %v2718_v56, %v2719_v58  ;;  %v2632_v50 = vld [vmem:[#allocation2 + $0x60] sm:$0xe]  ;;  %v2634_v59 = vld [vmem:[#allocation2 + $0x68] sm:$0x1] }
 0x161   : > { %2532 = vrot.lane.b32.xlu1 %v2409_v63, %s9078_s27  ;;  %v2726_v63 = vrot.slane %v2619_v0, 5  ;;  %v8650_v58 = vrot.slane %v2632_v50, 9 }
 0x162   : > { %v1922_v19 = vpop.permute.xlu0 %1921 }
 0x163   : > { %2018 = vst.msk [vmem:[#allocation3] sm:$0xf] %vm2017_vm1, %v1922_v19  ;;  %v1924_v25 = vpop.permute.xlu1 %1923  ;;  %v2727_v15 = vsel %vm9486_vm13, %v2725_v5, %v2726_v63  ;;  %v2737_v19 = vrot.slane %v2624_v13, 5  ;;  %v8651_v63 = vrot.slane %v2635_v62, 9 }
 0x164   : > { %2534 = vrot.lane.b32.xlu0 %v2423_v12, %s9078_s27  ;;  %2019 = vst.msk [vmem:[#allocation3 + $0x4] sm:$0xf] %vm2017_vm1, %v1924_v25  ;;  %v2623_v12 = vld [vmem:[#allocation2 + $0x3c] sm:$0xe] }
 0x165   : > { %2536 = vrot.lane.b32.xlu1 %v2433_v22, %s9078_s27  ;;  %v2731_v22 = vsel %vm9486_vm13, %v8646_v9, %v2730_v6  ;;  %v8647_v23 = vrot.slane %v2623_v12, 9  ;;  %v2739_v29 = vrot.slane %v2737_v19, 4  ;;  %v2637_v6 = vld [vmem:[#allocation2 + $0x74] sm:$0x1]  ;;  %v2638_v9 = vld [vmem:[#allocation2 + $0x78] sm:$0xe] }
 0x166   : > { %v1926_v31 = vpop.permute.xlu0 %1925  ;;  %v8652_v18 = vrot.slane %v2638_v9, 9 }
 0x167   : > { %2020 = vst.msk [vmem:[#allocation3 + $0x8] sm:$0xf] %vm2017_vm1, %v1926_v31  ;;  %v1928_v37 = vpop.permute.xlu1 %1927  ;;  %v2740_v31 = vrot.slane %v2625_v24, 5  ;;  %v2738_v35 = vsel %vm9486_vm13, %v8647_v23, %v2737_v19  ;;  %v2640_v19 = vld [vmem:[#allocation2 + $0x80] sm:$0x1] }
 0x168   : > { %2538 = vrot.lane.b32.xlu0 %v2447_v26, %s9078_s27  ;;  %2021 = vst.msk [vmem:[#allocation3 + $0xc] sm:$0xf] %vm2017_vm1, %v1928_v37  ;;  %v2626_v26 = vld [vmem:[#allocation2 + $0x48] sm:$0xe]  ;;  %v2630_v37 = vld [vmem:[#allocation2 + $0x58] sm:$0xf] }
 0x169   : > { %2540 = vrot.lane.b32.xlu1 %v2457_v33, %s9078_s27  ;;  %v8648_v36 = vrot.slane %v2626_v26, 9  ;;  %v2741_v42 = vsel %vm9486_vm13, %v2739_v29, %v2740_v31  ;;  %v2751_v43 = vrot.slane %v2630_v37, 5  ;;  %v2641_v23 = vld [vmem:[#allocation2 + $0x84] sm:$0xe] }
 0x16a   : > { %v1930_v16 = vpop.permute.xlu0 %1929  ;;  %v8653_v31 = vrot.slane %v2641_v23, 9 }
 0x16b   : > { %2022 = vst.msk [vmem:[#allocation3 + $0x10] sm:$0xf] %vm2017_vm1, %v1930_v16  ;;  %v1932_v48 = vpop.permute.xlu1 %1931  ;;  %v2747_v16 = vrot.slane %v2628_v28, 5  ;;  %v2745_v45 = vsel %vm9486_vm13, %v8648_v36, %v2744_v32  ;;  %v2753_v54 = vrot.slane %v2751_v43, 4  ;;  %v2752_v56 = vsel %vm9486_vm13, %v8649_v46, %v2751_v43  ;;  %v2643_v32 = vld [vmem:[#allocation2 + $0x8c] sm:$0x1] }
 0x16c   : > { %2542 = vrot.lane.b32.xlu0 %v2471_v38, %s9078_s27  ;;  %2023 = vst.msk [vmem:[#allocation3 + $0x14] sm:$0xf] %vm2017_vm1, %v1932_v48  ;;  %v2633_v48 = vld [vmem:[#allocation2 + $0x64] sm:$0xf]  ;;  %v2644_v36 = vld [vmem:[#allocation2 + $0x90] sm:$0xe] }
 0x16d   : > { %2544 = vrot.lane.b32.xlu1 %v2481_v44, %s9078_s27  ;;  %v2748_v53 = vsel %vm9486_vm13, %v2746_v3, %v2747_v16  ;;  %v2758_v51 = vrot.slane %v2633_v48, 5  ;;  %v8654_v43 = vrot.slane %v2644_v36, 9  ;;  %v2647_v46 = vld [vmem:[#allocation2 + $0x9c] sm:$0xe] }
 0x16e   : > { %v1934_v40 = vpop.permute.xlu0 %1933 }
 0x16f   : > { %2024 = vst.msk [vmem:[#allocation3 + $0x18] sm:$0xf] %vm2017_vm1, %v1934_v40  ;;  %v1936_v60 = vpop.permute.xlu1 %1935  ;;  %v2754_v40 = vrot.slane %v2631_v47, 5  ;;  %v2760_v1 = vrot.slane %v2758_v51, 4  ;;  %v2759_v5 = vsel %vm9486_vm13, %v8650_v58, %v2758_v51  ;;  %v8655_v51 = vrot.slane %v2647_v46, 9 }
 0x170   : > { %2819 = vrot.lane.b32.xlu0 %v2710_v49, %s9079_s28  ;;  %2025 = vst.msk [vmem:[#allocation3 + $0x1c] sm:$0xf] %vm2017_vm1, %v1936_v60  ;;  %v2636_v60 = vld [vmem:[#allocation2 + $0x70] sm:$0xf]  ;;  %v2650_v58 = vld [vmem:[#allocation2 + $0xa8] sm:$0xe] }
 0x171   : > { %2821 = vrot.lane.b32.xlu1 %v2713_v55, %s9079_s28  ;;  %v2755_v0 = vsel %vm9486_vm13, %v2753_v54, %v2754_v40  ;;  %v2765_v4 = vrot.slane %v2636_v60, 5  ;;  %v2953_v46 = vld [vmem:[#allocation2 + $0x30] sm:$0xf] }
 0x172   : > { %v1938_v2 = vpop.permute.xlu0 %1937 }
 0x173   : > { %2026 = vst.msk [vmem:[#allocation3 + $0x20] sm:$0xf] %vm2017_vm1, %v1938_v2  ;;  %v1940_v7 = vpop.permute.xlu1 %1939  ;;  %v2761_v2 = vrot.slane %v2634_v59, 5  ;;  %v2767_v13 = vrot.slane %v2765_v4, 4  ;;  %v2766_v17 = vsel %vm9486_vm13, %v8651_v63, %v2765_v4  ;;  %v2652_v4 = vld [vmem:[#allocation2 + $0xb0] sm:$0x1] }
 0x174   : > { %2823 = vrot.lane.b32.xlu0 %v2717_v61, %s9079_s28  ;;  %2027 = vst.msk [vmem:[#allocation3 + $0x24] sm:$0xf] %vm2017_vm1, %v1940_v7  ;;  %v2639_v7 = vld [vmem:[#allocation2 + $0x7c] sm:$0xf]  ;;  %v2653_v63 = vld [vmem:[#allocation2 + $0xb4] sm:$0xe] }
 0x175   : > { %2825 = vrot.lane.b32.xlu1 %v2720_v57, %s9079_s28  ;;  %v2762_v10 = vsel %vm9486_vm13, %v2760_v1, %v2761_v2  ;;  %v2772_v12 = vrot.slane %v2639_v7, 5  ;;  %v8656_v2 = vrot.slane %v2650_v58, 9 }
 0x176   : > { %v1942_v14 = vpop.permute.xlu0 %1941 }
 0x177   : > { %2028 = vst.msk [vmem:[#allocation3 + $0x28] sm:$0xf] %vm2017_vm1, %v1942_v14  ;;  %v1944_v20 = vpop.permute.xlu1 %1943  ;;  %v2768_v14 = vrot.slane %v2637_v6, 5  ;;  %v2774_v11 = vrot.slane %v2772_v12, 4  ;;  %v2773_v29 = vsel %vm9486_vm13, %v8652_v18, %v2772_v12  ;;  %v2655_v12 = vld [vmem:[#allocation2 + $0xbc] sm:$0x1] }
 0x178   : > { %2827 = vrot.lane.b32.xlu0 %v2724_v8, %s9079_s28  ;;  %2029 = vst.msk [vmem:[#allocation3 + $0x2c] sm:$0xf] %vm2017_vm1, %v1944_v20  ;;  %v2642_v20 = vld [vmem:[#allocation2 + $0x88] sm:$0xf]  ;;  %v2656_v18 = vld [vmem:[#allocation2 + $0xc0] sm:$0xe] }
 0x179   : > { %2829 = vrot.lane.b32.xlu1 %v2727_v15, %s9079_s28  ;;  %v2769_v24 = vsel %vm9486_vm13, %v2767_v13, %v2768_v14  ;;  %v2779_v26 = vrot.slane %v2642_v20, 5  ;;  %v8657_v14 = vrot.slane %v2653_v63, 9  ;;  %v2964_v63 = vld [vmem:[#allocation2 + $0x70] sm:$0xf] }
 0x17a   : > { %v1946_v25 = vpop.permute.xlu0 %1945 }
 0x17b   : > { %2030 = vst.msk [vmem:[#allocation3 + $0x30] sm:$0xf] %vm2017_vm1, %v1946_v25  ;;  %v1948_v33 = vpop.permute.xlu1 %1947  ;;  %v2775_v25 = vrot.slane %v2640_v19, 5  ;;  %v2781_v37 = vrot.slane %v2779_v26, 4  ;;  %v2780_v16 = vsel %vm9486_vm13, %v8653_v31, %v2779_v26  ;;  %v2658_v26 = vld [vmem:[#allocation2 + $0xc8] sm:$0x1] }
 0x17c   : > { %2831 = vrot.lane.b32.xlu0 %v2731_v22, %s9079_s28  ;;  %2031 = vst.msk [vmem:[#allocation3 + $0x34] sm:$0xf] %vm2017_vm1, %v1948_v33  ;;  %v2645_v33 = vld [vmem:[#allocation2 + $0x94] sm:$0xf] }
 0x17d   : > { %2833 = vrot.lane.b32.xlu1 %v2734_v30, %s9079_s28  ;;  %v2776_v28 = vsel %vm9486_vm13, %v2774_v11, %v2775_v25  ;;  %v2786_v41 = vrot.slane %v2645_v33, 5  ;;  %v8658_v25 = vrot.slane %v2656_v18, 9 }
 0x17e   : > { %v1950_v38 = vpop.permute.xlu0 %1949 }
 0x17f   : > { %2032 = vst.msk [vmem:[#allocation3 + $0x38] sm:$0xf] %vm2017_vm1, %v1950_v38  ;;  %v1952_v44 = vpop.permute.xlu1 %1951  ;;  %v2782_v38 = vrot.slane %v2643_v32, 5  ;;  %v2787_v40 = vsel %vm9486_vm13, %v8654_v43, %v2786_v41  ;;  %v2817_v32 = vrot.slane %v2658_v26, 5 }
 0x180   : > { %2835 = vrot.lane.b32.xlu0 %v2738_v35, %s9079_s28  ;;  %2033 = vst.msk [vmem:[#allocation3 + $0x3c] sm:$0xf] %vm2017_vm1, %v1952_v44  ;;  %v2646_v44 = vld [vmem:[#allocation2 + $0x98] sm:$0x1] }
 0x181   : > { %2837 = vrot.lane.b32.xlu1 %v2741_v42, %s9079_s28  ;;  %v2648_v42 = vld [vmem:[#allocation2 + $0xa0] sm:$0xf]  ;;  %v2783_v48 = vsel %vm9486_vm13, %v2781_v37, %v2782_v38  ;;  %v2789_v50 = vrot.slane %v2646_v44, 5  ;;  %v2949_v38 = vld [vmem:[#allocation2 + $0x18] sm:$0xf] }
 0x182   : > { %v1954_v49 = vpop.permute.xlu0 %1953  ;;  %v2793_v47 = vrot.slane %v2648_v42, 5  ;;  %v2950_v42 = vld [vmem:[#allocation2 + $0x1c] sm:$0xf]  ;;  %v2952_v44 = vld [vmem:[#allocation2 + $0x28] sm:$0xf] }
 0x183   : > { %2034 = vst.msk [vmem:[#allocation3 + $0x40] sm:$0xf] %vm2017_vm1, %v1954_v49  ;;  %v1956_v55 = vpop.permute.xlu1 %1955  ;;  %v2788_v49 = vrot.slane %v2786_v41, 4 }
 0x184   : > { %2839 = vrot.lane.b32.xlu0 %v2745_v45, %s9079_s28  ;;  %2035 = vst.msk [vmem:[#allocation3 + $0x44] sm:$0xf] %vm2017_vm1, %v1956_v55  ;;  %v2651_v55 = vld [vmem:[#allocation2 + $0xac] sm:$0xf]  ;;  %v2795_v59 = vrot.slane %v2793_v47, 4  ;;  %v2794_v1 = vsel %vm9486_vm13, %v8655_v51, %v2793_v47 }
 0x185   : > { %2841 = vrot.lane.b32.xlu1 %v2748_v53, %s9079_s28  ;;  %v2649_v53 = vld [vmem:[#allocation2 + $0xa4] sm:$0x1]  ;;  %v2800_v62 = vrot.slane %v2651_v55, 5  ;;  %v2957_v51 = vld [vmem:[#allocation2 + $0x48] sm:$0xf] }
 0x186   : > { %v1958_v61 = vpop.permute.xlu0 %1957  ;;  %v2796_v60 = vrot.slane %v2649_v53, 5 }
 0x187   : > { %2036 = vst.msk [vmem:[#allocation3 + $0x48] sm:$0xf] %vm2017_vm1, %v1958_v61  ;;  %v1960_v57 = vpop.permute.xlu1 %1959  ;;  %v2790_v61 = vsel %vm9486_vm13, %v2788_v49, %v2789_v50  ;;  %v2802_v7 = vrot.slane %v2800_v62, 4  ;;  %v2801_v13 = vsel %vm9486_vm13, %v8656_v2, %v2800_v62  ;;  %v2955_v50 = vld [vmem:[#allocation2 + $0x3c] sm:$0xf] }
 0x188   : > { %2843 = vrot.lane.b32.xlu0 %v2752_v56, %s9079_s28  ;;  %2037 = vst.msk [vmem:[#allocation3 + $0x4c] sm:$0xf] %vm2017_vm1, %v1960_v57  ;;  %v2654_v57 = vld [vmem:[#allocation2 + $0xb8] sm:$0xf]  ;;  %v2797_v6 = vsel %vm9486_vm13, %v2795_v59, %v2796_v60  ;;  %v2959_v59 = vld [vmem:[#allocation2 + $0x54] sm:$0xf] }
 0x189   : > { %2845 = vrot.lane.b32.xlu1 %v2755_v0, %s9079_s28  ;;  %v2807_v9 = vrot.slane %v2654_v57, 5  ;;  %v2962_v2 = vld [vmem:[#allocation2 + $0x64] sm:$0xf]  ;;  %v2963_v57 = vld [vmem:[#allocation2 + $0x6c] sm:$0xf] }
 0x18a   : > { %v1962_v8 = vpop.permute.xlu0 %1961 }
 0x18b   : > { %2038 = vst.msk [vmem:[#allocation3 + $0x50] sm:$0xf] %vm2017_vm1, %v1962_v8  ;;  %v1964_v15 = vpop.permute.xlu1 %1963  ;;  %v2803_v8 = vrot.slane %v2652_v4, 5  ;;  %v2809_v20 = vrot.slane %v2807_v9, 4  ;;  %v2808_v11 = vsel %vm9486_vm13, %v8657_v14, %v2807_v9  ;;  %v2966_v9 = vld [vmem:[#allocation2 + $0x7c] sm:$0xf] }
 0x18c   : > { %2847 = vrot.lane.b32.xlu0 %v2759_v5, %s9079_s28  ;;  %2039 = vst.msk [vmem:[#allocation3 + $0x54] sm:$0xf] %vm2017_vm1, %v1964_v15  ;;  %v2657_v15 = vld [vmem:[#allocation2 + $0xc4] sm:$0xf] }
 0x18d   : > { %2849 = vrot.lane.b32.xlu1 %v2762_v10, %s9079_s28  ;;  %v2804_v19 = vsel %vm9486_vm13, %v2802_v7, %v2803_v8  ;;  %v2814_v23 = vrot.slane %v2657_v15, 5  ;;  %v2965_v7 = vld [vmem:[#allocation2 + $0x78] sm:$0xf] }
 0x18e   : > { %v1966_v22 = vpop.permute.xlu0 %1965 }
 0x18f   : > { %2040 = vst.msk [vmem:[#allocation3 + $0x58] sm:$0xf] %vm2017_vm1, %v1966_v22  ;;  %v1968_v30 = vpop.permute.xlu1 %1967  ;;  %v2810_v22 = vrot.slane %v2655_v12, 5  ;;  %v2816_v31 = vrot.slane %v2814_v23, 4  ;;  %v2968_v12 = vld [vmem:[#allocation2 + $0x88] sm:$0xf] }
 0x190   : > { %2851 = vrot.lane.b32.xlu0 %v2766_v17, %s9079_s28  ;;  %2041 = vst.msk [vmem:[#allocation3 + $0x5c] sm:$0xf] %vm2017_vm1, %v1968_v30 }
 0x191   : > { %2853 = vrot.lane.b32.xlu1 %v2769_v24, %s9079_s28 }
 0x192   : > { %v1970_v35 = vpop.permute.xlu0 %1969 }
 0x193   : > { %2042 = vst.msk [vmem:[#allocation3 + $0x60] sm:$0xf] %vm2017_vm1, %v1970_v35  ;;  %v1972_v3 = vpop.permute.xlu1 %1971  ;;  %v2815_v35 = vsel %vm9486_vm13, %v8658_v25, %v2814_v23  ;;  %v3143_v25 = vld [vmem:[#allocation2 + $0x1c] sm:$0xf] }
 0x194   : > { %2855 = vrot.lane.b32.xlu0 %v2773_v29, %s9079_s28  ;;  %2043 = vst.msk [vmem:[#allocation3 + $0x64] sm:$0xf] %vm2017_vm1, %v1972_v3  ;;  %v2811_v29 = vsel %vm9486_vm13, %v2809_v20, %v2810_v22  ;;  %v2971_v22 = vld [vmem:[#allocation2 + $0x9c] sm:$0xf] }
 0x195   : > { %2857 = vrot.lane.b32.xlu1 %v2776_v28, %s9079_s28  ;;  %v2818_v28 = vsel %vm9486_vm13, %v2816_v31, %v2817_v32  ;;  %v3145_v32 = vld [vmem:[#allocation2 + $0x24] sm:$0xf] }
 0x196   : > { %v1974_v45 = vpop.permute.xlu0 %1973 }
 0x197   : > { %2044 = vst.msk [vmem:[#allocation3 + $0x68] sm:$0xf] %vm2017_vm1, %v1974_v45  ;;  %v1976_v54 = vpop.permute.xlu1 %1975 }
 0x198   : > { %2859 = vrot.lane.b32.xlu0 %v2780_v16, %s9079_s28  ;;  %2045 = vst.msk [vmem:[#allocation3 + $0x6c] sm:$0xf] %vm2017_vm1, %v1976_v54  ;;  %v2951_v16 = vld [vmem:[#allocation2 + $0x24] sm:$0xf]  ;;  %v2956_v54 = vld [vmem:[#allocation2 + $0x40] sm:$0xf] }
 0x199   : > { %2861 = vrot.lane.b32.xlu1 %v2783_v48, %s9079_s28  ;;  %v2954_v48 = vld [vmem:[#allocation2 + $0x34] sm:$0xf] }
 0x19a   : > { %v1978_v56 = vpop.permute.xlu0 %1977 }
 0x19b   : > { %2046 = vst.msk [vmem:[#allocation3 + $0x70] sm:$0xf] %vm2017_vm1, %v1978_v56  ;;  %v1980_v0 = vpop.permute.xlu1 %1979  ;;  %v2958_v56 = vld [vmem:[#allocation2 + $0x4c] sm:$0xf] }
 0x19c   : > { %2863 = vrot.lane.b32.xlu0 %v2787_v40, %s9079_s28  ;;  %2047 = vst.msk [vmem:[#allocation3 + $0x74] sm:$0xf] %vm2017_vm1, %v1980_v0  ;;  %v2961_v0 = vld [vmem:[#allocation2 + $0x60] sm:$0xf] }
 0x19d   : > { %2865 = vrot.lane.b32.xlu1 %v2790_v61, %s9079_s28  ;;  %v2960_v61 = vld [vmem:[#allocation2 + $0x58] sm:$0xf] }
 0x19e   : > { %v1982_v5 = vpop.permute.xlu0 %1981 }
 0x19f   : > { %2048 = vst.msk [vmem:[#allocation3 + $0x78] sm:$0xf] %vm2017_vm1, %v1982_v5  ;;  %v1984_v10 = vpop.permute.xlu1 %1983 }
 0x1a0   : > { %2867 = vrot.lane.b32.xlu0 %v2794_v1, %s9079_s28  ;;  %2049 = vst.msk [vmem:[#allocation3 + $0x7c] sm:$0xf] %vm2017_vm1, %v1984_v10 }
 0x1a1   : > { %2869 = vrot.lane.b32.xlu1 %v2797_v6, %s9079_s28 }
 0x1a2   : > { %v2483_v17 = vpop.permute.xlu0 %2482 }
 0x1a3   : > { %2579 = vst.msk [vmem:[#allocation3] sm:$0xf] %vm2578_vm2, %v2483_v17  ;;  %v2485_v24 = vpop.permute.xlu1 %2484  ;;  %v2969_v17 = vld [vmem:[#allocation2 + $0x90] sm:$0xf] }
 0x1a4   : > { %2871 = vrot.lane.b32.xlu0 %v2801_v13, %s9079_s28  ;;  %2580 = vst.msk [vmem:[#allocation3 + $0x4] sm:$0xf] %vm2578_vm2, %v2485_v24  ;;  %v2967_v13 = vld [vmem:[#allocation2 + $0x84] sm:$0xf]  ;;  %v3142_v24 = vld [vmem:[#allocation2 + $0x18] sm:$0xf] }
 0x1a5   : > { %2873 = vrot.lane.b32.xlu1 %v2804_v19, %s9079_s28  ;;  %v2970_v19 = vld [vmem:[#allocation2 + $0x94] sm:$0xf]  ;;  %v3194_v31 = vshll.u32 %v3142_v24, 16 }
 0x1a6   : > { %v2487_v30 = vpop.permute.xlu0 %2486 }
 0x1a7   : > { %2581 = vst.msk [vmem:[#allocation3 + $0x8] sm:$0xf] %vm2578_vm2, %v2487_v30  ;;  %v2489_v33 = vpop.permute.xlu1 %2488  ;;  %v2973_v30 = vld [vmem:[#allocation2 + $0xa8] sm:$0xf] }
 0x1a8   : > { %2875 = vrot.lane.b32.xlu0 %v2808_v11, %s9079_s28  ;;  %2582 = vst.msk [vmem:[#allocation3 + $0xc] sm:$0xf] %vm2578_vm2, %v2489_v33  ;;  %v2972_v11 = vld [vmem:[#allocation2 + $0xa0] sm:$0xf] }
 0x1a9   : > { %2877 = vrot.lane.b32.xlu1 %v2811_v29, %s9079_s28  ;;  %v3191_v29 = vshrl.u32 %v3142_v24, 16  ;;  %v3703_v24 = vld [vmem:[#allocation2 + $0x18] sm:$0xe] }
 0x1aa   : > { %v2491_v36 = vpop.permute.xlu0 %2490 }
 0x1ab   : > { %2583 = vst.msk [vmem:[#allocation3 + $0x10] sm:$0xf] %vm2578_vm2, %v2491_v36  ;;  %v2493_v37 = vpop.permute.xlu1 %2492  ;;  %v3204_v36 = vshrl.u32 %v3143_v25, 16 }
 0x1ac   : > { %2879 = vrot.lane.b32.xlu0 %v2815_v35, %s9079_s28  ;;  %2584 = vst.msk [vmem:[#allocation3 + $0x14] sm:$0xf] %vm2578_vm2, %v2493_v37  ;;  %v3200_v35 = vshll.u32 %v3143_v25, 16  ;;  %v3215_v37 = vshrl.u32 %v3145_v32, 16 }
 0x1ad   : > { %2881 = vrot.lane.b32.xlu1 %v2818_v28, %s9079_s28  ;;  %v2974_v28 = vld [vmem:[#allocation2 + $0xac] sm:$0xf] }
 0x1ae   : > { %v2495_v41 = vpop.permute.xlu0 %2494 }
 0x1af   : > { %2585 = vst.msk [vmem:[#allocation3 + $0x18] sm:$0xf] %vm2578_vm2, %v2495_v41  ;;  %v2497_v3 = vpop.permute.xlu1 %2496 }
 0x1b0   : > { %3013 = vrot.lane.b32.xlu0 %v2949_v38, %s9080_s29  ;;  %2586 = vst.msk [vmem:[#allocation3 + $0x1c] sm:$0xf] %vm2578_vm2, %v2497_v3  ;;  %v3218_v38 = vshll.u32 %v3145_v32, 16  ;;  %v3193_v3 = vrot.slane %v3191_v29, 4 }
 0x1b1   : > { %3015 = vrot.lane.b32.xlu1 %v2950_v42, %s9080_s29  ;;  %v2975_v42 = vld [vmem:[#allocation2 + $0xb4] sm:$0xf] }
 0x1b2   : > { %v2499_v43 = vpop.permute.xlu0 %2498 }
 0x1b3   : > { %2587 = vst.msk [vmem:[#allocation3 + $0x20] sm:$0xf] %vm2578_vm2, %v2499_v43  ;;  %v2501_v45 = vpop.permute.xlu1 %2500  ;;  %v3146_v43 = vld [vmem:[#allocation2 + $0x28] sm:$0xf] }
 0x1b4   : > { %3017 = vrot.lane.b32.xlu0 %v2951_v16, %s9080_s29  ;;  %2588 = vst.msk [vmem:[#allocation3 + $0x24] sm:$0xf] %vm2578_vm2, %v2501_v45  ;;  %v3196_v16 = vrot.slane %v3194_v31, 5  ;;  %v2976_v45 = vld [vmem:[#allocation2 + $0xb8] sm:$0xf] }
 0x1b5   : > { %3019 = vrot.lane.b32.xlu1 %v2952_v44, %s9080_s29 }
 0x1b6   : > { %v2503_v47 = vpop.permute.xlu0 %2502 }
 0x1b7   : > { %2589 = vst.msk [vmem:[#allocation3 + $0x28] sm:$0xf] %vm2578_vm2, %v2503_v47  ;;  %v2505_v49 = vpop.permute.xlu1 %2504  ;;  %v3206_v47 = vrot.slane %v3204_v36, 4 }
 0x1b8   : > { %3021 = vrot.lane.b32.xlu0 %v2953_v46, %s9080_s29  ;;  %2590 = vst.msk [vmem:[#allocation3 + $0x2c] sm:$0xf] %vm2578_vm2, %v2505_v49  ;;  %v3202_v46 = vrot.slane %v3200_v35, 5  ;;  %v3217_v49 = vrot.slane %v3215_v37, 4  ;;  %v3152_v35 = vld [vmem:[#allocation2 + $0x40] sm:$0xf] }
 0x1b9   : > { %3023 = vrot.lane.b32.xlu1 %v2954_v48, %s9080_s29  ;;  %v3144_v48 = vld [vmem:[#allocation2 + $0x20] sm:$0x1] }
 0x1ba   : > { %v2507_v53 = vpop.permute.xlu0 %2506 }
 0x1bb   : > { %2591 = vst.msk [vmem:[#allocation3 + $0x30] sm:$0xf] %vm2578_vm2, %v2507_v53  ;;  %v2509_v40 = vpop.permute.xlu1 %2508  ;;  %v3224_v53 = vshll.u32 %v3146_v43, 16 }
 0x1bc   : > { %3025 = vrot.lane.b32.xlu0 %v2955_v50, %s9080_s29  ;;  %2592 = vst.msk [vmem:[#allocation3 + $0x34] sm:$0xf] %vm2578_vm2, %v2509_v40  ;;  %v3220_v50 = vrot.slane %v3218_v38, 5 }
 0x1bd   : > { %3027 = vrot.lane.b32.xlu1 %v2956_v54, %s9080_s29  ;;  %v3228_v54 = vshrl.u32 %v3146_v43, 16  ;;  %v9029_v43 = vld [vmem:[%s11713_s1 + $0x8] sm:$0xff]  }
 0x1be   : > { %v2511_v55 = vpop.permute.xlu0 %2510 }
 0x1bf   : > { %2593 = vst.msk [vmem:[#allocation3 + $0x38] sm:$0xf] %vm2578_vm2, %v2511_v55  ;;  %v2513_v58 = vpop.permute.xlu1 %2512  ;;  %v3197_v55 = vor.u32 %v3196_v16, %v3193_v3 }
 0x1c0   : > { %3029 = vrot.lane.b32.xlu0 %v2957_v51, %s9080_s29  ;;  %2594 = vst.msk [vmem:[#allocation3 + $0x3c] sm:$0xf] %vm2578_vm2, %v2513_v58  ;;  %v2977_v51 = vld [vmem:[#allocation2 + $0xc0] sm:$0xf]  ;;  %v3207_v58 = vor.u32 %v3206_v47, %v3202_v46  ;;  %v3706_v47 = vld [vmem:[#allocation2 + $0x24] sm:$0xe] }
 0x1c1   : > { %3031 = vrot.lane.b32.xlu1 %v2958_v56, %s9080_s29 }
 0x1c2   : > { %v2515_v60 = vpop.permute.xlu0 %2514 }
 0x1c3   : > { %2595 = vst.msk [vmem:[#allocation3 + $0x40] sm:$0xf] %vm2578_vm2, %v2515_v60  ;;  %v2517_v62 = vpop.permute.xlu1 %2516  ;;  %v2978_v60 = vld [vmem:[#allocation2 + $0xc4] sm:$0xf] }
 0x1c4   : > { %3033 = vrot.lane.b32.xlu0 %v2959_v59, %s9080_s29  ;;  %2596 = vst.msk [vmem:[#allocation3 + $0x44] sm:$0xf] %vm2578_vm2, %v2517_v62  ;;  %v3210_v59 = vshll.u32 %v3144_v48, 16  ;;  %v3221_v62 = vor.u32 %v3220_v50, %v3217_v49  ;;  %v3272_v50 = vshll.u32 %v3152_v35, 16 }
 0x1c5   : > { %3035 = vrot.lane.b32.xlu1 %v2960_v61, %s9080_s29  ;;  %v2979_v61 = vld [vmem:[#allocation2 + $0xcc] sm:$0xf] }
 0x1c6   : > { %v2519_v1 = vpop.permute.xlu0 %2518 }
 0x1c7   : > { %2597 = vst.msk [vmem:[#allocation3 + $0x48] sm:$0xf] %vm2578_vm2, %v2519_v1  ;;  %v2521_v4 = vpop.permute.xlu1 %2520  ;;  %v3230_v1 = vrot.slane %v3228_v54, 4 }
 0x1c8   : > { %3037 = vrot.lane.b32.xlu0 %v2961_v0, %s9080_s29  ;;  %2598 = vst.msk [vmem:[#allocation3 + $0x4c] sm:$0xf] %vm2578_vm2, %v2521_v4  ;;  %v10051_v0 = vrot.slane %v3224_v53, 5  ;;  %v3198_v4 = vrot.slane %v3197_v55, 4  ;;  %v3276_v53 = vshrl.u32 %v3152_v35, 16 }
 0x1c9   : > { %3039 = vrot.lane.b32.xlu1 %v2962_v2, %s9080_s29 }
 0x1ca   : > { %v2523_v5 = vpop.permute.xlu0 %2522 }
 0x1cb   : > { %2599 = vst.msk [vmem:[#allocation3 + $0x50] sm:$0xf] %vm2578_vm2, %v2523_v5  ;;  %v2525_v6 = vpop.permute.xlu1 %2524  ;;  %v3148_v5 = vld [vmem:[#allocation2 + $0x30] sm:$0xf] }
 0x1cc   : > { %3041 = vrot.lane.b32.xlu0 %v2963_v57, %s9080_s29  ;;  %2600 = vst.msk [vmem:[#allocation3 + $0x54] sm:$0xf] %vm2578_vm2, %v2525_v6  ;;  %v3147_v57 = vld [vmem:[#allocation2 + $0x2c] sm:$0x1]  ;;  %v2980_v6 = vld [vmem:[#allocation2 + $0xd0] sm:$0xf] }
 0x1cd   : > { %3043 = vrot.lane.b32.xlu1 %v2964_v63, %s9080_s29 }
 0x1ce   : > { %v2527_v8 = vpop.permute.xlu0 %2526 }
 0x1cf   : > { %2601 = vst.msk [vmem:[#allocation3 + $0x58] sm:$0xf] %vm2578_vm2, %v2527_v8  ;;  %v2529_v10 = vpop.permute.xlu1 %2528  ;;  %v3212_v8 = vrot.slane %v3210_v59, 5 }
 0x1d0   : > { %3045 = vrot.lane.b32.xlu0 %v2965_v7, %s9080_s29  ;;  %2602 = vst.msk [vmem:[#allocation3 + $0x5c] sm:$0xf] %vm2578_vm2, %v2529_v10  ;;  %v3208_v7 = vrot.slane %v3207_v58, 4  ;;  %v3222_v10 = vrot.slane %v3221_v62, 4 }
 0x1d1   : > { %3047 = vrot.lane.b32.xlu1 %v2966_v9, %s9080_s29  ;;  %v3704_v9 = vld [vmem:[#allocation2 + $0x1c] sm:$0xf] }
 0x1d2   : > { %v2531_v14 = vpop.permute.xlu0 %2530  ;;  %v3213_v25 = vsel %vm9195_vm7, %v3208_v7, %v3212_v8  ;;  %v3227_v38 = vsel %vm9195_vm7, %v3222_v10, %v10051_v0 }
 0x1d3   : > { %2603 = vst.msk [vmem:[#allocation3 + $0x60] sm:$0xf] %vm2578_vm2, %v2531_v14  ;;  %v2533_v15 = vpop.permute.xlu1 %2532  ;;  %v3234_v14 = vshll.u32 %v3147_v57, 16  ;;  %v10094_v57 = vrot.slane %v3272_v50, 5 }
 0x1d4   : > { %3049 = vrot.lane.b32.xlu0 %v2967_v13, %s9080_s29  ;;  %2604 = vst.msk [vmem:[#allocation3 + $0x64] sm:$0xf] %vm2578_vm2, %v2533_v15  ;;  %v3231_v13 = vor.u32 %v3230_v1, %v10051_v0  ;;  %v3239_v15 = vshrl.u32 %v3148_v5, 16  ;;  %v9030_v0 = vld [vmem:[%s11713_s1] sm:$0xff]  }
 0x1d5   : > { %3051 = vrot.lane.b32.xlu1 %v2968_v12, %s9080_s29  ;;  %v3149_v12 = vld [vmem:[#allocation2 + $0x34] sm:$0xf] }
 0x1d6   : > { %v2535_v18 = vpop.permute.xlu0 %2534  ;;  %v3252_v29 = vshrl.u32 %v3149_v12, 16  ;;  %v3232_v32 = vrot.slane %v3231_v13, 4  ;;  %v3241_v3 = vrot.slane %v3239_v15, 4  ;;  %v3154_v15 = vld [vmem:[#allocation2 + $0x48] sm:$0xf] }
 0x1d7   : > { %2605 = vst.msk [vmem:[#allocation3 + $0x68] sm:$0xf] %vm2578_vm2, %v2535_v18  ;;  %v2537_v20 = vpop.permute.xlu1 %2536  ;;  %v3203_v18 = vsel %vm9195_vm7, %v3198_v4, %v3202_v46 }
 0x1d8   : > { %3053 = vrot.lane.b32.xlu0 %v2969_v17, %s9080_s29  ;;  %2606 = vst.msk [vmem:[#allocation3 + $0x6c] sm:$0xf] %vm2578_vm2, %v2537_v20  ;;  %v3151_v20 = vld [vmem:[#allocation2 + $0x3c] sm:$0xf]  ;;  %v3254_v49 = vrot.slane %v3252_v29, 4  ;;  %v3287_v29 = vshrl.u32 %v3154_v15, 16 }
 0x1d9   : > { %3055 = vrot.lane.b32.xlu1 %v2970_v19, %s9080_s29  ;;  %v3242_v19 = vshll.u32 %v3148_v5, 16  ;;  %v3263_v36 = vshrl.u32 %v3151_v20, 16  ;;  %v3278_v5 = vrot.slane %v3276_v53, 4  ;;  %v3712_v53 = vld [vmem:[#allocation2 + $0x3c] sm:$0xe] }
 0x1da   : > { %v2539_v23 = vpop.permute.xlu0 %2538 }
 0x1db   : > { %2607 = vst.msk [vmem:[#allocation3 + $0x70] sm:$0xf] %vm2578_vm2, %v2539_v23  ;;  %v2541_v26 = vpop.permute.xlu1 %2540  ;;  %v3244_v16 = vrot.slane %v3242_v19, 5  ;;  %v3265_v55 = vrot.slane %v3263_v36, 4  ;;  %v3279_v19 = vor.u32 %v3278_v5, %v10094_v57 }
 0x1dc   : > { %3057 = vrot.lane.b32.xlu0 %v2971_v22, %s9080_s29  ;;  %2608 = vst.msk [vmem:[#allocation3 + $0x74] sm:$0xf] %vm2578_vm2, %v2541_v26  ;;  %v9028_v22 = vld [vmem:[%s11713_s1 + $0x10] ss:$0 sps:$4 sm:$0x33]  }
 0x1dd   : > { %3059 = vrot.lane.b32.xlu1 %v2972_v11, %s9080_s29  ;;  %v3801_v11 = vrot.slane %v3704_v9, 5  ;;  %v3705_v26 = vld [vmem:[#allocation2 + $0x20] sm:$0x1]  ;;  %9009 = vmatprep.subr.msk.bf16.mxu0 %vm4222_vm4, %v9028_v22  ;;  %v4224_v31 = vsel %vm4222_vm4, %v9028_v22, 0  ;;  %v3245_v62 = vor.u32 %v3244_v16, %v3241_v3  ;;  %v3153_v9 = vld [vmem:[#allocation2 + $0x44] sm:$0x1] }
 0x1de   : > { %v2543_v33 = vpop.permute.xlu0 %2542  ;;  %8934 = vmatpush3.bf16.msra.mxu0 %v4224_v31  ;;  %v3804_v46 = vrot.slane %v3705_v26, 5  ;;  %v3709_v26 = vld [vmem:[#allocation2 + $0x30] sm:$0xe]  ;;  %v3290_v31 = vshll.u32 %v3154_v15, 16  ;;  %v3280_v36 = vrot.slane %v3279_v19, 4 }
 0x1df   : > { %2609 = vst.msk [vmem:[#allocation3 + $0x78] sm:$0xf] %vm2578_vm2, %v2543_v33  ;;  %v2545_v41 = vpop.permute.xlu1 %2544  ;;  %v3236_v33 = vrot.slane %v3234_v14, 5  ;;  %8935 = vmatprep.subr.bf16.mxu0 %v9029_v43  ;;  %v3246_v14 = vrot.slane %v3245_v62, 4  ;;  %v3711_v3 = vld [vmem:[#allocation2 + $0x38] sm:$0x1] }
 0x1e0   : > { %3061 = vrot.lane.b32.xlu0 %v2973_v30, %s9080_s29  ;;  %2610 = vst.msk [vmem:[#allocation3 + $0x7c] sm:$0xf] %vm2578_vm2, %v2545_v41  ;;  %v3248_v30 = vshll.u32 %v3149_v12, 16  ;;  %v8659_v41 = vrot.slane %v3703_v24, 9  ;;  %v3710_v24 = vld [vmem:[#allocation2 + $0x34] sm:$0xf] }
 0x1e1   : > { %3063 = vrot.lane.b32.xlu1 %v2974_v28, %s9080_s29  ;;  %v3266_v28 = vshll.u32 %v3151_v20, 16  ;;  %v3237_v54 = vsel %vm9195_vm7, %v3232_v32, %v3236_v33  ;;  %v3282_v20 = vshll.u32 %v3153_v9, 16  ;;  %v3157_v33 = vld [vmem:[#allocation2 + $0x54] sm:$0xf]  ;;  %v3159_v9 = vld [vmem:[#allocation2 + $0x5c] sm:$0x1] }
 0x1e2   : > { %v2820_v44 = vpop.permute.xlu0 %2819  ;;  %v10080_v48 = vrot.slane %v3248_v30, 5  ;;  %8936 = vmatpush3.bf16.msra.mxu0 %v9029_v43  ;;  %v3802_v59 = vsel %vm9486_vm13, %v8659_v41, %v3801_v11  ;;  %v3155_v30 = vld [vmem:[#allocation2 + $0x4c] sm:$0xf] }
 0x1e3   : > { %2916 = vst.msk [vmem:[#allocation3] sm:$0xf] %vm2915_vm3, %v2820_v44  ;;  %v2822_v40 = vpop.permute.xlu1 %2821  ;;  %8937 = vmatprep.subr.bf16.mxu0 %v9030_v0  ;;  %v3296_v16 = vshll.u32 %v3155_v30, 16  ;;  %v3300_v43 = vshrl.u32 %v3155_v30, 16 }
 0x1e4   : > { %3065 = vrot.lane.b32.xlu0 %v2975_v42, %s9080_s29  ;;  %2917 = vst.msk [vmem:[#allocation3 + $0x4] sm:$0xf] %vm2915_vm3, %v2822_v40  ;;  %v3707_v42 = vld [vmem:[#allocation2 + $0x28] sm:$0xf] }
 0x1e5   : > { %3067 = vrot.lane.b32.xlu1 %v2976_v45, %s9080_s29  ;;  %v3803_v45 = vrot.slane %v3801_v11, 4  ;;  %v3808_v40 = vrot.slane %v3707_v42, 5  ;;  %v8661_v42 = vrot.slane %v3709_v26, 9  ;;  %v3302_v62 = vrot.slane %v3300_v43, 4 }
 0x1e6   : > { %v2824_v56 = vpop.permute.xlu0 %2823  ;;  %8938 = vmatpush3.bf16.msra.mxu0 %v9030_v0 }
 0x1e7   : > { %2918 = vst.msk [vmem:[#allocation3 + $0x8] sm:$0xf] %vm2915_vm3, %v2824_v56  ;;  %v2826_v2 = vpop.permute.xlu1 %2825  ;;  %v3268_v56 = vrot.slane %v3266_v28, 5  ;;  %v3284_v28 = vrot.slane %v3282_v20, 5 }
 0x1e8   : > { %3069 = vrot.lane.b32.xlu0 %v2977_v51, %s9080_s29  ;;  %2919 = vst.msk [vmem:[#allocation3 + $0xc] sm:$0xf] %vm2915_vm3, %v2826_v2  ;;  %v3150_v51 = vld [vmem:[#allocation2 + $0x38] sm:$0x1]  ;;  %v3255_v2 = vor.u32 %v3254_v49, %v10080_v48  ;;  %v3314_v49 = vshll.u32 %v3157_v33, 16 }
 0x1e9   : > { %3071 = vrot.lane.b32.xlu1 %v2978_v60, %s9080_s29  ;;  %v8660_v60 = vrot.slane %v3706_v47, 9  ;;  %v3258_v4 = vshll.u32 %v3150_v51, 16  ;;  %v3269_v8 = vor.u32 %v3268_v56, %v3265_v55  ;;  %v3292_v47 = vrot.slane %v3290_v31, 5 }
 0x1ea   : > { %v2828_v63 = vpop.permute.xlu0 %2827  ;;  %v3285_v51 = vsel %vm9195_vm7, %v3280_v36, %v3284_v28  ;;  %v3818_v56 = vrot.slane %v3711_v3, 5  ;;  %v3316_v5 = vrot.slane %v3314_v49, 5  ;;  %v3163_v28 = vld [vmem:[#allocation2 + $0x6c] sm:$0xf] }
 0x1eb   : > { %2920 = vst.msk [vmem:[#allocation3 + $0x10] sm:$0xf] %vm2915_vm3, %v2828_v63  ;;  %v2830_v17 = vpop.permute.xlu1 %2829  ;;  %v3805_v63 = vsel %vm9486_vm13, %v3803_v45, %v3804_v46  ;;  %v3809_v13 = vsel %vm9486_vm13, %v8660_v60, %v3808_v40  ;;  %v3713_v45 = vld [vmem:[#allocation2 + $0x40] sm:$0xf]  ;;  %v3289_v46 = vrot.slane %v3287_v29, 4 }
 0x1ec   : > { %3073 = vrot.lane.b32.xlu0 %v2979_v61, %s9080_s29  ;;  %2921 = vst.msk [vmem:[#allocation3 + $0x14] sm:$0xf] %vm2915_vm3, %v2830_v17  ;;  %v3708_v61 = vld [vmem:[#allocation2 + $0x2c] sm:$0x1]  ;;  %v3256_v17 = vrot.slane %v3255_v2, 4 }
 0x1ed   : > { %3075 = vrot.lane.b32.xlu1 %v2980_v6, %s9080_s29  ;;  %v3810_v6 = vrot.slane %v3808_v40, 4  ;;  %v3811_v7 = vrot.slane %v3708_v61, 5  ;;  %v3714_v60 = vld [vmem:[#allocation2 + $0x44] sm:$0x1]  ;;  %v3298_v61 = vrot.slane %v3296_v16, 5  ;;  %v3293_v2 = vor.u32 %v3292_v47, %v3289_v46 }
 0x1ee   : > { %v2832_v23 = vpop.permute.xlu0 %2831  ;;  %v3161_v29 = vld [vmem:[#allocation2 + $0x64] sm:$0xf]  ;;  %v3164_v46 = vld [vmem:[#allocation2 + $0x70] sm:$0xf]  ;;  %v3359_v47 = vshrl.u32 %v3163_v28, 16 }
 0x1ef   : > { %2922 = vst.msk [vmem:[#allocation3 + $0x18] sm:$0xf] %vm2915_vm3, %v2832_v23  ;;  %v2834_v37 = vpop.permute.xlu1 %2833  ;;  %v3812_v22 = vsel %vm9486_vm13, %v3810_v6, %v3811_v7  ;;  %v3270_v23 = vrot.slane %v3269_v8, 4  ;;  %v3344_v16 = vshll.u32 %v3161_v29, 16  ;;  %v3348_v43 = vshrl.u32 %v3161_v29, 16 }
 0x1f0   : > { %3574 = vrot.lane.b32.xlu0 %v3203_v18, %s9081_s7  ;;  %2923 = vst.msk [vmem:[#allocation3 + $0x1c] sm:$0xf] %vm2915_vm3, %v2834_v37  ;;  %v3260_v18 = vrot.slane %v3258_v4, 5  ;;  %v3815_v37 = vrot.slane %v3710_v24, 5  ;;  %v3156_v4 = vld [vmem:[#allocation2 + $0x50] sm:$0x1] }
 0x1f1   : > { %3576 = vrot.lane.b32.xlu1 %v3213_v25, %s9081_s7  ;;  %v3251_v25 = vsel %vm9195_vm7, %v3246_v14, %v10080_v48  ;;  %v3275_v41 = vsel %vm9195_vm7, %v3270_v23, %v10094_v57  ;;  %v3311_v48 = vshrl.u32 %v3157_v33, 16  ;;  %v3303_v14 = vor.u32 %v3302_v62, %v3298_v61  ;;  %v3160_v24 = vld [vmem:[#allocation2 + $0x60] sm:$0xf] }
 0x1f2   : > { %v2836_v44 = vpop.permute.xlu0 %2835  ;;  %v3261_v35 = vsel %vm9195_vm7, %v3256_v17, %v3260_v18  ;;  %v3817_v55 = vrot.slane %v3815_v37, 4  ;;  %v3294_v18 = vrot.slane %v3293_v2, 4  ;;  %v3330_v23 = vshll.u32 %v3159_v9, 16 }
 0x1f3   : > { %2924 = vst.msk [vmem:[#allocation3 + $0x20] sm:$0xf] %vm2915_vm3, %v2836_v44  ;;  %v2838_v58 = vpop.permute.xlu1 %2837  ;;  %v3313_v57 = vrot.slane %v3311_v48, 4  ;;  %v3304_v26 = vrot.slane %v3303_v14, 4  ;;  %v3338_v36 = vshll.u32 %v3160_v24, 16  ;;  %v3362_v48 = vshll.u32 %v3163_v28, 16 }
 0x1f4   : > { %3578 = vrot.lane.b32.xlu0 %v3227_v38, %s9081_s7  ;;  %2925 = vst.msk [vmem:[#allocation3 + $0x24] sm:$0xf] %vm2915_vm3, %v2838_v58  ;;  %v3158_v38 = vld [vmem:[#allocation2 + $0x58] sm:$0xf]  ;;  %v3816_v58 = vsel %vm9486_vm13, %v8661_v42, %v3815_v37  ;;  %v3819_v8 = vsel %vm9486_vm13, %v3817_v55, %v3818_v56  ;;  %v3715_v42 = vld [vmem:[#allocation2 + $0x48] sm:$0xe] }
 0x1f5   : > { %3580 = vrot.lane.b32.xlu1 %v3237_v54, %s9081_s7  ;;  %v3320_v54 = vshll.u32 %v3158_v38, 16  ;;  %v3324_v40 = vshrl.u32 %v3158_v38, 16  ;;  %v3317_v19 = vor.u32 %v3316_v5, %v3313_v57  ;;  %v3368_v62 = vshll.u32 %v3164_v46, 16 }
 0x1f6   : > { %v2840_v1 = vpop.permute.xlu0 %2839  ;;  %v3361_v57 = vrot.slane %v3359_v47, 4  ;;  %v3364_v5 = vrot.slane %v3362_v48, 5  ;;  %v3170_v48 = vld [vmem:[#allocation2 + $0x88] sm:$0xf] }
 0x1f7   : > { %2926 = vst.msk [vmem:[#allocation3 + $0x28] sm:$0xf] %vm2915_vm3, %v2840_v1  ;;  %v2842_v10 = vpop.permute.xlu1 %2841  ;;  %v8662_v1 = vrot.slane %v3712_v53, 9  ;;  %v10129_v6 = vrot.slane %v3320_v54, 5  ;;  %v3326_v7 = vrot.slane %v3324_v40, 4  ;;  %v3318_v33 = vrot.slane %v3317_v19, 4 }
 0x1f8   : > { %3911 = vrot.lane.b32.xlu0 %v3802_v59, %s9082_s12  ;;  %2927 = vst.msk [vmem:[#allocation3 + $0x2c] sm:$0xf] %vm2915_vm3, %v2842_v10  ;;  %v3822_v59 = vrot.slane %v3713_v45, 5  ;;  %v3717_v45 = vld [vmem:[#allocation2 + $0x50] sm:$0x1]  ;;  %v8663_v53 = vrot.slane %v3715_v42, 9 }
 0x1f9   : > { %3913 = vrot.lane.b32.xlu1 %v3805_v63, %s9082_s12  ;;  %v3719_v54 = vld [vmem:[#allocation2 + $0x58] sm:$0xf] }
 0x1fa   : > { %v2844_v12 = vpop.permute.xlu0 %2843  ;;  %v3824_v10 = vrot.slane %v3822_v59, 4  ;;  %v3823_v17 = vsel %vm9486_vm13, %v8662_v1, %v3822_v59  ;;  %v3718_v59 = vld [vmem:[#allocation2 + $0x54] sm:$0xe]  ;;  %v3832_v1 = vrot.slane %v3717_v45, 5  ;;  %v3836_v2 = vrot.slane %v3719_v54, 5 }
 0x1fb   : > { %2928 = vst.msk [vmem:[#allocation3 + $0x30] sm:$0xf] %vm2915_vm3, %v2844_v12  ;;  %v2846_v11 = vpop.permute.xlu1 %2845  ;;  %v3306_v12 = vshll.u32 %v3156_v4, 16  ;;  %v3162_v4 = vld [vmem:[#allocation2 + $0x68] sm:$0x1] }
 0x1fc   : > { %3915 = vrot.lane.b32.xlu0 %v3809_v13, %s9082_s12  ;;  %2929 = vst.msk [vmem:[#allocation3 + $0x34] sm:$0xf] %vm2915_vm3, %v2846_v11  ;;  %v3825_v13 = vrot.slane %v3714_v60, 5  ;;  %v3716_v11 = vld [vmem:[#allocation2 + $0x4c] sm:$0xf]  ;;  %v3346_v60 = vrot.slane %v3344_v16, 5 }
 0x1fd   : > { %3917 = vrot.lane.b32.xlu1 %v3812_v22, %s9082_s12  ;;  %v3327_v22 = vor.u32 %v3326_v7, %v10129_v6  ;;  %v3308_v30 = vrot.slane %v3306_v12, 5  ;;  %v3829_v3 = vrot.slane %v3716_v11, 5  ;;  %v8664_v7 = vrot.slane %v3718_v59, 9 }
 0x1fe   : > { %v2848_v32 = vpop.permute.xlu0 %2847  ;;  %v3354_v14 = vshll.u32 %v3162_v4, 16  ;;  %v10167_v12 = vrot.slane %v3368_v62, 5  ;;  %v3724_v62 = vld [vmem:[#allocation2 + $0x6c] sm:$0xe] }
 0x1ff   : > { %2930 = vst.msk [vmem:[#allocation3 + $0x38] sm:$0xf] %vm2915_vm3, %v2848_v32  ;;  %v2850_v44 = vpop.permute.xlu1 %2849  ;;  %v3299_v32 = vsel %vm9195_vm7, %v3294_v18, %v3298_v61  ;;  %v3328_v38 = vrot.slane %v3327_v22, 4  ;;  %v3350_v61 = vrot.slane %v3348_v43, 4  ;;  %v3838_v18 = vrot.slane %v3836_v2, 4 }
 0x200   : > { %3582 = vrot.lane.b32.xlu0 %v3251_v25, %s9081_s7  ;;  %2931 = vst.msk [vmem:[#allocation3 + $0x3c] sm:$0xf] %vm2915_vm3, %v2850_v44  ;;  %v3826_v25 = vsel %vm9486_vm13, %v3824_v10, %v3825_v13  ;;  %v3309_v44 = vsel %vm9195_vm7, %v3304_v26, %v3308_v30  ;;  %v3165_v22 = vld [vmem:[#allocation2 + $0x74] sm:$0x1]  ;;  %v3166_v26 = vld [vmem:[#allocation2 + $0x78] sm:$0xf] }
 0x201   : > { %3584 = vrot.lane.b32.xlu1 %v3261_v35, %s9081_s7  ;;  %v3335_v35 = vshrl.u32 %v3160_v24, 16  ;;  %v3351_v13 = vor.u32 %v3350_v61, %v3346_v60  ;;  %v3837_v24 = vsel %vm9486_vm13, %v8664_v7, %v3836_v2  ;;  %v3356_v29 = vrot.slane %v3354_v14, 5  ;;  %v3169_v43 = vld [vmem:[#allocation2 + $0x84] sm:$0xf]  ;;  %v3168_v14 = vld [vmem:[#allocation2 + $0x80] sm:$0x1] }
 0x202   : > { %v2852_v50 = vpop.permute.xlu0 %2851  ;;  %v3383_v42 = vshrl.u32 %v3166_v26, 16  ;;  %v3407_v59 = vshrl.u32 %v3169_v43, 16 }
 0x203   : > { %2932 = vst.msk [vmem:[#allocation3 + $0x40] sm:$0xf] %vm2915_vm3, %v2852_v50  ;;  %v2854_v0 = vpop.permute.xlu1 %2853  ;;  %v3323_v50 = vsel %vm9195_vm7, %v3318_v33, %v10129_v6  ;;  %v3337_v40 = vrot.slane %v3335_v35, 4  ;;  %v3830_v6 = vsel %vm9486_vm13, %v8663_v53, %v3829_v3  ;;  %v3352_v30 = vrot.slane %v3351_v13, 4  ;;  %v3723_v53 = vld [vmem:[#allocation2 + $0x68] sm:$0x1] }
 0x204   : > { %3586 = vrot.lane.b32.xlu0 %v3275_v41, %s9081_s7  ;;  %2933 = vst.msk [vmem:[#allocation3 + $0x44] sm:$0xf] %vm2915_vm3, %v2854_v0  ;;  %v3332_v41 = vrot.slane %v3330_v23, 5  ;;  %v3372_v0 = vshrl.u32 %v3164_v46, 16 }
 0x205   : > { %3588 = vrot.lane.b32.xlu1 %v3285_v51, %s9081_s7  ;;  %v3340_v51 = vrot.slane %v3338_v36, 5  ;;  %v3722_v36 = vld [vmem:[#allocation2 + $0x64] sm:$0xf] }
 0x206   : > { %v2856_v63 = vpop.permute.xlu0 %2855  ;;  %v3333_v56 = vsel %vm9195_vm7, %v3328_v38, %v3332_v41  ;;  %v3721_v38 = vld [vmem:[#allocation2 + $0x60] sm:$0xe]  ;;  %v3167_v41 = vld [vmem:[#allocation2 + $0x7c] sm:$0xf]  ;;  %v3843_v47 = vrot.slane %v3722_v36, 5 }
 0x207   : > { %2934 = vst.msk [vmem:[#allocation3 + $0x48] sm:$0xf] %vm2915_vm3, %v2856_v63  ;;  %v2858_v15 = vpop.permute.xlu1 %2857  ;;  %v3341_v9 = vor.u32 %v3340_v51, %v3337_v40  ;;  %v3392_v54 = vshll.u32 %v3167_v41, 16  ;;  %v3396_v40 = vshrl.u32 %v3167_v41, 16  ;;  %v3172_v36 = vld [vmem:[#allocation2 + $0x90] sm:$0xf] }
 0x208   : > { %3919 = vrot.lane.b32.xlu0 %v3816_v58, %s9082_s12  ;;  %2935 = vst.msk [vmem:[#allocation3 + $0x4c] sm:$0xf] %vm2915_vm3, %v2858_v15  ;;  %v3831_v58 = vrot.slane %v3829_v3, 4  ;;  %v3374_v15 = vrot.slane %v3372_v0, 4  ;;  %v3386_v3 = vshll.u32 %v3166_v26, 16  ;;  %v3416_v0 = vshll.u32 %v3170_v48, 16 }
 0x209   : > { %3921 = vrot.lane.b32.xlu1 %v3819_v8, %s9082_s12  ;;  %v3720_v8 = vld [vmem:[#allocation2 + $0x5c] sm:$0x1]  ;;  %v3342_v11 = vrot.slane %v3341_v9, 4  ;;  %v3845_v4 = vrot.slane %v3843_v47, 4  ;;  %v3394_v7 = vrot.slane %v3392_v54, 5 }
 0x20a   : > { %v2860_v20 = vpop.permute.xlu0 %2859  ;;  %v3839_v19 = vrot.slane %v3720_v8, 5  ;;  %v3398_v8 = vrot.slane %v3396_v40, 4 }
 0x20b   : > { %2936 = vst.msk [vmem:[#allocation3 + $0x50] sm:$0xf] %vm2915_vm3, %v2860_v20  ;;  %v2862_v31 = vpop.permute.xlu1 %2861  ;;  %v3365_v20 = vor.u32 %v3364_v5, %v3361_v57  ;;  %v3846_v57 = vrot.slane %v3723_v53, 5 }
 0x20c   : > { %3923 = vrot.lane.b32.xlu0 %v3823_v17, %s9082_s12  ;;  %2937 = vst.msk [vmem:[#allocation3 + $0x54] sm:$0xf] %vm2915_vm3, %v2862_v31  ;;  %v3833_v17 = vsel %vm9486_vm13, %v3831_v58, %v3832_v1  ;;  %v3375_v31 = vor.u32 %v3374_v15, %v10167_v12  ;;  %v3840_v33 = vsel %vm9486_vm13, %v3838_v18, %v3839_v19  ;;  %v3388_v58 = vrot.slane %v3386_v3, 5 }
 0x20d   : > { %3925 = vrot.lane.b32.xlu1 %v3826_v25, %s9082_s12  ;;  %v3366_v35 = vrot.slane %v3365_v20, 4  ;;  %v3420_v1 = vshrl.u32 %v3170_v48, 16  ;;  %v10201_v18 = vrot.slane %v3416_v0, 5  ;;  %v3847_v20 = vsel %vm9486_vm13, %v3845_v4, %v3846_v57  ;;  %v3731_v0 = vld [vmem:[#allocation2 + $0x88] sm:$0xf] }
 0x20e   : > { %v2864_v37 = vpop.permute.xlu0 %2863  ;;  %v3376_v45 = vrot.slane %v3375_v31, 4 }
 0x20f   : > { %2938 = vst.msk [vmem:[#allocation3 + $0x58] sm:$0xf] %vm2915_vm3, %v2864_v37  ;;  %v2866_v49 = vpop.permute.xlu1 %2865  ;;  %v3347_v37 = vsel %vm9195_vm7, %v3342_v11, %v3346_v60  ;;  %v3410_v60 = vshll.u32 %v3169_v43, 16  ;;  %v3422_v19 = vrot.slane %v3420_v1, 4  ;;  %v3399_v11 = vor.u32 %v3398_v8, %v3394_v7 }
 0x210   : > { %3590 = vrot.lane.b32.xlu0 %v3299_v32, %s9081_s7  ;;  %2939 = vst.msk [vmem:[#allocation3 + $0x5c] sm:$0xf] %vm2915_vm3, %v2866_v49  ;;  %v3378_v32 = vshll.u32 %v3165_v22, 16  ;;  %v3371_v49 = vsel %vm9195_vm7, %v3366_v35, %v10167_v12  ;;  %v3409_v12 = vrot.slane %v3407_v59, 4  ;;  %v3171_v22 = vld [vmem:[#allocation2 + $0x8c] sm:$0x1] }
 0x211   : > { %3592 = vrot.lane.b32.xlu1 %v3309_v44, %s9081_s7  ;;  %v3357_v44 = vsel %vm9195_vm7, %v3352_v30, %v3356_v29  ;;  %v3412_v15 = vrot.slane %v3410_v60, 5  ;;  %v3426_v35 = vshll.u32 %v3171_v22, 16 }
 0x212   : > { %v2868_v55 = vpop.permute.xlu0 %2867  ;;  %v3380_v46 = vrot.slane %v3378_v32, 5 }
 0x213   : > { %2940 = vst.msk [vmem:[#allocation3 + $0x60] sm:$0xf] %vm2915_vm3, %v2868_v55  ;;  %v2870_v63 = vpop.permute.xlu1 %2869  ;;  %v3725_v55 = vld [vmem:[#allocation2 + $0x70] sm:$0xf]  ;;  %v3413_v31 = vor.u32 %v3412_v15, %v3409_v12 }
 0x214   : > { %3594 = vrot.lane.b32.xlu0 %v3323_v50, %s9081_s7  ;;  %2941 = vst.msk [vmem:[#allocation3 + $0x64] sm:$0xf] %vm2915_vm3, %v2870_v63  ;;  %v8665_v50 = vrot.slane %v3721_v38, 9  ;;  %v3381_v2 = vsel %vm9195_vm7, %v3376_v45, %v3380_v46  ;;  %v3850_v63 = vrot.slane %v3725_v55, 5  ;;  %v3400_v38 = vrot.slane %v3399_v11, 4 }
 0x215   : > { %3596 = vrot.lane.b32.xlu1 %v3333_v56, %s9081_s7  ;;  %v3385_v56 = vrot.slane %v3383_v42, 4  ;;  %v3173_v42 = vld [vmem:[#allocation2 + $0x94] sm:$0xf]  ;;  %v3414_v43 = vrot.slane %v3413_v31, 4  ;;  %v3434_v45 = vshll.u32 %v3172_v36, 16 }
 0x216   : > { %v2872_v10 = vpop.permute.xlu0 %2871  ;;  %v3844_v5 = vsel %vm9486_vm13, %v8665_v50, %v3843_v47  ;;  %v3175_v46 = vld [vmem:[#allocation2 + $0x9c] sm:$0xf]  ;;  %v3727_v50 = vld [vmem:[#allocation2 + $0x78] sm:$0xe]  ;;  %v3440_v54 = vshll.u32 %v3173_v42, 16  ;;  %v3444_v40 = vshrl.u32 %v3173_v42, 16 }
 0x217   : > { %2942 = vst.msk [vmem:[#allocation3 + $0x68] sm:$0xf] %vm2915_vm3, %v2872_v10  ;;  %v2874_v23 = vpop.permute.xlu1 %2873  ;;  %v8666_v10 = vrot.slane %v3724_v62, 9  ;;  %v3389_v13 = vor.u32 %v3388_v58, %v3385_v56  ;;  %v3729_v55 = vld [vmem:[#allocation2 + $0x80] sm:$0x1]  ;;  %v3455_v58 = vshrl.u32 %v3175_v46, 16 }
 0x218   : > { %3927 = vrot.lane.b32.xlu0 %v3830_v6, %s9082_s12  ;;  %2943 = vst.msk [vmem:[#allocation3 + $0x6c] sm:$0xf] %vm2915_vm3, %v2874_v23  ;;  %v3726_v6 = vld [vmem:[#allocation2 + $0x74] sm:$0x1]  ;;  %v3852_v23 = vrot.slane %v3850_v63, 4  ;;  %v3458_v59 = vshll.u32 %v3175_v46, 16 }
 0x219   : > { %3929 = vrot.lane.b32.xlu1 %v3833_v17, %s9082_s12  ;;  %v3851_v30 = vsel %vm9486_vm13, %v8666_v10, %v3850_v63  ;;  %v3390_v29 = vrot.slane %v3389_v13, 4  ;;  %v3176_v56 = vld [vmem:[#allocation2 + $0xa0] sm:$0xf]  ;;  %v8667_v62 = vrot.slane %v3727_v50, 9  ;;  %v3730_v63 = vld [vmem:[#allocation2 + $0x84] sm:$0xe] }
 0x21a   : > { %v2876_v25 = vpop.permute.xlu0 %2875  ;;  %v3464_v8 = vshll.u32 %v3176_v56, 16  ;;  %v3860_v10 = vrot.slane %v3729_v55, 5  ;;  %v3864_v13 = vrot.slane %v3731_v0, 5  ;;  %v3457_v12 = vrot.slane %v3455_v58, 4 }
 0x21b   : > { %2944 = vst.msk [vmem:[#allocation3 + $0x70] sm:$0xf] %vm2915_vm3, %v2876_v25  ;;  %v2878_v28 = vpop.permute.xlu1 %2877  ;;  %v3402_v25 = vshll.u32 %v3168_v14, 16  ;;  %v3174_v14 = vld [vmem:[#allocation2 + $0x98] sm:$0x1]  ;;  %v3460_v15 = vrot.slane %v3458_v59, 5 }
 0x21c   : > { %3931 = vrot.lane.b32.xlu0 %v3837_v24, %s9082_s12  ;;  %2945 = vst.msk [vmem:[#allocation3 + $0x74] sm:$0xf] %vm2915_vm3, %v2878_v28  ;;  %v3853_v24 = vrot.slane %v3726_v6, 5  ;;  %v3728_v28 = vld [vmem:[#allocation2 + $0x7c] sm:$0xf]  ;;  %v3442_v6 = vrot.slane %v3440_v54, 5 }
 0x21d   : > { %3933 = vrot.lane.b32.xlu1 %v3840_v33, %s9082_s12  ;;  %v3423_v33 = vor.u32 %v3422_v19, %v10201_v18  ;;  %v3404_v41 = vrot.slane %v3402_v25, 5  ;;  %v3857_v53 = vrot.slane %v3728_v28, 5  ;;  %v8668_v19 = vrot.slane %v3730_v63, 9  ;;  %v3735_v59 = vld [vmem:[#allocation2 + $0x98] sm:$0x1] }
 0x21e   : > { %v2880_v16 = vpop.permute.xlu0 %2879  ;;  %v3450_v11 = vshll.u32 %v3174_v14, 16  ;;  %v10239_v25 = vrot.slane %v3464_v8, 5  ;;  %v3866_v31 = vrot.slane %v3864_v13, 4  ;;  %v3736_v8 = vld [vmem:[#allocation2 + $0x9c] sm:$0xe] }
 0x21f   : > { %2946 = vst.msk [vmem:[#allocation3 + $0x78] sm:$0xf] %vm2915_vm3, %v2880_v16  ;;  %v2882_v51 = vpop.permute.xlu1 %2881  ;;  %v3395_v16 = vsel %vm9195_vm7, %v3390_v29, %v3394_v7  ;;  %v3424_v48 = vrot.slane %v3423_v33, 4  ;;  %v3446_v7 = vrot.slane %v3444_v40, 4  ;;  %v3461_v33 = vor.u32 %v3460_v15, %v3457_v12 }
 0x220   : > { %3598 = vrot.lane.b32.xlu0 %v3347_v37, %s9081_s7  ;;  %2947 = vst.msk [vmem:[#allocation3 + $0x7c] sm:$0xf] %vm2915_vm3, %v2882_v51  ;;  %v3854_v37 = vsel %vm9486_vm13, %v3852_v23, %v3853_v24  ;;  %v3405_v51 = vsel %vm9195_vm7, %v3400_v38, %v3404_v41  ;;  %v3178_v41 = vld [vmem:[#allocation2 + $0xa8] sm:$0xf]  ;;  %v3874_v12 = vrot.slane %v3735_v59, 5 }
 0x221   : > { %3600 = vrot.lane.b32.xlu1 %v3357_v44, %s9081_s7  ;;  %v3431_v44 = vshrl.u32 %v3172_v36, 16  ;;  %v3447_v24 = vor.u32 %v3446_v7, %v3442_v6  ;;  %v3865_v36 = vsel %vm9486_vm13, %v8668_v19, %v3864_v13  ;;  %v3482_v50 = vshll.u32 %v3178_v41, 16 }
 0x222   : > { %v3014_v61 = vpop.permute.xlu0 %3013 }
 0x223   : > { %3110 = vst.msk [vmem:[#allocation3] sm:$0xf] %vm3109_vm5, %v3014_v61  ;;  %v3016_v9 = vpop.permute.xlu1 %3015  ;;  %v3419_v61 = vsel %vm9195_vm7, %v3414_v43, %v10201_v18  ;;  %v3433_v1 = vrot.slane %v3431_v44, 4  ;;  %v3858_v18 = vsel %vm9486_vm13, %v8667_v62, %v3857_v53  ;;  %v3448_v42 = vrot.slane %v3447_v24, 4 }
 0x224   : > { %3602 = vrot.lane.b32.xlu0 %v3371_v49, %s9081_s7  ;;  %3111 = vst.msk [vmem:[#allocation3 + $0x4] sm:$0xf] %vm3109_vm5, %v3016_v9  ;;  %v3428_v49 = vrot.slane %v3426_v35, 5  ;;  %v3468_v9 = vshrl.u32 %v3176_v56, 16  ;;  %v3462_v44 = vrot.slane %v3461_v33, 4 }
 0x225   : > { %3604 = vrot.lane.b32.xlu1 %v3381_v2, %s9081_s7  ;;  %v3436_v2 = vrot.slane %v3434_v45, 5  ;;  %v3734_v45 = vld [vmem:[#allocation2 + $0x94] sm:$0xf] }
 0x226   : > { %v3018_v17 = vpop.permute.xlu0 %3017  ;;  %v3429_v57 = vsel %vm9195_vm7, %v3424_v48, %v3428_v49  ;;  %v3179_v48 = vld [vmem:[#allocation2 + $0xac] sm:$0xf]  ;;  %v3479_v49 = vshrl.u32 %v3178_v41, 16  ;;  %v3871_v58 = vrot.slane %v3734_v45, 5  ;;  %v3184_v45 = vld [vmem:[#allocation2 + $0xc0] sm:$0xf] }
 0x227   : > { %3112 = vst.msk [vmem:[#allocation3 + $0x8] sm:$0xf] %vm3109_vm5, %v3018_v17  ;;  %v3020_v26 = vpop.permute.xlu1 %3019  ;;  %v3437_v22 = vor.u32 %v3436_v2, %v3433_v1  ;;  %v3488_v62 = vshll.u32 %v3179_v48, 16  ;;  %v3492_v0 = vshrl.u32 %v3179_v48, 16 }
 0x228   : > { %3935 = vrot.lane.b32.xlu0 %v3844_v5, %s9082_s12  ;;  %3113 = vst.msk [vmem:[#allocation3 + $0xc] sm:$0xf] %vm3109_vm5, %v3020_v26  ;;  %v3859_v5 = vrot.slane %v3857_v53, 4  ;;  %v3177_v26 = vld [vmem:[#allocation2 + $0xa4] sm:$0x1]  ;;  %v3481_v63 = vrot.slane %v3479_v49, 4 }
 0x229   : > { %3937 = vrot.lane.b32.xlu1 %v3847_v20, %s9082_s12  ;;  %v3732_v20 = vld [vmem:[#allocation2 + $0x8c] sm:$0x1]  ;;  %v3438_v28 = vrot.slane %v3437_v22, 4  ;;  %v3474_v38 = vshll.u32 %v3177_v26, 16  ;;  %v3181_v53 = vld [vmem:[#allocation2 + $0xb4] sm:$0xf] }
 0x22a   : > { %v3022_v32 = vpop.permute.xlu0 %3021  ;;  %v3861_v29 = vsel %vm9486_vm13, %v3859_v5, %v3860_v10  ;;  %v3503_v1 = vshrl.u32 %v3181_v53, 16  ;;  %v3506_v2 = vshll.u32 %v3181_v53, 16  ;;  %v3873_v14 = vrot.slane %v3871_v58, 4  ;;  %v3740_v53 = vld [vmem:[#allocation2 + $0xac] sm:$0xf] }
 0x22b   : > { %3114 = vst.msk [vmem:[#allocation3 + $0x10] sm:$0xf] %vm3109_vm5, %v3022_v32  ;;  %v3024_v3 = vpop.permute.xlu1 %3023  ;;  %v3867_v32 = vrot.slane %v3732_v20, 5  ;;  %v3476_v40 = vrot.slane %v3474_v38, 5  ;;  %v3494_v19 = vrot.slane %v3492_v0, 4  ;;  %v3885_v0 = vrot.slane %v3740_v53, 5 }
 0x22c   : > { %3939 = vrot.lane.b32.xlu0 %v3851_v30, %s9082_s12  ;;  %3115 = vst.msk [vmem:[#allocation3 + $0x14] sm:$0xf] %vm3109_vm5, %v3024_v3  ;;  %v3470_v30 = vrot.slane %v3468_v9, 4  ;;  %v3452_v3 = vrot.slane %v3450_v11, 5  ;;  %v3505_v20 = vrot.slane %v3503_v1, 4  ;;  %v3508_v22 = vrot.slane %v3506_v2, 5 }
 0x22d   : > { %3941 = vrot.lane.b32.xlu1 %v3854_v37, %s9082_s12  ;;  %v3868_v43 = vsel %vm9486_vm13, %v3866_v31, %v3867_v32  ;;  %v8670_v11 = vrot.slane %v3736_v8, 9  ;;  %v3875_v32 = vsel %vm9486_vm13, %v3873_v14, %v3874_v12 }
 0x22e   : > { %v3026_v47 = vpop.permute.xlu0 %3025  ;;  %v3453_v55 = vsel %vm9195_vm7, %v3448_v42, %v3452_v3  ;;  %v3509_v38 = vor.u32 %v3508_v22, %v3505_v20  ;;  %v3744_v22 = vld [vmem:[#allocation2 + $0xbc] sm:$0x1] }
 0x22f   : > { %3116 = vst.msk [vmem:[#allocation3 + $0x18] sm:$0xf] %vm3109_vm5, %v3026_v47  ;;  %v3028_v60 = vpop.permute.xlu1 %3027  ;;  %v3443_v47 = vsel %vm9195_vm7, %v3438_v28, %v3442_v6  ;;  %v3484_v6 = vrot.slane %v3482_v50, 5  ;;  %v3739_v50 = vld [vmem:[#allocation2 + $0xa8] sm:$0xe] }
 0x230   : > { %3606 = vrot.lane.b32.xlu0 %v3395_v16, %s9081_s7  ;;  %3117 = vst.msk [vmem:[#allocation3 + $0x1c] sm:$0xf] %vm3109_vm5, %v3028_v60  ;;  %v3471_v16 = vor.u32 %v3470_v30, %v10239_v25  ;;  %v3182_v60 = vld [vmem:[#allocation2 + $0xb8] sm:$0xf]  ;;  %v3510_v49 = vrot.slane %v3509_v38, 4 }
 0x231   : > { %3608 = vrot.lane.b32.xlu1 %v3405_v51, %s9081_s7  ;;  %v3733_v51 = vld [vmem:[#allocation2 + $0x90] sm:$0xe]  ;;  %v3512_v9 = vshll.u32 %v3182_v60, 16  ;;  %v3516_v10 = vshrl.u32 %v3182_v60, 16  ;;  %v3485_v26 = vor.u32 %v3484_v6, %v3481_v63 }
 0x232   : > { %v3030_v4 = vpop.permute.xlu0 %3029  ;;  %v3472_v56 = vrot.slane %v3471_v16, 4  ;;  %v8669_v5 = vrot.slane %v3733_v51, 9  ;;  %v3185_v51 = vld [vmem:[#allocation2 + $0xc4] sm:$0xf] }
 0x233   : > { %3118 = vst.msk [vmem:[#allocation3 + $0x20] sm:$0xf] %vm3109_vm5, %v3030_v4  ;;  %v3032_v17 = vpop.permute.xlu1 %3031  ;;  %v3518_v31 = vrot.slane %v3516_v10, 4  ;;  %v3486_v3 = vrot.slane %v3485_v26, 4  ;;  %v3540_v63 = vshrl.u32 %v3185_v51, 16 }
 0x234   : > { %3610 = vrot.lane.b32.xlu0 %v3419_v61, %s9081_s7  ;;  %3119 = vst.msk [vmem:[#allocation3 + $0x24] sm:$0xf] %vm3109_vm5, %v3032_v17  ;;  %v3737_v61 = vld [vmem:[#allocation2 + $0xa0] sm:$0xf]  ;;  %v3477_v13 = vsel %vm9195_vm7, %v3472_v56, %v3476_v40  ;;  %v3490_v17 = vrot.slane %v3488_v62, 5  ;;  %v3872_v24 = vsel %vm9486_vm13, %v8669_v5, %v3871_v58  ;;  %v3530_v56 = vshll.u32 %v3184_v45, 16 }
 0x235   : > { %3612 = vrot.lane.b32.xlu1 %v3429_v57, %s9081_s7  ;;  %v3467_v57 = vsel %vm9195_vm7, %v3462_v44, %v10239_v25  ;;  %v3878_v15 = vrot.slane %v3737_v61, 5  ;;  %v3738_v25 = vld [vmem:[#allocation2 + $0xa4] sm:$0x1]  ;;  %v3187_v61 = vld [vmem:[#allocation2 + $0xcc] sm:$0xf]  ;;  %v8671_v62 = vrot.slane %v3739_v50, 9 }
 0x236   : > { %v3034_v23 = vpop.permute.xlu0 %3033  ;;  %v3881_v28 = vrot.slane %v3738_v25, 5  ;;  %v3491_v40 = vsel %vm9195_vm7, %v3486_v3, %v3490_v17  ;;  %v3536_v5 = vshll.u32 %v3185_v51, 16  ;;  %v3532_v8 = vrot.slane %v3530_v56, 5  ;;  %v3746_v56 = vld [vmem:[#allocation2 + $0xc4] sm:$0xf] }
 0x237   : > { %3120 = vst.msk [vmem:[#allocation3 + $0x28] sm:$0xf] %vm3109_vm5, %v3034_v23  ;;  %v3036_v35 = vpop.permute.xlu1 %3035  ;;  %v3879_v42 = vsel %vm9486_vm13, %v8670_v11, %v3878_v15  ;;  %v3551_v10 = vshrl.u32 %v3187_v61, 16 }
 0x238   : > { %3943 = vrot.lane.b32.xlu0 %v3858_v18, %s9082_s12  ;;  %3121 = vst.msk [vmem:[#allocation3 + $0x2c] sm:$0xf] %vm3109_vm5, %v3036_v35  ;;  %v3180_v18 = vld [vmem:[#allocation2 + $0xb0] sm:$0x1]  ;;  %v3183_v35 = vld [vmem:[#allocation2 + $0xbc] sm:$0x1] }
 0x239   : > { %3945 = vrot.lane.b32.xlu1 %v3861_v29, %s9082_s12  ;;  %v10273_v29 = vrot.slane %v3512_v9, 5  ;;  %v3498_v33 = vshll.u32 %v3180_v18, 16  ;;  %v3522_v44 = vshll.u32 %v3183_v35, 16  ;;  %v3188_v9 = vld [vmem:[#allocation2 + $0xd0] sm:$0xf]  ;;  %v3887_v18 = vrot.slane %v3885_v0, 4 }
 0x23a   : > { %v3038_v37 = vpop.permute.xlu0 %3037  ;;  %v3560_v11 = vshll.u32 %v3188_v9, 16  ;;  %v3564_v25 = vshrl.u32 %v3188_v9, 16 }
 0x23b   : > { %3122 = vst.msk [vmem:[#allocation3 + $0x30] sm:$0xf] %vm3109_vm5, %v3038_v37  ;;  %v3040_v46 = vpop.permute.xlu1 %3039  ;;  %v3495_v37 = vor.u32 %v3494_v19, %v3490_v17  ;;  %v3524_v60 = vrot.slane %v3522_v44, 5  ;;  %v3515_v2 = vsel %vm9195_vm7, %v3510_v49, %v10273_v29  ;;  %v3886_v17 = vsel %vm9486_vm13, %v8671_v62, %v3885_v0 }
 0x23c   : > { %3947 = vrot.lane.b32.xlu0 %v3865_v36, %s9082_s12  ;;  %3123 = vst.msk [vmem:[#allocation3 + $0x34] sm:$0xf] %vm3109_vm5, %v3040_v46  ;;  %v3880_v36 = vrot.slane %v3878_v15, 4  ;;  %v3500_v46 = vrot.slane %v3498_v33, 5  ;;  %v3742_v15 = vld [vmem:[#allocation2 + $0xb4] sm:$0xe] }
 0x23d   : > { %3949 = vrot.lane.b32.xlu1 %v3868_v43, %s9082_s12  ;;  %v3519_v43 = vor.u32 %v3518_v31, %v10273_v29  ;;  %v3496_v48 = vrot.slane %v3495_v37, 4  ;;  %v3186_v31 = vld [vmem:[#allocation2 + $0xc8] sm:$0x1]  ;;  %v3895_v37 = vrot.slane %v3744_v22, 5  ;;  %v3566_v3 = vrot.slane %v3564_v25, 4 }
 0x23e   : > { %v3042_v54 = vpop.permute.xlu0 %3041  ;;  %v3899_v0 = vrot.slane %v3746_v56, 5 }
 0x23f   : > { %3124 = vst.msk [vmem:[#allocation3 + $0x38] sm:$0xf] %vm3109_vm5, %v3042_v54  ;;  %v3044_v4 = vpop.permute.xlu1 %3043  ;;  %v3520_v59 = vrot.slane %v3519_v43, 4  ;;  %v3501_v1 = vsel %vm9195_vm7, %v3496_v48, %v3500_v46  ;;  %v3189_v46 = vld [vmem:[#allocation2 + $0xd4] sm:$0x1] }
 0x240   : > { %3614 = vrot.lane.b32.xlu0 %v3443_v47, %s9081_s7  ;;  %3125 = vst.msk [vmem:[#allocation3 + $0x3c] sm:$0xf] %vm3109_vm5, %v3044_v4  ;;  %v3882_v47 = vsel %vm9486_vm13, %v3880_v36, %v3881_v28  ;;  %v3741_v4 = vld [vmem:[#allocation2 + $0xb0] sm:$0x1] }
 0x241   : > { %3616 = vrot.lane.b32.xlu1 %v3453_v55, %s9081_s7  ;;  %v3527_v55 = vshrl.u32 %v3184_v45, 16  ;;  %v3525_v12 = vsel %vm9195_vm7, %v3520_v59, %v3524_v60  ;;  %v3888_v19 = vrot.slane %v3741_v4, 5  ;;  %v3745_v59 = vld [vmem:[#allocation2 + $0xc0] sm:$0xe] }
 0x242   : > { %v3046_v7 = vpop.permute.xlu0 %3045  ;;  %v8673_v4 = vrot.slane %v3745_v59, 9 }
 0x243   : > { %3126 = vst.msk [vmem:[#allocation3 + $0x40] sm:$0xf] %vm3109_vm5, %v3046_v7  ;;  %v3048_v23 = vpop.permute.xlu1 %3047  ;;  %v3529_v7 = vrot.slane %v3527_v55, 4  ;;  %v3889_v36 = vsel %vm9486_vm13, %v3887_v18, %v3888_v19 }
 0x244   : > { %3618 = vrot.lane.b32.xlu0 %v3467_v57, %s9081_s7  ;;  %3127 = vst.msk [vmem:[#allocation3 + $0x44] sm:$0xf] %vm3109_vm5, %v3048_v23  ;;  %v3743_v57 = vld [vmem:[#allocation2 + $0xb8] sm:$0xf]  ;;  %v3538_v23 = vrot.slane %v3536_v5, 5 }
 0x245   : > { %3620 = vrot.lane.b32.xlu1 %v3477_v13, %s9081_s7  ;;  %v3554_v13 = vshll.u32 %v3187_v61, 16  ;;  %v3892_v20 = vrot.slane %v3743_v57, 5  ;;  %v3533_v29 = vor.u32 %v3532_v8, %v3529_v7  ;;  %v3747_v57 = vld [vmem:[#allocation2 + $0xc8] sm:$0x1]  ;;  %v3749_v5 = vld [vmem:[#allocation2 + $0xd0] sm:$0xf] }
 0x246   : > { %v3050_v30 = vpop.permute.xlu0 %3049  ;;  %v3901_v8 = vrot.slane %v3899_v0, 4  ;;  %v3902_v9 = vrot.slane %v3747_v57, 5 }
 0x247   : > { %3128 = vst.msk [vmem:[#allocation3 + $0x48] sm:$0xf] %vm3109_vm5, %v3050_v30  ;;  %v3052_v41 = vpop.permute.xlu1 %3051  ;;  %v8672_v30 = vrot.slane %v3742_v15, 9  ;;  %v3556_v33 = vrot.slane %v3554_v13, 5  ;;  %v3894_v28 = vrot.slane %v3892_v20, 4  ;;  %v3534_v44 = vrot.slane %v3533_v29, 4 }
 0x248   : > { %3951 = vrot.lane.b32.xlu0 %v3872_v24, %s9082_s12  ;;  %3129 = vst.msk [vmem:[#allocation3 + $0x4c] sm:$0xf] %vm3109_vm5, %v3052_v41  ;;  %v3542_v24 = vrot.slane %v3540_v63, 4  ;;  %v3546_v41 = vshll.u32 %v3186_v31, 16  ;;  %v3750_v15 = vld [vmem:[#allocation2 + $0xd4] sm:$0x1]  ;;  %v3903_v18 = vsel %vm9486_vm13, %v3901_v8, %v3902_v9 }
 0x249   : > { %3953 = vrot.lane.b32.xlu1 %v3875_v32, %s9082_s12  ;;  %v3553_v32 = vrot.slane %v3551_v10, 4  ;;  %v3893_v43 = vsel %vm9486_vm13, %v8672_v30, %v3892_v20  ;;  %v3896_v48 = vsel %vm9486_vm13, %v3894_v28, %v3895_v37  ;;  %v3539_v51 = vsel %vm9195_vm7, %v3534_v44, %v3538_v23  ;;  %v4953_v30 = vld [vmem:[#allocation2] sm:$0xf] }
 0x24a   : > { %v3054_v16 = vpop.permute.xlu0 %3053  ;;  %v3543_v38 = vor.u32 %v3542_v24, %v3538_v23  ;;  %v3548_v50 = vrot.slane %v3546_v41, 5  ;;  %v3906_v10 = vrot.slane %v3749_v5, 5  ;;  %v3909_v20 = vrot.slane %v3750_v15, 5 }
 0x24b   : > { %3130 = vst.msk [vmem:[#allocation3 + $0x50] sm:$0xf] %vm3109_vm5, %v3054_v16  ;;  %v3056_v54 = vpop.permute.xlu1 %3055  ;;  %v3557_v45 = vor.u32 %v3556_v33, %v3553_v32  ;;  %v4954_v33 = vld [vmem:[#allocation2 + $0x4] sm:$0xf] }
 0x24c   : > { %3955 = vrot.lane.b32.xlu0 %v3879_v42, %s9082_s12  ;;  %3131 = vst.msk [vmem:[#allocation3 + $0x54] sm:$0xf] %vm3109_vm5, %v3056_v54  ;;  %v3562_v42 = vrot.slane %v3560_v11, 5  ;;  %v3544_v49 = vrot.slane %v3543_v38, 4  ;;  %v3570_v54 = vshll.u32 %v3189_v46, 16  ;;  %v3908_v19 = vrot.slane %v3906_v10, 4 }
 0x24d   : > { %3957 = vrot.lane.b32.xlu1 %v3882_v47, %s9082_s12  ;;  %v3558_v55 = vrot.slane %v3557_v45, 4 }
 0x24e   : > { %v3058_v58 = vpop.permute.xlu0 %3057  ;;  %v3567_v53 = vor.u32 %v3566_v3, %v3562_v42  ;;  %v3549_v60 = vsel %vm9195_vm7, %v3544_v49, %v3548_v50  ;;  %v3572_v62 = vrot.slane %v3570_v54, 5  ;;  %v3910_v11 = vsel %vm9486_vm13, %v3908_v19, %v3909_v20 }
 0x24f   : > { %3132 = vst.msk [vmem:[#allocation3 + $0x58] sm:$0xf] %vm3109_vm5, %v3058_v58  ;;  %v3060_v6 = vpop.permute.xlu1 %3059 }
 0x250   : > { %3622 = vrot.lane.b32.xlu0 %v3491_v40, %s9081_s7  ;;  %3133 = vst.msk [vmem:[#allocation3 + $0x5c] sm:$0xf] %vm3109_vm5, %v3060_v6  ;;  %v3568_v61 = vrot.slane %v3567_v53, 4  ;;  %v3748_v6 = vld [vmem:[#allocation2 + $0xcc] sm:$0xe] }
 0x251   : > { %3624 = vrot.lane.b32.xlu1 %v3501_v1, %s9081_s7 }
 0x252   : > { %v3062_v14 = vpop.permute.xlu0 %3061  ;;  %v3573_v7 = vsel %vm9195_vm7, %v3568_v61, %v3572_v62 }
 0x253   : > { %3134 = vst.msk [vmem:[#allocation3 + $0x60] sm:$0xf] %vm3109_vm5, %v3062_v14  ;;  %v3064_v26 = vpop.permute.xlu1 %3063  ;;  %v3900_v14 = vsel %vm9486_vm13, %v8673_v4, %v3899_v0 }
 0x254   : > { %3626 = vrot.lane.b32.xlu0 %v3515_v2, %s9081_s7  ;;  %3135 = vst.msk [vmem:[#allocation3 + $0x64] sm:$0xf] %vm3109_vm5, %v3064_v26  ;;  %v3563_v2 = vsel %vm9195_vm7, %v3558_v55, %v3562_v42 }
 0x255   : > { %3628 = vrot.lane.b32.xlu1 %v3525_v12, %s9081_s7  ;;  %v8674_v12 = vrot.slane %v3748_v6, 9 }
 0x256   : > { %v3066_v35 = vpop.permute.xlu0 %3065 }
 0x257   : > { %3136 = vst.msk [vmem:[#allocation3 + $0x68] sm:$0xf] %vm3109_vm5, %v3066_v35  ;;  %v3068_v16 = vpop.permute.xlu1 %3067  ;;  %v3907_v23 = vsel %vm9486_vm13, %v8674_v12, %v3906_v10 }
 0x258   : > { %3959 = vrot.lane.b32.xlu0 %v3886_v17, %s9082_s12  ;;  %3137 = vst.msk [vmem:[#allocation3 + $0x6c] sm:$0xf] %vm3109_vm5, %v3068_v16 }
 0x259   : > { %3961 = vrot.lane.b32.xlu1 %v3889_v36, %s9082_s12 }
 0x25a   : > { %v3070_v47 = vpop.permute.xlu0 %3069 }
 0x25b   : > { %3138 = vst.msk [vmem:[#allocation3 + $0x70] sm:$0xf] %vm3109_vm5, %v3070_v47  ;;  %v3072_v40 = vpop.permute.xlu1 %3071 }
 0x25c   : > { %3963 = vrot.lane.b32.xlu0 %v3893_v43, %s9082_s12  ;;  %3139 = vst.msk [vmem:[#allocation3 + $0x74] sm:$0xf] %vm3109_vm5, %v3072_v40 }
 0x25d   : > { %3965 = vrot.lane.b32.xlu1 %v3896_v48, %s9082_s12 }
 0x25e   : > { %v3074_v58 = vpop.permute.xlu0 %3073 }
 0x25f   : > { %3140 = vst.msk [vmem:[#allocation3 + $0x78] sm:$0xf] %vm3109_vm5, %v3074_v58  ;;  %v3076_v1 = vpop.permute.xlu1 %3075 }
 0x260   : > { %3630 = vrot.lane.b32.xlu0 %v3539_v51, %s9081_s7  ;;  %3141 = vst.msk [vmem:[#allocation3 + $0x7c] sm:$0xf] %vm3109_vm5, %v3076_v1 }
 0x261   : > { %3632 = vrot.lane.b32.xlu1 %v3549_v60, %s9081_s7 }
 0x262   : > { %v3575_v63 = vpop.permute.xlu0 %3574 }
 0x263   : > { %3671 = vst.msk [vmem:[#allocation3] sm:$0xf] %vm3670_vm6, %v3575_v63  ;;  %v3577_v13 = vpop.permute.xlu1 %3576 }
 0x264   : > { %3634 = vrot.lane.b32.xlu0 %v3563_v2, %s9081_s7  ;;  %3672 = vst.msk [vmem:[#allocation3 + $0x4] sm:$0xf] %vm3670_vm6, %v3577_v13 }
 0x265   : > { %3636 = vrot.lane.b32.xlu1 %v3573_v7, %s9081_s7 }
 0x266   : > { %v3579_v17 = vpop.permute.xlu0 %3578 }
 0x267   : > { %3673 = vst.msk [vmem:[#allocation3 + $0x8] sm:$0xf] %vm3670_vm6, %v3579_v17  ;;  %v3581_v22 = vpop.permute.xlu1 %3580 }
 0x268   : > { %3967 = vrot.lane.b32.xlu0 %v3900_v14, %s9082_s12  ;;  %3674 = vst.msk [vmem:[#allocation3 + $0xc] sm:$0xf] %vm3670_vm6, %v3581_v22 }
 0x269   : > { %3969 = vrot.lane.b32.xlu1 %v3903_v18, %s9082_s12 }
 0x26a   : > { %v3912_v24 = vpop.permute.xlu0 %3911 }
 0x26b   : > { %4008 = vst.msk [vmem:[#allocation3] sm:$0xf] %vm4007_vm11, %v3912_v24  ;;  %v3914_v25 = vpop.permute.xlu1 %3913 }
 0x26c   : > { %3971 = vrot.lane.b32.xlu0 %v3907_v23, %s9082_s12  ;;  %4009 = vst.msk [vmem:[#allocation3 + $0x4] sm:$0xf] %vm4007_vm11, %v3914_v25 }
 0x26d   : > { %3973 = vrot.lane.b32.xlu1 %v3910_v11, %s9082_s12 }
 0x26e   : > { %v3916_v26 = vpop.permute.xlu0 %3915 }
 0x26f   : > { %4010 = vst.msk [vmem:[#allocation3 + $0x8] sm:$0xf] %vm4007_vm11, %v3916_v26  ;;  %v3918_v29 = vpop.permute.xlu1 %3917 }
 0x270   : > { %4011 = vst.msk [vmem:[#allocation3 + $0xc] sm:$0xf] %vm4007_vm11, %v3918_v29 }
 0x272   : > { %v4040_v31 = vld [vmem:[#allocation3] sm:$0xf]  ;;  %v3583_v32 = vpop.permute.xlu0 %3582 }
 0x273   : > { %4985 = vst.msk [vmem:[#allocation3] sm:$0xf] %vm226_vm0, %v4953_v30  ;;  %v4041_v35 = vld [vmem:[#allocation3 + $0x4] sm:$0xf]  ;;  %v3585_v36 = vpop.permute.xlu1 %3584 }
 0x274   : > { %3675 = vst.msk [vmem:[#allocation3 + $0x10] sm:$0xf] %vm3670_vm6, %v3583_v32  ;;  %3676 = vst.msk [vmem:[#allocation3 + $0x14] sm:$0xf] %vm3670_vm6, %v3585_v36  ;;  %v8676_v28 = vcombine.low %v4040_v31, %v4041_v35  ;;  %v5017_v35 = vld [vmem:[#allocation2] sm:$0xf] }
 0x275   : > { %4986 = vst.msk [vmem:[#allocation3 + $0x4] sm:$0xf] %vm226_vm0, %v4954_v33  ;;  %v5066_v36 = vshrl.u32 %v5017_v35, 16 }
 0x276   : > { %v3587_v37 = vpop.permute.xlu0 %3586  ;;  %8939 = vmatprep.mubr.msk.bf16.mxu0 %vm4173_vm12, %v8676_v28  ;;  %v5069_v28 = vshll.u32 %v5017_v35, 16 }
 0x277   : > { %3677 = vst.msk [vmem:[#allocation3 + $0x18] sm:$0xf] %vm3670_vm6, %v3587_v37  ;;  %v3589_v38 = vpop.permute.xlu1 %3588  ;;  %v9031_v41 = vld [vmem:[#allocation3 + $0x8] sm:$0xff]  }
 0x278   : > { %3678 = vst.msk [vmem:[#allocation3 + $0x1c] sm:$0xf] %vm3670_vm6, %v3589_v38  ;;  %8940 = vmatmul.mubr.msk.bf16.vlgmr.msra.gmra.mxu0 %vm4173_vm12, %v9031_v41  ;;  %v5068_v41 = vrot.slane %v5066_v36, 4 }
 0x27a   : > { %v3920_v42 = vpop.permute.xlu0 %3919 }
 0x27b   : > { %4012 = vst.msk [vmem:[#allocation3 + $0x10] sm:$0xf] %vm4007_vm11, %v3920_v42  ;;  %v3922_v3 = vpop.permute.xlu1 %3921  ;;  %v5071_v42 = vrot.slane %v5069_v28, 5 }
 0x27c   : > { %4013 = vst.msk [vmem:[#allocation3 + $0x14] sm:$0xf] %vm4007_vm11, %v3922_v3  ;;  %v5018_v3 = vld [vmem:[#allocation2 + $0x4] sm:$0xf] }
 0x27e   : > { %v3924_v16 = vpop.permute.xlu0 %3923 }
 0x27f   : > { %4014 = vst.msk [vmem:[#allocation3 + $0x18] sm:$0xf] %vm4007_vm11, %v3924_v16  ;;  %v3926_v43 = vpop.permute.xlu1 %3925  ;;  %v5072_v16 = vor.u32 %v5071_v42, %v5068_v41 }
 0x280   : > { %4015 = vst.msk [vmem:[#allocation3 + $0x1c] sm:$0xf] %vm4007_vm11, %v3926_v43  ;;  %v5075_v43 = vshll.u32 %v5018_v3, 16 }
 0x282   : > { %v3591_v44 = vpop.permute.xlu0 %3590 }
 0x283   : > { %3679 = vst.msk [vmem:[#allocation3 + $0x20] sm:$0xf] %vm3670_vm6, %v3591_v44  ;;  %v3593_v45 = vpop.permute.xlu1 %3592  ;;  %v9032_v46 = vld [vmem:[#allocation3 + $0x10] sm:$0xff]   ;;  %v5079_v44 = vshrl.u32 %v5018_v3, 16 }
 0x284   : > { %3680 = vst.msk [vmem:[#allocation3 + $0x24] sm:$0xf] %vm3670_vm6, %v3593_v45  ;;  %8943 = vmatprep.mubr.msk.bf16.mxu0 %vm4173_vm12, %v9032_v46 }
 0x286   : > { %v3595_v47 = vpop.permute.xlu0 %3594 }
 0x287   : > { %3681 = vst.msk [vmem:[#allocation3 + $0x28] sm:$0xf] %vm3670_vm6, %v3595_v47  ;;  %v3597_v48 = vpop.permute.xlu1 %3596  ;;  %v9033_v49 = vld [vmem:[#allocation3 + $0x18] sm:$0xff]  }
 0x288   : > { %3682 = vst.msk [vmem:[#allocation3 + $0x2c] sm:$0xf] %vm3670_vm6, %v3597_v48  ;;  %8944 = vmatmul.mubr.msk.bf16.gmra.mxu0 %vm4173_vm12, %v9033_v49  ;;  %v5073_v48 = vrot.slane %v5072_v16, 4  ;;  %v5077_v49 = vrot.slane %v5075_v43, 5 }
 0x28a   : > { %v3928_v50 = vpop.permute.xlu0 %3927 }
 0x28b   : > { %4016 = vst.msk [vmem:[#allocation3 + $0x20] sm:$0xf] %vm4007_vm11, %v3928_v50  ;;  %v3930_v53 = vpop.permute.xlu1 %3929  ;;  %v5019_v50 = vld [vmem:[#allocation2 + $0x8] sm:$0x1] }
 0x28c   : > { %4017 = vst.msk [vmem:[#allocation3 + $0x24] sm:$0xf] %vm4007_vm11, %v3930_v53  ;;  %v5081_v53 = vrot.slane %v5079_v44, 4 }
 0x28e   : > { %v3932_v54 = vpop.permute.xlu0 %3931 }
 0x28f   : > { %4018 = vst.msk [vmem:[#allocation3 + $0x28] sm:$0xf] %vm4007_vm11, %v3932_v54  ;;  %v3934_v40 = vpop.permute.xlu1 %3933  ;;  %v5078_v54 = vsel %vm9195_vm7, %v5073_v48, %v5077_v49 }
 0x290   : > { %4019 = vst.msk [vmem:[#allocation3 + $0x2c] sm:$0xf] %vm4007_vm11, %v3934_v40  ;;  %v5085_v40 = vshll.u32 %v5019_v50, 16  ;;  %5449 = vrot.lane.b32.xlu0 %v5078_v54, %s9075_s24 }
 0x292   : > { %v3599_v51 = vpop.permute.xlu0 %3598 }
 0x293   : > { %3683 = vst.msk [vmem:[#allocation3 + $0x30] sm:$0xf] %vm3670_vm6, %v3599_v51  ;;  %v3601_v55 = vpop.permute.xlu1 %3600  ;;  %v9034_v56 = vld [vmem:[#allocation3 + $0x20] sm:$0xff]  }
 0x294   : > { %3684 = vst.msk [vmem:[#allocation3 + $0x34] sm:$0xf] %vm3670_vm6, %v3601_v55  ;;  %8947 = vmatprep.mubr.msk.bf16.mxu0 %vm4173_vm12, %v9034_v56  ;;  %v5082_v56 = vor.u32 %v5081_v53, %v5077_v49  ;;  %v4839_v49 = vld [vmem:[#allocation2 + $0x14] sm:$0x1] }
 0x296   : > { %v3603_v58 = vpop.permute.xlu0 %3602 }
 0x297   : > { %3685 = vst.msk [vmem:[#allocation3 + $0x38] sm:$0xf] %vm3670_vm6, %v3603_v58  ;;  %v3605_v59 = vpop.permute.xlu1 %3604  ;;  %v9035_v60 = vld [vmem:[#allocation3 + $0x28] sm:$0xff]  }
 0x298   : > { %3686 = vst.msk [vmem:[#allocation3 + $0x3c] sm:$0xf] %vm3670_vm6, %v3605_v59  ;;  %8948 = vmatmul.mubr.msk.bf16.gmra.mxu0 %vm4173_vm12, %v9035_v60  ;;  %v5087_v59 = vrot.slane %v5085_v40, 5  ;;  %v5083_v60 = vrot.slane %v5082_v56, 4 }
 0x29a   : > { %v3936_v61 = vpop.permute.xlu0 %3935 }
 0x29b   : > { %4020 = vst.msk [vmem:[#allocation3 + $0x30] sm:$0xf] %vm4007_vm11, %v3936_v61  ;;  %v3938_v62 = vpop.permute.xlu1 %3937 }
 0x29c   : > { %4021 = vst.msk [vmem:[#allocation3 + $0x34] sm:$0xf] %vm4007_vm11, %v3938_v62  ;;  %v5088_v62 = vsel %vm9195_vm7, %v5083_v60, %v5087_v59 }
 0x29d   : > { %5451 = vrot.lane.b32.xlu1 %v5088_v62, %s9075_s24 }
 0x29e   : > { %v3940_v0 = vpop.permute.xlu0 %3939 }
 0x29f   : > { %4022 = vst.msk [vmem:[#allocation3 + $0x38] sm:$0xf] %vm4007_vm11, %v3940_v0  ;;  %v3942_v1 = vpop.permute.xlu1 %3941 }
 0x2a0   : > { %4023 = vst.msk [vmem:[#allocation3 + $0x3c] sm:$0xf] %vm4007_vm11, %v3942_v1 }
 0x2a2   : > { %v3607_v2 = vpop.permute.xlu0 %3606 }
 0x2a3   : > { %3687 = vst.msk [vmem:[#allocation3 + $0x40] sm:$0xf] %vm3670_vm6, %v3607_v2  ;;  %v3609_v4 = vpop.permute.xlu1 %3608  ;;  %v9036_v57 = vld [vmem:[#allocation3 + $0x30] sm:$0xff]  }
 0x2a4   : > { %3688 = vst.msk [vmem:[#allocation3 + $0x44] sm:$0xf] %vm3670_vm6, %v3609_v4  ;;  %8951 = vmatprep.mubr.msk.bf16.mxu0 %vm4173_vm12, %v9036_v57  ;;  %v10441_v57 = vld [vmem:[%s11714_s2] ss:$0 sm:$0xff] }
 0x2a6   : > { %v3611_v5 = vpop.permute.xlu0 %3610 }
 0x2a7   : > { %3689 = vst.msk [vmem:[#allocation3 + $0x48] sm:$0xf] %vm3670_vm6, %v3611_v5  ;;  %v3613_v63 = vpop.permute.xlu1 %3612  ;;  %v9037_v6 = vld [vmem:[#allocation3 + $0x38] sm:$0xff]  }
 0x2a8   : > { %3690 = vst.msk [vmem:[#allocation3 + $0x4c] sm:$0xf] %vm3670_vm6, %v3613_v63  ;;  %8952 = vmatmul.mubr.msk.bf16.gmra.mxu0 %vm4173_vm12, %v9037_v6 }
 0x2aa   : > { %v3944_v7 = vpop.permute.xlu0 %3943 }
 0x2ab   : > { %4024 = vst.msk [vmem:[#allocation3 + $0x40] sm:$0xf] %vm4007_vm11, %v3944_v7  ;;  %v3946_v8 = vpop.permute.xlu1 %3945 }
 0x2ac   : > { %4025 = vst.msk [vmem:[#allocation3 + $0x44] sm:$0xf] %vm4007_vm11, %v3946_v8 }
 0x2ae   : > { %v3948_v9 = vpop.permute.xlu0 %3947 }
 0x2af   : > { %4026 = vst.msk [vmem:[#allocation3 + $0x48] sm:$0xf] %vm4007_vm11, %v3948_v9  ;;  %v3950_v10 = vpop.permute.xlu1 %3949 }
 0x2b0   : > { %4027 = vst.msk [vmem:[#allocation3 + $0x4c] sm:$0xf] %vm4007_vm11, %v3950_v10 }
 0x2b2   : > { %v3615_v13 = vpop.permute.xlu0 %3614 }
 0x2b3   : > { %3691 = vst.msk [vmem:[#allocation3 + $0x50] sm:$0xf] %vm3670_vm6, %v3615_v13  ;;  %v3617_v14 = vpop.permute.xlu1 %3616  ;;  %v9038_v12 = vld [vmem:[#allocation3 + $0x40] sm:$0xff]  }
 0x2b4   : > { %3692 = vst.msk [vmem:[#allocation3 + $0x54] sm:$0xf] %vm3670_vm6, %v3617_v14  ;;  %8955 = vmatprep.mubr.msk.bf16.mxu0 %vm4173_vm12, %v9038_v12 }
 0x2b6   : > { %v3619_v15 = vpop.permute.xlu0 %3618 }
 0x2b7   : > { %3693 = vst.msk [vmem:[#allocation3 + $0x58] sm:$0xf] %vm3670_vm6, %v3619_v15  ;;  %v3621_v17 = vpop.permute.xlu1 %3620  ;;  %v9039_v18 = vld [vmem:[#allocation3 + $0x48] sm:$0xff]  }
 0x2b8   : > { %3694 = vst.msk [vmem:[#allocation3 + $0x5c] sm:$0xf] %vm3670_vm6, %v3621_v17  ;;  %8956 = vmatmul.mubr.msk.bf16.gmra.mxu0 %vm4173_vm12, %v9039_v18 }
 0x2ba   : > { %v3952_v19 = vpop.permute.xlu0 %3951 }
 0x2bb   : > { %4028 = vst.msk [vmem:[#allocation3 + $0x50] sm:$0xf] %vm4007_vm11, %v3952_v19  ;;  %v3954_v20 = vpop.permute.xlu1 %3953 }
 0x2bc   : > { %4029 = vst.msk [vmem:[#allocation3 + $0x54] sm:$0xf] %vm4007_vm11, %v3954_v20 }
 0x2be   : > { %v3956_v22 = vpop.permute.xlu0 %3955 }
 0x2bf   : > { %4030 = vst.msk [vmem:[#allocation3 + $0x58] sm:$0xf] %vm4007_vm11, %v3956_v22  ;;  %v3958_v23 = vpop.permute.xlu1 %3957 }
 0x2c0   : > { %4031 = vst.msk [vmem:[#allocation3 + $0x5c] sm:$0xf] %vm4007_vm11, %v3958_v23 }
 0x2c2   : > { %v3623_v24 = vpop.permute.xlu0 %3622 }
 0x2c3   : > { %3695 = vst.msk [vmem:[#allocation3 + $0x60] sm:$0xf] %vm3670_vm6, %v3623_v24  ;;  %v3625_v11 = vpop.permute.xlu1 %3624  ;;  %v9040_v25 = vld [vmem:[#allocation3 + $0x50] sm:$0xff]  }
 0x2c4   : > { %3696 = vst.msk [vmem:[#allocation3 + $0x64] sm:$0xf] %vm3670_vm6, %v3625_v11  ;;  %8959 = vmatprep.mubr.msk.bf16.mxu0 %vm4173_vm12, %v9040_v25  ;;  %v4842_v11 = vld [vmem:[#allocation2 + $0x18] sm:$0xf] }
 0x2c6   : > { %v3627_v26 = vpop.permute.xlu0 %3626 }
 0x2c7   : > { %3697 = vst.msk [vmem:[#allocation3 + $0x68] sm:$0xf] %vm3670_vm6, %v3627_v26  ;;  %v3629_v30 = vpop.permute.xlu1 %3628  ;;  %v9041_v29 = vld [vmem:[#allocation3 + $0x58] sm:$0xff]  }
 0x2c8   : > { %3698 = vst.msk [vmem:[#allocation3 + $0x6c] sm:$0xf] %vm3670_vm6, %v3629_v30  ;;  %8960 = vmatmul.mubr.msk.bf16.gmra.mxu0 %vm4173_vm12, %v9041_v29 }
 0x2ca   : > { %v3960_v31 = vpop.permute.xlu0 %3959 }
 0x2cb   : > { %4032 = vst.msk [vmem:[#allocation3 + $0x60] sm:$0xf] %vm4007_vm11, %v3960_v31  ;;  %v3962_v32 = vpop.permute.xlu1 %3961 }
 0x2cc   : > { %4033 = vst.msk [vmem:[#allocation3 + $0x64] sm:$0xf] %vm4007_vm11, %v3962_v32  ;;  %v4835_v32 = vld [vmem:[#allocation2 + $0xc] sm:$0xf] }
 0x2ce   : > { %v3964_v33 = vpop.permute.xlu0 %3963 }
 0x2cf   : > { %4034 = vst.msk [vmem:[#allocation3 + $0x68] sm:$0xf] %vm4007_vm11, %v3964_v33  ;;  %v3966_v37 = vpop.permute.xlu1 %3965 }
 0x2d0   : > { %4035 = vst.msk [vmem:[#allocation3 + $0x6c] sm:$0xf] %vm4007_vm11, %v3966_v37 }
 0x2d2   : > { %v3631_v38 = vpop.permute.xlu0 %3630 }
 0x2d3   : > { %3699 = vst.msk [vmem:[#allocation3 + $0x70] sm:$0xf] %vm3670_vm6, %v3631_v38  ;;  %v3633_v45 = vpop.permute.xlu1 %3632  ;;  %v9042_v46 = vld [vmem:[#allocation3 + $0x60] sm:$0xff]   ;;  %v4846_v38 = vld [vmem:[#allocation2 + $0x20] sm:$0x1] }
 0x2d4   : > { %3700 = vst.msk [vmem:[#allocation3 + $0x74] sm:$0xf] %vm3670_vm6, %v3633_v45  ;;  %8963 = vmatprep.mubr.msk.bf16.mxu0 %vm4173_vm12, %v9042_v46 }
 0x2d6   : > { %v3635_v47 = vpop.permute.xlu0 %3634 }
 0x2d7   : > { %3701 = vst.msk [vmem:[#allocation3 + $0x78] sm:$0xf] %vm3670_vm6, %v3635_v47  ;;  %v3637_v51 = vpop.permute.xlu1 %3636  ;;  %v9043_v55 = vld [vmem:[#allocation3 + $0x68] sm:$0xff]  }
 0x2d8   : > { %3702 = vst.msk [vmem:[#allocation3 + $0x7c] sm:$0xf] %vm3670_vm6, %v3637_v51  ;;  %8964 = vmatmul.mubr.msk.bf16.gmra.mxu0 %vm4173_vm12, %v9043_v55 }
 0x2da   : > { %v3968_v58 = vpop.permute.xlu0 %3967 }
 0x2db   : > { %4036 = vst.msk [vmem:[#allocation3 + $0x70] sm:$0xf] %vm4007_vm11, %v3968_v58  ;;  %v3970_v61 = vpop.permute.xlu1 %3969 }
 0x2dc   : > { %4037 = vst.msk [vmem:[#allocation3 + $0x74] sm:$0xf] %vm4007_vm11, %v3970_v61 }
 0x2de   : > { %v3972_v0 = vpop.permute.xlu0 %3971 }
 0x2df   : > { %4038 = vst.msk [vmem:[#allocation3 + $0x78] sm:$0xf] %vm4007_vm11, %v3972_v0  ;;  %v3974_v1 = vpop.permute.xlu1 %3973 }
 0x2e0   : > { %4039 = vst.msk [vmem:[#allocation3 + $0x7c] sm:$0xf] %vm4007_vm11, %v3974_v1 }
 0x2e3   : > { %v9044_v2 = vld [vmem:[#allocation3 + $0x70] sm:$0xff]  }
 0x2e4   : > { %8967 = vmatprep.mubr.msk.bf16.mxu0 %vm4173_vm12, %v9044_v2 }
 0x2e7   : > { %v9045_v4 = vld [vmem:[#allocation3 + $0x78] sm:$0xff]  }
 0x2e8   : > { %8968 = vmatmul.mubr.msk.bf16.gmra.mxu0 %vm4173_vm12, %v9045_v4 }
 0x302   : > { %v5450_v61 = vpop.permute.xlu0 %5449 }
 0x303   : > { %5545 = vst.msk [vmem:[#allocation3] sm:$0xf] %vm1484_vm14, %v5450_v61 }
 0x338   : > { %v8941_v5 = vpop.f32.mrf.mxu0 }
 0x339   : > { %v4269_v63 = vadd.f32 %v8941_v5, %v10441_v57 }
 0x33a   : > { %v4260_v6 = vpop.f32.mrf.mxu0 }
 0x33b   : > { %v4389_v7 = vmax.f32 %v4269_v63, 0.0  ;;  %v4261_v8 = vadd.f32 %v10441_v57, %v4260_v6 }
 0x33c   : > { %v8942_v9 = vpop.f32.mrf.mxu0 }
 0x33d   : > { %v8865_v10 = vpack.c.bf16 %v4389_v7, %v4389_v7  ;;  %v4387_v13 = vmax.f32 %v4261_v8, 0.0  ;;  %v4272_v14 = vadd.f32 %v8942_v9, %v10441_v57 }
 0x33e   : > { %v4263_v12 = vpop.f32.mrf.mxu0 }
 0x33f   : > { %v4533_v15 = vshrl.u32 %v8865_v10, 16  ;;  %v8863_v17 = vpack.c.bf16 %v4387_v13, %v4387_v13  ;;  %v4390_v18 = vmax.f32 %v4272_v14, 0.0  ;;  %v4264_v19 = vadd.f32 %v10441_v57, %v4263_v12 }
 0x340   : > { %v4536_v22 = vshll.u32 %v8865_v10, 16 }
 0x341   : > { %v4535_v20 = vrot.slane %v4533_v15, 7  ;;  %v4516_v23 = vshrl.u32 %v8863_v17, 16  ;;  %v8866_v24 = vpack.c.bf16 %v4390_v18, %v4390_v18  ;;  %v4388_v25 = vmax.f32 %v4264_v19, 0.0 }
 0x342   : > { %v4519_v29 = vshll.u32 %v8863_v17, 16 }
 0x343   : > { %v4538_v26 = vor.u32 %v4536_v22, %v4535_v20  ;;  %v4518_v30 = vrot.slane %v4516_v23, 7  ;;  %v4541_v31 = vshrl.u32 %v8866_v24, 16  ;;  %v8864_v33 = vpack.c.bf16 %v4388_v25, %v4388_v25 }
 0x344   : > { %v4544_v37 = vshll.u32 %v8866_v24, 16  ;;  %v4539_v42 = vrot.slane %v4535_v20, 4  ;;  %v4856_v24 = vld [vmem:[#allocation2 + $0x30] sm:$0xf] }
 0x345   : > { %v4843_v35 = vsel %vm9208_vm9, %v4538_v26, %v4842_v11  ;;  %v4521_v36 = vor.u32 %v4519_v29, %v4518_v30  ;;  %v4543_v28 = vrot.slane %v4541_v31, 7  ;;  %v4524_v41 = vshrl.u32 %v8864_v33, 16 }
 0x346   : > { %4844 = vst [vmem:[#allocation2 + $0x18] sm:$0xf] %v4843_v35  ;;  %v4527_v45 = vshll.u32 %v8864_v33, 16  ;;  %v4522_v53 = vrot.slane %v4518_v30, 4  ;;  %v4849_v33 = vld [vmem:[#allocation2 + $0x24] sm:$0xf] }
 0x347   : > { %v4836_v3 = vsel %vm9208_vm9, %v4521_v36, %v4835_v32  ;;  %v4546_v16 = vor.u32 %v4544_v37, %v4543_v28  ;;  %v4548_v43 = vrot.slane %v4543_v28, 4  ;;  %v4526_v44 = vrot.slane %v4524_v41, 7  ;;  %v4860_v28 = vld [vmem:[#allocation2 + $0x38] sm:$0x1] }
 0x348   : > { %4837 = vst [vmem:[#allocation2 + $0xc] sm:$0xf] %v4836_v3  ;;  %v8945_v46 = vpop.f32.mrf.mxu0  ;;  %v5452_v3 = vpop.permute.xlu1 %5451 }
 0x349   : > { %v4547_v47 = vsel %vm9201_vm8, %v4539_v42, %v4546_v16  ;;  %v4847_v48 = vsel %vm9214_vm10, %v4548_v43, %v4846_v38  ;;  %v4285_v50 = vadd.f32 %v8945_v46, %v10441_v57  ;;  %v4529_v54 = vor.u32 %v4527_v45, %v4526_v44  ;;  %5546 = vst.msk [vmem:[#allocation3 + $0x4] sm:$0xf] %vm1484_vm14, %v5452_v3 }
 0x34a   : > { %4848 = vst [vmem:[#allocation2 + $0x20] sm:$0x1] %v4847_v48  ;;  %4845 = vst.msk [vmem:[#allocation2 + $0x1c] sm:$0xf] %vm226_vm0, %v4547_v47  ;;  %v4531_v40 = vrot.slane %v4526_v44, 4  ;;  %v4276_v51 = vpop.f32.mrf.mxu0 }
 0x34b   : > { %v4393_v55 = vmax.f32 %v4285_v50, 0.0  ;;  %v4277_v56 = vadd.f32 %v10441_v57, %v4276_v51  ;;  %v4530_v58 = vsel %vm9201_vm8, %v4522_v53, %v4529_v54 }
 0x34c   : > { %v4840_v59 = vsel %vm9214_vm10, %v4531_v40, %v4839_v49  ;;  %v8946_v60 = vpop.f32.mrf.mxu0  ;;  %4838 = vst.msk [vmem:[#allocation2 + $0x10] sm:$0xf] %vm226_vm0, %v4530_v58 }
 0x34d   : > { %4841 = vst [vmem:[#allocation2 + $0x14] sm:$0x1] %v4840_v59  ;;  %v8869_v62 = vpack.c.bf16 %v4393_v55, %v4393_v55  ;;  %v4391_v0 = vmax.f32 %v4277_v56, 0.0  ;;  %v4288_v1 = vadd.f32 %v8946_v60, %v10441_v57  ;;  %v5023_v2 = vld [vmem:[#allocation2 + $0x18] sm:$0xf] }
 0x34e   : > { %v4957_v4 = vld [vmem:[#allocation2 + $0x18] sm:$0xf]  ;;  %v4279_v5 = vpop.f32.mrf.mxu0  ;;  %v5114_v63 = vshrl.u32 %v5023_v2, 16  ;;  %v5117_v6 = vshll.u32 %v5023_v2, 16 }
 0x34f   : > { %4989 = vst.msk [vmem:[#allocation3 + $0x10] sm:$0xf] %vm226_vm0, %v4957_v4  ;;  %v4567_v7 = vshrl.u32 %v8869_v62, 16  ;;  %v4570_v8 = vshll.u32 %v8869_v62, 16  ;;  %v8867_v9 = vpack.c.bf16 %v4391_v0, %v4391_v0  ;;  %v4394_v10 = vmax.f32 %v4288_v1, 0.0 }
 0x350   : > { %v5020_v13 = vld [vmem:[#allocation2 + $0xc] sm:$0xf]  ;;  %v4280_v14 = vadd.f32 %v10441_v57, %v4279_v5  ;;  %v5116_v17 = vrot.slane %v5114_v63, 4  ;;  %v5119_v30 = vrot.slane %v5117_v6, 5 }
 0x351   : > { %v5090_v12 = vshrl.u32 %v5020_v13, 16  ;;  %v5093_v15 = vshll.u32 %v5020_v13, 16  ;;  %v4955_v18 = vld [vmem:[#allocation2 + $0xc] sm:$0xf]  ;;  %v4569_v19 = vrot.slane %v4567_v7, 7  ;;  %v4550_v20 = vshrl.u32 %v8867_v9, 16 }
 0x352   : > { %v4553_v22 = vshll.u32 %v8867_v9, 16  ;;  %v8870_v23 = vpack.c.bf16 %v4394_v10, %v4394_v10  ;;  %4987 = vst.msk [vmem:[#allocation3 + $0x8] sm:$0xf] %vm226_vm0, %v4955_v18  ;;  %v4392_v11 = vmax.f32 %v4280_v14, 0.0  ;;  %v5120_v42 = vor.u32 %v5119_v30, %v5116_v17  ;;  %v4958_v54 = vld [vmem:[#allocation2 + $0x1c] sm:$0xf] }
 0x353   : > { %v5092_v25 = vrot.slane %v5090_v12, 4  ;;  %v5095_v26 = vrot.slane %v5093_v15, 5  ;;  %v4572_v29 = vor.u32 %v4570_v8, %v4569_v19  ;;  %v4573_v31 = vrot.slane %v4569_v19, 4  ;;  %v5021_v38 = vld [vmem:[#allocation2 + $0x10] sm:$0xf] }
 0x354   : > { %v4552_v32 = vrot.slane %v4550_v20, 7  ;;  %v4575_v35 = vshrl.u32 %v8870_v23, 16  ;;  %v4578_v36 = vshll.u32 %v8870_v23, 16  ;;  %v8868_v37 = vpack.c.bf16 %v4392_v11, %v4392_v11  ;;  %v5022_v46 = vld [vmem:[#allocation2 + $0x14] sm:$0x1] }
 0x355   : > { %v5096_v41 = vor.u32 %v5095_v26, %v5092_v25  ;;  %v4857_v16 = vsel %vm9208_vm9, %v4572_v29, %v4856_v24  ;;  %v4956_v47 = vld [vmem:[#allocation2 + $0x10] sm:$0xf]  ;;  %v5099_v53 = vshll.u32 %v5021_v38, 16  ;;  %v5103_v56 = vshrl.u32 %v5021_v38, 16  ;;  %4990 = vst.msk [vmem:[#allocation3 + $0x14] sm:$0xf] %vm226_vm0, %v4958_v54 }
 0x356   : > { %v4555_v43 = vor.u32 %v4553_v22, %v4552_v32  ;;  %v4556_v44 = vrot.slane %v4552_v32, 4  ;;  %v4577_v45 = vrot.slane %v4575_v35, 7  ;;  %4858 = vst [vmem:[#allocation2 + $0x30] sm:$0xf] %v4857_v16  ;;  %v4558_v48 = vshrl.u32 %v8868_v37, 16 }
 0x357   : > { %v4561_v49 = vshll.u32 %v8868_v37, 16  ;;  %v5097_v50 = vrot.slane %v5096_v41, 4  ;;  %4988 = vst.msk [vmem:[#allocation3 + $0xc] sm:$0xf] %vm226_vm0, %v4956_v47  ;;  %v5101_v60 = vrot.slane %v5099_v53, 5  ;;  %v5109_v61 = vshll.u32 %v5022_v46, 16 }
 0x358   : > { %v4850_v40 = vsel %vm9208_vm9, %v4555_v43, %v4849_v33  ;;  %v4580_v51 = vor.u32 %v4578_v36, %v4577_v45  ;;  %v4582_v55 = vrot.slane %v4577_v45, 4  ;;  %v4560_v58 = vrot.slane %v4558_v48, 7  ;;  %v8949_v59 = vpop.f32.mrf.mxu0  ;;  %v5024_v62 = vld [vmem:[#allocation2 + $0x1c] sm:$0xf]  ;;  %v4853_v4 = vld [vmem:[#allocation2 + $0x2c] sm:$0x1] }
 0x359   : > { %4851 = vst [vmem:[#allocation2 + $0x24] sm:$0xf] %v4850_v40  ;;  %v5121_v0 = vrot.slane %v5120_v42, 4  ;;  %v4301_v5 = vadd.f32 %v8949_v59, %v10441_v57  ;;  %v5105_v63 = vrot.slane %v5103_v56, 4  ;;  %v5025_v6 = vld [vmem:[#allocation2 + $0x20] sm:$0x1]  ;;  %v5102_v9 = vsel %vm9195_vm7, %v5097_v50, %v5101_v60 }
 0x35a   : > { %v4581_v1 = vsel %vm9201_vm8, %v4573_v31, %v4580_v51  ;;  %v4861_v2 = vsel %vm9214_vm10, %v4582_v55, %v4860_v28  ;;  %v4563_v7 = vor.u32 %v4561_v49, %v4560_v58  ;;  %v4565_v8 = vrot.slane %v4560_v58, 4  ;;  %v4292_v10 = vpop.f32.mrf.mxu0  ;;  %5453 = vrot.lane.b32.xlu0 %v5102_v9, %s9075_s24  ;;  %v4870_v50 = vld [vmem:[#allocation2 + $0x48] sm:$0xf] }
 0x35b   : > { %4862 = vst [vmem:[#allocation2 + $0x38] sm:$0x1] %v4861_v2  ;;  %4859 = vst.msk [vmem:[#allocation2 + $0x34] sm:$0xf] %vm226_vm0, %v4581_v1  ;;  %v5111_v13 = vrot.slane %v5109_v61, 5  ;;  %v4397_v14 = vmax.f32 %v4301_v5, 0.0  ;;  %v4293_v12 = vadd.f32 %v10441_v57, %v4292_v10  ;;  %v5106_v15 = vor.u32 %v5105_v63, %v5101_v60 }
 0x35c   : > { %v5123_v17 = vshll.u32 %v5024_v62, 16  ;;  %v4564_v18 = vsel %vm9201_vm8, %v4556_v44, %v4563_v7  ;;  %v4854_v19 = vsel %vm9214_vm10, %v4565_v8, %v4853_v4  ;;  %v8950_v20 = vpop.f32.mrf.mxu0  ;;  %v5127_v22 = vshrl.u32 %v5024_v62, 16  ;;  %v4863_v60 = vld [vmem:[#allocation2 + $0x3c] sm:$0xf]  ;;  %v4874_v7 = vld [vmem:[#allocation2 + $0x50] sm:$0x1] }
 0x35d   : > { %v5133_v23 = vshll.u32 %v5025_v6, 16  ;;  %4855 = vst [vmem:[#allocation2 + $0x2c] sm:$0x1] %v4854_v19  ;;  %4852 = vst.msk [vmem:[#allocation2 + $0x28] sm:$0xf] %vm226_vm0, %v4564_v18  ;;  %v8873_v24 = vpack.c.bf16 %v4397_v14, %v4397_v14  ;;  %v4395_v11 = vmax.f32 %v4293_v12, 0.0  ;;  %v4304_v25 = vadd.f32 %v8950_v20, %v10441_v57 }
 0x35e   : > { %v5107_v26 = vrot.slane %v5106_v15, 4  ;;  %v10491_v30 = vld [vmem:[#allocation2 + $0x30] sm:$0xf]  ;;  %v5125_v29 = vrot.slane %v5123_v17, 5  ;;  %v4295_v31 = vpop.f32.mrf.mxu0  ;;  %v5129_v32 = vrot.slane %v5127_v22, 4 }
 0x35f   : > { %v5135_v33 = vrot.slane %v5133_v23, 5  ;;  %v5162_v35 = vshrl.u32 %v10491_v30, 16  ;;  %v4961_v36 = vld [vmem:[#allocation2 + $0x30] sm:$0xf]  ;;  %v4601_v28 = vshrl.u32 %v8873_v24, 16  ;;  %v4604_v37 = vshll.u32 %v8873_v24, 16 }
 0x360   : > { %v8871_v38 = vpack.c.bf16 %v4395_v11, %v4395_v11  ;;  %v4398_v41 = vmax.f32 %v4304_v25, 0.0  ;;  %v5026_v42 = vld [vmem:[#allocation2 + $0x24] sm:$0xf]  ;;  %4993 = vst.msk [vmem:[#allocation3 + $0x20] sm:$0xf] %vm226_vm0, %v4961_v36  ;;  %v5112_v3 = vsel %vm9195_vm7, %v5107_v26, %v5111_v13  ;;  %v5126_v16 = vsel %vm9195_vm7, %v5121_v0, %v5125_v29 }
 0x361   : > { %v4296_v43 = vadd.f32 %v10441_v57, %v4295_v31  ;;  %v5130_v44 = vor.u32 %v5129_v32, %v5125_v29  ;;  %v4959_v45 = vld [vmem:[#allocation2 + $0x24] sm:$0xf]  ;;  %v4603_v46 = vrot.slane %v4601_v28, 7  ;;  %5455 = vrot.lane.b32.xlu1 %v5112_v3, %s9075_s24  ;;  %5457 = vrot.lane.b32.xlu0 %v5126_v16, %s9075_s24  ;;  %v5138_v40 = vshrl.u32 %v5026_v42, 16 }
 0x362   : > { %v4584_v47 = vshrl.u32 %v8871_v38, 16  ;;  %v4587_v48 = vshll.u32 %v8871_v38, 16  ;;  %v8874_v49 = vpack.c.bf16 %v4398_v41, %v4398_v41  ;;  %4991 = vst.msk [vmem:[#allocation3 + $0x18] sm:$0xf] %vm226_vm0, %v4959_v45  ;;  %v5141_v51 = vshll.u32 %v5026_v42, 16 }
 0x363   : > { %v4396_v53 = vmax.f32 %v4296_v43, 0.0  ;;  %v5131_v54 = vrot.slane %v5130_v44, 4  ;;  %v4606_v55 = vor.u32 %v4604_v37, %v4603_v46  ;;  %v4607_v56 = vrot.slane %v4603_v46, 4  ;;  %v4962_v20 = vld [vmem:[#allocation2 + $0x34] sm:$0xf] }
 0x364   : > { %v4586_v58 = vrot.slane %v4584_v47, 7  ;;  %v4609_v59 = vshrl.u32 %v8874_v49, 16  ;;  %v4612_v61 = vshll.u32 %v8874_v49, 16  ;;  %v5027_v1 = vld [vmem:[#allocation2 + $0x28] sm:$0xf]  ;;  %v5140_v2 = vrot.slane %v5138_v40, 4 }
 0x365   : > { %v8872_v62 = vpack.c.bf16 %v4396_v53, %v4396_v53  ;;  %v5136_v0 = vsel %vm9195_vm7, %v5131_v54, %v5135_v33  ;;  %v4871_v4 = vsel %vm9208_vm9, %v4606_v55, %v4870_v50  ;;  %v5028_v8 = vld [vmem:[#allocation2 + $0x2c] sm:$0x1]  ;;  %v5143_v13 = vrot.slane %v5141_v51, 5  ;;  %v4960_v12 = vld [vmem:[#allocation2 + $0x28] sm:$0xf] }
 0x366   : > { %v4589_v5 = vor.u32 %v4587_v48, %v4586_v58  ;;  %v4590_v63 = vrot.slane %v4586_v58, 4  ;;  %v4611_v6 = vrot.slane %v4609_v59, 7  ;;  %5459 = vrot.lane.b32.xlu1 %v5136_v0, %s9075_s24  ;;  %4872 = vst [vmem:[#allocation2 + $0x48] sm:$0xf] %v4871_v4  ;;  %v5147_v14 = vshll.u32 %v5027_v1, 16 }
 0x367   : > { %v4592_v9 = vshrl.u32 %v8872_v62, 16  ;;  %v4595_v10 = vshll.u32 %v8872_v62, 16  ;;  %v5151_v19 = vshrl.u32 %v5027_v1, 16  ;;  %4992 = vst.msk [vmem:[#allocation3 + $0x1c] sm:$0xf] %vm226_vm0, %v4960_v12  ;;  %v5144_v24 = vor.u32 %v5143_v13, %v5140_v2 }
 0x368   : > { %v4864_v15 = vsel %vm9208_vm9, %v4589_v5, %v4863_v60  ;;  %v4614_v17 = vor.u32 %v4612_v61, %v4611_v6  ;;  %v4616_v18 = vrot.slane %v4611_v6, 4  ;;  %v8953_v23 = vpop.f32.mrf.mxu0  ;;  %v5149_v11 = vrot.slane %v5147_v14, 5  ;;  %4994 = vst.msk [vmem:[#allocation3 + $0x24] sm:$0xf] %vm226_vm0, %v4962_v20  ;;  %v4867_v31 = vld [vmem:[#allocation2 + $0x44] sm:$0x1] }
 0x369   : > { %4865 = vst [vmem:[#allocation2 + $0x3c] sm:$0xf] %v4864_v15  ;;  %v4594_v22 = vrot.slane %v4592_v9, 7  ;;  %v5157_v25 = vshll.u32 %v5028_v8, 16  ;;  %v4317_v32 = vadd.f32 %v8953_v23, %v10441_v57  ;;  %v5153_v33 = vrot.slane %v5151_v19, 4 }
 0x36a   : > { %v4615_v26 = vsel %vm9201_vm8, %v4607_v56, %v4614_v17  ;;  %v4875_v29 = vsel %vm9214_vm10, %v4616_v18, %v4874_v7  ;;  %v5145_v37 = vrot.slane %v5144_v24, 4  ;;  %v4308_v38 = vpop.f32.mrf.mxu0  ;;  %v5030_v43 = vld [vmem:[#allocation2 + $0x34] sm:$0xf]  ;;  %v5164_v44 = vrot.slane %v5162_v35, 4  ;;  %v5031_v45 = vld [vmem:[#allocation2 + $0x38] sm:$0x1] }
 0x36b   : > { %4876 = vst [vmem:[#allocation2 + $0x50] sm:$0x1] %v4875_v29  ;;  %4873 = vst.msk [vmem:[#allocation2 + $0x4c] sm:$0xf] %vm226_vm0, %v4615_v26  ;;  %v4597_v36 = vor.u32 %v4595_v10, %v4594_v22  ;;  %v4599_v28 = vrot.slane %v4594_v22, 4  ;;  %v5159_v41 = vrot.slane %v5157_v25, 5  ;;  %v4309_v3 = vadd.f32 %v10441_v57, %v4308_v38 }
 0x36c   : > { %v4401_v42 = vmax.f32 %v4317_v32, 0.0  ;;  %v5154_v16 = vor.u32 %v5153_v33, %v5149_v11  ;;  %v5150_v48 = vsel %vm9195_vm7, %v5145_v37, %v5149_v11  ;;  %v8954_v49 = vpop.f32.mrf.mxu0  ;;  %v5165_v50 = vshll.u32 %v10491_v30, 16  ;;  %v4884_v10 = vld [vmem:[#allocation2 + $0x60] sm:$0xf]  ;;  %v4877_v23 = vld [vmem:[#allocation2 + $0x54] sm:$0xf] }
 0x36d   : > { %v4598_v46 = vsel %vm9201_vm8, %v4590_v63, %v4597_v36  ;;  %v4868_v47 = vsel %vm9214_vm10, %v4599_v28, %v4867_v31  ;;  %5461 = vrot.lane.b32.xlu0 %v5150_v48, %s9075_s24  ;;  %v4399_v35 = vmax.f32 %v4309_v3, 0.0  ;;  %v4320_v54 = vadd.f32 %v8954_v49, %v10441_v57  ;;  %v4965_v60 = vld [vmem:[#allocation2 + $0x48] sm:$0xf] }
 0x36e   : > { %4869 = vst [vmem:[#allocation2 + $0x44] sm:$0x1] %v4868_v47  ;;  %4866 = vst.msk [vmem:[#allocation2 + $0x40] sm:$0xf] %vm226_vm0, %v4598_v46  ;;  %v8877_v53 = vpack.c.bf16 %v4401_v42, %v4401_v42  ;;  %v5155_v40 = vrot.slane %v5154_v16, 4  ;;  %v5167_v51 = vrot.slane %v5165_v50, 5  ;;  %v4311_v58 = vpop.f32.mrf.mxu0 }
 0x36f   : > { %v5171_v55 = vshll.u32 %v5030_v43, 16  ;;  %v5175_v56 = vshrl.u32 %v5030_v43, 16  ;;  %v5181_v59 = vshll.u32 %v5031_v45, 16  ;;  %v8875_v0 = vpack.c.bf16 %v4399_v35, %v4399_v35  ;;  %4997 = vst.msk [vmem:[#allocation3 + $0x30] sm:$0xf] %vm226_vm0, %v4965_v60 }
 0x370   : > { %v4635_v61 = vshrl.u32 %v8877_v53, 16  ;;  %v4638_v62 = vshll.u32 %v8877_v53, 16  ;;  %v4402_v30 = vmax.f32 %v4320_v54, 0.0  ;;  %v5160_v1 = vsel %vm9195_vm7, %v5155_v40, %v5159_v41  ;;  %v4963_v63 = vld [vmem:[#allocation2 + $0x3c] sm:$0xf] }
 0x371   : > { %v5168_v2 = vor.u32 %v5167_v51, %v5164_v44  ;;  %v5173_v4 = vrot.slane %v5171_v55, 5  ;;  %v4312_v5 = vadd.f32 %v10441_v57, %v4311_v58  ;;  %v4618_v7 = vshrl.u32 %v8875_v0, 16  ;;  %5463 = vrot.lane.b32.xlu1 %v5160_v1, %s9075_s24  ;;  %4995 = vst.msk [vmem:[#allocation3 + $0x28] sm:$0xf] %vm226_vm0, %v4963_v63  ;;  %v5032_v22 = vld [vmem:[#allocation2 + $0x3c] sm:$0xf] }
 0x372   : > { %v4637_v6 = vrot.slane %v4635_v61, 7  ;;  %v4621_v8 = vshll.u32 %v8875_v0, 16  ;;  %v8878_v9 = vpack.c.bf16 %v4402_v30, %v4402_v30  ;;  %v5177_v12 = vrot.slane %v5175_v56, 4  ;;  %v4888_v28 = vld [vmem:[#allocation2 + $0x68] sm:$0x1] }
 0x373   : > { %v5169_v13 = vrot.slane %v5168_v2, 4  ;;  %v4400_v14 = vmax.f32 %v4312_v5, 0.0  ;;  %v5183_v15 = vrot.slane %v5181_v59, 5  ;;  %v4620_v19 = vrot.slane %v4618_v7, 7  ;;  %v4966_v46 = vld [vmem:[#allocation2 + $0x4c] sm:$0xf] }
 0x374   : > { %v4640_v17 = vor.u32 %v4638_v62, %v4637_v6  ;;  %v4641_v18 = vrot.slane %v4637_v6, 4  ;;  %v4643_v20 = vshrl.u32 %v8878_v9, 16  ;;  %v4646_v24 = vshll.u32 %v8878_v9, 16  ;;  %4998 = vst.msk [vmem:[#allocation3 + $0x34] sm:$0xf] %vm226_vm0, %v4966_v46 }
 0x375   : > { %v5174_v11 = vsel %vm9195_vm7, %v5169_v13, %v5173_v4  ;;  %v8876_v25 = vpack.c.bf16 %v4400_v14, %v4400_v14  ;;  %v5178_v26 = vor.u32 %v5177_v12, %v5173_v4  ;;  %v4623_v31 = vor.u32 %v4621_v8, %v4620_v19  ;;  %v5033_v36 = vld [vmem:[#allocation2 + $0x40] sm:$0xf]  ;;  %v5034_v35 = vld [vmem:[#allocation2 + $0x44] sm:$0x1]  ;;  %v4881_v51 = vld [vmem:[#allocation2 + $0x5c] sm:$0x1] }
 0x376   : > { %v4885_v29 = vsel %vm9208_vm9, %v4640_v17, %v4884_v10  ;;  %v4624_v32 = vrot.slane %v4620_v19, 4  ;;  %v4645_v33 = vrot.slane %v4643_v20, 7  ;;  %5465 = vrot.lane.b32.xlu0 %v5174_v11, %s9075_s24  ;;  %v5186_v42 = vshrl.u32 %v5032_v22, 16  ;;  %v4964_v45 = vld [vmem:[#allocation2 + $0x40] sm:$0xf] }
 0x377   : > { %4886 = vst [vmem:[#allocation2 + $0x60] sm:$0xf] %v4885_v29  ;;  %v4626_v37 = vshrl.u32 %v8876_v25, 16  ;;  %v4629_v38 = vshll.u32 %v8876_v25, 16  ;;  %v5179_v41 = vrot.slane %v5178_v26, 4  ;;  %v4878_v3 = vsel %vm9208_vm9, %v4623_v31, %v4877_v23 }
 0x378   : > { %v4648_v16 = vor.u32 %v4646_v24, %v4645_v33  ;;  %v4650_v43 = vrot.slane %v4645_v33, 4  ;;  %v5189_v44 = vshll.u32 %v5032_v22, 16  ;;  %4879 = vst [vmem:[#allocation2 + $0x54] sm:$0xf] %v4878_v3  ;;  %v8957_v49 = vpop.f32.mrf.mxu0  ;;  %v5188_v50 = vrot.slane %v5186_v42, 4 }
 0x379   : > { %v4628_v47 = vrot.slane %v4626_v37, 7  ;;  %v5184_v48 = vsel %vm9195_vm7, %v5179_v41, %v5183_v15  ;;  %v5195_v53 = vshll.u32 %v5033_v36, 16  ;;  %4996 = vst.msk [vmem:[#allocation3 + $0x2c] sm:$0xf] %vm226_vm0, %v4964_v45  ;;  %v4333_v55 = vadd.f32 %v8957_v49, %v10441_v57  ;;  %v5035_v58 = vld [vmem:[#allocation2 + $0x48] sm:$0xf] }
 0x37a   : > { %v4649_v54 = vsel %vm9201_vm8, %v4641_v18, %v4648_v16  ;;  %v4889_v40 = vsel %vm9214_vm10, %v4650_v43, %v4888_v28  ;;  %5467 = vrot.lane.b32.xlu1 %v5184_v48, %s9075_s24  ;;  %v5191_v56 = vrot.slane %v5189_v44, 5  ;;  %v5199_v62 = vshrl.u32 %v5033_v36, 16  ;;  %v4324_v0 = vpop.f32.mrf.mxu0  ;;  %v5036_v12 = vld [vmem:[#allocation2 + $0x4c] sm:$0xf]  ;;  %v4898_v41 = vld [vmem:[#allocation2 + $0x78] sm:$0xf] }
 0x37b   : > { %4890 = vst [vmem:[#allocation2 + $0x68] sm:$0x1] %v4889_v40  ;;  %4887 = vst.msk [vmem:[#allocation2 + $0x64] sm:$0xf] %vm226_vm0, %v4649_v54  ;;  %v4631_v59 = vor.u32 %v4629_v38, %v4628_v47  ;;  %v4633_v60 = vrot.slane %v4628_v47, 4  ;;  %v5197_v61 = vrot.slane %v5195_v53, 5  ;;  %v4325_v2 = vadd.f32 %v10441_v57, %v4324_v0 }
 0x37c   : > { %v4405_v30 = vmax.f32 %v4333_v55, 0.0  ;;  %v5192_v1 = vor.u32 %v5191_v56, %v5188_v50  ;;  %v5205_v4 = vshll.u32 %v5034_v35, 16  ;;  %v8958_v6 = vpop.f32.mrf.mxu0  ;;  %v5201_v7 = vrot.slane %v5199_v62, 4  ;;  %v4891_v42 = vld [vmem:[#allocation2 + $0x6c] sm:$0xf] }
 0x37d   : > { %v4632_v5 = vsel %vm9201_vm8, %v4624_v32, %v4631_v59  ;;  %v4882_v63 = vsel %vm9214_vm10, %v4633_v60, %v4881_v51  ;;  %v5210_v8 = vshrl.u32 %v5035_v58, 16  ;;  %v4403_v13 = vmax.f32 %v4325_v2, 0.0  ;;  %v5037_v49 = vld [vmem:[#allocation2 + $0x50] sm:$0x1]  ;;  %v4902_v2 = vld [vmem:[#allocation2 + $0x80] sm:$0x1] }
 0x37e   : > { %4883 = vst [vmem:[#allocation2 + $0x5c] sm:$0x1] %v4882_v63  ;;  %4880 = vst.msk [vmem:[#allocation2 + $0x58] sm:$0xf] %vm226_vm0, %v4632_v5  ;;  %v8881_v9 = vpack.c.bf16 %v4405_v30, %v4405_v30  ;;  %v5193_v10 = vrot.slane %v5192_v1, 4  ;;  %v4336_v14 = vadd.f32 %v8958_v6, %v10441_v57  ;;  %v5202_v15 = vor.u32 %v5201_v7, %v5197_v61  ;;  %v4327_v32 = vpop.f32.mrf.mxu0 }
 0x37f   : > { %v5207_v17 = vrot.slane %v5205_v4, 5  ;;  %v5212_v18 = vrot.slane %v5210_v8, 4  ;;  %v5213_v19 = vshll.u32 %v5035_v58, 16  ;;  %v4969_v20 = vld [vmem:[#allocation2 + $0x60] sm:$0xf]  ;;  %v8879_v11 = vpack.c.bf16 %v4403_v13, %v4403_v13 }
 0x380   : > { %v4669_v22 = vshrl.u32 %v8881_v9, 16  ;;  %v4672_v23 = vshll.u32 %v8881_v9, 16  ;;  %v5198_v24 = vsel %vm9195_vm7, %v5193_v10, %v5197_v61  ;;  %5001 = vst.msk [vmem:[#allocation3 + $0x40] sm:$0xf] %vm226_vm0, %v4969_v20  ;;  %v4406_v25 = vmax.f32 %v4336_v14, 0.0 }
 0x381   : > { %5469 = vrot.lane.b32.xlu0 %v5198_v24, %s9075_s24  ;;  %v5203_v26 = vrot.slane %v5202_v15, 4  ;;  %v5215_v29 = vrot.slane %v5213_v19, 5  ;;  %v5219_v31 = vshll.u32 %v5036_v12, 16  ;;  %v4967_v33 = vld [vmem:[#allocation2 + $0x54] sm:$0xf]  ;;  %v4652_v28 = vshrl.u32 %v8879_v11, 16 }
 0x382   : > { %v4671_v36 = vrot.slane %v4669_v22, 7  ;;  %v4655_v37 = vshll.u32 %v8879_v11, 16  ;;  %v5223_v38 = vshrl.u32 %v5036_v12, 16  ;;  %4999 = vst.msk [vmem:[#allocation3 + $0x38] sm:$0xf] %vm226_vm0, %v4967_v33  ;;  %v8882_v3 = vpack.c.bf16 %v4406_v25, %v4406_v25 }
 0x383   : > { %v5208_v16 = vsel %vm9195_vm7, %v5203_v26, %v5207_v17  ;;  %v5216_v43 = vor.u32 %v5215_v29, %v5212_v18  ;;  %v5221_v44 = vrot.slane %v5219_v31, 5  ;;  %v10569_v47 = vrot.slane %v4652_v28, 7  ;;  %v4970_v50 = vld [vmem:[#allocation2 + $0x64] sm:$0xf]  ;;  %v5038_v51 = vld [vmem:[#allocation2 + $0x54] sm:$0xf] }
 0x384   : > { %v4674_v45 = vor.u32 %v4672_v23, %v4671_v36  ;;  %v4675_v46 = vrot.slane %v4671_v36, 4  ;;  %5471 = vrot.lane.b32.xlu1 %v5208_v16, %s9075_s24  ;;  %v4328_v48 = vadd.f32 %v10441_v57, %v4327_v32  ;;  %v4677_v53 = vshrl.u32 %v8882_v3, 16  ;;  %5002 = vst.msk [vmem:[#allocation3 + $0x44] sm:$0xf] %vm226_vm0, %v4970_v50  ;;  %v10583_v6 = vld [vmem:[#allocation2 + $0x60] sm:$0xf] }
 0x385   : > { %v4680_v35 = vshll.u32 %v8882_v3, 16  ;;  %v5217_v54 = vrot.slane %v5216_v43, 4  ;;  %v5225_v40 = vrot.slane %v5223_v38, 4  ;;  %v4657_v56 = vor.u32 %v4655_v37, %v10569_v47  ;;  %v4968_v30 = vld [vmem:[#allocation2 + $0x58] sm:$0xf] }
 0x386   : > { %v4899_v55 = vsel %vm9208_vm9, %v4674_v45, %v4898_v41  ;;  %v4658_v58 = vrot.slane %v10569_v47, 4  ;;  %v4404_v59 = vmax.f32 %v4328_v48, 0.0  ;;  %v4679_v60 = vrot.slane %v4677_v53, 7  ;;  %5000 = vst.msk [vmem:[#allocation3 + $0x3c] sm:$0xf] %vm226_vm0, %v4968_v30 }
 0x387   : > { %4900 = vst [vmem:[#allocation2 + $0x78] sm:$0xf] %v4899_v55  ;;  %v5222_v61 = vsel %vm9195_vm7, %v5217_v54, %v5221_v44  ;;  %v5226_v62 = vor.u32 %v5225_v40, %v5221_v44  ;;  %v5229_v0 = vshll.u32 %v5037_v49, 16  ;;  %v4892_v1 = vsel %vm9208_vm9, %v4657_v56, %v4891_v42  ;;  %v5039_v14 = vld [vmem:[#allocation2 + $0x58] sm:$0xf] }
 0x388   : > { %5473 = vrot.lane.b32.xlu0 %v5222_v61, %s9075_s24  ;;  %v8880_v4 = vpack.c.bf16 %v4404_v59, %v4404_v59  ;;  %v5234_v5 = vshrl.u32 %v5038_v51, 16  ;;  %v5237_v63 = vshll.u32 %v5038_v51, 16  ;;  %4893 = vst [vmem:[#allocation2 + $0x6c] sm:$0xf] %v4892_v1  ;;  %v4682_v7 = vor.u32 %v4680_v35, %v4679_v60  ;;  %v8961_v13 = vpop.f32.mrf.mxu0  ;;  %v5040_v19 = vld [vmem:[#allocation2 + $0x5c] sm:$0x1] }
 0x389   : > { %v4684_v8 = vrot.slane %v4679_v60, 4  ;;  %v5227_v9 = vrot.slane %v5226_v62, 4  ;;  %v5231_v10 = vrot.slane %v5229_v0, 5  ;;  %v4349_v17 = vadd.f32 %v8961_v13, %v10441_v57  ;;  %v4895_v32 = vld [vmem:[#allocation2 + $0x74] sm:$0x1] }
 0x38a   : > { %v4660_v12 = vshrl.u32 %v8880_v4, 16  ;;  %v4663_v15 = vshll.u32 %v8880_v4, 16  ;;  %v5236_v18 = vrot.slane %v5234_v5, 4  ;;  %v4683_v20 = vsel %vm9201_vm8, %v4675_v46, %v4682_v7  ;;  %v4340_v11 = vpop.f32.mrf.mxu0  ;;  %v5042_v55 = vld [vmem:[#allocation2 + $0x64] sm:$0xf] }
 0x38b   : > { %v4903_v22 = vsel %vm9214_vm10, %v4684_v8, %v4902_v2  ;;  %v5232_v23 = vsel %vm9195_vm7, %v5227_v9, %v5231_v10  ;;  %v5239_v24 = vrot.slane %v5237_v63, 5  ;;  %4901 = vst.msk [vmem:[#allocation2 + $0x7c] sm:$0xf] %vm226_vm0, %v4683_v20  ;;  %v4409_v26 = vmax.f32 %v4349_v17, 0.0  ;;  %v4912_v62 = vld [vmem:[#allocation2 + $0x90] sm:$0xf] }
 0x38c   : > { %4904 = vst [vmem:[#allocation2 + $0x80] sm:$0x1] %v4903_v22  ;;  %v4662_v25 = vrot.slane %v4660_v12, 7  ;;  %5475 = vrot.lane.b32.xlu1 %v5232_v23, %s9075_s24  ;;  %v5243_v29 = vshll.u32 %v5039_v14, 16  ;;  %v5247_v31 = vshrl.u32 %v5039_v14, 16  ;;  %v4341_v36 = vadd.f32 %v10441_v57, %v4340_v11  ;;  %v8962_v28 = vpop.f32.mrf.mxu0 }
 0x38d   : > { %v5240_v33 = vor.u32 %v5239_v24, %v5236_v18  ;;  %v5253_v37 = vshll.u32 %v5040_v19, 16  ;;  %v5258_v38 = vshrl.u32 %v10583_v6, 16  ;;  %v8885_v3 = vpack.c.bf16 %v4409_v26, %v4409_v26  ;;  %v5043_v9 = vld [vmem:[#allocation2 + $0x68] sm:$0x1]  ;;  %v4905_v17 = vld [vmem:[#allocation2 + $0x84] sm:$0xf] }
 0x38e   : > { %v4665_v41 = vor.u32 %v4663_v15, %v4662_v25  ;;  %v4667_v42 = vrot.slane %v4662_v25, 4  ;;  %v5245_v16 = vrot.slane %v5243_v29, 5  ;;  %v4407_v44 = vmax.f32 %v4341_v36, 0.0  ;;  %v4973_v47 = vld [vmem:[#allocation2 + $0x78] sm:$0xf]  ;;  %v4343_v8 = vpop.f32.mrf.mxu0 }
 0x38f   : > { %v5241_v43 = vrot.slane %v5240_v33, 4  ;;  %v4352_v45 = vadd.f32 %v8962_v28, %v10441_v57  ;;  %v5249_v46 = vrot.slane %v5247_v31, 4  ;;  %v4703_v50 = vshrl.u32 %v8885_v3, 16  ;;  %5005 = vst.msk [vmem:[#allocation3 + $0x50] sm:$0xf] %vm226_vm0, %v4973_v47 }
 0x390   : > { %v4666_v48 = vsel %vm9201_vm8, %v4658_v58, %v4665_v41  ;;  %v4896_v49 = vsel %vm9214_vm10, %v4667_v42, %v4895_v32  ;;  %v4706_v53 = vshll.u32 %v8885_v3, 16  ;;  %v8883_v54 = vpack.c.bf16 %v4407_v44, %v4407_v44  ;;  %v4971_v56 = vld [vmem:[#allocation2 + $0x6c] sm:$0xf]  ;;  %v4916_v26 = vld [vmem:[#allocation2 + $0x98] sm:$0x1] }
 0x391   : > { %4897 = vst [vmem:[#allocation2 + $0x74] sm:$0x1] %v4896_v49  ;;  %4894 = vst.msk [vmem:[#allocation2 + $0x70] sm:$0xf] %vm226_vm0, %v4666_v48  ;;  %v5246_v35 = vsel %vm9195_vm7, %v5241_v43, %v5245_v16  ;;  %v4410_v40 = vmax.f32 %v4352_v45, 0.0  ;;  %v5250_v51 = vor.u32 %v5249_v46, %v5245_v16  ;;  %v4705_v59 = vrot.slane %v4703_v50, 7 }
 0x392   : > { %5477 = vrot.lane.b32.xlu0 %v5246_v35, %s9075_s24  ;;  %v5255_v58 = vrot.slane %v5253_v37, 5  ;;  %v5260_v60 = vrot.slane %v5258_v38, 4  ;;  %v5261_v61 = vshll.u32 %v10583_v6, 16  ;;  %5003 = vst.msk [vmem:[#allocation3 + $0x48] sm:$0xf] %vm226_vm0, %v4971_v56  ;;  %v4686_v0 = vshrl.u32 %v8883_v54, 16 }
 0x393   : > { %v4689_v30 = vshll.u32 %v8883_v54, 16  ;;  %v8886_v1 = vpack.c.bf16 %v4410_v40, %v4410_v40  ;;  %v5251_v2 = vrot.slane %v5250_v51, 4  ;;  %v4708_v4 = vor.u32 %v4706_v53, %v4705_v59  ;;  %v5044_v12 = vld [vmem:[#allocation2 + $0x6c] sm:$0xf]  ;;  %v4974_v22 = vld [vmem:[#allocation2 + $0x7c] sm:$0xf] }
 0x394   : > { %v4709_v5 = vrot.slane %v4705_v59, 4  ;;  %v5263_v63 = vrot.slane %v5261_v61, 5  ;;  %v5267_v7 = vshll.u32 %v5042_v55, 16  ;;  %v10609_v10 = vrot.slane %v4686_v0, 7  ;;  %5006 = vst.msk [vmem:[#allocation3 + $0x54] sm:$0xf] %vm226_vm0, %v4974_v22 }
 0x395   : > { %v4711_v13 = vshrl.u32 %v8886_v1, 16  ;;  %v4714_v14 = vshll.u32 %v8886_v1, 16  ;;  %v5256_v6 = vsel %vm9195_vm7, %v5251_v2, %v5255_v58  ;;  %v4913_v15 = vsel %vm9208_vm9, %v4708_v4, %v4912_v62  ;;  %v10635_v56 = vld [vmem:[%s11714_s2] ss:$0 sm:$0xff] }
 0x396   : > { %5479 = vrot.lane.b32.xlu1 %v5256_v6, %s9075_s24  ;;  %v5264_v18 = vor.u32 %v5263_v63, %v5260_v60  ;;  %v5269_v19 = vrot.slane %v5267_v7, 5  ;;  %v5271_v20 = vshrl.u32 %v5042_v55, 16  ;;  %4914 = vst [vmem:[#allocation2 + $0x90] sm:$0xf] %v4913_v15  ;;  %v4691_v23 = vor.u32 %v4689_v30, %v10609_v10  ;;  %v4909_v7 = vld [vmem:[#allocation2 + $0x8c] sm:$0x1] }
 0x397   : > { %v4692_v24 = vrot.slane %v10609_v10, 4  ;;  %v4713_v11 = vrot.slane %v4711_v13, 7  ;;  %v4344_v25 = vadd.f32 %v10441_v57, %v4343_v8  ;;  %v5277_v32 = vshll.u32 %v5043_v9, 16 }
 0x398   : > { %v5265_v29 = vrot.slane %v5264_v18, 4  ;;  %v5273_v31 = vrot.slane %v5271_v20, 4  ;;  %v5282_v33 = vshrl.u32 %v5044_v12, 16  ;;  %v4906_v36 = vsel %vm9208_vm9, %v4691_v23, %v4905_v17  ;;  %v8965_v41 = vpop.f32.mrf.mxu0  ;;  %v5045_v42 = vld [vmem:[#allocation2 + $0x70] sm:$0xf] }
 0x399   : > { %v4716_v28 = vor.u32 %v4714_v14, %v4713_v11  ;;  %v4718_v37 = vrot.slane %v4713_v11, 4  ;;  %v4408_v38 = vmax.f32 %v4344_v25, 0.0  ;;  %4907 = vst [vmem:[#allocation2 + $0x84] sm:$0xf] %v4906_v36  ;;  %v5279_v43 = vrot.slane %v5277_v32, 5 }
 0x39a   : > { %v5270_v3 = vsel %vm9195_vm7, %v5265_v29, %v5269_v19  ;;  %v5274_v16 = vor.u32 %v5273_v31, %v5269_v19  ;;  %v4365_v44 = vadd.f32 %v8965_v41, %v10441_v57  ;;  %v4972_v45 = vld [vmem:[#allocation2 + $0x70] sm:$0xf]  ;;  %v5284_v49 = vrot.slane %v5282_v33, 4  ;;  %v4356_v50 = vpop.f32.mrf.mxu0  ;;  %v5046_v60 = vld [vmem:[#allocation2 + $0x74] sm:$0x1] }
 0x39b   : > { %v4717_v46 = vsel %vm9201_vm8, %v4709_v5, %v4716_v28  ;;  %v4917_v47 = vsel %vm9214_vm10, %v4718_v37, %v4916_v26  ;;  %5481 = vrot.lane.b32.xlu0 %v5270_v3, %s9075_s24  ;;  %v8884_v48 = vpack.c.bf16 %v4408_v38, %v4408_v38  ;;  %5004 = vst.msk [vmem:[#allocation3 + $0x4c] sm:$0xf] %vm226_vm0, %v4972_v45  ;;  %v5285_v57 = vshll.u32 %v5044_v12, 16  ;;  %v5047_v18 = vld [vmem:[#allocation2 + $0x78] sm:$0xf] }
 0x39c   : > { %4918 = vst [vmem:[#allocation2 + $0x98] sm:$0x1] %v4917_v47  ;;  %4915 = vst.msk [vmem:[#allocation2 + $0x94] sm:$0xf] %vm226_vm0, %v4717_v46  ;;  %v5275_v53 = vrot.slane %v5274_v16, 4  ;;  %v4413_v35 = vmax.f32 %v4365_v44, 0.0  ;;  %v4357_v59 = vadd.f32 %v10635_v56, %v4356_v50  ;;  %v8966_v58 = vpop.f32.mrf.mxu0 }
 0x39d   : > { %v5291_v54 = vshll.u32 %v5045_v42, 16  ;;  %v4694_v40 = vshrl.u32 %v8884_v48, 16  ;;  %v4697_v51 = vshll.u32 %v8884_v48, 16  ;;  %v5295_v55 = vshrl.u32 %v5045_v42, 16  ;;  %v4977_v63 = vld [vmem:[#allocation2 + $0x90] sm:$0xf] }
 0x39e   : > { %v5280_v61 = vsel %vm9195_vm7, %v5275_v53, %v5279_v43  ;;  %v8889_v62 = vpack.c.bf16 %v4413_v35, %v4413_v35  ;;  %v5287_v0 = vrot.slane %v5285_v57, 5  ;;  %v4411_v2 = vmax.f32 %v4357_v59, 0.0  ;;  %5009 = vst.msk [vmem:[#allocation3 + $0x60] sm:$0xf] %vm226_vm0, %v4977_v63  ;;  %v4926_v29 = vld [vmem:[#allocation2 + $0xa8] sm:$0xf]  ;;  %v4359_v48 = vpop.f32.mrf.mxu0 }
 0x39f   : > { %v5293_v30 = vrot.slane %v5291_v54, 5  ;;  %v4696_v1 = vrot.slane %v4694_v40, 7  ;;  %5483 = vrot.lane.b32.xlu1 %v5280_v61, %s9075_s24  ;;  %v4368_v4 = vadd.f32 %v10635_v56, %v8966_v58  ;;  %v5297_v5 = vrot.slane %v5295_v55, 4  ;;  %v5048_v33 = vld [vmem:[#allocation2 + $0x7c] sm:$0xf] }
 0x3a0   : > { %v4737_v8 = vshrl.u32 %v8889_v62, 16  ;;  %v4740_v9 = vshll.u32 %v8889_v62, 16  ;;  %v5288_v13 = vor.u32 %v5287_v0, %v5284_v49  ;;  %v5301_v14 = vshll.u32 %v5046_v60, 16  ;;  %v4975_v11 = vld [vmem:[#allocation2 + $0x84] sm:$0xf] }
 0x3a1   : > { %v4699_v6 = vor.u32 %v4697_v51, %v4696_v1  ;;  %v4701_v12 = vrot.slane %v4696_v1, 4  ;;  %v8887_v15 = vpack.c.bf16 %v4411_v2, %v4411_v2  ;;  %v4414_v17 = vmax.f32 %v4368_v4, 0.0  ;;  %5007 = vst.msk [vmem:[#allocation3 + $0x58] sm:$0xf] %vm226_vm0, %v4975_v11  ;;  %v4919_v37 = vld [vmem:[#allocation2 + $0x9c] sm:$0xf] }
 0x3a2   : > { %v4739_v19 = vrot.slane %v4737_v8, 7  ;;  %v5289_v20 = vrot.slane %v5288_v13, 4  ;;  %v5298_v22 = vor.u32 %v5297_v5, %v5293_v30  ;;  %v5303_v23 = vrot.slane %v5301_v14, 5  ;;  %v5050_v49 = vld [vmem:[#allocation2 + $0x84] sm:$0xf] }
 0x3a3   : > { %v4700_v25 = vsel %vm9201_vm8, %v4692_v24, %v4699_v6  ;;  %v4910_v26 = vsel %vm9214_vm10, %v4701_v12, %v4909_v7  ;;  %v4720_v31 = vshrl.u32 %v8887_v15, 16  ;;  %v4723_v32 = vshll.u32 %v8887_v15, 16  ;;  %v5049_v24 = vld [vmem:[#allocation2 + $0x80] sm:$0x1]  ;;  %v4978_v43 = vld [vmem:[#allocation2 + $0x94] sm:$0xf] }
 0x3a4   : > { %4911 = vst [vmem:[#allocation2 + $0x8c] sm:$0x1] %v4910_v26  ;;  %4908 = vst.msk [vmem:[#allocation2 + $0x88] sm:$0xf] %vm226_vm0, %v4700_v25  ;;  %v4742_v36 = vor.u32 %v4740_v9, %v4739_v19  ;;  %v4743_v28 = vrot.slane %v4739_v19, 4  ;;  %v5294_v10 = vsel %vm9195_vm7, %v5289_v20, %v5293_v30  ;;  %v8890_v38 = vpack.c.bf16 %v4414_v17, %v4414_v17 }
 0x3a5   : > { %5485 = vrot.lane.b32.xlu0 %v5294_v10, %s9075_s24  ;;  %v10654_v41 = vrot.slane %v4720_v31, 7  ;;  %v5299_v42 = vrot.slane %v5298_v22, 4  ;;  %v5306_v3 = vshrl.u32 %v5047_v18, 16  ;;  %v5309_v16 = vshll.u32 %v5047_v18, 16  ;;  %5010 = vst.msk [vmem:[#allocation3 + $0x64] sm:$0xf] %vm226_vm0, %v4978_v43 }
 0x3a6   : > { %v4927_v44 = vsel %vm9208_vm9, %v4742_v36, %v4926_v29  ;;  %v4745_v45 = vshrl.u32 %v8890_v38, 16  ;;  %v4748_v46 = vshll.u32 %v8890_v38, 16  ;;  %v5315_v47 = vshll.u32 %v5048_v33, 16  ;;  %v4930_v58 = vld [vmem:[#allocation2 + $0xb0] sm:$0x1] }
 0x3a7   : > { %4928 = vst [vmem:[#allocation2 + $0xa8] sm:$0xf] %v4927_v44  ;;  %v4725_v50 = vor.u32 %v4723_v32, %v10654_v41  ;;  %v4726_v53 = vrot.slane %v10654_v41, 4  ;;  %v5304_v35 = vsel %vm9195_vm7, %v5299_v42, %v5303_v23  ;;  %v5308_v57 = vrot.slane %v5306_v3, 4 }
 0x3a8   : > { %v4747_v54 = vrot.slane %v4745_v45, 7  ;;  %5487 = vrot.lane.b32.xlu1 %v5304_v35, %s9075_s24  ;;  %v5311_v40 = vrot.slane %v5309_v16, 5  ;;  %v5317_v51 = vrot.slane %v5315_v47, 5  ;;  %v5319_v55 = vshrl.u32 %v5048_v33, 16  ;;  %v8969_v62 = vpop.f32.mrf.mxu0  ;;  %v4923_v45 = vld [vmem:[#allocation2 + $0xa4] sm:$0x1] }
 0x3a9   : > { %v4920_v59 = vsel %vm9208_vm9, %v4725_v50, %v4919_v37  ;;  %v4360_v60 = vadd.f32 %v10635_v56, %v4359_v48  ;;  %v5325_v61 = vshll.u32 %v5049_v24, 16  ;;  %v5330_v0 = vshrl.u32 %v5050_v49, 16 }
 0x3aa   : > { %4921 = vst [vmem:[#allocation2 + $0x9c] sm:$0xf] %v4920_v59  ;;  %v4750_v30 = vor.u32 %v4748_v46, %v4747_v54  ;;  %v4752_v1 = vrot.slane %v4747_v54, 4  ;;  %v5312_v2 = vor.u32 %v5311_v40, %v5308_v57  ;;  %v5321_v4 = vrot.slane %v5319_v55, 4  ;;  %v4372_v13 = vpop.f32.mrf.mxu0 }
 0x3ab   : > { %v4412_v5 = vmax.f32 %v4360_v60, 0.0  ;;  %v5327_v63 = vrot.slane %v5325_v61, 5  ;;  %v4381_v7 = vadd.f32 %v10635_v56, %v8969_v62  ;;  %v5051_v8 = vld [vmem:[#allocation2 + $0x88] sm:$0xf]  ;;  %v5332_v9 = vrot.slane %v5330_v0, 4 }
 0x3ac   : > { %v4751_v14 = vsel %vm9201_vm8, %v4743_v28, %v4750_v30  ;;  %v4931_v6 = vsel %vm9214_vm10, %v4752_v1, %v4930_v58  ;;  %v5313_v12 = vrot.slane %v5312_v2, 4  ;;  %v5322_v15 = vor.u32 %v5321_v4, %v5317_v51  ;;  %v8970_v22 = vpop.f32.mrf.mxu0  ;;  %v5052_v29 = vld [vmem:[#allocation2 + $0x8c] sm:$0x1]  ;;  %v4976_v28 = vld [vmem:[#allocation2 + $0x88] sm:$0xf] }
 0x3ad   : > { %4932 = vst [vmem:[#allocation2 + $0xb0] sm:$0x1] %v4931_v6  ;;  %4929 = vst.msk [vmem:[#allocation2 + $0xac] sm:$0xf] %vm226_vm0, %v4751_v14  ;;  %v8888_v17 = vpack.c.bf16 %v4412_v5, %v4412_v5  ;;  %v4417_v18 = vmax.f32 %v4381_v7, 0.0  ;;  %v5333_v19 = vshll.u32 %v5050_v49, 16  ;;  %v4373_v26 = vadd.f32 %v10635_v56, %v4372_v13 }
 0x3ae   : > { %v5339_v20 = vshll.u32 %v5051_v8, 16  ;;  %v5318_v23 = vsel %vm9195_vm7, %v5313_v12, %v5317_v51  ;;  %v5323_v11 = vrot.slane %v5322_v15, 4  ;;  %v5343_v25 = vshrl.u32 %v5051_v8, 16  ;;  %5008 = vst.msk [vmem:[#allocation3 + $0x5c] sm:$0xf] %vm226_vm0, %v4976_v28 }
 0x3af   : > { %5489 = vrot.lane.b32.xlu0 %v5318_v23, %s9075_s24  ;;  %v4728_v31 = vshrl.u32 %v8888_v17, 16  ;;  %v4731_v32 = vshll.u32 %v8888_v17, 16  ;;  %v8893_v33 = vpack.c.bf16 %v4417_v18, %v4417_v18  ;;  %v5335_v36 = vrot.slane %v5333_v19, 5  ;;  %v4981_v42 = vld [vmem:[#allocation2 + $0xa8] sm:$0xf]  ;;  %v4375_v18 = vpop.f32.mrf.mxu0 }
 0x3b0   : > { %v5328_v10 = vsel %vm9195_vm7, %v5323_v11, %v5327_v63  ;;  %v5341_v37 = vrot.slane %v5339_v20, 5  ;;  %v4415_v38 = vmax.f32 %v4373_v26, 0.0  ;;  %v4384_v24 = vadd.f32 %v10635_v56, %v8970_v22  ;;  %5013 = vst.msk [vmem:[#allocation3 + $0x70] sm:$0xf] %vm226_vm0, %v4981_v42  ;;  %v4940_v51 = vld [vmem:[#allocation2 + $0xc0] sm:$0xf] }
 0x3b1   : > { %v4730_v3 = vrot.slane %v4728_v31, 7  ;;  %5491 = vrot.lane.b32.xlu1 %v5328_v10, %s9075_s24  ;;  %v4771_v16 = vshrl.u32 %v8893_v33, 16  ;;  %v4774_v43 = vshll.u32 %v8893_v33, 16  ;;  %v5336_v44 = vor.u32 %v5335_v36, %v5332_v9  ;;  %v4979_v40 = vld [vmem:[#allocation2 + $0x9c] sm:$0xf] }
 0x3b2   : > { %v8891_v46 = vpack.c.bf16 %v4415_v38, %v4415_v38  ;;  %v4418_v47 = vmax.f32 %v4384_v24, 0.0  ;;  %v5345_v48 = vrot.slane %v5343_v25, 4  ;;  %v5349_v49 = vshll.u32 %v5052_v29, 16  ;;  %v5053_v60 = vld [vmem:[#allocation2 + $0x90] sm:$0xf] }
 0x3b3   : > { %v4733_v50 = vor.u32 %v4731_v32, %v4730_v3  ;;  %v4735_v35 = vrot.slane %v4730_v3, 4  ;;  %v4773_v57 = vrot.slane %v4771_v16, 7  ;;  %v5337_v54 = vrot.slane %v5336_v44, 4  ;;  %5011 = vst.msk [vmem:[#allocation3 + $0x68] sm:$0xf] %vm226_vm0, %v4979_v40 }
 0x3b4   : > { %v4754_v55 = vshrl.u32 %v8891_v46, 16  ;;  %v8894_v59 = vpack.c.bf16 %v4418_v47, %v4418_v47  ;;  %v5346_v58 = vor.u32 %v5345_v48, %v5341_v37  ;;  %v4757_v30 = vshll.u32 %v8891_v46, 16  ;;  %v4933_v1 = vld [vmem:[#allocation2 + $0xb4] sm:$0xf]  ;;  %v4982_v7 = vld [vmem:[#allocation2 + $0xac] sm:$0xf] }
 0x3b5   : > { %v4734_v61 = vsel %vm9201_vm8, %v4726_v53, %v4733_v50  ;;  %v4924_v62 = vsel %vm9214_vm10, %v4735_v35, %v4923_v45  ;;  %v4776_v0 = vor.u32 %v4774_v43, %v4773_v57  ;;  %v5054_v2 = vld [vmem:[#allocation2 + $0x94] sm:$0xf]  ;;  %v4777_v4 = vrot.slane %v4773_v57, 4  ;;  %v4944_v8 = vld [vmem:[#allocation2 + $0xc8] sm:$0x1] }
 0x3b6   : > { %4925 = vst [vmem:[#allocation2 + $0xa4] sm:$0x1] %v4924_v62  ;;  %4922 = vst.msk [vmem:[#allocation2 + $0xa0] sm:$0xf] %vm226_vm0, %v4734_v61  ;;  %v5342_v5 = vsel %vm9195_vm7, %v5337_v54, %v5341_v37  ;;  %v10693_v63 = vrot.slane %v4754_v55, 7  ;;  %v4779_v41 = vshrl.u32 %v8894_v59, 16  ;;  %v4376_v36 = vadd.f32 %v10635_v56, %v4375_v18 }
 0x3b7   : > { %v4941_v53 = vsel %vm9208_vm9, %v4776_v0, %v4940_v51  ;;  %5493 = vrot.lane.b32.xlu0 %v5342_v5, %s9075_s24  ;;  %v5347_v9 = vrot.slane %v5346_v58, 4  ;;  %v5351_v13 = vrot.slane %v5349_v49, 5  ;;  %v5354_v14 = vshrl.u32 %v5053_v60, 16  ;;  %5014 = vst.msk [vmem:[#allocation3 + $0x74] sm:$0xf] %vm226_vm0, %v4982_v7 }
 0x3b8   : > { %4942 = vst [vmem:[#allocation2 + $0xc0] sm:$0xf] %v4941_v53  ;;  %v4759_v6 = vor.u32 %v4757_v30, %v10693_v63  ;;  %v4781_v12 = vrot.slane %v4779_v41, 7  ;;  %v4782_v15 = vshll.u32 %v8894_v59, 16  ;;  %v5357_v17 = vshll.u32 %v5053_v60, 16 }
 0x3b9   : > { %v5055_v19 = vld [vmem:[#allocation2 + $0x98] sm:$0x1]  ;;  %v5352_v20 = vsel %vm9195_vm7, %v5347_v9, %v5351_v13  ;;  %v5356_v22 = vrot.slane %v5354_v14, 4  ;;  %v5363_v23 = vshll.u32 %v5054_v2, 16  ;;  %v5367_v11 = vshrl.u32 %v5054_v2, 16 }
 0x3ba   : > { %v5056_v25 = vld [vmem:[#allocation2 + $0x9c] sm:$0xf]  ;;  %v4934_v26 = vsel %vm9208_vm9, %v4759_v6, %v4933_v1  ;;  %v4784_v29 = vor.u32 %v4782_v15, %v4781_v12  ;;  %v4786_v31 = vrot.slane %v4781_v12, 4  ;;  %5495 = vrot.lane.b32.xlu1 %v5352_v20, %s9075_s24  ;;  %v5359_v32 = vrot.slane %v5357_v17, 5  ;;  %v5059_v42 = vld [vmem:[#allocation2 + $0xa8] sm:$0xf] }
 0x3bb   : > { %4935 = vst [vmem:[#allocation2 + $0xb4] sm:$0xf] %v4934_v26  ;;  %v5365_v33 = vrot.slane %v5363_v23, 5  ;;  %v5369_v28 = vrot.slane %v5367_v11, 4  ;;  %v5373_v10 = vshll.u32 %v5055_v19, 16  ;;  %v5378_v34 = vshrl.u32 %v5056_v25, 16 }
 0x3bc   : > { %v4785_v37 = vsel %vm9201_vm8, %v4777_v4, %v4784_v29  ;;  %v4945_v38 = vsel %vm9214_vm10, %v4786_v31, %v4944_v8  ;;  %v5360_v24 = vor.u32 %v5359_v32, %v5356_v22  ;;  %v4416_v3 = vmax.f32 %v4376_v36, 0.0  ;;  %v5060_v59 = vld [vmem:[#allocation2 + $0xac] sm:$0xf]  ;;  %v4937_v2 = vld [vmem:[#allocation2 + $0xbc] sm:$0x1] }
 0x3bd   : > { %4943 = vst.msk [vmem:[#allocation2 + $0xc4] sm:$0xf] %vm226_vm0, %v4785_v37  ;;  %4946 = vst [vmem:[#allocation2 + $0xc8] sm:$0x1] %v4945_v38  ;;  %v5370_v16 = vor.u32 %v5369_v28, %v5365_v33  ;;  %v5375_v43 = vrot.slane %v5373_v10, 5  ;;  %v5381_v45 = vshll.u32 %v5056_v25, 16 }
 0x3be   : > { %v5057_v44 = vld [vmem:[#allocation2 + $0xa0] sm:$0xf]  ;;  %v5361_v56 = vrot.slane %v5360_v24, 4  ;;  %v5380_v46 = vrot.slane %v5378_v34, 4  ;;  %v5058_v49 = vld [vmem:[#allocation2 + $0xa4] sm:$0x1]  ;;  %v8892_v50 = vpack.c.bf16 %v4416_v3, %v4416_v3 }
 0x3bf   : > { %v5387_v47 = vshll.u32 %v5057_v44, 16  ;;  %v5391_v48 = vshrl.u32 %v5057_v44, 16  ;;  %v5371_v35 = vrot.slane %v5370_v16, 4  ;;  %v5383_v57 = vrot.slane %v5381_v45, 5  ;;  %v4980_v30 = vld [vmem:[#allocation2 + $0xa0] sm:$0xf] }
 0x3c0   : > { %v5397_v54 = vshll.u32 %v5058_v49, 16  ;;  %v5366_v40 = vsel %vm9195_vm7, %v5361_v56, %v5365_v33  ;;  %v5402_v58 = vshrl.u32 %v5059_v42, 16  ;;  %v4760_v60 = vrot.slane %v10693_v63, 4  ;;  %5012 = vst.msk [vmem:[#allocation3 + $0x6c] sm:$0xf] %vm226_vm0, %v4980_v30 }
 0x3c1   : > { %v5389_v51 = vrot.slane %v5387_v47, 5  ;;  %v5393_v55 = vrot.slane %v5391_v48, 4  ;;  %5497 = vrot.lane.b32.xlu0 %v5366_v40, %s9075_s24  ;;  %v4762_v61 = vshrl.u32 %v8892_v50, 16  ;;  %v5376_v62 = vsel %vm9195_vm7, %v5371_v35, %v5375_v43  ;;  %v5061_v13 = vld [vmem:[#allocation2 + $0xb0] sm:$0x1] }
 0x3c2   : > { %v5384_v0 = vor.u32 %v5383_v57, %v5380_v46  ;;  %v4765_v1 = vshll.u32 %v8892_v50, 16  ;;  %5499 = vrot.lane.b32.xlu1 %v5376_v62, %s9075_s24  ;;  %v5404_v5 = vrot.slane %v5402_v58, 4  ;;  %v5405_v41 = vshll.u32 %v5059_v42, 16  ;;  %v5062_v7 = vld [vmem:[#allocation2 + $0xb4] sm:$0xf] }
 0x3c3   : > { %v5394_v4 = vor.u32 %v5393_v55, %v5389_v51  ;;  %v4764_v53 = vrot.slane %v4762_v61, 7  ;;  %v5411_v8 = vshll.u32 %v5060_v59, 16  ;;  %v5415_v9 = vshrl.u32 %v5060_v59, 16  ;;  %v4983_v17 = vld [vmem:[#allocation2 + $0xb4] sm:$0xf] }
 0x3c4   : > { %v5385_v63 = vrot.slane %v5384_v0, 4  ;;  %v5399_v6 = vrot.slane %v5397_v54, 5  ;;  %v5407_v12 = vrot.slane %v5405_v41, 5  ;;  %v5426_v15 = vshrl.u32 %v5062_v7, 16  ;;  %5015 = vst.msk [vmem:[#allocation3 + $0x78] sm:$0xf] %vm226_vm0, %v4983_v17 }
 0x3c5   : > { %v5395_v14 = vrot.slane %v5394_v4, 4  ;;  %v4767_v18 = vor.u32 %v4765_v1, %v4764_v53  ;;  %v4769_v19 = vrot.slane %v4764_v53, 4  ;;  %v5413_v22 = vrot.slane %v5411_v8, 5  ;;  %v5577_v42 = vld [vmem:[#allocation2] sm:$0xe] }
 0x3c6   : > { %v5390_v20 = vsel %vm9195_vm7, %v5385_v63, %v5389_v51  ;;  %v5408_v11 = vor.u32 %v5407_v12, %v5404_v5  ;;  %v5417_v25 = vrot.slane %v5415_v9, 4  ;;  %v5421_v26 = vshll.u32 %v5061_v13, 16  ;;  %v5578_v43 = vld [vmem:[#allocation2 + $0x4] sm:$0xf]  ;;  %v5579_v57 = vld [vmem:[#allocation2 + $0x8] sm:$0x1] }
 0x3c7   : > { %5501 = vrot.lane.b32.xlu0 %v5390_v20, %s9075_s24  ;;  %v5400_v23 = vsel %vm9195_vm7, %v5395_v14, %v5399_v6  ;;  %v4768_v29 = vsel %vm9201_vm8, %v4760_v60, %v4767_v18  ;;  %v4938_v31 = vsel %vm9214_vm10, %v4769_v19, %v4937_v2  ;;  %v5429_v32 = vshll.u32 %v5062_v7, 16  ;;  %v5581_v58 = vld [vmem:[#allocation2 + $0x10] sm:$0xf]  ;;  %v5580_v30 = vld [vmem:[#allocation2 + $0xc] sm:$0xe] }
 0x3c8   : > { %5503 = vrot.lane.b32.xlu1 %v5400_v23, %s9075_s24  ;;  %4939 = vst [vmem:[#allocation2 + $0xbc] sm:$0x1] %v4938_v31  ;;  %4936 = vst.msk [vmem:[#allocation2 + $0xb8] sm:$0xf] %vm226_vm0, %v4768_v29  ;;  %v5409_v33 = vrot.slane %v5408_v11, 4  ;;  %v5418_v36 = vor.u32 %v5417_v25, %v5413_v22  ;;  %v5428_v28 = vrot.slane %v5426_v15, 4 }
 0x3c9   : > { %v5431_v10 = vrot.slane %v5429_v32, 5  ;;  %v5423_v24 = vrot.slane %v5421_v26, 5  ;;  %v8743_v46 = vrot.slane %v5577_v42, 9  ;;  %v5675_v35 = vrot.slane %v5578_v43, 5  ;;  %v5584_v5 = vld [vmem:[#allocation2 + $0x1c] sm:$0xf] }
 0x3ca   : > { %v5414_v37 = vsel %vm9195_vm7, %v5409_v33, %v5413_v22  ;;  %v5419_v38 = vrot.slane %v5418_v36, 4  ;;  %v5678_v59 = vrot.slane %v5579_v57, 5  ;;  %v5682_v2 = vrot.slane %v5581_v58, 5  ;;  %v5582_v53 = vld [vmem:[#allocation2 + $0x14] sm:$0x1] }
 0x3cb   : > { %5505 = vrot.lane.b32.xlu0 %v5414_v37, %s9075_s24  ;;  %v5432_v39 = vor.u32 %v5431_v10, %v5428_v28  ;;  %v5676_v62 = vsel %vm9486_vm13, %v8743_v46, %v5675_v35  ;;  %v5677_v0 = vrot.slane %v5675_v35, 4  ;;  %v8744_v7 = vrot.slane %v5580_v30, 9  ;;  %v5583_v63 = vld [vmem:[#allocation2 + $0x18] sm:$0xe]  ;;  %v5587_v14 = vld [vmem:[#allocation2 + $0x28] sm:$0xf] }
 0x3cc   : > { %v5424_v27 = vsel %vm9195_vm7, %v5419_v38, %v5423_v24  ;;  %v5454_v34 = vpop.permute.xlu0 %5453  ;;  %v5684_v9 = vrot.slane %v5682_v2, 4  ;;  %v5689_v13 = vrot.slane %v5584_v5, 5  ;;  %v5685_v6 = vrot.slane %v5582_v53, 5  ;;  %v5585_v15 = vld [vmem:[#allocation2 + $0x20] sm:$0x1] }
 0x3cd   : > { %5507 = vrot.lane.b32.xlu1 %v5424_v27, %s9075_s24  ;;  %5547 = vst.msk [vmem:[#allocation3 + $0x8] sm:$0xf] %vm1484_vm14, %v5454_v34  ;;  %v5433_v44 = vrot.slane %v5432_v39, 4  ;;  %v5679_v41 = vsel %vm9486_vm13, %v5677_v0, %v5678_v59  ;;  %v5683_v8 = vsel %vm9486_vm13, %v8744_v7, %v5682_v2  ;;  %v8745_v12 = vrot.slane %v5583_v63, 9  ;;  %v5586_v17 = vld [vmem:[#allocation2 + $0x24] sm:$0xe] }
 0x3ce   : > { %v5686_v18 = vsel %vm9486_vm13, %v5684_v9, %v5685_v6  ;;  %v5691_v20 = vrot.slane %v5689_v13, 4  ;;  %v5696_v22 = vrot.slane %v5587_v14, 5  ;;  %v5590_v11 = vld [vmem:[#allocation2 + $0x34] sm:$0xf]  ;;  %v5692_v25 = vrot.slane %v5585_v15, 5 }
 0x3cf   : > { %v5063_v3 = vld [vmem:[#allocation2 + $0xb8] sm:$0xf]  ;;  %v5064_v16 = vld [vmem:[#allocation2 + $0xbc] sm:$0x1]  ;;  %v5690_v19 = vsel %vm9486_vm13, %v8745_v12, %v5689_v13  ;;  %v8746_v26 = vrot.slane %v5586_v17, 9  ;;  %v5703_v28 = vrot.slane %v5590_v11, 5 }
 0x3d0   : > { %v5435_v45 = vshll.u32 %v5063_v3, 16  ;;  %v5439_v56 = vshrl.u32 %v5063_v3, 16  ;;  %v4984_v47 = vld [vmem:[#allocation2 + $0xb8] sm:$0xf]  ;;  %v5445_v50 = vshll.u32 %v5064_v16, 16  ;;  %v5693_v32 = vsel %vm9486_vm13, %v5691_v20, %v5692_v25 }
 0x3d1   : > { %5016 = vst.msk [vmem:[#allocation3 + $0x7c] sm:$0xf] %vm226_vm0, %v4984_v47  ;;  %v5588_v29 = vld [vmem:[#allocation2 + $0x2c] sm:$0x1]  ;;  %v5589_v31 = vld [vmem:[#allocation2 + $0x30] sm:$0xe]  ;;  %v5697_v33 = vsel %vm9486_vm13, %v8746_v26, %v5696_v22 }
 0x3d2   : > { %v5437_v48 = vrot.slane %v5435_v45, 5  ;;  %v5441_v49 = vrot.slane %v5439_v56, 4  ;;  %v5447_v61 = vrot.slane %v5445_v50, 5  ;;  %v5698_v36 = vrot.slane %v5696_v22, 4  ;;  %v5593_v37 = vld [vmem:[#allocation2 + $0x40] sm:$0xf] }
 0x3d3   : > { %v5456_v51 = vpop.permute.xlu1 %5455  ;;  %v5458_v55 = vpop.permute.xlu0 %5457  ;;  %v5699_v38 = vrot.slane %v5588_v29, 5  ;;  %v8747_v24 = vrot.slane %v5589_v31, 9  ;;  %v5591_v27 = vld [vmem:[#allocation2 + $0x38] sm:$0x1]  ;;  %v5592_v39 = vld [vmem:[#allocation2 + $0x3c] sm:$0xe] }
 0x3d4   : > { %v5438_v54 = vsel %vm9195_vm7, %v5433_v44, %v5437_v48  ;;  %v5442_v40 = vor.u32 %v5441_v49, %v5437_v48  ;;  %5548 = vst.msk [vmem:[#allocation3 + $0xc] sm:$0xf] %vm1484_vm14, %v5456_v51  ;;  %5549 = vst.msk [vmem:[#allocation3 + $0x10] sm:$0xf] %vm1484_vm14, %v5458_v55  ;;  %v5705_v16 = vrot.slane %v5703_v28, 4  ;;  %v5710_v43 = vrot.slane %v5593_v37, 5 }
 0x3d5   : > { %5509 = vrot.lane.b32.xlu0 %v5438_v54, %s9075_s24  ;;  %v5700_v34 = vsel %vm9486_vm13, %v5698_v36, %v5699_v38  ;;  %v5704_v42 = vsel %vm9486_vm13, %v8747_v24, %v5703_v28  ;;  %v5596_v44 = vld [vmem:[#allocation2 + $0x4c] sm:$0xf]  ;;  %v5706_v45 = vrot.slane %v5591_v27, 5  ;;  %v8748_v56 = vrot.slane %v5592_v39, 9  ;;  %v5594_v46 = vld [vmem:[#allocation2 + $0x44] sm:$0x1] }
 0x3d6   : > { %v5443_v60 = vrot.slane %v5442_v40, 4  ;;  %v5595_v47 = vld [vmem:[#allocation2 + $0x48] sm:$0xe]  ;;  %v5712_v35 = vrot.slane %v5710_v43, 4  ;;  %v5717_v57 = vrot.slane %v5596_v44, 5  ;;  %v5713_v40 = vrot.slane %v5594_v46, 5 }
 0x3d7   : > { %v5707_v48 = vsel %vm9486_vm13, %v5705_v16, %v5706_v45  ;;  %v5711_v49 = vsel %vm9486_vm13, %v8748_v56, %v5710_v43  ;;  %v5599_v54 = vld [vmem:[#allocation2 + $0x58] sm:$0xf]  ;;  %v8749_v51 = vrot.slane %v5595_v47, 9  ;;  %v5597_v55 = vld [vmem:[#allocation2 + $0x50] sm:$0x1]  ;;  %vm8498_vm0 = vcmask 31744  }
 0x3d8   : > { %v5448_v1 = vsel %vm9195_vm7, %v5443_v60, %v5447_v61  ;;  %v5460_v4 = vpop.permute.xlu1 %5459  ;;  %v5598_v59 = vld [vmem:[#allocation2 + $0x54] sm:$0xe]  ;;  %v5714_v58 = vsel %vm9486_vm13, %v5712_v35, %v5713_v40  ;;  %v5719_v61 = vrot.slane %v5717_v57, 4  ;;  %v5602_v0 = vld [vmem:[#allocation2 + $0x64] sm:$0xf]  ;;  %v5720_v30 = vrot.slane %v5597_v55, 5 }
 0x3d9   : > { %5511 = vrot.lane.b32.xlu1 %v5448_v1, %s9075_s24  ;;  %5785 = vrot.lane.b32.xlu0 %v5676_v62, %s9076_s25  ;;  %5550 = vst.msk [vmem:[#allocation3 + $0x14] sm:$0xf] %vm1484_vm14, %v5460_v4  ;;  %v5718_v60 = vsel %vm9486_vm13, %v8749_v51, %v5717_v57  ;;  %v5724_v62 = vrot.slane %v5599_v54, 5  ;;  %v8750_v1 = vrot.slane %v5598_v59, 9  ;;  %v5600_v4 = vld [vmem:[#allocation2 + $0x5c] sm:$0x1] }
 0x3da   : > { %v5601_v5 = vld [vmem:[#allocation2 + $0x60] sm:$0xe]  ;;  %v5731_v63 = vrot.slane %v5602_v0, 5  ;;  %v5727_v9 = vrot.slane %v5600_v4, 5  ;;  %v5603_v6 = vld [vmem:[#allocation2 + $0x68] sm:$0x1] }
 0x3db   : > { %v5725_v7 = vsel %vm9486_vm13, %v8750_v1, %v5724_v62  ;;  %v5726_v53 = vrot.slane %v5724_v62, 4  ;;  %v8751_v13 = vrot.slane %v5601_v5, 9  ;;  %v5604_v12 = vld [vmem:[#allocation2 + $0x6c] sm:$0xe]  ;;  %v5608_v20 = vld [vmem:[#allocation2 + $0x7c] sm:$0xf] }
 0x3dc   : > { %v8752_v11 = vrot.slane %v5604_v12, 9  ;;  %v5606_v25 = vld [vmem:[#allocation2 + $0x74] sm:$0x1]  ;;  %v5607_v26 = vld [vmem:[#allocation2 + $0x78] sm:$0xe] }
 0x3dd   : > { %5787 = vrot.lane.b32.xlu1 %v5679_v41, %s9076_s25  ;;  %5789 = vrot.lane.b32.xlu0 %v5683_v8, %s9076_s25  ;;  %v5721_v41 = vsel %vm9486_vm13, %v5719_v61, %v5720_v30  ;;  %v5605_v8 = vld [vmem:[#allocation2 + $0x70] sm:$0xf]  ;;  %v5728_v15 = vsel %vm9486_vm13, %v5726_v53, %v5727_v9  ;;  %v5732_v17 = vsel %vm9486_vm13, %v8751_v13, %v5731_v63  ;;  %v5611_v36 = vld [vmem:[#allocation2 + $0x88] sm:$0xf]  ;;  %v8753_v37 = vrot.slane %v5607_v26, 9 }
 0x3de   : > { %v5609_v38 = vld [vmem:[#allocation2 + $0x80] sm:$0x1]  ;;  %v5610_v24 = vld [vmem:[#allocation2 + $0x84] sm:$0xe]  ;;  %v5612_v44 = vld [vmem:[#allocation2 + $0x8c] sm:$0x1] }
 0x3df   : > { %v5462_v23 = vpop.permute.xlu0 %5461  ;;  %v5748_v16 = vrot.slane %v5609_v38, 5  ;;  %v8754_v43 = vrot.slane %v5610_v24, 9  ;;  %v5613_v45 = vld [vmem:[#allocation2 + $0x90] sm:$0xe]  ;;  %v5755_v35 = vrot.slane %v5612_v44, 5 }
 0x3e0   : > { %5551 = vst.msk [vmem:[#allocation3 + $0x18] sm:$0xf] %vm1484_vm14, %v5462_v23  ;;  %v5734_v23 = vrot.slane %v5603_v6, 5  ;;  %v8755_v57 = vrot.slane %v5613_v45, 9  ;;  %v5615_v54 = vld [vmem:[#allocation2 + $0x98] sm:$0x1] }
 0x3e1   : > { %5791 = vrot.lane.b32.xlu1 %v5686_v18, %s9076_s25  ;;  %5793 = vrot.lane.b32.xlu0 %v5690_v19, %s9076_s25  ;;  %v5733_v18 = vrot.slane %v5731_v63, 4  ;;  %v5738_v19 = vrot.slane %v5605_v8, 5  ;;  %v5616_v40 = vld [vmem:[#allocation2 + $0x9c] sm:$0xe]  ;;  %v5620_v61 = vld [vmem:[#allocation2 + $0xac] sm:$0xf] }
 0x3e2   : > { %v5762_v62 = vrot.slane %v5615_v54, 5  ;;  %v8756_v0 = vrot.slane %v5616_v40, 9  ;;  %v5618_v30 = vld [vmem:[#allocation2 + $0xa4] sm:$0x1]  ;;  %v5619_v1 = vld [vmem:[#allocation2 + $0xa8] sm:$0xe] }
 0x3e3   : > { %v5464_v10 = vpop.permute.xlu1 %5463  ;;  %v5735_v29 = vsel %vm9486_vm13, %v5733_v18, %v5734_v23  ;;  %v5739_v31 = vsel %vm9486_vm13, %v8752_v11, %v5738_v19  ;;  %v5623_v53 = vld [vmem:[#allocation2 + $0xb8] sm:$0xf]  ;;  %v5769_v63 = vrot.slane %v5618_v30, 5  ;;  %v8757_v8 = vrot.slane %v5619_v1, 9  ;;  %v5621_v9 = vld [vmem:[#allocation2 + $0xb0] sm:$0x1] }
 0x3e4   : > { %5552 = vst.msk [vmem:[#allocation3 + $0x1c] sm:$0xf] %vm1484_vm14, %v5464_v10  ;;  %v5741_v10 = vrot.slane %v5606_v25, 5  ;;  %v5622_v13 = vld [vmem:[#allocation2 + $0xb4] sm:$0xe]  ;;  %v5776_v18 = vrot.slane %v5621_v9, 5 }
 0x3e5   : > { %5795 = vrot.lane.b32.xlu1 %v5693_v32, %s9076_s25  ;;  %5797 = vrot.lane.b32.xlu0 %v5697_v33, %s9076_s25  ;;  %v5740_v32 = vrot.slane %v5738_v19, 4  ;;  %v5745_v33 = vrot.slane %v5608_v20, 5  ;;  %v8758_v19 = vrot.slane %v5622_v13, 9  ;;  %v5624_v20 = vld [vmem:[#allocation2 + $0xbc] sm:$0x1] }
 0x3e6   : > { %v5783_v25 = vrot.slane %v5624_v20, 5  ;;  %v5918_v24 = vld [vmem:[#allocation2 + $0x28] sm:$0xf]  ;;  %v5924_v44 = vld [vmem:[#allocation2 + $0x4c] sm:$0xf] }
 0x3e7   : > { %v5742_v27 = vsel %vm9486_vm13, %v5740_v32, %v5741_v10  ;;  %v5746_v39 = vsel %vm9486_vm13, %v8753_v37, %v5745_v33  ;;  %v5917_v10 = vld [vmem:[#allocation2 + $0x24] sm:$0xf]  ;;  %v5925_v45 = vld [vmem:[#allocation2 + $0x54] sm:$0xf] }
 0x3e8   : > { %v5466_v3 = vpop.permute.xlu0 %5465  ;;  %v6107_v20 = vld [vmem:[#allocation2 + $0x14] sm:$0x1] }
 0x3e9   : > { %5799 = vrot.lane.b32.xlu1 %v5700_v34, %s9076_s25  ;;  %5801 = vrot.lane.b32.xlu0 %v5704_v42, %s9076_s25  ;;  %5553 = vst.msk [vmem:[#allocation3 + $0x20] sm:$0xf] %vm1484_vm14, %v5466_v3  ;;  %v5747_v34 = vrot.slane %v5745_v33, 4  ;;  %v5752_v42 = vrot.slane %v5611_v36, 5  ;;  %v5614_v3 = vld [vmem:[#allocation2 + $0x94] sm:$0xf] }
 0x3ea   : > { %v5914_v33 = vld [vmem:[#allocation2 + $0x10] sm:$0xf]  ;;  %v5915_v36 = vld [vmem:[#allocation2 + $0x18] sm:$0xf] }
 0x3eb   : > { %v5749_v56 = vsel %vm9486_vm13, %v5747_v34, %v5748_v16  ;;  %v5753_v46 = vsel %vm9486_vm13, %v8754_v43, %v5752_v42  ;;  %v5921_v34 = vld [vmem:[#allocation2 + $0x3c] sm:$0xf]  ;;  %v5922_v16 = vld [vmem:[#allocation2 + $0x40] sm:$0xf]  ;;  %v5923_v43 = vld [vmem:[#allocation2 + $0x48] sm:$0xf] }
 0x3ec   : > { %v5468_v50 = vpop.permute.xlu1 %5467 }
 0x3ed   : > { %5803 = vrot.lane.b32.xlu1 %v5707_v48, %s9076_s25  ;;  %5805 = vrot.lane.b32.xlu0 %v5711_v49, %s9076_s25  ;;  %5554 = vst.msk [vmem:[#allocation3 + $0x24] sm:$0xf] %vm1484_vm14, %v5468_v50  ;;  %v5754_v48 = vrot.slane %v5752_v42, 4  ;;  %v5759_v49 = vrot.slane %v5614_v3, 5  ;;  %v5617_v50 = vld [vmem:[#allocation2 + $0xa0] sm:$0xf] }
 0x3ef   : > { %v5756_v51 = vsel %vm9486_vm13, %v5754_v48, %v5755_v35  ;;  %v5760_v55 = vsel %vm9486_vm13, %v8755_v57, %v5759_v49  ;;  %v5927_v48 = vld [vmem:[#allocation2 + $0x60] sm:$0xf]  ;;  %v5929_v35 = vld [vmem:[#allocation2 + $0x6c] sm:$0xf] }
 0x3f0   : > { %v6105_v57 = vld [vmem:[#allocation2 + $0xc] sm:$0xf] }
 0x3f1   : > { %5807 = vrot.lane.b32.xlu1 %v5714_v58, %s9076_s25  ;;  %5809 = vrot.lane.b32.xlu0 %v5718_v60, %s9076_s25  ;;  %v5761_v58 = vrot.slane %v5759_v49, 4  ;;  %v5766_v60 = vrot.slane %v5617_v50, 5  ;;  %v5928_v50 = vld [vmem:[#allocation2 + $0x64] sm:$0xf]  ;;  %v6154_v40 = vshrl.u32 %v6105_v57, 16 }
 0x3f3   : > { %v5470_v2 = vpop.permute.xlu0 %5469  ;;  %v5767_v4 = vsel %vm9486_vm13, %v8756_v0, %v5766_v60  ;;  %v5768_v5 = vrot.slane %v5766_v60, 4  ;;  %v6156_v0 = vrot.slane %v6154_v40, 4 }
 0x3f4   : > { %5555 = vst.msk [vmem:[#allocation3 + $0x28] sm:$0xf] %vm1484_vm14, %v5470_v2  ;;  %v5763_v2 = vsel %vm9486_vm13, %v5761_v58, %v5762_v62  ;;  %v6106_v58 = vld [vmem:[#allocation2 + $0x10] sm:$0xf] }
 0x3f5   : > { %5811 = vrot.lane.b32.xlu1 %v5721_v41, %s9076_s25  ;;  %5813 = vrot.lane.b32.xlu0 %v5725_v7, %s9076_s25  ;;  %v5773_v41 = vrot.slane %v5620_v61, 5  ;;  %v6108_v61 = vld [vmem:[#allocation2 + $0x18] sm:$0xf]  ;;  %v6163_v1 = vshll.u32 %v6106_v58, 16 }
 0x3f6   : > { %v5472_v14 = vpop.permute.xlu1 %5471 }
 0x3f7   : > { %5556 = vst.msk [vmem:[#allocation3 + $0x2c] sm:$0xf] %vm1484_vm14, %v5472_v14  ;;  %v5770_v14 = vsel %vm9486_vm13, %v5768_v5, %v5769_v63  ;;  %v5774_v6 = vsel %vm9486_vm13, %v8757_v8, %v5773_v41  ;;  %v5775_v12 = vrot.slane %v5773_v41, 4  ;;  %v5933_v5 = vld [vmem:[#allocation2 + $0x84] sm:$0xf]  ;;  %v6178_v41 = vshrl.u32 %v6108_v61, 16 }
 0x3f8   : > { %v5935_v63 = vld [vmem:[#allocation2 + $0x90] sm:$0xf]  ;;  %v6165_v9 = vrot.slane %v6163_v1, 5  ;;  %v6670_v1 = vld [vmem:[#allocation2 + $0x20] sm:$0x1] }
 0x3f9   : > { %5815 = vrot.lane.b32.xlu1 %v5728_v15, %s9076_s25  ;;  %5817 = vrot.lane.b32.xlu0 %v5732_v17, %s9076_s25  ;;  %v5780_v15 = vrot.slane %v5623_v53, 5  ;;  %v6109_v53 = vld [vmem:[#allocation2 + $0x1c] sm:$0xf] }
 0x3fa   : > { %v5474_v22 = vpop.permute.xlu0 %5473 }
 0x3fb   : > { %5557 = vst.msk [vmem:[#allocation3 + $0x30] sm:$0xf] %vm1484_vm14, %v5474_v22  ;;  %v5777_v22 = vsel %vm9486_vm13, %v5775_v12, %v5776_v18  ;;  %v5781_v23 = vsel %vm9486_vm13, %v8758_v19, %v5780_v15  ;;  %v5782_v11 = vrot.slane %v5780_v15, 4  ;;  %v6187_v15 = vshll.u32 %v6109_v53, 16  ;;  %v5936_v19 = vld [vmem:[#allocation2 + $0x94] sm:$0xf] }
 0x3fd   : > { %5819 = vrot.lane.b32.xlu1 %v5735_v29, %s9076_s25  ;;  %5821 = vrot.lane.b32.xlu0 %v5739_v31, %s9076_s25  ;;  %v5784_v29 = vsel %vm9486_vm13, %v5782_v11, %v5783_v25  ;;  %v5913_v31 = vld [vmem:[#allocation2 + $0xc] sm:$0xf] }
 0x3fe   : > { %v5476_v28 = vpop.permute.xlu1 %5475 }
 0x3ff   : > { %5558 = vst.msk [vmem:[#allocation3 + $0x34] sm:$0xf] %vm1484_vm14, %v5476_v28  ;;  %v5916_v28 = vld [vmem:[#allocation2 + $0x1c] sm:$0xf] }
 0x401   : > { %5823 = vrot.lane.b32.xlu1 %v5742_v27, %s9076_s25  ;;  %5825 = vrot.lane.b32.xlu0 %v5746_v39, %s9076_s25  ;;  %v5919_v27 = vld [vmem:[#allocation2 + $0x30] sm:$0xf]  ;;  %v5920_v39 = vld [vmem:[#allocation2 + $0x34] sm:$0xf] }
 0x404   : > { %v5478_v47 = vpop.permute.xlu0 %5477 }
 0x405   : > { %5827 = vrot.lane.b32.xlu1 %v5749_v56, %s9076_s25  ;;  %5829 = vrot.lane.b32.xlu0 %v5753_v46, %s9076_s25  ;;  %5559 = vst.msk [vmem:[#allocation3 + $0x38] sm:$0xf] %vm1484_vm14, %v5478_v47  ;;  %v5926_v47 = vld [vmem:[#allocation2 + $0x58] sm:$0xf] }
 0x408   : > { %v5480_v59 = vpop.permute.xlu1 %5479 }
 0x409   : > { %5831 = vrot.lane.b32.xlu1 %v5756_v51, %s9076_s25  ;;  %5833 = vrot.lane.b32.xlu0 %v5760_v55, %s9076_s25  ;;  %5560 = vst.msk [vmem:[#allocation3 + $0x3c] sm:$0xf] %vm1484_vm14, %v5480_v59  ;;  %v6157_v51 = vshll.u32 %v6105_v57, 16  ;;  %v5930_v55 = vld [vmem:[#allocation2 + $0x70] sm:$0xf] }
 0x40a   : > { %v5931_v59 = vld [vmem:[#allocation2 + $0x78] sm:$0xf] }
 0x40b   : > { %v6159_v30 = vrot.slane %v6157_v51, 5  ;;  %v6668_v51 = vld [vmem:[#allocation2 + $0x18] sm:$0xe] }
 0x40d   : > { %v5482_v7 = vpop.permute.xlu0 %5481  ;;  %5835 = vrot.lane.b32.xlu1 %v5763_v2, %s9076_s25  ;;  %5837 = vrot.lane.b32.xlu0 %v5767_v4, %s9076_s25  ;;  %v6167_v2 = vshrl.u32 %v6106_v58, 16  ;;  %v5932_v4 = vld [vmem:[#allocation2 + $0x7c] sm:$0xf]  ;;  %v6160_v8 = vor.u32 %v6159_v30, %v6156_v0  ;;  %v8760_v30 = vrot.slane %v6668_v51, 9 }
 0x40e   : > { %5561 = vst.msk [vmem:[#allocation3 + $0x40] sm:$0xf] %vm1484_vm14, %v5482_v7  ;;  %v6181_v7 = vshll.u32 %v6108_v61, 16  ;;  %v9046_v51 = vld [vmem:[%s11715_s3 + $0x10] ss:$0 sps:$4 sm:$0x33]  }
 0x40f   : > { %v6169_v13 = vrot.slane %v6167_v2, 4  ;;  %v6161_v11 = vrot.slane %v6160_v8, 4  ;;  %9010 = vmatprep.subr.msk.bf16.mxu1 %vm4222_vm4, %v9046_v51 }
 0x410   : > { %v6183_v12 = vrot.slane %v6181_v7, 5 }
 0x411   : > { %v5484_v17 = vpop.permute.xlu1 %5483  ;;  %5839 = vrot.lane.b32.xlu1 %v5770_v14, %s9076_s25  ;;  %5841 = vrot.lane.b32.xlu0 %v5774_v6, %s9076_s25  ;;  %v5934_v14 = vld [vmem:[#allocation2 + $0x88] sm:$0xf]  ;;  %v6180_v6 = vrot.slane %v6178_v41, 4 }
 0x412   : > { %5562 = vst.msk [vmem:[#allocation3 + $0x44] sm:$0xf] %vm1484_vm14, %v5484_v17  ;;  %v6191_v17 = vshrl.u32 %v6109_v53, 16  ;;  %v7197_v53 = vld [vmem:[#allocation2 + $0x28] sm:$0xf] }
 0x413   : > { %v6184_v25 = vor.u32 %v6183_v12, %v6180_v6  ;;  %v6773_v12 = vrot.slane %v6670_v1, 5 }
 0x415   : > { %5843 = vrot.lane.b32.xlu1 %v5777_v22, %s9076_s25  ;;  %5845 = vrot.lane.b32.xlu0 %v5781_v23, %s9076_s25  ;;  %v6170_v22 = vor.u32 %v6169_v13, %v6165_v9  ;;  %v5937_v23 = vld [vmem:[#allocation2 + $0x9c] sm:$0xf] }
 0x417   : > { %v5486_v26 = vpop.permute.xlu0 %5485 }
 0x418   : > { %5563 = vst.msk [vmem:[#allocation3 + $0x48] sm:$0xf] %vm1484_vm14, %v5486_v26  ;;  %v6189_v26 = vrot.slane %v6187_v15, 5 }
 0x419   : > { %5847 = vrot.lane.b32.xlu1 %v5784_v29, %s9076_s25  ;;  %5977 = vrot.lane.b32.xlu0 %v5913_v31, %s9077_s26  ;;  %v6193_v29 = vrot.slane %v6191_v17, 4  ;;  %v6173_v31 = vshll.u32 %v6107_v20, 16 }
 0x41a   : > { %v5488_v32 = vpop.permute.xlu1 %5487 }
 0x41b   : > { %5564 = vst.msk [vmem:[#allocation3 + $0x4c] sm:$0xf] %vm1484_vm14, %v5488_v32 }
 0x41d   : > { %5979 = vrot.lane.b32.xlu1 %v5914_v33, %s9077_s26  ;;  %5981 = vrot.lane.b32.xlu0 %v5915_v36, %s9077_s26  ;;  %v6110_v36 = vld [vmem:[#allocation2 + $0x20] sm:$0x1] }
 0x421   : > { %v5490_v37 = vpop.permute.xlu0 %5489  ;;  %5983 = vrot.lane.b32.xlu1 %v5916_v28, %s9077_s26  ;;  %5985 = vrot.lane.b32.xlu0 %v5917_v10, %s9077_s26  ;;  %v5938_v28 = vld [vmem:[#allocation2 + $0xa0] sm:$0xf]  ;;  %v6166_v10 = vsel %vm9195_vm7, %v6161_v11, %v6165_v9 }
 0x422   : > { %5565 = vst.msk [vmem:[#allocation3 + $0x50] sm:$0xf] %vm1484_vm14, %v5490_v37  ;;  %v6171_v37 = vrot.slane %v6170_v22, 4 }
 0x423   : > { %v5492_v38 = vpop.permute.xlu1 %5491 }
 0x424   : > { %5566 = vst.msk [vmem:[#allocation3 + $0x54] sm:$0xf] %vm1484_vm14, %v5492_v38  ;;  %v6185_v38 = vrot.slane %v6184_v25, 4 }
 0x425   : > { %5987 = vrot.lane.b32.xlu1 %v5918_v24, %s9077_s26  ;;  %5989 = vrot.lane.b32.xlu0 %v5919_v27, %s9077_s26  ;;  %v6194_v24 = vor.u32 %v6193_v29, %v6189_v26  ;;  %v6666_v27 = vld [vmem:[#allocation2 + $0x10] sm:$0xf] }
 0x429   : > { %v5494_v42 = vpop.permute.xlu0 %5493  ;;  %5991 = vrot.lane.b32.xlu1 %v5920_v39, %s9077_s26  ;;  %5993 = vrot.lane.b32.xlu0 %v5921_v34, %s9077_s26  ;;  %v6175_v39 = vrot.slane %v6173_v31, 5  ;;  %v6197_v34 = vshll.u32 %v6110_v36, 16  ;;  %v7195_v31 = vld [vmem:[#allocation2 + $0x20] sm:$0x1] }
 0x42a   : > { %5567 = vst.msk [vmem:[#allocation3 + $0x58] sm:$0xf] %vm1484_vm14, %v5494_v42  ;;  %v6665_v42 = vld [vmem:[#allocation2 + $0xc] sm:$0xe] }
 0x42c   : > { %v5496_v3 = vpop.permute.xlu1 %5495 }
 0x42d   : > { %5568 = vst.msk [vmem:[#allocation3 + $0x5c] sm:$0xf] %vm1484_vm14, %v5496_v3  ;;  %5995 = vrot.lane.b32.xlu1 %v5922_v16, %s9077_s26  ;;  %5997 = vrot.lane.b32.xlu0 %v5923_v43, %s9077_s26  ;;  %v6763_v43 = vrot.slane %v6666_v27, 5 }
 0x42f   : > { %v6765_v40 = vrot.slane %v6763_v43, 4 }
 0x431   : > { %5999 = vrot.lane.b32.xlu1 %v5924_v44, %s9077_s26  ;;  %6001 = vrot.lane.b32.xlu0 %v5925_v45, %s9077_s26  ;;  %v6176_v44 = vsel %vm9195_vm7, %v6171_v37, %v6175_v39  ;;  %v6190_v45 = vsel %vm9195_vm7, %v6185_v38, %v6189_v26  ;;  %v7001_v26 = vld [vmem:[#allocation2 + $0x18] sm:$0xf]  ;;  %v7002_v38 = vld [vmem:[#allocation2 + $0x1c] sm:$0xf]  ;;  %v7261_v39 = vshll.u32 %v7195_v31, 16 }
 0x433   : > { %v5498_v56 = vpop.permute.xlu0 %5497 }
 0x434   : > { %5569 = vst.msk [vmem:[#allocation3 + $0x60] sm:$0xf] %vm1484_vm14, %v5498_v56  ;;  %v5500_v46 = vpop.permute.xlu1 %5499  ;;  %v6195_v56 = vrot.slane %v6194_v24, 4  ;;  %v7003_v24 = vld [vmem:[#allocation2 + $0x24] sm:$0xf] }
 0x435   : > { %5570 = vst.msk [vmem:[#allocation3 + $0x64] sm:$0xf] %vm1484_vm14, %v5500_v46  ;;  %6003 = vrot.lane.b32.xlu1 %v5926_v47, %s9077_s26  ;;  %6005 = vrot.lane.b32.xlu0 %v5927_v48, %s9077_s26  ;;  %v8759_v46 = vrot.slane %v6665_v42, 9  ;;  %v6669_v47 = vld [vmem:[#allocation2 + $0x1c] sm:$0xf] }
 0x436   : > { %v7193_v48 = vld [vmem:[#allocation2 + $0x18] sm:$0xf]  ;;  %v6770_v58 = vrot.slane %v6669_v47, 5  ;;  %v7004_v42 = vld [vmem:[#allocation2 + $0x28] sm:$0xf] }
 0x437   : > { %v7245_v61 = vshll.u32 %v7193_v48, 16  ;;  %v7754_v47 = vld [vmem:[#allocation2 + $0x1c] sm:$0xf] }
 0x438   : > { %v6771_v9 = vsel %vm9486_vm13, %v8760_v30, %v6770_v58  ;;  %v6772_v13 = vrot.slane %v6770_v58, 4  ;;  %v7757_v30 = vld [vmem:[#allocation2 + $0x28] sm:$0xf] }
 0x439   : > { %v5502_v49 = vpop.permute.xlu0 %5501  ;;  %6007 = vrot.lane.b32.xlu1 %v5928_v50, %s9077_s26  ;;  %6009 = vrot.lane.b32.xlu0 %v5929_v35, %s9077_s26  ;;  %v6667_v50 = vld [vmem:[#allocation2 + $0x14] sm:$0x1]  ;;  %v7247_v6 = vrot.slane %v7245_v61, 5 }
 0x43a   : > { %5571 = vst.msk [vmem:[#allocation3 + $0x68] sm:$0xf] %vm1484_vm14, %v5502_v49  ;;  %v5504_v54 = vpop.permute.xlu1 %5503  ;;  %v6199_v49 = vrot.slane %v6197_v34, 5  ;;  %v6766_v0 = vrot.slane %v6667_v50, 5  ;;  %v6774_v25 = vsel %vm9486_vm13, %v6772_v13, %v6773_v12  ;;  %v6111_v34 = vld [vmem:[#allocation2 + $0x24] sm:$0xf] }
 0x43b   : > { %5572 = vst.msk [vmem:[#allocation3 + $0x6c] sm:$0xf] %vm1484_vm14, %v5504_v54  ;;  %v6764_v54 = vsel %vm9486_vm13, %v8759_v46, %v6763_v43  ;;  %v7753_v46 = vld [vmem:[#allocation2 + $0x18] sm:$0xe]  ;;  %v6112_v50 = vld [vmem:[#allocation2 + $0x28] sm:$0xf] }
 0x43c   : > { %v6767_v7 = vsel %vm9486_vm13, %v6765_v40, %v6766_v0  ;;  %v6114_v40 = vld [vmem:[#allocation2 + $0x30] sm:$0xf]  ;;  %v8775_v58 = vrot.slane %v7753_v46, 9  ;;  %v6211_v1 = vshll.u32 %v6112_v50, 16  ;;  %v7756_v12 = vld [vmem:[#allocation2 + $0x24] sm:$0xe] }
 0x43d   : > { %v5506_v60 = vpop.permute.xlu0 %5505  ;;  %6011 = vrot.lane.b32.xlu1 %v5930_v55, %s9077_s26  ;;  %6013 = vrot.lane.b32.xlu0 %v5931_v59, %s9077_s26  ;;  %v7194_v55 = vld [vmem:[#allocation2 + $0x1c] sm:$0xf]  ;;  %v6200_v59 = vsel %vm9195_vm7, %v6195_v56, %v6199_v49  ;;  %v7263_v49 = vrot.slane %v7261_v39, 5 }
 0x43e   : > { %5573 = vst.msk [vmem:[#allocation3 + $0x70] sm:$0xf] %vm1484_vm14, %v5506_v60  ;;  %v7242_v60 = vshrl.u32 %v7193_v48, 16  ;;  %v7251_v2 = vshll.u32 %v7194_v55, 16 }
 0x43f   : > { %v5508_v62 = vpop.permute.xlu1 %5507 }
 0x440   : > { %5574 = vst.msk [vmem:[#allocation3 + $0x74] sm:$0xf] %vm1484_vm14, %v5508_v62  ;;  %v7196_v62 = vld [vmem:[#allocation2 + $0x24] sm:$0xf]  ;;  %v7253_v15 = vrot.slane %v7251_v2, 5  ;;  %v6215_v2 = vshrl.u32 %v6112_v50, 16 }
 0x441   : > { %6015 = vrot.lane.b32.xlu1 %v5932_v4, %s9077_s26  ;;  %6017 = vrot.lane.b32.xlu0 %v5933_v5, %s9077_s26  ;;  %v7255_v4 = vshrl.u32 %v7194_v55, 16  ;;  %v7269_v8 = vshll.u32 %v7196_v62, 16 }
 0x443   : > { %v7257_v17 = vrot.slane %v7255_v4, 4  ;;  %v7271_v11 = vrot.slane %v7269_v8, 5  ;;  %v8271_v4 = vsel %vm4222_vm4, %v9046_v51, 0  ;;  %v6671_v51 = vld [vmem:[#allocation2 + $0x24] sm:$0xe] }
 0x444   : > { %8972 = vmatpush3.bf16.msra.mxu1 %v8271_v4  ;;  %v6673_v4 = vld [vmem:[#allocation2 + $0x2c] sm:$0x1] }
 0x445   : > { %6019 = vrot.lane.b32.xlu1 %v5934_v14, %s9077_s26  ;;  %6021 = vrot.lane.b32.xlu0 %v5935_v63, %s9077_s26  ;;  %v7266_v63 = vshrl.u32 %v7196_v62, 16  ;;  %v7244_v14 = vrot.slane %v7242_v60, 4  ;;  %v7851_v60 = vrot.slane %v7754_v47, 5  ;;  %v6116_v47 = vld [vmem:[#allocation2 + $0x38] sm:$0x1] }
 0x447   : > { %v5510_v18 = vpop.permute.xlu0 %5509  ;;  %v7248_v29 = vor.u32 %v7247_v6, %v7244_v14  ;;  %v7852_v13 = vsel %vm9486_vm13, %v8775_v58, %v7851_v60  ;;  %v7755_v14 = vld [vmem:[#allocation2 + $0x20] sm:$0x1]  ;;  %v7853_v6 = vrot.slane %v7851_v60, 4 }
 0x448   : > { %5575 = vst.msk [vmem:[#allocation3 + $0x78] sm:$0xf] %vm1484_vm14, %v5510_v18  ;;  %v7275_v18 = vshll.u32 %v7197_v53, 16  ;;  %v7854_v31 = vrot.slane %v7755_v14, 5 }
 0x449   : > { %6023 = vrot.lane.b32.xlu1 %v5936_v19, %s9077_s26  ;;  %6025 = vrot.lane.b32.xlu0 %v5937_v23, %s9077_s26  ;;  %v7279_v19 = vshrl.u32 %v7197_v53, 16  ;;  %v7268_v23 = vrot.slane %v7266_v63, 4  ;;  %v7249_v27 = vrot.slane %v7248_v29, 4  ;;  %v6226_v53 = vshrl.u32 %v6114_v40, 16 }
 0x44a   : > { %v6229_v63 = vshll.u32 %v6114_v40, 16  ;;  %v6245_v40 = vshll.u32 %v6116_v47, 16 }
 0x44b   : > { %v5512_v32 = vpop.permute.xlu1 %5511  ;;  %v5786_v33 = vpop.permute.xlu0 %5785  ;;  %v7281_v36 = vrot.slane %v7279_v19, 4  ;;  %v7272_v37 = vor.u32 %v7271_v11, %v7268_v23  ;;  %v7254_v48 = vsel %vm9195_vm7, %v7249_v27, %v7253_v15  ;;  %v6113_v27 = vld [vmem:[#allocation2 + $0x2c] sm:$0x1] }
 0x44c   : > { %5576 = vst.msk [vmem:[#allocation3 + $0x7c] sm:$0xf] %vm1484_vm14, %v5512_v32  ;;  %v7258_v32 = vor.u32 %v7257_v17, %v7253_v15  ;;  %v7858_v15 = vrot.slane %v7757_v30, 5  ;;  %v6675_v30 = vld [vmem:[#allocation2 + $0x34] sm:$0xf] }
 0x44d   : > { %5881 = vst.msk [vmem:[#allocation3] sm:$0xf] %vm1824_vm15, %v5786_v33  ;;  %6027 = vrot.lane.b32.xlu1 %v5938_v28, %s9077_s26  ;;  %6537 = vrot.lane.b32.xlu0 %v6166_v10, %s9078_s27  ;;  %v7277_v33 = vrot.slane %v7275_v18, 5  ;;  %v7273_v56 = vrot.slane %v7272_v37, 4  ;;  %v7855_v37 = vsel %vm9486_vm13, %v7853_v6, %v7854_v31 }
 0x44f   : > { %v5788_v3 = vpop.permute.xlu1 %5787  ;;  %v5790_v16 = vpop.permute.xlu0 %5789  ;;  %v7282_v43 = vor.u32 %v7281_v36, %v7277_v33  ;;  %v7278_v0 = vsel %vm9195_vm7, %v7273_v56, %v7277_v33  ;;  %v9048_v33 = vld [vmem:[%s11715_s3] sm:$0xff]   ;;  %v7758_v36 = vld [vmem:[#allocation2 + $0x2c] sm:$0x1] }
 0x450   : > { %5882 = vst.msk [vmem:[#allocation3 + $0x4] sm:$0xf] %vm1824_vm15, %v5788_v3  ;;  %5883 = vst.msk [vmem:[#allocation3 + $0x8] sm:$0xf] %vm1824_vm15, %v5790_v16  ;;  %v7259_v3 = vrot.slane %v7258_v32, 4  ;;  %v8776_v32 = vrot.slane %v7756_v12, 9 }
 0x451   : > { %6539 = vrot.lane.b32.xlu1 %v6176_v44, %s9078_s27  ;;  %6541 = vrot.lane.b32.xlu0 %v6190_v45, %s9078_s27  ;;  %v7198_v16 = vld [vmem:[#allocation2 + $0x2c] sm:$0x1]  ;;  %v7202_v12 = vld [vmem:[#allocation2 + $0x3c] sm:$0xf] }
 0x452   : > { %v7264_v55 = vsel %vm9195_vm7, %v7259_v3, %v7263_v49 }
 0x453   : > { %v5792_v35 = vpop.permute.xlu1 %5791  ;;  %v5794_v57 = vpop.permute.xlu0 %5793 }
 0x454   : > { %5884 = vst.msk [vmem:[#allocation3 + $0xc] sm:$0xf] %vm1824_vm15, %v5792_v35  ;;  %5885 = vst.msk [vmem:[#allocation3 + $0x10] sm:$0xf] %vm1824_vm15, %v5794_v57  ;;  %v6202_v35 = vshrl.u32 %v6111_v34, 16  ;;  %v6205_v57 = vshll.u32 %v6111_v34, 16 }
 0x455   : > { %6543 = vrot.lane.b32.xlu1 %v6200_v59, %s9078_s27  ;;  %6873 = vrot.lane.b32.xlu0 %v6764_v54, %s9079_s28  ;;  %v7285_v54 = vshll.u32 %v7198_v16, 16  ;;  %v7283_v59 = vrot.slane %v7282_v43, 4  ;;  %v7861_v43 = vrot.slane %v7758_v36, 5  ;;  %v7203_v36 = vld [vmem:[#allocation2 + $0x40] sm:$0xf] }
 0x457   : > { %v5796_v5 = vpop.permute.xlu1 %5795  ;;  %v5798_v41 = vpop.permute.xlu0 %5797  ;;  %v7287_v8 = vrot.slane %v7285_v54, 5 }
 0x458   : > { %5886 = vst.msk [vmem:[#allocation3 + $0x14] sm:$0xf] %vm1824_vm15, %v5796_v5  ;;  %5887 = vst.msk [vmem:[#allocation3 + $0x18] sm:$0xf] %vm1824_vm15, %v5798_v41  ;;  %v6204_v5 = vrot.slane %v6202_v35, 4  ;;  %v6207_v41 = vrot.slane %v6205_v57, 5 }
 0x459   : > { %6875 = vrot.lane.b32.xlu1 %v6767_v7, %s9079_s28  ;;  %6877 = vrot.lane.b32.xlu0 %v6771_v9, %s9079_s28  ;;  %v6115_v7 = vld [vmem:[#allocation2 + $0x34] sm:$0xf]  ;;  %v9047_v9 = vld [vmem:[%s11715_s3 + $0x8] sm:$0xff]   ;;  %v7288_v19 = vsel %vm9195_vm7, %v7283_v59, %v7287_v8 }
 0x45a   : > { %v6235_v23 = vshll.u32 %v6115_v7, 16  ;;  %8973 = vmatprep.subr.bf16.mxu1 %v9047_v9  ;;  %v6208_v11 = vor.u32 %v6207_v41, %v6204_v5  ;;  %v6239_v29 = vshrl.u32 %v6115_v7, 16  ;;  %v6672_v57 = vld [vmem:[#allocation2 + $0x28] sm:$0xf]  ;;  %v7200_v8 = vld [vmem:[#allocation2 + $0x34] sm:$0xf] }
 0x45b   : > { %v5800_v20 = vpop.permute.xlu1 %5799  ;;  %v5802_v22 = vpop.permute.xlu0 %5801  ;;  %8974 = vmatpush3.bf16.msra.mxu1 %v9047_v9  ;;  %v6777_v58 = vrot.slane %v6672_v57, 5 }
 0x45c   : > { %5888 = vst.msk [vmem:[#allocation3 + $0x1c] sm:$0xf] %vm1824_vm15, %v5800_v20  ;;  %5889 = vst.msk [vmem:[#allocation3 + $0x20] sm:$0xf] %vm1824_vm15, %v5802_v22  ;;  %v6213_v20 = vrot.slane %v6211_v1, 5  ;;  %v6217_v22 = vrot.slane %v6215_v2, 4  ;;  %8975 = vmatprep.subr.bf16.mxu1 %v9048_v33 }
 0x45d   : > { %6879 = vrot.lane.b32.xlu1 %v6774_v25, %s9079_s28  ;;  %7065 = vrot.lane.b32.xlu0 %v7001_v26, %s9080_s29  ;;  %v6228_v25 = vrot.slane %v6226_v53, 4  ;;  %v6231_v26 = vrot.slane %v6229_v63, 5  ;;  %v6209_v34 = vrot.slane %v6208_v11, 4  ;;  %v6237_v3 = vrot.slane %v6235_v23, 5  ;;  %v7199_v1 = vld [vmem:[#allocation2 + $0x30] sm:$0xf] }
 0x45e   : > { %v6218_v39 = vor.u32 %v6217_v22, %v6213_v20  ;;  %v6241_v16 = vrot.slane %v6239_v29, 4  ;;  %v6247_v2 = vrot.slane %v6245_v40, 5  ;;  %v6779_v53 = vrot.slane %v6777_v58, 4  ;;  %v6674_v63 = vld [vmem:[#allocation2 + $0x30] sm:$0xe] }
 0x45f   : > { %v5804_v28 = vpop.permute.xlu1 %5803  ;;  %v5806_v10 = vpop.permute.xlu0 %5805  ;;  %8976 = vmatpush3.bf16.msra.mxu1 %v9048_v33  ;;  %v7290_v14 = vshrl.u32 %v7199_v1, 16  ;;  %v7293_v6 = vshll.u32 %v7199_v1, 16  ;;  %v6676_v11 = vld [vmem:[#allocation2 + $0x38] sm:$0x1]  ;;  %v6117_v40 = vld [vmem:[#allocation2 + $0x3c] sm:$0xf] }
 0x460   : > { %5890 = vst.msk [vmem:[#allocation3 + $0x24] sm:$0xf] %vm1824_vm15, %v5804_v28  ;;  %5891 = vst.msk [vmem:[#allocation3 + $0x28] sm:$0xf] %vm1824_vm15, %v5806_v10  ;;  %v6219_v49 = vrot.slane %v6218_v39, 4  ;;  %v6242_v35 = vor.u32 %v6241_v16, %v6237_v3 }
 0x461   : > { %7067 = vrot.lane.b32.xlu1 %v7002_v38, %s9080_s29  ;;  %7069 = vrot.lane.b32.xlu0 %v7003_v24, %s9080_s29  ;;  %v7859_v38 = vsel %vm9486_vm13, %v8776_v32, %v7858_v15  ;;  %v7860_v24 = vrot.slane %v7858_v15, 4  ;;  %v6780_v15 = vrot.slane %v6673_v4, 5  ;;  %v7292_v32 = vrot.slane %v7290_v14, 4  ;;  %v7005_v16 = vld [vmem:[#allocation2 + $0x30] sm:$0xf] }
 0x462   : > { %v7295_v33 = vrot.slane %v7293_v6, 5  ;;  %v6118_v4 = vld [vmem:[#allocation2 + $0x40] sm:$0xf] }
 0x463   : > { %v5808_v44 = vpop.permute.xlu1 %5807  ;;  %v5810_v45 = vpop.permute.xlu0 %5809  ;;  %v7862_v46 = vsel %vm9486_vm13, %v7860_v24, %v7861_v43  ;;  %v6781_v23 = vsel %vm9486_vm13, %v6779_v53, %v6780_v15  ;;  %v6120_v53 = vld [vmem:[#allocation2 + $0x48] sm:$0xf]  ;;  %v7763_v15 = vld [vmem:[#allocation2 + $0x40] sm:$0xf] }
 0x464   : > { %5892 = vst.msk [vmem:[#allocation3 + $0x2c] sm:$0xf] %vm1824_vm15, %v5808_v44  ;;  %5893 = vst.msk [vmem:[#allocation3 + $0x30] sm:$0xf] %vm1824_vm15, %v5810_v45  ;;  %v6221_v44 = vshll.u32 %v6113_v27, 16  ;;  %v7296_v43 = vor.u32 %v7295_v33, %v7292_v32  ;;  %v7872_v33 = vrot.slane %v7763_v15, 5 }
 0x465   : > { %7071 = vrot.lane.b32.xlu1 %v7004_v42, %s9080_s29  ;;  %7625 = vrot.lane.b32.xlu0 %v7254_v48, %s9081_s7  ;;  %v6232_v42 = vor.u32 %v6231_v26, %v6228_v25  ;;  %v6214_v48 = vsel %vm9195_vm7, %v6209_v34, %v6213_v20  ;;  %v7314_v25 = vshrl.u32 %v7202_v12, 16  ;;  %v7317_v26 = vshll.u32 %v7202_v12, 16  ;;  %v7762_v32 = vld [vmem:[#allocation2 + $0x3c] sm:$0xe]  ;;  %v6679_v15 = vld [vmem:[#allocation2 + $0x44] sm:$0x1] }
 0x466   : > { %v6223_v54 = vrot.slane %v6221_v44, 5  ;;  %v7323_v34 = vshll.u32 %v7203_v36, 16  ;;  %v7201_v44 = vld [vmem:[#allocation2 + $0x38] sm:$0x1]  ;;  %v7297_v57 = vrot.slane %v7296_v43, 4 }
 0x467   : > { %v5812_v61 = vpop.permute.xlu1 %5811  ;;  %v5814_v62 = vpop.permute.xlu0 %5813  ;;  %v6233_v50 = vrot.slane %v6232_v42, 4  ;;  %v7316_v27 = vrot.slane %v7314_v25, 4  ;;  %v7319_v39 = vrot.slane %v7317_v26, 5  ;;  %v7327_v42 = vshrl.u32 %v7203_v36, 16  ;;  %v7764_v43 = vld [vmem:[#allocation2 + $0x44] sm:$0x1] }
 0x468   : > { %5894 = vst.msk [vmem:[#allocation3 + $0x34] sm:$0xf] %vm1824_vm15, %v5812_v61  ;;  %5895 = vst.msk [vmem:[#allocation3 + $0x38] sm:$0xf] %vm1824_vm15, %v5814_v62  ;;  %v6224_v60 = vsel %vm9195_vm7, %v6219_v49, %v6223_v54  ;;  %v6243_v62 = vrot.slane %v6242_v35, 4  ;;  %v7309_v54 = vshll.u32 %v7201_v44, 16 }
 0x469   : > { %7627 = vrot.lane.b32.xlu1 %v7264_v55, %s9081_s7  ;;  %7629 = vrot.lane.b32.xlu0 %v7278_v0, %s9081_s7  ;;  %v6238_v61 = vsel %vm9195_vm7, %v6233_v50, %v6237_v3  ;;  %v8761_v0 = vrot.slane %v6671_v51, 9  ;;  %v7320_v47 = vor.u32 %v7319_v39, %v7316_v27  ;;  %v7329_v49 = vrot.slane %v7327_v42, 4  ;;  %v7006_v50 = vld [vmem:[#allocation2 + $0x34] sm:$0xf]  ;;  %v7007_v35 = vld [vmem:[#allocation2 + $0x3c] sm:$0xf] }
 0x46a   : > { %v6248_v9 = vsel %vm9195_vm7, %v6243_v62, %v6247_v2  ;;  %v7008_v51 = vld [vmem:[#allocation2 + $0x40] sm:$0xf]  ;;  %v7311_v2 = vrot.slane %v7309_v54, 5 }
 0x46b   : > { %v5816_v17 = vpop.permute.xlu1 %5815  ;;  %v5818_v18 = vpop.permute.xlu0 %5817  ;;  %v6778_v7 = vsel %vm9486_vm13, %v8761_v0, %v6777_v58  ;;  %v7759_v0 = vld [vmem:[#allocation2 + $0x30] sm:$0xe] }
 0x46c   : > { %5896 = vst.msk [vmem:[#allocation3 + $0x3c] sm:$0xf] %vm1824_vm15, %v5816_v17  ;;  %5897 = vst.msk [vmem:[#allocation3 + $0x40] sm:$0xf] %vm1824_vm15, %v5818_v18  ;;  %v8762_v17 = vrot.slane %v6674_v63, 9  ;;  %v7299_v18 = vshll.u32 %v7200_v8, 16 }
 0x46d   : > { %7631 = vrot.lane.b32.xlu1 %v7288_v19, %s9081_s7  ;;  %7961 = vrot.lane.b32.xlu0 %v7852_v13, %s9082_s12  ;;  %v6784_v13 = vrot.slane %v6675_v30, 5  ;;  %v7303_v19 = vshrl.u32 %v7200_v8, 16  ;;  %v7760_v30 = vld [vmem:[#allocation2 + $0x34] sm:$0xf]  ;;  %v8777_v8 = vrot.slane %v7759_v0, 9 }
 0x46f   : > { %v5820_v28 = vpop.permute.xlu1 %5819  ;;  %v5822_v10 = vpop.permute.xlu0 %5821  ;;  %v6785_v29 = vsel %vm9486_vm13, %v8762_v17, %v6784_v13  ;;  %v6786_v31 = vrot.slane %v6784_v13, 4  ;;  %v6259_v17 = vshll.u32 %v6118_v4, 16 }
 0x470   : > { %5898 = vst.msk [vmem:[#allocation3 + $0x44] sm:$0xf] %vm1824_vm15, %v5820_v28  ;;  %5899 = vst.msk [vmem:[#allocation3 + $0x48] sm:$0xf] %vm1824_vm15, %v5822_v10  ;;  %v6787_v28 = vrot.slane %v6676_v11, 5  ;;  %v7301_v10 = vrot.slane %v7299_v18, 5 }
 0x471   : > { %7963 = vrot.lane.b32.xlu1 %v7855_v37, %s9082_s12  ;;  %7965 = vrot.lane.b32.xlu0 %v7859_v38, %s9082_s12  ;;  %v7305_v37 = vrot.slane %v7303_v19, 4  ;;  %v6263_v18 = vshrl.u32 %v6118_v4, 16  ;;  %v6277_v11 = vshll.u32 %v6120_v53, 16 }
 0x472   : > { %v6788_v3 = vsel %vm9486_vm13, %v6786_v31, %v6787_v28  ;;  %v7302_v1 = vsel %vm9195_vm7, %v7297_v57, %v7301_v10 }
 0x473   : > { %v5824_v45 = vpop.permute.xlu1 %5823  ;;  %v5826_v56 = vpop.permute.xlu0 %5825 }
 0x474   : > { %5900 = vst.msk [vmem:[#allocation3 + $0x4c] sm:$0xf] %vm1824_vm15, %v5824_v45  ;;  %5901 = vst.msk [vmem:[#allocation3 + $0x50] sm:$0xf] %vm1824_vm15, %v5826_v56  ;;  %v7306_v45 = vor.u32 %v7305_v37, %v7301_v10  ;;  %v6261_v37 = vrot.slane %v6259_v17, 5 }
 0x475   : > { %7967 = vrot.lane.b32.xlu1 %v7862_v46, %s9082_s12  ;;  %6545 = vrot.lane.b32.xlu0 %v6214_v48, %s9078_s27  ;;  %v7325_v48 = vrot.slane %v7323_v34, 5  ;;  %v6279_v34 = vrot.slane %v6277_v11, 5 }
 0x477   : > { %v5828_v55 = vpop.permute.xlu1 %5827  ;;  %v5830_v59 = vpop.permute.xlu0 %5829  ;;  %v7330_v62 = vor.u32 %v7329_v49, %v7325_v48 }
 0x478   : > { %5902 = vst.msk [vmem:[#allocation3 + $0x54] sm:$0xf] %vm1824_vm15, %v5828_v55  ;;  %5903 = vst.msk [vmem:[#allocation3 + $0x58] sm:$0xf] %vm1824_vm15, %v5830_v59  ;;  %v7307_v55 = vrot.slane %v7306_v45, 4 }
 0x479   : > { %6547 = vrot.lane.b32.xlu1 %v6224_v60, %s9078_s27  ;;  %6549 = vrot.lane.b32.xlu0 %v6238_v61, %s9078_s27  ;;  %v7204_v59 = vld [vmem:[#allocation2 + $0x44] sm:$0x1]  ;;  %v7321_v61 = vrot.slane %v7320_v47, 4  ;;  %v7331_v12 = vrot.slane %v7330_v62, 4  ;;  %v7874_v47 = vrot.slane %v7872_v33, 4 }
 0x47a   : > { %v7312_v63 = vsel %vm9195_vm7, %v7307_v55, %v7311_v2 }
 0x47b   : > { %v5832_v5 = vpop.permute.xlu1 %5831  ;;  %v5834_v41 = vpop.permute.xlu0 %5833  ;;  %v7326_v6 = vsel %vm9195_vm7, %v7321_v61, %v7325_v48  ;;  %v6119_v48 = vld [vmem:[#allocation2 + $0x44] sm:$0x1] }
 0x47c   : > { %5904 = vst.msk [vmem:[#allocation3 + $0x5c] sm:$0xf] %vm1824_vm15, %v5832_v5  ;;  %5905 = vst.msk [vmem:[#allocation3 + $0x60] sm:$0xf] %vm1824_vm15, %v5834_v41  ;;  %v6250_v5 = vshrl.u32 %v6117_v40, 16  ;;  %v6253_v41 = vshll.u32 %v6117_v40, 16 }
 0x47d   : > { %6551 = vrot.lane.b32.xlu1 %v6248_v9, %s9078_s27  ;;  %6881 = vrot.lane.b32.xlu0 %v6778_v7, %s9079_s28  ;;  %v7333_v7 = vshll.u32 %v7204_v59, 16  ;;  %v7865_v9 = vrot.slane %v7760_v30, 5  ;;  %v7875_v40 = vrot.slane %v7764_v43, 5  ;;  %v7209_v43 = vld [vmem:[#allocation2 + $0x58] sm:$0xf] }
 0x47e   : > { %v6252_v19 = vrot.slane %v6250_v5, 4  ;;  %v6677_v5 = vld [vmem:[#allocation2 + $0x3c] sm:$0xe] }
 0x47f   : > { %v5836_v20 = vpop.permute.xlu1 %5835  ;;  %v5838_v22 = vpop.permute.xlu0 %5837  ;;  %v7335_v25 = vrot.slane %v7333_v7, 5  ;;  %v7866_v26 = vsel %vm9486_vm13, %v8777_v8, %v7865_v9  ;;  %v7867_v31 = vrot.slane %v7865_v9, 4 }
 0x480   : > { %5906 = vst.msk [vmem:[#allocation3 + $0x64] sm:$0xf] %vm1824_vm15, %v5836_v20  ;;  %5907 = vst.msk [vmem:[#allocation3 + $0x68] sm:$0xf] %vm1824_vm15, %v5838_v22  ;;  %v6255_v20 = vrot.slane %v6253_v41, 5 }
 0x481   : > { %6883 = vrot.lane.b32.xlu1 %v6781_v23, %s9079_s28  ;;  %6885 = vrot.lane.b32.xlu0 %v6785_v29, %s9079_s28  ;;  %v6121_v22 = vld [vmem:[#allocation2 + $0x4c] sm:$0xf]  ;;  %v6274_v23 = vshrl.u32 %v6120_v53, 16  ;;  %v7761_v29 = vld [vmem:[#allocation2 + $0x38] sm:$0x1]  ;;  %v7336_v10 = vsel %vm9195_vm7, %v7331_v12, %v7335_v25 }
 0x482   : > { %v6256_v27 = vor.u32 %v6255_v20, %v6252_v19  ;;  %v6287_v42 = vshrl.u32 %v6121_v22, 16 }
 0x483   : > { %v5840_v38 = vpop.permute.xlu1 %5839  ;;  %v5842_v24 = vpop.permute.xlu0 %5841  ;;  %v6276_v39 = vrot.slane %v6274_v23, 4  ;;  %v7206_v23 = vld [vmem:[#allocation2 + $0x4c] sm:$0xf] }
 0x484   : > { %5908 = vst.msk [vmem:[#allocation3 + $0x6c] sm:$0xf] %vm1824_vm15, %v5840_v38  ;;  %5909 = vst.msk [vmem:[#allocation3 + $0x70] sm:$0xf] %vm1824_vm15, %v5842_v24  ;;  %v6265_v38 = vrot.slane %v6263_v18, 4  ;;  %v6283_v24 = vshll.u32 %v6121_v22, 16 }
 0x485   : > { %6887 = vrot.lane.b32.xlu1 %v6788_v3, %s9079_s28  ;;  %7073 = vrot.lane.b32.xlu0 %v7005_v16, %s9080_s29  ;;  %v7868_v3 = vrot.slane %v7761_v29, 5  ;;  %v8778_v16 = vrot.slane %v7762_v32, 9  ;;  %v6289_v54 = vrot.slane %v6287_v42, 4  ;;  %v6680_v22 = vld [vmem:[#allocation2 + $0x48] sm:$0xe]  ;;  %v6794_v32 = vrot.slane %v6679_v15, 5 }
 0x486   : > { %v6266_v49 = vor.u32 %v6265_v38, %v6261_v37  ;;  %v6285_v57 = vrot.slane %v6283_v24, 5  ;;  %v6682_v24 = vld [vmem:[#allocation2 + $0x50] sm:$0x1]  ;;  %v6124_v15 = vld [vmem:[#allocation2 + $0x58] sm:$0xf] }
 0x487   : > { %v5844_v56 = vpop.permute.xlu1 %5843  ;;  %v5846_v46 = vpop.permute.xlu0 %5845 }
 0x488   : > { %5910 = vst.msk [vmem:[#allocation3 + $0x74] sm:$0xf] %vm1824_vm15, %v5844_v56  ;;  %5911 = vst.msk [vmem:[#allocation3 + $0x78] sm:$0xf] %vm1824_vm15, %v5846_v46  ;;  %v7869_v56 = vsel %vm9486_vm13, %v7867_v31, %v7868_v3  ;;  %v7873_v46 = vsel %vm9486_vm13, %v8778_v16, %v7872_v33  ;;  %v6267_v62 = vrot.slane %v6266_v49, 4  ;;  %v6290_v30 = vor.u32 %v6289_v54, %v6285_v57 }
 0x489   : > { %7075 = vrot.lane.b32.xlu1 %v7006_v50, %s9080_s29  ;;  %7077 = vrot.lane.b32.xlu0 %v7007_v35, %s9080_s29  ;;  %v6257_v50 = vrot.slane %v6256_v27, 4  ;;  %v6280_v35 = vor.u32 %v6279_v34, %v6276_v39  ;;  %v7208_v31 = vld [vmem:[#allocation2 + $0x54] sm:$0xf]  ;;  %v8764_v33 = vrot.slane %v6680_v22, 9  ;;  %v7009_v54 = vld [vmem:[#allocation2 + $0x48] sm:$0xf] }
 0x48a   : > { %v6291_v9 = vrot.slane %v6290_v30, 4  ;;  %v7362_v27 = vshrl.u32 %v7208_v31, 16  ;;  %v7365_v39 = vshll.u32 %v7208_v31, 16  ;;  %v7011_v30 = vld [vmem:[#allocation2 + $0x54] sm:$0xf] }
 0x48b   : > { %v5848_v58 = vpop.permute.xlu1 %5847  ;;  %v5978_v60 = vpop.permute.xlu0 %5977  ;;  %v6262_v61 = vsel %vm9195_vm7, %v6257_v50, %v6261_v37  ;;  %v6281_v0 = vrot.slane %v6280_v35, 4  ;;  %v7371_v50 = vshll.u32 %v7209_v43, 16  ;;  %v7375_v35 = vshrl.u32 %v7209_v43, 16 }
 0x48c   : > { %5912 = vst.msk [vmem:[#allocation3 + $0x7c] sm:$0xf] %vm1824_vm15, %v5848_v58  ;;  %v7876_v58 = vsel %vm9486_vm13, %v7874_v47, %v7875_v40  ;;  %v7367_v49 = vrot.slane %v7365_v39, 5 }
 0x48d   : > { %6073 = vst.msk [vmem:[#allocation3] sm:$0xf] %vm2017_vm1, %v5978_v60  ;;  %7079 = vrot.lane.b32.xlu1 %v7008_v51, %s9080_s29  ;;  %7633 = vrot.lane.b32.xlu0 %v7302_v1, %s9081_s7  ;;  %v6269_v51 = vshll.u32 %v6119_v48, 16  ;;  %v6122_v60 = vld [vmem:[#allocation2 + $0x50] sm:$0x1]  ;;  %v6286_v8 = vsel %vm9195_vm7, %v6281_v0, %v6285_v57  ;;  %v7364_v48 = vrot.slane %v7362_v27, 4 }
 0x48e   : > { %v6678_v1 = vld [vmem:[#allocation2 + $0x40] sm:$0xf]  ;;  %v6293_v4 = vshll.u32 %v6122_v60, 16  ;;  %v7010_v0 = vld [vmem:[#allocation2 + $0x4c] sm:$0xf] }
 0x48f   : > { %v5980_v13 = vpop.permute.xlu1 %5979  ;;  %v5982_v14 = vpop.permute.xlu0 %5981  ;;  %v6271_v2 = vrot.slane %v6269_v51, 5  ;;  %v6791_v53 = vrot.slane %v6678_v1, 5  ;;  %v7207_v51 = vld [vmem:[#allocation2 + $0x50] sm:$0x1]  ;;  %v7368_v60 = vor.u32 %v7367_v49, %v7364_v48 }
 0x490   : > { %6074 = vst.msk [vmem:[#allocation3 + $0x4] sm:$0xf] %vm2017_vm1, %v5980_v13  ;;  %6075 = vst.msk [vmem:[#allocation3 + $0x8] sm:$0xf] %vm2017_vm1, %v5982_v14  ;;  %v8763_v13 = vrot.slane %v6677_v5, 9  ;;  %v6295_v12 = vrot.slane %v6293_v4, 5 }
 0x491   : > { %7635 = vrot.lane.b32.xlu1 %v7312_v63, %s9081_s7  ;;  %7637 = vrot.lane.b32.xlu0 %v7326_v6, %s9081_s7  ;;  %v6272_v63 = vsel %vm9195_vm7, %v6267_v62, %v6271_v2  ;;  %v6681_v14 = vld [vmem:[#allocation2 + $0x4c] sm:$0xf]  ;;  %v7205_v6 = vld [vmem:[#allocation2 + $0x48] sm:$0xf]  ;;  %v6793_v20 = vrot.slane %v6791_v53, 4  ;;  %v7377_v62 = vrot.slane %v7375_v35, 4 }
 0x492   : > { %v6792_v19 = vsel %vm9486_vm13, %v8763_v13, %v6791_v53  ;;  %v6296_v11 = vsel %vm9195_vm7, %v6291_v9, %v6295_v12  ;;  %v6798_v25 = vrot.slane %v6681_v14, 5  ;;  %v7341_v29 = vshll.u32 %v7205_v6, 16  ;;  %v6123_v4 = vld [vmem:[#allocation2 + $0x54] sm:$0xf]  ;;  %v7012_v5 = vld [vmem:[#allocation2 + $0x58] sm:$0xf] }
 0x493   : > { %v5984_v36 = vpop.permute.xlu1 %5983  ;;  %v5986_v28 = vpop.permute.xlu0 %5985  ;;  %v6795_v38 = vsel %vm9486_vm13, %v6793_v20, %v6794_v32  ;;  %v7357_v2 = vshll.u32 %v7207_v51, 16  ;;  %v7765_v13 = vld [vmem:[#allocation2 + $0x48] sm:$0xe]  ;;  %v7766_v14 = vld [vmem:[#allocation2 + $0x4c] sm:$0xf] }
 0x494   : > { %6076 = vst.msk [vmem:[#allocation3 + $0xc] sm:$0xf] %vm2017_vm1, %v5984_v36  ;;  %6077 = vst.msk [vmem:[#allocation3 + $0x10] sm:$0xf] %vm2017_vm1, %v5986_v28  ;;  %v7347_v36 = vshll.u32 %v7206_v23, 16  ;;  %v7351_v28 = vshrl.u32 %v7206_v23, 16  ;;  %v6799_v34 = vsel %vm9486_vm13, %v8764_v33, %v6798_v25 }
 0x495   : > { %7639 = vrot.lane.b32.xlu1 %v7336_v10, %s9081_s7  ;;  %7969 = vrot.lane.b32.xlu0 %v7866_v26, %s9082_s12  ;;  %v7338_v26 = vshrl.u32 %v7205_v6, 16  ;;  %v6800_v42 = vrot.slane %v6798_v25, 4  ;;  %v7343_v16 = vrot.slane %v7341_v29, 5  ;;  %v7359_v12 = vrot.slane %v7357_v2, 5  ;;  %v6126_v20 = vld [vmem:[#allocation2 + $0x60] sm:$0xf] }
 0x496   : > { %v8779_v23 = vrot.slane %v7765_v13, 9  ;;  %v7769_v32 = vld [vmem:[#allocation2 + $0x58] sm:$0xf]  ;;  %v6307_v33 = vshll.u32 %v6124_v15, 16 }
 0x497   : > { %v5988_v44 = vpop.permute.xlu1 %5987  ;;  %v5990_v45 = vpop.permute.xlu0 %5989  ;;  %v7340_v3 = vrot.slane %v7338_v26, 4 }
 0x498   : > { %6078 = vst.msk [vmem:[#allocation3 + $0x14] sm:$0xf] %vm2017_vm1, %v5988_v44  ;;  %6079 = vst.msk [vmem:[#allocation3 + $0x18] sm:$0xf] %vm2017_vm1, %v5990_v45  ;;  %v6801_v44 = vrot.slane %v6682_v24, 5  ;;  %v7349_v45 = vrot.slane %v7347_v36, 5 }
 0x499   : > { %7971 = vrot.lane.b32.xlu1 %v7869_v56, %s9082_s12  ;;  %7973 = vrot.lane.b32.xlu0 %v7873_v46, %s9082_s12  ;;  %v7353_v56 = vrot.slane %v7351_v28, 4  ;;  %v7344_v40 = vor.u32 %v7343_v16, %v7340_v3  ;;  %v6311_v36 = vshrl.u32 %v6124_v15, 16  ;;  %v6325_v24 = vshll.u32 %v6126_v20, 16  ;;  %v7768_v3 = vld [vmem:[#allocation2 + $0x54] sm:$0xe] }
 0x49a   : > { %v6802_v57 = vsel %vm9486_vm13, %v6800_v42, %v6801_v44  ;;  %v7886_v16 = vrot.slane %v7769_v32, 5  ;;  %v6685_v32 = vld [vmem:[#allocation2 + $0x5c] sm:$0x1] }
 0x49b   : > { %v5992_v55 = vpop.permute.xlu1 %5991  ;;  %v5994_v59 = vpop.permute.xlu0 %5993  ;;  %v7345_v1 = vrot.slane %v7344_v40, 4  ;;  %v7770_v40 = vld [vmem:[#allocation2 + $0x5c] sm:$0x1] }
 0x49c   : > { %6080 = vst.msk [vmem:[#allocation3 + $0x1c] sm:$0xf] %vm2017_vm1, %v5992_v55  ;;  %6081 = vst.msk [vmem:[#allocation3 + $0x20] sm:$0xf] %vm2017_vm1, %v5994_v59  ;;  %v7354_v55 = vor.u32 %v7353_v56, %v7349_v45  ;;  %v6309_v56 = vrot.slane %v6307_v33, 5 }
 0x49d   : > { %7975 = vrot.lane.b32.xlu1 %v7876_v58, %s9082_s12  ;;  %6553 = vrot.lane.b32.xlu0 %v6262_v61, %s9078_s27  ;;  %v7373_v61 = vrot.slane %v7371_v50, 5  ;;  %v7350_v6 = vsel %vm9195_vm7, %v7345_v1, %v7349_v45  ;;  %v6327_v50 = vrot.slane %v6325_v24, 5 }
 0x49f   : > { %v5996_v41 = vpop.permute.xlu1 %5995  ;;  %v5998_v7 = vpop.permute.xlu0 %5997  ;;  %v7378_v9 = vor.u32 %v7377_v62, %v7373_v61 }
 0x4a0   : > { %6082 = vst.msk [vmem:[#allocation3 + $0x24] sm:$0xf] %vm2017_vm1, %v5996_v41  ;;  %6083 = vst.msk [vmem:[#allocation3 + $0x28] sm:$0xf] %vm2017_vm1, %v5998_v7  ;;  %v7355_v41 = vrot.slane %v7354_v55, 4 }
 0x4a1   : > { %6555 = vrot.lane.b32.xlu1 %v6272_v63, %s9078_s27  ;;  %6557 = vrot.lane.b32.xlu0 %v6286_v8, %s9078_s27  ;;  %v7210_v7 = vld [vmem:[#allocation2 + $0x5c] sm:$0x1]  ;;  %v7369_v8 = vrot.slane %v7368_v60, 4  ;;  %v7379_v31 = vrot.slane %v7378_v9, 4  ;;  %v7888_v60 = vrot.slane %v7886_v16, 4 }
 0x4a2   : > { %v7360_v22 = vsel %vm9195_vm7, %v7355_v41, %v7359_v12 }
 0x4a3   : > { %v6000_v17 = vpop.permute.xlu1 %5999  ;;  %v6002_v18 = vpop.permute.xlu0 %6001  ;;  %v7374_v29 = vsel %vm9195_vm7, %v7369_v8, %v7373_v61  ;;  %v6125_v61 = vld [vmem:[#allocation2 + $0x5c] sm:$0x1] }
 0x4a4   : > { %6084 = vst.msk [vmem:[#allocation3 + $0x2c] sm:$0xf] %vm2017_vm1, %v6000_v17  ;;  %6085 = vst.msk [vmem:[#allocation3 + $0x30] sm:$0xf] %vm2017_vm1, %v6002_v18  ;;  %v6298_v17 = vshrl.u32 %v6123_v4, 16  ;;  %v6301_v18 = vshll.u32 %v6123_v4, 16 }
 0x4a5   : > { %6559 = vrot.lane.b32.xlu1 %v6296_v11, %s9078_s27  ;;  %6889 = vrot.lane.b32.xlu0 %v6792_v19, %s9079_s28  ;;  %v7381_v19 = vshll.u32 %v7210_v7, 16  ;;  %v7879_v11 = vrot.slane %v7766_v14, 5  ;;  %v7889_v4 = vrot.slane %v7770_v40, 5  ;;  %v7215_v40 = vld [vmem:[#allocation2 + $0x70] sm:$0xf] }
 0x4a6   : > { %v6300_v28 = vrot.slane %v6298_v17, 4  ;;  %v6683_v17 = vld [vmem:[#allocation2 + $0x54] sm:$0xe] }
 0x4a7   : > { %v6004_v10 = vpop.permute.xlu1 %6003  ;;  %v6006_v37 = vpop.permute.xlu0 %6005  ;;  %v7383_v27 = vrot.slane %v7381_v19, 5  ;;  %v7880_v39 = vsel %vm9486_vm13, %v8779_v23, %v7879_v11  ;;  %v7881_v42 = vrot.slane %v7879_v11, 4 }
 0x4a8   : > { %6086 = vst.msk [vmem:[#allocation3 + $0x34] sm:$0xf] %vm2017_vm1, %v6004_v10  ;;  %6087 = vst.msk [vmem:[#allocation3 + $0x38] sm:$0xf] %vm2017_vm1, %v6006_v37  ;;  %v6303_v10 = vrot.slane %v6301_v18, 5 }
 0x4a9   : > { %6891 = vrot.lane.b32.xlu1 %v6795_v38, %s9079_s28  ;;  %6893 = vrot.lane.b32.xlu0 %v6799_v34, %s9079_s28  ;;  %v6127_v37 = vld [vmem:[#allocation2 + $0x64] sm:$0xf]  ;;  %v6322_v38 = vshrl.u32 %v6126_v20, 16  ;;  %v7767_v34 = vld [vmem:[#allocation2 + $0x50] sm:$0x1]  ;;  %v7384_v45 = vsel %vm9195_vm7, %v7379_v31, %v7383_v27 }
 0x4aa   : > { %v6304_v48 = vor.u32 %v6303_v10, %v6300_v28  ;;  %v6335_v35 = vshrl.u32 %v6127_v37, 16 }
 0x4ab   : > { %v6008_v46 = vpop.permute.xlu1 %6007  ;;  %v6010_v47 = vpop.permute.xlu0 %6009  ;;  %v6324_v49 = vrot.slane %v6322_v38, 4  ;;  %v7212_v38 = vld [vmem:[#allocation2 + $0x64] sm:$0xf] }
 0x4ac   : > { %6088 = vst.msk [vmem:[#allocation3 + $0x3c] sm:$0xf] %vm2017_vm1, %v6008_v46  ;;  %6089 = vst.msk [vmem:[#allocation3 + $0x40] sm:$0xf] %vm2017_vm1, %v6010_v47  ;;  %v6313_v46 = vrot.slane %v6311_v36, 4  ;;  %v6331_v47 = vshll.u32 %v6127_v37, 16 }
 0x4ad   : > { %6895 = vrot.lane.b32.xlu1 %v6802_v57, %s9079_s28  ;;  %7081 = vrot.lane.b32.xlu0 %v7009_v54, %s9080_s29  ;;  %v7882_v57 = vrot.slane %v7767_v34, 5  ;;  %v8780_v54 = vrot.slane %v7768_v3, 9  ;;  %v6337_v2 = vrot.slane %v6335_v35, 4  ;;  %v6686_v37 = vld [vmem:[#allocation2 + $0x60] sm:$0xe]  ;;  %v6808_v3 = vrot.slane %v6685_v32, 5 }
 0x4ae   : > { %v6314_v62 = vor.u32 %v6313_v46, %v6309_v56  ;;  %v6333_v1 = vrot.slane %v6331_v47, 5  ;;  %v6688_v47 = vld [vmem:[#allocation2 + $0x68] sm:$0x1]  ;;  %v6130_v32 = vld [vmem:[#allocation2 + $0x70] sm:$0xf] }
 0x4af   : > { %v6012_v59 = vpop.permute.xlu1 %6011  ;;  %v6014_v58 = vpop.permute.xlu0 %6013 }
 0x4b0   : > { %6090 = vst.msk [vmem:[#allocation3 + $0x44] sm:$0xf] %vm2017_vm1, %v6012_v59  ;;  %6091 = vst.msk [vmem:[#allocation3 + $0x48] sm:$0xf] %vm2017_vm1, %v6014_v58  ;;  %v7883_v59 = vsel %vm9486_vm13, %v7881_v42, %v7882_v57  ;;  %v7887_v58 = vsel %vm9486_vm13, %v8780_v54, %v7886_v16  ;;  %v6315_v9 = vrot.slane %v6314_v62, 4  ;;  %v6338_v14 = vor.u32 %v6337_v2, %v6333_v1 }
 0x4b1   : > { %7083 = vrot.lane.b32.xlu1 %v7010_v0, %s9080_s29  ;;  %7085 = vrot.lane.b32.xlu0 %v7011_v30, %s9080_s29  ;;  %v6305_v0 = vrot.slane %v6304_v48, 4  ;;  %v6328_v30 = vor.u32 %v6327_v50, %v6324_v49  ;;  %v7214_v42 = vld [vmem:[#allocation2 + $0x6c] sm:$0xf]  ;;  %v8766_v16 = vrot.slane %v6686_v37, 9  ;;  %v7013_v2 = vld [vmem:[#allocation2 + $0x60] sm:$0xf] }
 0x4b2   : > { %v6339_v11 = vrot.slane %v6338_v14, 4  ;;  %v7410_v48 = vshrl.u32 %v7214_v42, 16  ;;  %v7413_v49 = vshll.u32 %v7214_v42, 16  ;;  %v7015_v14 = vld [vmem:[#allocation2 + $0x6c] sm:$0xf] }
 0x4b3   : > { %v6016_v53 = vpop.permute.xlu1 %6015  ;;  %v6018_v63 = vpop.permute.xlu0 %6017  ;;  %v6310_v8 = vsel %vm9195_vm7, %v6305_v0, %v6309_v56  ;;  %v6329_v13 = vrot.slane %v6328_v30, 4  ;;  %v7419_v0 = vshll.u32 %v7215_v40, 16  ;;  %v7423_v30 = vshrl.u32 %v7215_v40, 16 }
 0x4b4   : > { %6092 = vst.msk [vmem:[#allocation3 + $0x4c] sm:$0xf] %vm2017_vm1, %v6016_v53  ;;  %6093 = vst.msk [vmem:[#allocation3 + $0x50] sm:$0xf] %vm2017_vm1, %v6018_v63  ;;  %v7890_v53 = vsel %vm9486_vm13, %v7888_v60, %v7889_v4  ;;  %v6128_v63 = vld [vmem:[#allocation2 + $0x68] sm:$0x1] }
 0x4b5   : > { %7087 = vrot.lane.b32.xlu1 %v7012_v5, %s9080_s29  ;;  %7641 = vrot.lane.b32.xlu0 %v7350_v6, %s9081_s7  ;;  %v6317_v5 = vshll.u32 %v6125_v61, 16  ;;  %v6684_v6 = vld [vmem:[#allocation2 + $0x58] sm:$0xf]  ;;  %v6341_v15 = vshll.u32 %v6128_v63, 16  ;;  %v6334_v23 = vsel %vm9195_vm7, %v6329_v13, %v6333_v1  ;;  %v7412_v61 = vrot.slane %v7410_v48, 4 }
 0x4b6   : > { %v6805_v20 = vrot.slane %v6684_v6, 5  ;;  %v7415_v62 = vrot.slane %v7413_v49, 5  ;;  %v7014_v13 = vld [vmem:[#allocation2 + $0x64] sm:$0xf] }
 0x4b7   : > { %v6020_v25 = vpop.permute.xlu1 %6019  ;;  %v6022_v26 = vpop.permute.xlu0 %6021  ;;  %v6319_v12 = vrot.slane %v6317_v5, 5  ;;  %v6343_v31 = vrot.slane %v6341_v15, 5  ;;  %v7213_v5 = vld [vmem:[#allocation2 + $0x68] sm:$0x1]  ;;  %v6129_v15 = vld [vmem:[#allocation2 + $0x6c] sm:$0xf] }
 0x4b8   : > { %6094 = vst.msk [vmem:[#allocation3 + $0x54] sm:$0xf] %vm2017_vm1, %v6020_v25  ;;  %6095 = vst.msk [vmem:[#allocation3 + $0x58] sm:$0xf] %vm2017_vm1, %v6022_v26  ;;  %v8765_v25 = vrot.slane %v6683_v17, 9  ;;  %v6807_v10 = vrot.slane %v6805_v20, 4  ;;  %v7416_v63 = vor.u32 %v7415_v62, %v7412_v61 }
 0x4b9   : > { %7643 = vrot.lane.b32.xlu1 %v7360_v22, %s9081_s7  ;;  %7645 = vrot.lane.b32.xlu0 %v7374_v29, %s9081_s7  ;;  %v6320_v22 = vsel %vm9195_vm7, %v6315_v9, %v6319_v12  ;;  %v6687_v26 = vld [vmem:[#allocation2 + $0x64] sm:$0xf]  ;;  %v7211_v29 = vld [vmem:[#allocation2 + $0x60] sm:$0xf]  ;;  %v6344_v24 = vsel %vm9195_vm7, %v6339_v11, %v6343_v31  ;;  %v7425_v9 = vrot.slane %v7423_v30, 4  ;;  %v7405_v12 = vshll.u32 %v7213_v5, 16 }
 0x4ba   : > { %v6806_v28 = vsel %vm9486_vm13, %v8765_v25, %v6805_v20  ;;  %v6812_v27 = vrot.slane %v6687_v26, 5  ;;  %v7389_v34 = vshll.u32 %v7211_v29, 16  ;;  %v6809_v46 = vsel %vm9486_vm13, %v6807_v10, %v6808_v3  ;;  %v7016_v17 = vld [vmem:[#allocation2 + $0x70] sm:$0xf]  ;;  %v7771_v25 = vld [vmem:[#allocation2 + $0x60] sm:$0xe] }
 0x4bb   : > { %v6024_v43 = vpop.permute.xlu1 %6023  ;;  %v6026_v44 = vpop.permute.xlu0 %6025  ;;  %v7772_v26 = vld [vmem:[#allocation2 + $0x64] sm:$0xf]  ;;  %v7407_v31 = vrot.slane %v7405_v12, 5  ;;  %v6132_v10 = vld [vmem:[#allocation2 + $0x78] sm:$0xf] }
 0x4bc   : > { %6096 = vst.msk [vmem:[#allocation3 + $0x5c] sm:$0xf] %vm2017_vm1, %v6024_v43  ;;  %6097 = vst.msk [vmem:[#allocation3 + $0x60] sm:$0xf] %vm2017_vm1, %v6026_v44  ;;  %v7395_v43 = vshll.u32 %v7212_v38, 16  ;;  %v7399_v44 = vshrl.u32 %v7212_v38, 16  ;;  %v6813_v50 = vsel %vm9486_vm13, %v8766_v16, %v6812_v27 }
 0x4bd   : > { %7647 = vrot.lane.b32.xlu1 %v7384_v45, %s9081_s7  ;;  %7977 = vrot.lane.b32.xlu0 %v7880_v39, %s9082_s12  ;;  %v7386_v39 = vshrl.u32 %v7211_v29, 16  ;;  %v6814_v35 = vrot.slane %v6812_v27, 4  ;;  %v7391_v54 = vrot.slane %v7389_v34, 5  ;;  %v8781_v38 = vrot.slane %v7771_v25, 9  ;;  %v7775_v3 = vld [vmem:[#allocation2 + $0x70] sm:$0xf] }
 0x4be   : > { %v6355_v16 = vshll.u32 %v6130_v32, 16 }
 0x4bf   : > { %v6028_v51 = vpop.permute.xlu1 %6027  ;;  %v6538_v55 = vpop.permute.xlu0 %6537  ;;  %v7388_v57 = vrot.slane %v7386_v39, 4 }
 0x4c0   : > { %6098 = vst.msk [vmem:[#allocation3 + $0x64] sm:$0xf] %vm2017_vm1, %v6028_v51  ;;  %v6815_v51 = vrot.slane %v6688_v47, 5  ;;  %v6373_v47 = vshll.u32 %v6132_v10, 16 }
 0x4c1   : > { %6633 = vst.msk [vmem:[#allocation3] sm:$0xf] %vm2578_vm2, %v6538_v55  ;;  %7979 = vrot.lane.b32.xlu1 %v7883_v59, %s9082_s12  ;;  %7981 = vrot.lane.b32.xlu0 %v7887_v58, %s9082_s12  ;;  %v7397_v55 = vrot.slane %v7395_v43, 5  ;;  %v7401_v59 = vrot.slane %v7399_v44, 4  ;;  %v7392_v4 = vor.u32 %v7391_v54, %v7388_v57  ;;  %v6359_v43 = vshrl.u32 %v6130_v32, 16 }
 0x4c2   : > { %v6816_v1 = vsel %vm9486_vm13, %v6814_v35, %v6815_v51  ;;  %v7774_v57 = vld [vmem:[#allocation2 + $0x6c] sm:$0xe]  ;;  %v7900_v54 = vrot.slane %v7775_v3, 5  ;;  %v7217_v3 = vld [vmem:[#allocation2 + $0x78] sm:$0xf] }
 0x4c3   : > { %v6540_v41 = vpop.permute.xlu1 %6539  ;;  %v6542_v7 = vpop.permute.xlu0 %6541  ;;  %v7393_v6 = vrot.slane %v7392_v4, 4  ;;  %v7776_v4 = vld [vmem:[#allocation2 + $0x74] sm:$0x1] }
 0x4c4   : > { %6634 = vst.msk [vmem:[#allocation3 + $0x4] sm:$0xf] %vm2578_vm2, %v6540_v41  ;;  %6635 = vst.msk [vmem:[#allocation3 + $0x8] sm:$0xf] %vm2578_vm2, %v6542_v7  ;;  %v7402_v41 = vor.u32 %v7401_v59, %v7397_v55  ;;  %v6357_v59 = vrot.slane %v6355_v16, 5 }
 0x4c5   : > { %7983 = vrot.lane.b32.xlu1 %v7890_v53, %s9082_s12  ;;  %6561 = vrot.lane.b32.xlu0 %v6310_v8, %s9078_s27  ;;  %v7421_v8 = vrot.slane %v7419_v0, 5  ;;  %v7398_v29 = vsel %vm9195_vm7, %v7393_v6, %v7397_v55  ;;  %v6375_v0 = vrot.slane %v6373_v47, 5  ;;  %v6692_v47 = vld [vmem:[#allocation2 + $0x78] sm:$0xe] }
 0x4c7   : > { %v6544_v18 = vpop.permute.xlu1 %6543  ;;  %v6874_v19 = vpop.permute.xlu0 %6873  ;;  %v7426_v11 = vor.u32 %v7425_v9, %v7421_v8 }
 0x4c8   : > { %6636 = vst.msk [vmem:[#allocation3 + $0xc] sm:$0xf] %vm2578_vm2, %v6544_v18  ;;  %v7403_v18 = vrot.slane %v7402_v41, 4 }
 0x4c9   : > { %6969 = vst.msk [vmem:[#allocation3] sm:$0xf] %vm2915_vm3, %v6874_v19  ;;  %6563 = vrot.lane.b32.xlu1 %v6320_v22, %s9078_s27  ;;  %6565 = vrot.lane.b32.xlu0 %v6334_v23, %s9078_s27  ;;  %v7216_v19 = vld [vmem:[#allocation2 + $0x74] sm:$0x1]  ;;  %v7417_v23 = vrot.slane %v7416_v63, 4  ;;  %v7427_v42 = vrot.slane %v7426_v11, 4 }
 0x4ca   : > { %v7408_v37 = vsel %vm9195_vm7, %v7403_v18, %v7407_v31  ;;  %v7902_v63 = vrot.slane %v7900_v54, 4  ;;  %v6134_v18 = vld [vmem:[#allocation2 + $0x80] sm:$0x1]  ;;  %v6690_v31 = vld [vmem:[#allocation2 + $0x70] sm:$0xf] }
 0x4cb   : > { %v6876_v33 = vpop.permute.xlu1 %6875  ;;  %v6878_v36 = vpop.permute.xlu0 %6877  ;;  %v7422_v34 = vsel %vm9195_vm7, %v7417_v23, %v7421_v8  ;;  %v6131_v8 = vld [vmem:[#allocation2 + $0x74] sm:$0x1] }
 0x4cc   : > { %6970 = vst.msk [vmem:[#allocation3 + $0x4] sm:$0xf] %vm2915_vm3, %v6876_v33  ;;  %6971 = vst.msk [vmem:[#allocation3 + $0x8] sm:$0xf] %vm2915_vm3, %v6878_v36  ;;  %v6346_v33 = vshrl.u32 %v6129_v15, 16  ;;  %v6349_v36 = vshll.u32 %v6129_v15, 16 }
 0x4cd   : > { %6567 = vrot.lane.b32.xlu1 %v6344_v24, %s9078_s27  ;;  %6897 = vrot.lane.b32.xlu0 %v6806_v28, %s9079_s28  ;;  %v7429_v28 = vshll.u32 %v7216_v19, 16  ;;  %v7893_v24 = vrot.slane %v7772_v26, 5  ;;  %v7903_v15 = vrot.slane %v7776_v4, 5 }
 0x4ce   : > { %v6348_v44 = vrot.slane %v6346_v33, 4  ;;  %v6389_v33 = vshll.u32 %v6134_v18, 16 }
 0x4cf   : > { %v6880_v45 = vpop.permute.xlu1 %6879  ;;  %v7066_v56 = vpop.permute.xlu0 %7065  ;;  %v7431_v48 = vrot.slane %v7429_v28, 5  ;;  %v7894_v49 = vsel %vm9486_vm13, %v8781_v38, %v7893_v24  ;;  %v7895_v35 = vrot.slane %v7893_v24, 4  ;;  %v6819_v38 = vrot.slane %v6690_v31, 5  ;;  %v7019_v31 = vld [vmem:[#allocation2 + $0x84] sm:$0xf] }
 0x4d0   : > { %6972 = vst.msk [vmem:[#allocation3 + $0xc] sm:$0xf] %vm2915_vm3, %v6880_v45  ;;  %v6351_v45 = vrot.slane %v6349_v36, 5  ;;  %v6689_v36 = vld [vmem:[#allocation2 + $0x6c] sm:$0xe]  ;;  %v6391_v16 = vrot.slane %v6389_v33, 5 }
 0x4d1   : > { %7161 = vst.msk [vmem:[#allocation3] sm:$0xf] %vm3109_vm5, %v7066_v56  ;;  %6899 = vrot.lane.b32.xlu1 %v6809_v46, %s9079_s28  ;;  %6901 = vrot.lane.b32.xlu0 %v6813_v50, %s9079_s28  ;;  %v6133_v56 = vld [vmem:[#allocation2 + $0x7c] sm:$0xf]  ;;  %v6370_v46 = vshrl.u32 %v6132_v10, 16  ;;  %v7432_v55 = vsel %vm9195_vm7, %v7427_v42, %v7431_v48 }
 0x4d2   : > { %v7773_v50 = vld [vmem:[#allocation2 + $0x68] sm:$0x1]  ;;  %v6352_v61 = vor.u32 %v6351_v45, %v6348_v44  ;;  %v6383_v30 = vshrl.u32 %v6133_v56, 16  ;;  %v6693_v42 = vld [vmem:[#allocation2 + $0x7c] sm:$0xf] }
 0x4d3   : > { %v7068_v58 = vpop.permute.xlu1 %7067  ;;  %v7070_v60 = vpop.permute.xlu0 %7069  ;;  %v6372_v62 = vrot.slane %v6370_v46, 4  ;;  %v6821_v46 = vrot.slane %v6819_v38, 4  ;;  %v7218_v48 = vld [vmem:[#allocation2 + $0x7c] sm:$0xf] }
 0x4d4   : > { %7162 = vst.msk [vmem:[#allocation3 + $0x4] sm:$0xf] %vm3109_vm5, %v7068_v58  ;;  %7163 = vst.msk [vmem:[#allocation3 + $0x8] sm:$0xf] %vm3109_vm5, %v7070_v60  ;;  %v6361_v58 = vrot.slane %v6359_v43, 4  ;;  %v6379_v60 = vshll.u32 %v6133_v56, 16 }
 0x4d5   : > { %6903 = vrot.lane.b32.xlu1 %v6816_v1, %s9079_s28  ;;  %7089 = vrot.lane.b32.xlu0 %v7013_v2, %s9080_s29  ;;  %v7896_v1 = vrot.slane %v7773_v50, 5  ;;  %v8782_v2 = vrot.slane %v7774_v57, 9  ;;  %v6385_v12 = vrot.slane %v6383_v30, 4  ;;  %v6691_v43 = vld [vmem:[#allocation2 + $0x74] sm:$0x1]  ;;  %v6826_v50 = vrot.slane %v6693_v42, 5 }
 0x4d6   : > { %v6362_v9 = vor.u32 %v6361_v58, %v6357_v59  ;;  %v6381_v6 = vrot.slane %v6379_v60, 5  ;;  %v7437_v57 = vshll.u32 %v7217_v3, 16  ;;  %v7778_v42 = vld [vmem:[#allocation2 + $0x7c] sm:$0xf] }
 0x4d7   : > { %v7072_v7 = vpop.permute.xlu1 %7071  ;;  %v7626_v53 = vpop.permute.xlu0 %7625 }
 0x4d8   : > { %7164 = vst.msk [vmem:[#allocation3 + $0xc] sm:$0xf] %vm3109_vm5, %v7072_v7  ;;  %v7897_v7 = vsel %vm9486_vm13, %v7895_v35, %v7896_v1  ;;  %v6363_v25 = vrot.slane %v6362_v9, 4  ;;  %v7434_v35 = vshrl.u32 %v7217_v3, 16 }
 0x4d9   : > { %7721 = vst.msk [vmem:[#allocation3] sm:$0xf] %vm3670_vm6, %v7626_v53  ;;  %7091 = vrot.lane.b32.xlu1 %v7014_v13, %s9080_s29  ;;  %7093 = vrot.lane.b32.xlu0 %v7015_v14, %s9080_s29  ;;  %v7901_v53 = vsel %vm9486_vm13, %v8782_v2, %v7900_v54  ;;  %v6353_v13 = vrot.slane %v6352_v61, 4  ;;  %v6376_v14 = vor.u32 %v6375_v0, %v6372_v62  ;;  %v7220_v54 = vld [vmem:[#allocation2 + $0x84] sm:$0xf]  ;;  %v6828_v2 = vrot.slane %v6826_v50, 4 }
 0x4da   : > { %v6694_v62 = vld [vmem:[#allocation2 + $0x80] sm:$0x1]  ;;  %v7458_v0 = vshrl.u32 %v7220_v54, 16  ;;  %v7461_v30 = vshll.u32 %v7220_v54, 16  ;;  %v7436_v4 = vrot.slane %v7434_v35, 4 }
 0x4db   : > { %v7628_v20 = vpop.permute.xlu1 %7627  ;;  %v7630_v22 = vpop.permute.xlu0 %7629  ;;  %v6358_v11 = vsel %vm9195_vm7, %v6353_v13, %v6357_v59  ;;  %v6377_v26 = vrot.slane %v6376_v14, 4  ;;  %v7447_v59 = vshrl.u32 %v7218_v48, 16 }
 0x4dc   : > { %7722 = vst.msk [vmem:[#allocation3 + $0x4] sm:$0xf] %vm3670_vm6, %v7628_v20  ;;  %7723 = vst.msk [vmem:[#allocation3 + $0x8] sm:$0xf] %vm3670_vm6, %v7630_v22  ;;  %v7904_v22 = vsel %vm9486_vm13, %v7902_v63, %v7903_v15  ;;  %v7460_v13 = vrot.slane %v7458_v0, 4  ;;  %v7463_v14 = vrot.slane %v7461_v30, 5 }
 0x4dd   : > { %7095 = vrot.lane.b32.xlu1 %v7016_v17, %s9080_s29  ;;  %7649 = vrot.lane.b32.xlu0 %v7398_v29, %s9081_s7  ;;  %v6365_v17 = vshll.u32 %v6131_v8, 16  ;;  %v6386_v29 = vor.u32 %v6385_v12, %v6381_v6  ;;  %v7449_v63 = vrot.slane %v7447_v59, 4 }
 0x4df   : > { %v7632_v27 = vpop.permute.xlu1 %7631  ;;  %v7962_v39 = vpop.permute.xlu0 %7961  ;;  %v6367_v32 = vrot.slane %v6365_v17, 5  ;;  %v7017_v17 = vld [vmem:[#allocation2 + $0x78] sm:$0xf] }
 0x4e0   : > { %7724 = vst.msk [vmem:[#allocation3 + $0xc] sm:$0xf] %vm3670_vm6, %v7632_v27  ;;  %v6382_v27 = vsel %vm9195_vm7, %v6377_v26, %v6381_v6 }
 0x4e1   : > { %8057 = vst.msk [vmem:[#allocation3] sm:$0xf] %vm4007_vm11, %v7962_v39  ;;  %7651 = vrot.lane.b32.xlu1 %v7408_v37, %s9081_s7  ;;  %7653 = vrot.lane.b32.xlu0 %v7422_v34, %s9081_s7  ;;  %v6368_v24 = vsel %vm9195_vm7, %v6363_v25, %v6367_v32  ;;  %v6387_v39 = vrot.slane %v6386_v29, 4  ;;  %v8767_v34 = vrot.slane %v6689_v36, 9  ;;  %v7018_v29 = vld [vmem:[#allocation2 + $0x7c] sm:$0xf] }
 0x4e2   : > { %v6135_v36 = vld [vmem:[#allocation2 + $0x84] sm:$0xf] }
 0x4e3   : > { %v7964_v40 = vpop.permute.xlu1 %7963  ;;  %v7966_v51 = vpop.permute.xlu0 %7965  ;;  %v6820_v56 = vsel %vm9486_vm13, %v8767_v34, %v6819_v38  ;;  %v7777_v34 = vld [vmem:[#allocation2 + $0x78] sm:$0xe] }
 0x4e4   : > { %8058 = vst.msk [vmem:[#allocation3 + $0x4] sm:$0xf] %vm4007_vm11, %v7964_v40  ;;  %8059 = vst.msk [vmem:[#allocation3 + $0x8] sm:$0xf] %vm4007_vm11, %v7966_v51  ;;  %v6822_v40 = vrot.slane %v6691_v43, 5  ;;  %v8768_v51 = vrot.slane %v6692_v47, 9 }
 0x4e5   : > { %7655 = vrot.lane.b32.xlu1 %v7432_v55, %s9081_s7  ;;  %7985 = vrot.lane.b32.xlu0 %v7894_v49, %s9082_s12  ;;  %v6392_v49 = vsel %vm9195_vm7, %v6387_v39, %v6391_v16  ;;  %v7443_v55 = vshll.u32 %v7218_v48, 16  ;;  %v6136_v43 = vld [vmem:[#allocation2 + $0x88] sm:$0xf]  ;;  %v8783_v48 = vrot.slane %v7777_v34, 9 }
 0x4e6   : > { %v6823_v61 = vsel %vm9486_vm13, %v6821_v46, %v6822_v40  ;;  %v6827_v1 = vsel %vm9486_vm13, %v8768_v51, %v6826_v50  ;;  %v6138_v46 = vld [vmem:[#allocation2 + $0x90] sm:$0xf]  ;;  %v7781_v40 = vld [vmem:[#allocation2 + $0x88] sm:$0xf]  ;;  %v6403_v51 = vshll.u32 %v6136_v43, 16 }
 0x4e7   : > { %v7968_v5 = vpop.permute.xlu1 %7967  ;;  %v6546_v41 = vpop.permute.xlu0 %6545 }
 0x4e8   : > { %8060 = vst.msk [vmem:[#allocation3 + $0xc] sm:$0xf] %vm4007_vm11, %v7968_v5  ;;  %v7439_v5 = vrot.slane %v7437_v57, 5 }
 0x4e9   : > { %6637 = vst.msk [vmem:[#allocation3 + $0x10] sm:$0xf] %vm2578_vm2, %v6546_v41  ;;  %7987 = vrot.lane.b32.xlu1 %v7897_v7, %s9082_s12  ;;  %7989 = vrot.lane.b32.xlu0 %v7901_v53, %s9082_s12  ;;  %v7221_v41 = vld [vmem:[#allocation2 + $0x88] sm:$0xf]  ;;  %v6829_v7 = vrot.slane %v6694_v62, 5  ;;  %v7445_v53 = vrot.slane %v7443_v55, 5 }
 0x4ea   : > { %v7467_v6 = vshll.u32 %v7221_v41, 16  ;;  %v7471_v12 = vshrl.u32 %v7221_v41, 16  ;;  %v7440_v18 = vor.u32 %v7439_v5, %v7436_v4  ;;  %v6407_v55 = vshrl.u32 %v6136_v43, 16  ;;  %v7780_v4 = vld [vmem:[#allocation2 + $0x84] sm:$0xe] }
 0x4eb   : > { %v6548_v19 = vpop.permute.xlu1 %6547  ;;  %v6550_v20 = vpop.permute.xlu0 %6549  ;;  %v9049_v23 = vld [vmem:[#allocation3] sm:$0xff]   ;;  %v6830_v15 = vsel %vm9486_vm13, %v6828_v2, %v6829_v7  ;;  %v6421_v62 = vshll.u32 %v6138_v46, 16  ;;  %v7914_v5 = vrot.slane %v7781_v40, 5  ;;  %v7223_v40 = vld [vmem:[#allocation2 + $0x90] sm:$0xf] }
 0x4ec   : > { %6638 = vst.msk [vmem:[#allocation3 + $0x14] sm:$0xf] %vm2578_vm2, %v6548_v19  ;;  %6639 = vst.msk [vmem:[#allocation3 + $0x18] sm:$0xf] %vm2578_vm2, %v6550_v20  ;;  %8977 = vmatprep.mubr.msk.bf16.mxu1 %vm4173_vm12, %v9049_v23  ;;  %v7219_v19 = vld [vmem:[#allocation2 + $0x80] sm:$0x1]  ;;  %v7450_v20 = vor.u32 %v7449_v63, %v7445_v53 }
 0x4ed   : > { %7991 = vrot.lane.b32.xlu1 %v7904_v22, %s9082_s12  ;;  %6569 = vrot.lane.b32.xlu0 %v6358_v11, %s9078_s27  ;;  %v7464_v11 = vor.u32 %v7463_v14, %v7460_v13  ;;  %v7469_v25 = vrot.slane %v7467_v6, 5  ;;  %v7473_v26 = vrot.slane %v7471_v12, 4  ;;  %v7441_v32 = vrot.slane %v7440_v18, 4  ;;  %v7782_v18 = vld [vmem:[#allocation2 + $0x8c] sm:$0x1] }
 0x4ee   : > { %v7453_v33 = vshll.u32 %v7219_v19, 16  ;;  %v6405_v63 = vrot.slane %v6403_v51, 5  ;;  %v6423_v6 = vrot.slane %v6421_v62, 5 }
 0x4ef   : > { %v6552_v28 = vpop.permute.xlu1 %6551  ;;  %v6882_v10 = vpop.permute.xlu0 %6881  ;;  %v9050_v37 = vld [vmem:[#allocation3 + $0x8] sm:$0xff]   ;;  %v7474_v39 = vor.u32 %v7473_v26, %v7469_v25  ;;  %v7446_v3 = vsel %vm9195_vm7, %v7441_v32, %v7445_v53 }
 0x4f0   : > { %6640 = vst.msk [vmem:[#allocation3 + $0x1c] sm:$0xf] %vm2578_vm2, %v6552_v28  ;;  %8978 = vmatmul.mubr.msk.bf16.vlgmr.msra.gmra.mxu1 %vm4173_vm12, %v9050_v37  ;;  %v7020_v28 = vld [vmem:[#allocation2 + $0x88] sm:$0xf]  ;;  %v7222_v37 = vld [vmem:[#allocation2 + $0x8c] sm:$0x1] }
 0x4f1   : > { %6973 = vst.msk [vmem:[#allocation3 + $0x10] sm:$0xf] %vm2915_vm3, %v6882_v10  ;;  %6571 = vrot.lane.b32.xlu1 %v6368_v24, %s9078_s27  ;;  %6573 = vrot.lane.b32.xlu0 %v6382_v27, %s9078_s27  ;;  %v7451_v10 = vrot.slane %v7450_v20, 4  ;;  %v7465_v27 = vrot.slane %v7464_v11, 4  ;;  %v7455_v16 = vrot.slane %v7453_v33, 5  ;;  %v7475_v54 = vrot.slane %v7474_v39, 4 }
 0x4f2   : > { %v7916_v11 = vrot.slane %v7914_v5, 4 }
 0x4f3   : > { %v6884_v44 = vpop.permute.xlu1 %6883  ;;  %v6886_v45 = vpop.permute.xlu0 %6885  ;;  %v7456_v47 = vsel %vm9195_vm7, %v7451_v10, %v7455_v16  ;;  %v7470_v57 = vsel %vm9195_vm7, %v7465_v27, %v7469_v25  ;;  %v6137_v25 = vld [vmem:[#allocation2 + $0x8c] sm:$0x1]  ;;  %v6140_v10 = vld [vmem:[#allocation2 + $0x98] sm:$0x1] }
 0x4f4   : > { %6974 = vst.msk [vmem:[#allocation3 + $0x14] sm:$0xf] %vm2915_vm3, %v6884_v44  ;;  %6975 = vst.msk [vmem:[#allocation3 + $0x18] sm:$0xf] %vm2915_vm3, %v6886_v45  ;;  %v6394_v44 = vshrl.u32 %v6135_v36, 16  ;;  %v6397_v45 = vshll.u32 %v6135_v36, 16 }
 0x4f5   : > { %6575 = vrot.lane.b32.xlu1 %v6392_v49, %s9078_s27  ;;  %6905 = vrot.lane.b32.xlu0 %v6820_v56, %s9079_s28  ;;  %v7477_v56 = vshll.u32 %v7222_v37, 16  ;;  %v7907_v49 = vrot.slane %v7778_v42, 5  ;;  %v7917_v36 = vrot.slane %v7782_v18, 5  ;;  %v6696_v37 = vld [vmem:[#allocation2 + $0x88] sm:$0xf] }
 0x4f6   : > { %v6396_v59 = vrot.slane %v6394_v44, 4  ;;  %v6437_v44 = vshll.u32 %v6140_v10, 16  ;;  %v7227_v18 = vld [vmem:[#allocation2 + $0xa0] sm:$0xf] }
 0x4f7   : > { %v6888_v58 = vpop.permute.xlu1 %6887  ;;  %v7074_v60 = vpop.permute.xlu0 %7073  ;;  %v7479_v0 = vrot.slane %v7477_v56, 5  ;;  %v7908_v30 = vsel %vm9486_vm13, %v8783_v48, %v7907_v49  ;;  %v7909_v2 = vrot.slane %v7907_v49, 4  ;;  %v7918_v27 = vsel %vm9486_vm13, %v7916_v11, %v7917_v36  ;;  %v6695_v48 = vld [vmem:[#allocation2 + $0x84] sm:$0xe] }
 0x4f8   : > { %6976 = vst.msk [vmem:[#allocation3 + $0x1c] sm:$0xf] %vm2915_vm3, %v6888_v58  ;;  %v6399_v58 = vrot.slane %v6397_v45, 5  ;;  %v6833_v45 = vrot.slane %v6696_v37, 5  ;;  %v6439_v51 = vrot.slane %v6437_v44, 5  ;;  %v7519_v10 = vshrl.u32 %v7227_v18, 16 }
 0x4f9   : > { %7165 = vst.msk [vmem:[#allocation3 + $0x10] sm:$0xf] %vm3109_vm5, %v7074_v60  ;;  %6907 = vrot.lane.b32.xlu1 %v6823_v61, %s9079_s28  ;;  %6909 = vrot.lane.b32.xlu0 %v6827_v1, %s9079_s28  ;;  %v6139_v60 = vld [vmem:[#allocation2 + $0x94] sm:$0xf]  ;;  %v6418_v61 = vshrl.u32 %v6138_v46, 16  ;;  %v7480_v53 = vsel %vm9195_vm7, %v7475_v54, %v7479_v0 }
 0x4fa   : > { %v7779_v1 = vld [vmem:[#allocation2 + $0x80] sm:$0x1]  ;;  %v6400_v13 = vor.u32 %v6399_v58, %v6396_v59  ;;  %v6431_v12 = vshrl.u32 %v6139_v60, 16  ;;  %v6699_v54 = vld [vmem:[#allocation2 + $0x94] sm:$0xf]  ;;  %v6835_v59 = vrot.slane %v6833_v45, 4 }
 0x4fb   : > { %v7076_v8 = vpop.permute.xlu1 %7075  ;;  %v7078_v9 = vpop.permute.xlu0 %7077  ;;  %v6420_v14 = vrot.slane %v6418_v61, 4  ;;  %v6698_v58 = vld [vmem:[#allocation2 + $0x90] sm:$0xe]  ;;  %v6840_v0 = vrot.slane %v6699_v54, 5  ;;  %v7225_v37 = vld [vmem:[#allocation2 + $0x98] sm:$0x1] }
 0x4fc   : > { %7166 = vst.msk [vmem:[#allocation3 + $0x14] sm:$0xf] %vm3109_vm5, %v7076_v8  ;;  %7167 = vst.msk [vmem:[#allocation3 + $0x18] sm:$0xf] %vm3109_vm5, %v7078_v9  ;;  %v6409_v8 = vrot.slane %v6407_v55, 4  ;;  %v6427_v9 = vshll.u32 %v6139_v60, 16 }
 0x4fd   : > { %6911 = vrot.lane.b32.xlu1 %v6830_v15, %s9079_s28  ;;  %7097 = vrot.lane.b32.xlu0 %v7017_v17, %s9080_s29  ;;  %v7910_v15 = vrot.slane %v7779_v1, 5  ;;  %v8784_v17 = vrot.slane %v7780_v4, 9  ;;  %v6433_v33 = vrot.slane %v6431_v12, 4  ;;  %v8769_v55 = vrot.slane %v6695_v48, 9  ;;  %v7784_v48 = vld [vmem:[#allocation2 + $0x94] sm:$0xf] }
 0x4fe   : > { %v6410_v26 = vor.u32 %v6409_v8, %v6405_v63  ;;  %v6429_v32 = vrot.slane %v6427_v9, 5  ;;  %v7482_v4 = vshrl.u32 %v7223_v40, 16  ;;  %v7501_v44 = vshll.u32 %v7225_v37, 16  ;;  %v7783_v54 = vld [vmem:[#allocation2 + $0x90] sm:$0xe] }
 0x4ff   : > { %v7080_v22 = vpop.permute.xlu1 %7079  ;;  %v7634_v23 = vpop.permute.xlu0 %7633  ;;  %v6834_v1 = vsel %vm9486_vm13, %v8769_v55, %v6833_v45  ;;  %v7228_v45 = vld [vmem:[#allocation2 + $0xa4] sm:$0x1]  ;;  %v6141_v55 = vld [vmem:[#allocation2 + $0x9c] sm:$0xf] }
 0x500   : > { %7168 = vst.msk [vmem:[#allocation3 + $0x1c] sm:$0xf] %vm3109_vm5, %v7080_v22  ;;  %v7911_v22 = vsel %vm9486_vm13, %v7909_v2, %v7910_v15  ;;  %v6411_v42 = vrot.slane %v6410_v26, 4  ;;  %v6434_v16 = vor.u32 %v6433_v33, %v6429_v32  ;;  %v7224_v2 = vld [vmem:[#allocation2 + $0x94] sm:$0xf]  ;;  %v7484_v15 = vrot.slane %v7482_v4, 4 }
 0x501   : > { %7725 = vst.msk [vmem:[#allocation3 + $0x10] sm:$0xf] %vm3670_vm6, %v7634_v23  ;;  %7099 = vrot.lane.b32.xlu1 %v7018_v29, %s9080_s29  ;;  %7101 = vrot.lane.b32.xlu0 %v7019_v31, %s9080_s29  ;;  %v7915_v23 = vsel %vm9486_vm13, %v8784_v17, %v7914_v5  ;;  %v6401_v29 = vrot.slane %v6400_v13, 4  ;;  %v6424_v31 = vor.u32 %v6423_v6, %v6420_v14  ;;  %v7485_v5 = vshll.u32 %v7223_v40, 16 }
 0x502   : > { %v6842_v14 = vrot.slane %v6840_v0, 4  ;;  %v7491_v6 = vshll.u32 %v7224_v2, 16  ;;  %v7495_v12 = vshrl.u32 %v7224_v2, 16  ;;  %v7503_v40 = vrot.slane %v7501_v44, 5  ;;  %v6142_v2 = vld [vmem:[#allocation2 + $0xa0] sm:$0xf] }
 0x503   : > { %v7636_v38 = vpop.permute.xlu1 %7635  ;;  %v7638_v24 = vpop.permute.xlu0 %7637  ;;  %v6406_v34 = vsel %vm9195_vm7, %v6401_v29, %v6405_v63  ;;  %v6700_v63 = vld [vmem:[#allocation2 + $0x98] sm:$0x1]  ;;  %v7487_v17 = vrot.slane %v7485_v5, 5 }
 0x504   : > { %7726 = vst.msk [vmem:[#allocation3 + $0x14] sm:$0xf] %vm3670_vm6, %v7636_v38  ;;  %7727 = vst.msk [vmem:[#allocation3 + $0x18] sm:$0xf] %vm3670_vm6, %v7638_v24  ;;  %v7493_v26 = vrot.slane %v7491_v6, 5  ;;  %v7497_v29 = vrot.slane %v7495_v12, 4 }
 0x505   : > { %7103 = vrot.lane.b32.xlu1 %v7020_v28, %s9080_s29  ;;  %7657 = vrot.lane.b32.xlu0 %v7446_v3, %s9081_s7  ;;  %v6413_v28 = vshll.u32 %v6137_v25, 16  ;;  %v6425_v3 = vrot.slane %v6424_v31, 4  ;;  %v7515_v31 = vshll.u32 %v7227_v18, 16  ;;  %v7488_v33 = vor.u32 %v7487_v17, %v7484_v15 }
 0x506   : > { %v6451_v17 = vshll.u32 %v6142_v2, 16  ;;  %v6455_v18 = vshrl.u32 %v6142_v2, 16  ;;  %v6701_v2 = vld [vmem:[#allocation2 + $0x9c] sm:$0xe] }
 0x507   : > { %v7640_v50 = vpop.permute.xlu1 %7639  ;;  %v7970_v35 = vpop.permute.xlu0 %7969  ;;  %v6415_v43 = vrot.slane %v6413_v28, 5 }
 0x508   : > { %7728 = vst.msk [vmem:[#allocation3 + $0x1c] sm:$0xf] %vm3670_vm6, %v7640_v50  ;;  %v6430_v50 = vsel %vm9195_vm7, %v6425_v3, %v6429_v32  ;;  %v7021_v32 = vld [vmem:[#allocation2 + $0x90] sm:$0xf] }
 0x509   : > { %8061 = vst.msk [vmem:[#allocation3 + $0x10] sm:$0xf] %vm4007_vm11, %v7970_v35  ;;  %7659 = vrot.lane.b32.xlu1 %v7456_v47, %s9081_s7  ;;  %7661 = vrot.lane.b32.xlu0 %v7470_v57, %s9081_s7  ;;  %v6416_v49 = vsel %vm9195_vm7, %v6411_v42, %v6415_v43  ;;  %v6435_v35 = vrot.slane %v6434_v16, 4  ;;  %v6697_v57 = vld [vmem:[#allocation2 + $0x8c] sm:$0x1]  ;;  %v7489_v42 = vrot.slane %v7488_v33, 4 }
 0x50a   : > { %v6836_v62 = vrot.slane %v6697_v57, 5  ;;  %v7517_v16 = vrot.slane %v7515_v31, 5  ;;  %v7521_v43 = vrot.slane %v7519_v10, 4  ;;  %v7788_v31 = vld [vmem:[#allocation2 + $0xa4] sm:$0x1]  ;;  %v6457_v10 = vrot.slane %v6455_v18, 4 }
 0x50b   : > { %v7972_v41 = vpop.permute.xlu1 %7971  ;;  %v7974_v7 = vpop.permute.xlu0 %7973 }
 0x50c   : > { %8062 = vst.msk [vmem:[#allocation3 + $0x14] sm:$0xf] %vm4007_vm11, %v7972_v41  ;;  %8063 = vst.msk [vmem:[#allocation3 + $0x18] sm:$0xf] %vm4007_vm11, %v7974_v7  ;;  %v8770_v41 = vrot.slane %v6698_v58, 9  ;;  %v7522_v57 = vor.u32 %v7521_v43, %v7517_v16 }
 0x50d   : > { %7663 = vrot.lane.b32.xlu1 %v7480_v53, %s9081_s7  ;;  %7993 = vrot.lane.b32.xlu0 %v7908_v30, %s9082_s12  ;;  %v6440_v30 = vsel %vm9195_vm7, %v6435_v35, %v6439_v51  ;;  %v7226_v7 = vld [vmem:[#allocation2 + $0x9c] sm:$0xf]  ;;  %v6837_v53 = vsel %vm9486_vm13, %v6835_v59, %v6836_v62  ;;  %v7525_v51 = vshll.u32 %v7228_v45, 16  ;;  %v7921_v59 = vrot.slane %v7784_v48, 5  ;;  %v7785_v58 = vld [vmem:[#allocation2 + $0x98] sm:$0x1] }
 0x50e   : > { %v6841_v13 = vsel %vm9486_vm13, %v8770_v41, %v6840_v0  ;;  %v7523_v5 = vrot.slane %v7522_v57, 4  ;;  %v6442_v41 = vshrl.u32 %v6141_v55, 16 }
 0x50f   : > { %v7976_v19 = vpop.permute.xlu1 %7975  ;;  %v6554_v20 = vpop.permute.xlu0 %6553 }
 0x510   : > { %8064 = vst.msk [vmem:[#allocation3 + $0x1c] sm:$0xf] %vm4007_vm11, %v7976_v19  ;;  %v7506_v19 = vshrl.u32 %v7226_v7, 16 }
 0x511   : > { %6641 = vst.msk [vmem:[#allocation3 + $0x20] sm:$0xf] %vm2578_vm2, %v6554_v20  ;;  %7995 = vrot.lane.b32.xlu1 %v7911_v22, %s9082_s12  ;;  %7997 = vrot.lane.b32.xlu0 %v7915_v23, %s9082_s12  ;;  %v7509_v20 = vshll.u32 %v7226_v7, 16  ;;  %v6843_v22 = vrot.slane %v6700_v63, 5  ;;  %v6445_v7 = vshll.u32 %v6141_v55, 16  ;;  %v7527_v63 = vrot.slane %v7525_v51, 5 }
 0x512   : > { %v7508_v36 = vrot.slane %v7506_v19, 4  ;;  %v5940_v51 = vld [vmem:[#allocation2 + $0xac] sm:$0xf] }
 0x513   : > { %v6556_v38 = vpop.permute.xlu1 %6555  ;;  %v6558_v24 = vpop.permute.xlu0 %6557  ;;  %v9051_v39 = vld [vmem:[#allocation3 + $0x10] sm:$0xff]   ;;  %v6844_v25 = vsel %vm9486_vm13, %v6842_v14, %v6843_v22  ;;  %v7511_v28 = vrot.slane %v7509_v20, 5  ;;  %v7528_v20 = vsel %vm9195_vm7, %v7523_v5, %v7527_v63  ;;  %v6444_v22 = vrot.slane %v6442_v41, 4 }
 0x514   : > { %6642 = vst.msk [vmem:[#allocation3 + $0x24] sm:$0xf] %vm2578_vm2, %v6556_v38  ;;  %6643 = vst.msk [vmem:[#allocation3 + $0x28] sm:$0xf] %vm2578_vm2, %v6558_v24  ;;  %8981 = vmatprep.mubr.msk.bf16.mxu1 %vm4173_vm12, %v9051_v39  ;;  %v7498_v39 = vor.u32 %v7497_v29, %v7493_v26  ;;  %v7229_v63 = vld [vmem:[#allocation2 + $0xa8] sm:$0xf] }
 0x515   : > { %7999 = vrot.lane.b32.xlu1 %v7918_v27, %s9082_s12  ;;  %6577 = vrot.lane.b32.xlu0 %v6406_v34, %s9078_s27  ;;  %v7022_v27 = vld [vmem:[#allocation2 + $0x94] sm:$0xf]  ;;  %v7023_v34 = vld [vmem:[#allocation2 + $0x9c] sm:$0xf]  ;;  %v7512_v3 = vor.u32 %v7511_v28, %v7508_v36  ;;  %v6453_v28 = vrot.slane %v6451_v17, 5  ;;  %v7530_v18 = vshrl.u32 %v7229_v63, 16 }
 0x516   : > { %v7230_v17 = vld [vmem:[#allocation2 + $0xac] sm:$0xf] }
 0x517   : > { %v6560_v56 = vpop.permute.xlu1 %6559  ;;  %v6890_v46 = vpop.permute.xlu0 %6889  ;;  %v9052_v47 = vld [vmem:[#allocation3 + $0x18] sm:$0xff]   ;;  %v7513_v35 = vrot.slane %v7512_v3, 4  ;;  %v6458_v45 = vor.u32 %v6457_v10, %v6453_v28 }
 0x518   : > { %6644 = vst.msk [vmem:[#allocation3 + $0x2c] sm:$0xf] %vm2578_vm2, %v6560_v56  ;;  %8982 = vmatmul.mubr.msk.bf16.gmra.mxu1 %vm4173_vm12, %v9052_v47  ;;  %v7499_v47 = vrot.slane %v7498_v39, 4 }
 0x519   : > { %6977 = vst.msk [vmem:[#allocation3 + $0x20] sm:$0xf] %vm2915_vm3, %v6890_v46  ;;  %6579 = vrot.lane.b32.xlu1 %v6416_v49, %s9078_s27  ;;  %6581 = vrot.lane.b32.xlu0 %v6430_v50, %s9078_s27  ;;  %v7024_v49 = vld [vmem:[#allocation2 + $0xa0] sm:$0xf]  ;;  %v7494_v50 = vsel %vm9195_vm7, %v7489_v42, %v7493_v26  ;;  %v7518_v4 = vsel %vm9195_vm7, %v7513_v35, %v7517_v16  ;;  %v6143_v42 = vld [vmem:[#allocation2 + $0xa4] sm:$0x1] }
 0x51a   : > { %v7504_v0 = vsel %vm9195_vm7, %v7499_v47, %v7503_v40  ;;  %v6146_v40 = vld [vmem:[#allocation2 + $0xb0] sm:$0x1] }
 0x51b   : > { %v6892_v60 = vpop.permute.xlu1 %6891  ;;  %v6894_v61 = vpop.permute.xlu0 %6893 }
 0x51c   : > { %6978 = vst.msk [vmem:[#allocation3 + $0x24] sm:$0xf] %vm2915_vm3, %v6892_v60  ;;  %6979 = vst.msk [vmem:[#allocation3 + $0x28] sm:$0xf] %vm2915_vm3, %v6894_v61  ;;  %v7786_v60 = vld [vmem:[#allocation2 + $0x9c] sm:$0xe] }
 0x51d   : > { %6583 = vrot.lane.b32.xlu1 %v6440_v30, %s9078_s27  ;;  %6913 = vrot.lane.b32.xlu0 %v6834_v1, %s9079_s28  ;;  %v8785_v30 = vrot.slane %v7783_v54, 9  ;;  %v7787_v1 = vld [vmem:[#allocation2 + $0xa0] sm:$0xf]  ;;  %v8786_v15 = vrot.slane %v7786_v60, 9 }
 0x51e   : > { %v7928_v14 = vrot.slane %v7787_v1, 5 }
 0x51f   : > { %v6896_v8 = vpop.permute.xlu1 %6895  ;;  %v7082_v9 = vpop.permute.xlu0 %7081 }
 0x520   : > { %6980 = vst.msk [vmem:[#allocation3 + $0x2c] sm:$0xf] %vm2915_vm3, %v6896_v8  ;;  %v7922_v8 = vsel %vm9486_vm13, %v8785_v30, %v7921_v59  ;;  %v7929_v29 = vsel %vm9486_vm13, %v8786_v15, %v7928_v14  ;;  %v7930_v36 = vrot.slane %v7928_v14, 4  ;;  %v6704_v14 = vld [vmem:[#allocation2 + $0xa8] sm:$0xe] }
 0x521   : > { %7169 = vst.msk [vmem:[#allocation3 + $0x20] sm:$0xf] %vm3109_vm5, %v7082_v9  ;;  %6915 = vrot.lane.b32.xlu1 %v6837_v53, %s9079_s28  ;;  %6917 = vrot.lane.b32.xlu0 %v6841_v13, %s9079_s28  ;;  %v6144_v53 = vld [vmem:[#allocation2 + $0xa8] sm:$0xf]  ;;  %v7923_v9 = vrot.slane %v7921_v59, 4  ;;  %v7924_v13 = vrot.slane %v7785_v58, 5 }
 0x522   : > { %v6466_v19 = vshrl.u32 %v6144_v53, 16  ;;  %v6459_v59 = vrot.slane %v6458_v45, 4 }
 0x523   : > { %v7084_v23 = vpop.permute.xlu1 %7083  ;;  %v7086_v11 = vpop.permute.xlu0 %7085  ;;  %v7925_v26 = vsel %vm9486_vm13, %v7923_v9, %v7924_v13  ;;  %v8771_v9 = vrot.slane %v6701_v2, 9  ;;  %v6703_v13 = vld [vmem:[#allocation2 + $0xa4] sm:$0x1]  ;;  %v7028_v2 = vld [vmem:[#allocation2 + $0xb8] sm:$0xf] }
 0x524   : > { %7170 = vst.msk [vmem:[#allocation3 + $0x24] sm:$0xf] %vm3109_vm5, %v7084_v23  ;;  %7171 = vst.msk [vmem:[#allocation3 + $0x28] sm:$0xf] %vm3109_vm5, %v7086_v11  ;;  %v6447_v23 = vrot.slane %v6445_v7, 5  ;;  %v6469_v11 = vshll.u32 %v6144_v53, 16 }
 0x525   : > { %6919 = vrot.lane.b32.xlu1 %v6844_v25, %s9079_s28  ;;  %7105 = vrot.lane.b32.xlu0 %v7021_v32, %s9080_s29  ;;  %v6145_v25 = vld [vmem:[#allocation2 + $0xac] sm:$0xf]  ;;  %v6468_v37 = vrot.slane %v6466_v19, 4  ;;  %v7533_v19 = vshll.u32 %v7229_v63, 16 }
 0x526   : > { %v6479_v39 = vshrl.u32 %v6145_v25, 16  ;;  %v6705_v53 = vld [vmem:[#allocation2 + $0xac] sm:$0xf] }
 0x527   : > { %v7088_v38 = vpop.permute.xlu1 %7087  ;;  %v7642_v24 = vpop.permute.xlu0 %7641  ;;  %v6854_v15 = vrot.slane %v6705_v53, 5  ;;  %v7535_v10 = vrot.slane %v7533_v19, 5  ;;  %v7790_v53 = vld [vmem:[#allocation2 + $0xac] sm:$0xf] }
 0x528   : > { %7172 = vst.msk [vmem:[#allocation3 + $0x2c] sm:$0xf] %vm3109_vm5, %v7088_v38  ;;  %v6448_v38 = vor.u32 %v6447_v23, %v6444_v22 }
 0x529   : > { %7729 = vst.msk [vmem:[#allocation3 + $0x20] sm:$0xf] %vm3670_vm6, %v7642_v24  ;;  %7107 = vrot.lane.b32.xlu1 %v7022_v27, %s9080_s29  ;;  %7109 = vrot.lane.b32.xlu0 %v7023_v34, %s9080_s29  ;;  %v6471_v24 = vrot.slane %v6469_v11, 5  ;;  %v6475_v27 = vshll.u32 %v6145_v25, 16  ;;  %v7931_v34 = vrot.slane %v7788_v31, 5  ;;  %v6850_v25 = vrot.slane %v6703_v13, 5 }
 0x52a   : > { %v7232_v11 = vld [vmem:[#allocation2 + $0xb4] sm:$0xf]  ;;  %v7539_v31 = vshll.u32 %v7230_v17, 16 }
 0x52b   : > { %v7644_v56 = vpop.permute.xlu1 %7643  ;;  %v7646_v46 = vpop.permute.xlu0 %7645  ;;  %v7932_v43 = vsel %vm9486_vm13, %v7930_v36, %v7931_v34  ;;  %v6472_v47 = vor.u32 %v6471_v24, %v6468_v37  ;;  %v6477_v48 = vrot.slane %v6475_v27, 5  ;;  %v6856_v36 = vrot.slane %v6854_v15, 4 }
 0x52c   : > { %7730 = vst.msk [vmem:[#allocation3 + $0x24] sm:$0xf] %vm3670_vm6, %v7644_v56  ;;  %7731 = vst.msk [vmem:[#allocation3 + $0x28] sm:$0xf] %vm3670_vm6, %v7646_v46  ;;  %v5939_v56 = vld [vmem:[#allocation2 + $0xa8] sm:$0xf] }
 0x52d   : > { %7111 = vrot.lane.b32.xlu1 %v7024_v49, %s9080_s29  ;;  %7665 = vrot.lane.b32.xlu0 %v7494_v50, %s9081_s7  ;;  %v6449_v46 = vrot.slane %v6448_v38, 4  ;;  %v6481_v49 = vrot.slane %v6479_v39, 4  ;;  %v6461_v50 = vshll.u32 %v6143_v42, 16  ;;  %v6473_v58 = vrot.slane %v6472_v47, 4  ;;  %v7233_v42 = vld [vmem:[#allocation2 + $0xb8] sm:$0xf] }
 0x52e   : > { %v7543_v37 = vshrl.u32 %v7230_v17, 16  ;;  %v7554_v27 = vshrl.u32 %v7232_v11, 16  ;;  %v7557_v39 = vshll.u32 %v7232_v11, 16  ;;  %v7541_v45 = vrot.slane %v7539_v31, 5  ;;  %v7792_v11 = vld [vmem:[#allocation2 + $0xb4] sm:$0xe] }
 0x52f   : > { %v7648_v61 = vpop.permute.xlu1 %7647  ;;  %v7978_v62 = vpop.permute.xlu0 %7977  ;;  %v6454_v55 = vsel %vm9195_vm7, %v6449_v46, %v6453_v28  ;;  %v6482_v60 = vor.u32 %v6481_v49, %v6477_v48  ;;  %v6478_v5 = vsel %vm9195_vm7, %v6473_v58, %v6477_v48  ;;  %v7532_v28 = vrot.slane %v7530_v18, 4  ;;  %v7025_v46 = vld [vmem:[#allocation2 + $0xa8] sm:$0xf] }
 0x530   : > { %7732 = vst.msk [vmem:[#allocation3 + $0x2c] sm:$0xf] %vm3670_vm6, %v7648_v61  ;;  %v6702_v61 = vld [vmem:[#allocation2 + $0xa0] sm:$0xf]  ;;  %v7556_v47 = vrot.slane %v7554_v27, 4  ;;  %v7559_v48 = vrot.slane %v7557_v39, 5 }
 0x531   : > { %8065 = vst.msk [vmem:[#allocation3 + $0x20] sm:$0xf] %vm4007_vm11, %v7978_v62  ;;  %7667 = vrot.lane.b32.xlu1 %v7504_v0, %s9081_s7  ;;  %7669 = vrot.lane.b32.xlu0 %v7518_v4, %s9081_s7  ;;  %v6463_v62 = vrot.slane %v6461_v50, 5  ;;  %v6485_v0 = vshll.u32 %v6146_v40, 16  ;;  %v6483_v41 = vrot.slane %v6482_v60, 4  ;;  %v6847_v7 = vrot.slane %v6702_v61, 5 }
 0x532   : > { %v7563_v49 = vshll.u32 %v7233_v42, 16  ;;  %v7567_v50 = vshrl.u32 %v7233_v42, 16  ;;  %v7231_v40 = vld [vmem:[#allocation2 + $0xb0] sm:$0x1]  ;;  %v7560_v58 = vor.u32 %v7559_v48, %v7556_v47  ;;  %v7794_v27 = vld [vmem:[#allocation2 + $0xbc] sm:$0x1] }
 0x533   : > { %v7980_v6 = vpop.permute.xlu1 %7979  ;;  %v7982_v12 = vpop.permute.xlu0 %7981  ;;  %v6464_v4 = vsel %vm9195_vm7, %v6459_v59, %v6463_v62  ;;  %v6848_v22 = vsel %vm9486_vm13, %v8771_v9, %v6847_v7  ;;  %v6849_v23 = vrot.slane %v6847_v7, 4  ;;  %v7549_v62 = vshll.u32 %v7231_v40, 16  ;;  %v7789_v9 = vld [vmem:[#allocation2 + $0xa8] sm:$0xe]  ;;  %v6151_v47 = vld [vmem:[#allocation2 + $0xc4] sm:$0xf] }
 0x534   : > { %8066 = vst.msk [vmem:[#allocation3 + $0x24] sm:$0xf] %vm4007_vm11, %v7980_v6  ;;  %8067 = vst.msk [vmem:[#allocation3 + $0x28] sm:$0xf] %vm4007_vm11, %v7982_v12  ;;  %v7565_v60 = vrot.slane %v7563_v49, 5  ;;  %v7569_v61 = vrot.slane %v7567_v50, 4 }
 0x535   : > { %7671 = vrot.lane.b32.xlu1 %v7528_v20, %s9081_s7  ;;  %8001 = vrot.lane.b32.xlu0 %v7922_v8, %s9082_s12  ;;  %v6487_v8 = vrot.slane %v6485_v0, 5  ;;  %v6851_v38 = vsel %vm9486_vm13, %v6849_v23, %v6850_v25  ;;  %v7551_v63 = vrot.slane %v7549_v62, 5  ;;  %v8787_v23 = vrot.slane %v7789_v9, 9 }
 0x536   : > { %v7570_v7 = vor.u32 %v7569_v61, %v7565_v60  ;;  %v7945_v50 = vrot.slane %v7794_v27, 5 }
 0x537   : > { %v7984_v32 = vpop.permute.xlu1 %7983  ;;  %v6562_v33 = vpop.permute.xlu0 %6561  ;;  %v6488_v20 = vsel %vm9195_vm7, %v6483_v41, %v6487_v8  ;;  %v7561_v41 = vrot.slane %v7560_v58, 4  ;;  %v5941_v58 = vld [vmem:[#allocation2 + $0xb4] sm:$0xf] }
 0x538   : > { %8068 = vst.msk [vmem:[#allocation3 + $0x2c] sm:$0xf] %vm4007_vm11, %v7984_v32  ;;  %v7571_v19 = vrot.slane %v7570_v7, 4 }
 0x539   : > { %6645 = vst.msk [vmem:[#allocation3 + $0x30] sm:$0xf] %vm2578_vm2, %v6562_v33  ;;  %8003 = vrot.lane.b32.xlu1 %v7925_v26, %s9082_s12  ;;  %8005 = vrot.lane.b32.xlu0 %v7929_v29, %s9082_s12  ;;  %v8772_v26 = vrot.slane %v6704_v14, 9  ;;  %v6706_v29 = vld [vmem:[#allocation2 + $0xb0] sm:$0x1]  ;;  %v7566_v18 = vsel %vm9195_vm7, %v7561_v41, %v7565_v60 }
 0x53a   : > { %v6857_v34 = vrot.slane %v6706_v29, 5  ;;  %v5943_v41 = vld [vmem:[#allocation2 + $0xc0] sm:$0xf] }
 0x53b   : > { %v6564_v3 = vpop.permute.xlu1 %6563  ;;  %v6566_v16 = vpop.permute.xlu0 %6565  ;;  %v9053_v44 = vld [vmem:[#allocation3 + $0x20] sm:$0xff]   ;;  %v6855_v24 = vsel %vm9486_vm13, %v8772_v26, %v6854_v15  ;;  %v6147_v15 = vld [vmem:[#allocation2 + $0xb4] sm:$0xf] }
 0x53c   : > { %6646 = vst.msk [vmem:[#allocation3 + $0x34] sm:$0xf] %vm2578_vm2, %v6564_v3  ;;  %6647 = vst.msk [vmem:[#allocation3 + $0x38] sm:$0xf] %vm2578_vm2, %v6566_v16  ;;  %8985 = vmatprep.mubr.msk.bf16.mxu1 %vm4173_vm12, %v9053_v44  ;;  %v7536_v44 = vor.u32 %v7535_v10, %v7532_v28  ;;  %v6490_v26 = vshrl.u32 %v6147_v15, 16 }
 0x53d   : > { %8007 = vrot.lane.b32.xlu1 %v7932_v43, %s9082_s12  ;;  %6029 = vrot.lane.b32.xlu0 %v5939_v56, %s9077_s26  ;;  %v6858_v43 = vsel %vm9486_vm13, %v6856_v36, %v6857_v34  ;;  %v7545_v56 = vrot.slane %v7543_v37, 4  ;;  %v6493_v36 = vshll.u32 %v6147_v15, 16 }
 0x53e   : > { %v7537_v59 = vrot.slane %v7536_v44, 4  ;;  %v6492_v34 = vrot.slane %v6490_v26, 4  ;;  %v6707_v26 = vld [vmem:[#allocation2 + $0xb4] sm:$0xe] }
 0x53f   : > { %v6568_v35 = vpop.permute.xlu1 %6567  ;;  %v6898_v57 = vpop.permute.xlu0 %6897  ;;  %v9054_v54 = vld [vmem:[#allocation3 + $0x28] sm:$0xff]  }
 0x540   : > { %6648 = vst.msk [vmem:[#allocation3 + $0x3c] sm:$0xf] %vm2578_vm2, %v6568_v35  ;;  %8986 = vmatmul.mubr.msk.bf16.gmra.mxu1 %vm4173_vm12, %v9054_v54  ;;  %v7026_v54 = vld [vmem:[#allocation2 + $0xac] sm:$0xf] }
 0x541   : > { %6981 = vst.msk [vmem:[#allocation3 + $0x30] sm:$0xf] %vm2915_vm3, %v6898_v57  ;;  %6031 = vrot.lane.b32.xlu1 %v5940_v51, %s9077_s26  ;;  %6585 = vrot.lane.b32.xlu0 %v6454_v55, %s9078_s27  ;;  %v7546_v51 = vor.u32 %v7545_v56, %v7541_v45  ;;  %v7027_v55 = vld [vmem:[#allocation2 + $0xb4] sm:$0xf] }
 0x543   : > { %v6900_v30 = vpop.permute.xlu1 %6899  ;;  %v6902_v1 = vpop.permute.xlu0 %6901 }
 0x544   : > { %6982 = vst.msk [vmem:[#allocation3 + $0x34] sm:$0xf] %vm2915_vm3, %v6900_v30  ;;  %6983 = vst.msk [vmem:[#allocation3 + $0x38] sm:$0xf] %vm2915_vm3, %v6902_v1  ;;  %v7234_v1 = vld [vmem:[#allocation2 + $0xbc] sm:$0x1] }
 0x545   : > { %6587 = vrot.lane.b32.xlu1 %v6464_v4, %s9078_s27  ;;  %6589 = vrot.lane.b32.xlu0 %v6478_v5, %s9078_s27  ;;  %v7542_v4 = vsel %vm9195_vm7, %v7537_v59, %v7541_v45  ;;  %v7547_v5 = vrot.slane %v7546_v51, 4  ;;  %v7573_v8 = vshll.u32 %v7234_v1, 16  ;;  %v6495_v45 = vrot.slane %v6493_v36, 5  ;;  %v6711_v36 = vld [vmem:[#allocation2 + $0xc4] sm:$0xf] }
 0x546   : > { %v6523_v59 = vshll.u32 %v6151_v47, 16 }
 0x547   : > { %v6904_v6 = vpop.permute.xlu1 %6903  ;;  %v7090_v12 = vpop.permute.xlu0 %7089  ;;  %v7552_v17 = vsel %vm9195_vm7, %v7547_v5, %v7551_v63  ;;  %v6496_v51 = vor.u32 %v6495_v45, %v6492_v34  ;;  %v5942_v5 = vld [vmem:[#allocation2 + $0xb8] sm:$0xf] }
 0x548   : > { %6984 = vst.msk [vmem:[#allocation3 + $0x3c] sm:$0xf] %vm2915_vm3, %v6904_v6  ;;  %v7935_v6 = vrot.slane %v7790_v53, 5 }
 0x549   : > { %7173 = vst.msk [vmem:[#allocation3 + $0x30] sm:$0xf] %vm3109_vm5, %v7090_v12  ;;  %6591 = vrot.lane.b32.xlu1 %v6488_v20, %s9078_s27  ;;  %6921 = vrot.lane.b32.xlu0 %v6848_v22, %s9079_s28  ;;  %v7793_v12 = vld [vmem:[#allocation2 + $0xb8] sm:$0xf]  ;;  %v7791_v20 = vld [vmem:[#allocation2 + $0xb0] sm:$0x1] }
 0x54a   : > { %v7575_v22 = vrot.slane %v7573_v8, 5  ;;  %v7942_v25 = vrot.slane %v7793_v12, 5  ;;  %v7936_v10 = vsel %vm9486_vm13, %v8787_v23, %v7935_v6  ;;  %v7938_v37 = vrot.slane %v7791_v20, 5  ;;  %v5944_v12 = vld [vmem:[#allocation2 + $0xc4] sm:$0xf] }
 0x54b   : > { %v7092_v32 = vpop.permute.xlu1 %7091  ;;  %v7094_v33 = vpop.permute.xlu0 %7093  ;;  %v6497_v7 = vrot.slane %v6496_v51, 4  ;;  %v6708_v20 = vld [vmem:[#allocation2 + $0xb8] sm:$0xf] }
 0x54c   : > { %7174 = vst.msk [vmem:[#allocation3 + $0x34] sm:$0xf] %vm3109_vm5, %v7092_v32  ;;  %7175 = vst.msk [vmem:[#allocation3 + $0x38] sm:$0xf] %vm3109_vm5, %v7094_v33  ;;  %v7937_v32 = vrot.slane %v7935_v6, 4  ;;  %v7576_v28 = vsel %vm9195_vm7, %v7571_v19, %v7575_v22  ;;  %v7944_v39 = vrot.slane %v7942_v25, 4 }
 0x54d   : > { %6923 = vrot.lane.b32.xlu1 %v6851_v38, %s9079_s28  ;;  %6925 = vrot.lane.b32.xlu0 %v6855_v24, %s9079_s28  ;;  %v6148_v33 = vld [vmem:[#allocation2 + $0xb8] sm:$0xf]  ;;  %v6150_v38 = vld [vmem:[#allocation2 + $0xc0] sm:$0xf]  ;;  %v8788_v24 = vrot.slane %v7792_v11, 9 }
 0x54e   : > { %v6499_v42 = vshll.u32 %v6148_v33, 16  ;;  %v6514_v48 = vshrl.u32 %v6150_v38, 16  ;;  %v6517_v49 = vshll.u32 %v6150_v38, 16  ;;  %v6152_v6 = vld [vmem:[#allocation2 + $0xc8] sm:$0x1] }
 0x54f   : > { %v7096_v3 = vpop.permute.xlu1 %7095  ;;  %v7650_v16 = vpop.permute.xlu0 %7649  ;;  %v7943_v56 = vsel %vm9486_vm13, %v8788_v24, %v7942_v25  ;;  %v6533_v23 = vshll.u32 %v6152_v6, 16  ;;  %v6709_v38 = vld [vmem:[#allocation2 + $0xbc] sm:$0x1]  ;;  %v6710_v24 = vld [vmem:[#allocation2 + $0xc0] sm:$0xe] }
 0x550   : > { %7176 = vst.msk [vmem:[#allocation3 + $0x3c] sm:$0xf] %vm3109_vm5, %v7096_v3  ;;  %v6516_v61 = vrot.slane %v6514_v48, 4  ;;  %v6519_v62 = vrot.slane %v6517_v49, 5  ;;  %v6712_v48 = vld [vmem:[#allocation2 + $0xc8] sm:$0x1] }
 0x551   : > { %7733 = vst.msk [vmem:[#allocation3 + $0x30] sm:$0xf] %vm3670_vm6, %v7650_v16  ;;  %6927 = vrot.lane.b32.xlu1 %v6858_v43, %s9079_s28  ;;  %7113 = vrot.lane.b32.xlu0 %v7025_v46, %s9080_s29  ;;  %v7939_v43 = vsel %vm9486_vm13, %v7937_v32, %v7938_v37  ;;  %v6503_v46 = vshrl.u32 %v6148_v33, 16  ;;  %v8773_v37 = vrot.slane %v6707_v26, 9 }
 0x552   : > { %v6520_v63 = vor.u32 %v6519_v62, %v6516_v61  ;;  %v6871_v62 = vrot.slane %v6712_v48, 5 }
 0x553   : > { %v7652_v35 = vpop.permute.xlu1 %7651  ;;  %v7654_v57 = vpop.permute.xlu0 %7653  ;;  %v6505_v60 = vrot.slane %v6503_v46, 4  ;;  %v8774_v46 = vrot.slane %v6710_v24, 9 }
 0x554   : > { %7734 = vst.msk [vmem:[#allocation3 + $0x34] sm:$0xf] %vm3670_vm6, %v7652_v35  ;;  %7735 = vst.msk [vmem:[#allocation3 + $0x38] sm:$0xf] %vm3670_vm6, %v7654_v57 }
 0x555   : > { %7115 = vrot.lane.b32.xlu1 %v7026_v54, %s9080_s29  ;;  %7117 = vrot.lane.b32.xlu0 %v7027_v55, %s9080_s29  ;;  %v7946_v54 = vsel %vm9486_vm13, %v7944_v39, %v7945_v50  ;;  %v6501_v55 = vrot.slane %v6499_v42, 5  ;;  %v6868_v42 = vrot.slane %v6711_v36, 5 }
 0x557   : > { %v7656_v0 = vpop.permute.xlu1 %7655  ;;  %v7986_v30 = vpop.permute.xlu0 %7985  ;;  %v6506_v53 = vor.u32 %v6505_v60, %v6501_v55  ;;  %v6502_v15 = vsel %vm9195_vm7, %v6497_v7, %v6501_v55  ;;  %v6870_v51 = vrot.slane %v6868_v42, 4  ;;  %v7239_v55 = vld [vmem:[#allocation2 + $0xd0] sm:$0xf]  ;;  %v7029_v7 = vld [vmem:[#allocation2 + $0xc0] sm:$0xf] }
 0x558   : > { %7736 = vst.msk [vmem:[#allocation3 + $0x3c] sm:$0xf] %vm3670_vm6, %v7656_v0  ;;  %v6527_v0 = vshrl.u32 %v6151_v47, 16  ;;  %v7236_v47 = vld [vmem:[#allocation2 + $0xc4] sm:$0xf] }
 0x559   : > { %8069 = vst.msk [vmem:[#allocation3 + $0x30] sm:$0xf] %vm4007_vm11, %v7986_v30  ;;  %7119 = vrot.lane.b32.xlu1 %v7028_v2, %s9080_s29  ;;  %7673 = vrot.lane.b32.xlu0 %v7542_v4, %s9081_s7  ;;  %v6149_v2 = vld [vmem:[#allocation2 + $0xbc] sm:$0x1]  ;;  %v6525_v4 = vrot.slane %v6523_v59, 5  ;;  %v7587_v60 = vshll.u32 %v7236_v47, 16 }
 0x55a   : > { %v6529_v8 = vrot.slane %v6527_v0, 4  ;;  %v6509_v9 = vshll.u32 %v6149_v2, 16  ;;  %v7591_v61 = vshrl.u32 %v7236_v47, 16  ;;  %v7615_v2 = vshrl.u32 %v7239_v55, 16 }
 0x55b   : > { %v7988_v13 = vpop.permute.xlu1 %7987  ;;  %v7990_v14 = vpop.permute.xlu0 %7989 }
 0x55c   : > { %8070 = vst.msk [vmem:[#allocation3 + $0x34] sm:$0xf] %vm4007_vm11, %v7988_v13  ;;  %8071 = vst.msk [vmem:[#allocation3 + $0x38] sm:$0xf] %vm4007_vm11, %v7990_v14  ;;  %v6530_v19 = vor.u32 %v6529_v8, %v6525_v4  ;;  %v6511_v22 = vrot.slane %v6509_v9, 5  ;;  %v7593_v8 = vrot.slane %v7591_v61, 4 }
 0x55d   : > { %7675 = vrot.lane.b32.xlu1 %v7552_v17, %s9081_s7  ;;  %7677 = vrot.lane.b32.xlu0 %v7566_v18, %s9081_s7  ;;  %v6507_v17 = vrot.slane %v6506_v53, 4  ;;  %v6521_v18 = vrot.slane %v6520_v63, 4  ;;  %v7589_v63 = vrot.slane %v7587_v60, 5  ;;  %v7031_v9 = vld [vmem:[#allocation2 + $0xcc] sm:$0xf] }
 0x55e   : > { %v6531_v33 = vrot.slane %v6530_v19, 4  ;;  %v7030_v19 = vld [vmem:[#allocation2 + $0xc4] sm:$0xf] }
 0x55f   : > { %v7992_v29 = vpop.permute.xlu1 %7991  ;;  %v6570_v31 = vpop.permute.xlu0 %6569  ;;  %v6526_v32 = vsel %vm9195_vm7, %v6521_v18, %v6525_v4  ;;  %v7240_v18 = vld [vmem:[#allocation2 + $0xd4] sm:$0x1] }
 0x560   : > { %8072 = vst.msk [vmem:[#allocation3 + $0x3c] sm:$0xf] %vm4007_vm11, %v7992_v29  ;;  %v6861_v29 = vrot.slane %v6708_v20, 5 }
 0x561   : > { %6649 = vst.msk [vmem:[#allocation3 + $0x40] sm:$0xf] %vm2578_vm2, %v6570_v31  ;;  %7679 = vrot.lane.b32.xlu1 %v7576_v28, %s9081_s7  ;;  %8009 = vrot.lane.b32.xlu0 %v7936_v10, %s9082_s12  ;;  %v6512_v31 = vsel %vm9195_vm7, %v6507_v17, %v6511_v22  ;;  %v7235_v28 = vld [vmem:[#allocation2 + $0xc0] sm:$0xf]  ;;  %v6535_v10 = vrot.slane %v6533_v23, 5  ;;  %v7594_v22 = vor.u32 %v7593_v8, %v7589_v63 }
 0x562   : > { %v6863_v34 = vrot.slane %v6861_v29, 4  ;;  %v7581_v45 = vshll.u32 %v7235_v28, 16 }
 0x563   : > { %v6572_v3 = vpop.permute.xlu1 %6571  ;;  %v6574_v16 = vpop.permute.xlu0 %6573  ;;  %v9055_v44 = vld [vmem:[#allocation3 + $0x30] sm:$0xff]   ;;  %v7595_v36 = vrot.slane %v7594_v22, 4  ;;  %v8434_v22 = vld [vmem:[%s9187_s23] sm:$0xff] }
 0x564   : > { %6650 = vst.msk [vmem:[#allocation3 + $0x44] sm:$0xf] %vm2578_vm2, %v6572_v3  ;;  %6651 = vst.msk [vmem:[#allocation3 + $0x48] sm:$0xf] %vm2578_vm2, %v6574_v16  ;;  %8989 = vmatprep.mubr.msk.bf16.mxu1 %vm4173_vm12, %v9055_v44  ;;  %v7238_v3 = vld [vmem:[#allocation2 + $0xcc] sm:$0xf]  ;;  %v6536_v16 = vsel %vm9195_vm7, %v6531_v33, %v6535_v10 }
 0x565   : > { %8011 = vrot.lane.b32.xlu1 %v7939_v43, %s9082_s12  ;;  %8013 = vrot.lane.b32.xlu0 %v7943_v56, %s9082_s12  ;;  %v6862_v43 = vsel %vm9486_vm13, %v8773_v37, %v6861_v29  ;;  %v7578_v44 = vshrl.u32 %v7235_v28, 16  ;;  %v6864_v56 = vrot.slane %v6709_v38, 5  ;;  %v7602_v49 = vshrl.u32 %v7238_v3, 16  ;;  %v7795_v10 = vld [vmem:[#allocation2 + $0xc0] sm:$0xe] }
 0x566   : > { %v7605_v50 = vshll.u32 %v7238_v3, 16  ;;  %v7621_v29 = vshll.u32 %v7240_v18, 16  ;;  %v7796_v37 = vld [vmem:[#allocation2 + $0xc4] sm:$0xf] }
 0x567   : > { %v6576_v35 = vpop.permute.xlu1 %6575  ;;  %v6906_v57 = vpop.permute.xlu0 %6905  ;;  %v9056_v40 = vld [vmem:[#allocation3 + $0x38] sm:$0xff]   ;;  %v7580_v59 = vrot.slane %v7578_v44, 4  ;;  %v7604_v0 = vrot.slane %v7602_v49, 4  ;;  %v7949_v44 = vrot.slane %v7796_v37, 5 }
 0x568   : > { %6652 = vst.msk [vmem:[#allocation3 + $0x4c] sm:$0xf] %vm2578_vm2, %v6576_v35  ;;  %8990 = vmatmul.mubr.msk.bf16.gmra.mxu1 %vm4173_vm12, %v9056_v40  ;;  %v6869_v40 = vsel %vm9486_vm13, %v8774_v46, %v6868_v42  ;;  %v7797_v46 = vld [vmem:[#allocation2 + $0xc8] sm:$0x1] }
 0x569   : > { %6985 = vst.msk [vmem:[#allocation3 + $0x40] sm:$0xf] %vm2915_vm3, %v6906_v57  ;;  %8015 = vrot.lane.b32.xlu1 %v7946_v54, %s9082_s12  ;;  %6033 = vrot.lane.b32.xlu0 %v5941_v58, %s9077_s26  ;;  %v6865_v54 = vsel %vm9486_vm13, %v6863_v34, %v6864_v56  ;;  %v7583_v58 = vrot.slane %v7581_v45, 5  ;;  %v7798_v34 = vld [vmem:[#allocation2 + $0xcc] sm:$0xe]  ;;  %v8789_v56 = vrot.slane %v7795_v10, 9 }
 0x56a   : > { %v8790_v48 = vrot.slane %v7798_v34, 9  ;;  %v7952_v21 = vrot.slane %v7797_v46, 5  ;;  %v8435_v10 = vld [vmem:[%s9187_s23 + $0x8] sm:$0xff] }
 0x56b   : > { %v6908_v30 = vpop.permute.xlu1 %6907  ;;  %v6910_v1 = vpop.permute.xlu0 %6909  ;;  %v7584_v53 = vor.u32 %v7583_v58, %v7580_v59 }
 0x56c   : > { %6986 = vst.msk [vmem:[#allocation3 + $0x44] sm:$0xf] %vm2915_vm3, %v6908_v30  ;;  %6987 = vst.msk [vmem:[#allocation3 + $0x48] sm:$0xf] %vm2915_vm3, %v6910_v1  ;;  %v7607_v30 = vrot.slane %v7605_v50, 5  ;;  %v7611_v1 = vshll.u32 %v7239_v55, 16 }
 0x56d   : > { %6035 = vrot.lane.b32.xlu1 %v5942_v5, %s9077_s26  ;;  %6037 = vrot.lane.b32.xlu0 %v5943_v41, %s9077_s26  ;;  %v6872_v41 = vsel %vm9486_vm13, %v6870_v51, %v6871_v62  ;;  %v7585_v20 = vrot.slane %v7584_v53, 4 }
 0x56e   : > { %v7613_v6 = vrot.slane %v7611_v1, 5 }
 0x56f   : > { %v6912_v13 = vpop.permute.xlu1 %6911  ;;  %v7098_v14 = vpop.permute.xlu0 %7097  ;;  %v7590_v33 = vsel %vm9195_vm7, %v7585_v20, %v7589_v63 }
 0x570   : > { %6988 = vst.msk [vmem:[#allocation3 + $0x4c] sm:$0xf] %vm2915_vm3, %v6912_v13  ;;  %v7237_v13 = vld [vmem:[#allocation2 + $0xc8] sm:$0x1] }
 0x571   : > { %7177 = vst.msk [vmem:[#allocation3 + $0x40] sm:$0xf] %vm3109_vm5, %v7098_v14  ;;  %6039 = vrot.lane.b32.xlu1 %v5944_v12, %s9077_s26  ;;  %6593 = vrot.lane.b32.xlu0 %v6502_v15, %s9078_s27  ;;  %v7608_v14 = vor.u32 %v7607_v30, %v7604_v0  ;;  %v7617_v12 = vrot.slane %v7615_v2, 4  ;;  %v7597_v23 = vshll.u32 %v7237_v13, 16 }
 0x573   : > { %v7100_v11 = vpop.permute.xlu1 %7099  ;;  %v7102_v25 = vpop.permute.xlu0 %7101  ;;  %v7618_v26 = vor.u32 %v7617_v12, %v7613_v6  ;;  %v7599_v28 = vrot.slane %v7597_v23, 5  ;;  %v8436_v12 = vld [vmem:[%s9187_s23 + $0x10] sm:$0xff] }
 0x574   : > { %7178 = vst.msk [vmem:[#allocation3 + $0x44] sm:$0xf] %vm3109_vm5, %v7100_v11  ;;  %7179 = vst.msk [vmem:[#allocation3 + $0x48] sm:$0xf] %vm3109_vm5, %v7102_v25  ;;  %v7032_v11 = vld [vmem:[#allocation2 + $0xd0] sm:$0xf] }
 0x575   : > { %6595 = vrot.lane.b32.xlu1 %v6512_v31, %s9078_s27  ;;  %6597 = vrot.lane.b32.xlu0 %v6526_v32, %s9078_s27  ;;  %v7609_v25 = vrot.slane %v7608_v14, 4  ;;  %v7619_v24 = vrot.slane %v7618_v26, 4  ;;  %v11521_v14 = vld [vmem:[%s11716_s4] ss:$0 sm:$0xff]  ;;  %v8437_v26 = vld [vmem:[%s9187_s23 + $0x18] sm:$0xff] }
 0x577   : > { %v7104_v27 = vpop.permute.xlu1 %7103  ;;  %v7658_v39 = vpop.permute.xlu0 %7657  ;;  %v7614_v38 = vsel %vm9195_vm7, %v7609_v25, %v7613_v6 }
 0x578   : > { %7180 = vst.msk [vmem:[#allocation3 + $0x4c] sm:$0xf] %vm3109_vm5, %v7104_v27  ;;  %v7623_v27 = vrot.slane %v7621_v29, 5 }
 0x579   : > { %7737 = vst.msk [vmem:[#allocation3 + $0x40] sm:$0xf] %vm3670_vm6, %v7658_v39  ;;  %6599 = vrot.lane.b32.xlu1 %v6536_v16, %s9078_s27  ;;  %6929 = vrot.lane.b32.xlu0 %v6862_v43, %s9079_s28  ;;  %v7799_v39 = vld [vmem:[#allocation2 + $0xd0] sm:$0xf]  ;;  %v7600_v43 = vsel %vm9195_vm7, %v7595_v36, %v7599_v28 }
 0x57a   : > { %v7624_v45 = vsel %vm9195_vm7, %v7619_v24, %v7623_v27  ;;  %v7956_v47 = vrot.slane %v7799_v39, 5 }
 0x57b   : > { %v7660_v35 = vpop.permute.xlu1 %7659  ;;  %v7662_v57 = vpop.permute.xlu0 %7661 }
 0x57c   : > { %7738 = vst.msk [vmem:[#allocation3 + $0x44] sm:$0xf] %vm3670_vm6, %v7660_v35  ;;  %7739 = vst.msk [vmem:[#allocation3 + $0x48] sm:$0xf] %vm3670_vm6, %v7662_v57  ;;  %v7800_v57 = vld [vmem:[#allocation2 + $0xd4] sm:$0x1]  ;;  %v7957_v59 = vsel %vm9486_vm13, %v8790_v48, %v7956_v47 }
 0x57d   : > { %6931 = vrot.lane.b32.xlu1 %v6865_v54, %s9079_s28  ;;  %6933 = vrot.lane.b32.xlu0 %v6869_v40, %s9079_s28  ;;  %v7950_v54 = vsel %vm9486_vm13, %v8789_v56, %v7949_v44  ;;  %v7951_v40 = vrot.slane %v7949_v44, 4  ;;  %v7958_v51 = vrot.slane %v7956_v47, 4  ;;  %v7959_v55 = vrot.slane %v7800_v57, 5 }
 0x57f   : > { %v7664_v4 = vpop.permute.xlu1 %7663  ;;  %v7994_v5 = vpop.permute.xlu0 %7993  ;;  %v7953_v61 = vsel %vm9486_vm13, %v7951_v40, %v7952_v21  ;;  %v7960_v62 = vsel %vm9486_vm13, %v7958_v51, %v7959_v55 }
 0x580   : > { %7740 = vst.msk [vmem:[#allocation3 + $0x4c] sm:$0xf] %vm3670_vm6, %v7664_v4 }
 0x581   : > { %8073 = vst.msk [vmem:[#allocation3 + $0x40] sm:$0xf] %vm4007_vm11, %v7994_v5  ;;  %6935 = vrot.lane.b32.xlu1 %v6872_v41, %s9079_s28  ;;  %7121 = vrot.lane.b32.xlu0 %v7029_v7, %s9080_s29 }
 0x583   : > { %v7996_v15 = vpop.permute.xlu1 %7995  ;;  %v7998_v17 = vpop.permute.xlu0 %7997 }
 0x584   : > { %8074 = vst.msk [vmem:[#allocation3 + $0x44] sm:$0xf] %vm4007_vm11, %v7996_v15  ;;  %8075 = vst.msk [vmem:[#allocation3 + $0x48] sm:$0xf] %vm4007_vm11, %v7998_v17 }
 0x585   : > { %7123 = vrot.lane.b32.xlu1 %v7030_v19, %s9080_s29  ;;  %7125 = vrot.lane.b32.xlu0 %v7031_v9, %s9080_s29 }
 0x587   : > { %v8000_v31 = vpop.permute.xlu1 %7999  ;;  %v6578_v32 = vpop.permute.xlu0 %6577 }
 0x588   : > { %8076 = vst.msk [vmem:[#allocation3 + $0x4c] sm:$0xf] %vm4007_vm11, %v8000_v31 }
 0x589   : > { %6653 = vst.msk [vmem:[#allocation3 + $0x50] sm:$0xf] %vm2578_vm2, %v6578_v32  ;;  %7127 = vrot.lane.b32.xlu1 %v7032_v11, %s9080_s29  ;;  %7681 = vrot.lane.b32.xlu0 %v7590_v33, %s9081_s7 }
 0x58b   : > { %v6580_v42 = vpop.permute.xlu1 %6579  ;;  %v6582_v3 = vpop.permute.xlu0 %6581  ;;  %v9057_v16 = vld [vmem:[#allocation3 + $0x40] sm:$0xff]  }
 0x58c   : > { %6654 = vst.msk [vmem:[#allocation3 + $0x54] sm:$0xf] %vm2578_vm2, %v6580_v42  ;;  %6655 = vst.msk [vmem:[#allocation3 + $0x58] sm:$0xf] %vm2578_vm2, %v6582_v3  ;;  %8993 = vmatprep.mubr.msk.bf16.mxu1 %vm4173_vm12, %v9057_v16 }
 0x58d   : > { %7683 = vrot.lane.b32.xlu1 %v7600_v43, %s9081_s7  ;;  %7685 = vrot.lane.b32.xlu0 %v7614_v38, %s9081_s7 }
 0x58f   : > { %v6584_v49 = vpop.permute.xlu1 %6583  ;;  %v6914_v50 = vpop.permute.xlu0 %6913  ;;  %v9058_v35 = vld [vmem:[#allocation3 + $0x48] sm:$0xff]  }
 0x590   : > { %6656 = vst.msk [vmem:[#allocation3 + $0x5c] sm:$0xf] %vm2578_vm2, %v6584_v49  ;;  %8994 = vmatmul.mubr.msk.bf16.gmra.mxu1 %vm4173_vm12, %v9058_v35 }
 0x591   : > { %6989 = vst.msk [vmem:[#allocation3 + $0x50] sm:$0xf] %vm2915_vm3, %v6914_v50  ;;  %7687 = vrot.lane.b32.xlu1 %v7624_v45, %s9081_s7  ;;  %8017 = vrot.lane.b32.xlu0 %v7950_v54, %s9082_s12  ;;  %v8440_v54 = vld [vmem:[%s9187_s23 + $0x30] sm:$0xff] }
 0x593   : > { %v6916_v58 = vpop.permute.xlu1 %6915  ;;  %v6918_v60 = vpop.permute.xlu0 %6917 }
 0x594   : > { %6990 = vst.msk [vmem:[#allocation3 + $0x54] sm:$0xf] %vm2915_vm3, %v6916_v58  ;;  %6991 = vst.msk [vmem:[#allocation3 + $0x58] sm:$0xf] %vm2915_vm3, %v6918_v60 }
 0x595   : > { %8019 = vrot.lane.b32.xlu1 %v7953_v61, %s9082_s12  ;;  %8021 = vrot.lane.b32.xlu0 %v7957_v59, %s9082_s12  ;;  %v8438_v59 = vld [vmem:[%s9187_s23 + $0x20] sm:$0xff] }
 0x597   : > { %v6920_v0 = vpop.permute.xlu1 %6919  ;;  %v7106_v30 = vpop.permute.xlu0 %7105 }
 0x598   : > { %6992 = vst.msk [vmem:[#allocation3 + $0x5c] sm:$0xf] %vm2915_vm3, %v6920_v0 }
 0x599   : > { %7181 = vst.msk [vmem:[#allocation3 + $0x50] sm:$0xf] %vm3109_vm5, %v7106_v30  ;;  %8023 = vrot.lane.b32.xlu1 %v7960_v62, %s9082_s12  ;;  %v8441_v62 = vld [vmem:[%s9187_s23 + $0x38] sm:$0xff] }
 0x59b   : > { %v7108_v1 = vpop.permute.xlu1 %7107  ;;  %v7110_v2 = vpop.permute.xlu0 %7109 }
 0x59c   : > { %7182 = vst.msk [vmem:[#allocation3 + $0x54] sm:$0xf] %vm3109_vm5, %v7108_v1  ;;  %7183 = vst.msk [vmem:[#allocation3 + $0x58] sm:$0xf] %vm3109_vm5, %v7110_v2 }
 0x59f   : > { %v7112_v4 = vpop.permute.xlu1 %7111  ;;  %v7666_v5 = vpop.permute.xlu0 %7665 }
 0x5a0   : > { %7184 = vst.msk [vmem:[#allocation3 + $0x5c] sm:$0xf] %vm3109_vm5, %v7112_v4 }
 0x5a1   : > { %7741 = vst.msk [vmem:[#allocation3 + $0x50] sm:$0xf] %vm3670_vm6, %v7666_v5 }
 0x5a3   : > { %v7668_v52 = vpop.permute.xlu1 %7667  ;;  %v7670_v41 = vpop.permute.xlu0 %7669 }
 0x5a4   : > { %7742 = vst.msk [vmem:[#allocation3 + $0x54] sm:$0xf] %vm3670_vm6, %v7668_v52  ;;  %7743 = vst.msk [vmem:[#allocation3 + $0x58] sm:$0xf] %vm3670_vm6, %v7670_v41  ;;  %v8439_v52 = vld [vmem:[%s9187_s23 + $0x28] sm:$0xff] }
 0x5a7   : > { %v7672_v7 = vpop.permute.xlu1 %7671  ;;  %v8002_v53 = vpop.permute.xlu0 %8001 }
 0x5a8   : > { %7744 = vst.msk [vmem:[#allocation3 + $0x5c] sm:$0xf] %vm3670_vm6, %v7672_v7 }
 0x5a9   : > { %8077 = vst.msk [vmem:[#allocation3 + $0x50] sm:$0xf] %vm4007_vm11, %v8002_v53 }
 0x5ab   : > { %v8004_v63 = vpop.permute.xlu1 %8003  ;;  %v8006_v8 = vpop.permute.xlu0 %8005 }
 0x5ac   : > { %8078 = vst.msk [vmem:[#allocation3 + $0x54] sm:$0xf] %vm4007_vm11, %v8004_v63  ;;  %8079 = vst.msk [vmem:[#allocation3 + $0x58] sm:$0xf] %vm4007_vm11, %v8006_v8 }
 0x5af   : > { %v8008_v9 = vpop.permute.xlu1 %8007  ;;  %v6030_v13 = vpop.permute.xlu0 %6029 }
 0x5b0   : > { %8080 = vst.msk [vmem:[#allocation3 + $0x5c] sm:$0xf] %vm4007_vm11, %v8008_v9  ;;  %v8979_v6 = vpop.f32.mrf.mxu1 }
 0x5b1   : > { %6099 = vst.msk [vmem:[#allocation3 + $0x68] sm:$0xf] %vm2017_vm1, %v6030_v13  ;;  %v8316_v15 = vadd.f32 %v8979_v6, %v11521_v14 }
 0x5b2   : > { %v8307_v20 = vpop.f32.mrf.mxu1 }
 0x5b3   : > { %v6032_v17 = vpop.permute.xlu1 %6031  ;;  %v6586_v18 = vpop.permute.xlu0 %6585  ;;  %v9059_v19 = vld [vmem:[#allocation3 + $0x50] sm:$0xff]   ;;  %v8468_v23 = vadd.f32 %v8436_v12, %v8316_v15  ;;  %v8308_v11 = vadd.f32 %v11521_v14, %v8307_v20 }
 0x5b4   : > { %6100 = vst.msk [vmem:[#allocation3 + $0x6c] sm:$0xf] %vm2017_vm1, %v6032_v17  ;;  %8997 = vmatprep.mubr.msk.bf16.mxu1 %vm4173_vm12, %v9059_v19  ;;  %v8980_v25 = vpop.f32.mrf.mxu1 }
 0x5b5   : > { %6657 = vst.msk [vmem:[#allocation3 + $0x60] sm:$0xf] %vm2578_vm2, %v6586_v18  ;;  %v8466_v29 = vadd.f32 %v8434_v22, %v8308_v11  ;;  %v8319_v31 = vadd.f32 %v8980_v25, %v11521_v14 }
 0x5b6   : > { %8501 = vst.msk [vmem:[%s11530_s6 + $0x10] sm:$0xff] %vm8498_vm0, %v8468_v23  ;;  %v8310_v28 = vpop.f32.mrf.mxu1 }
 0x5b7   : > { %v6588_v32 = vpop.permute.xlu1 %6587  ;;  %v6590_v33 = vpop.permute.xlu0 %6589  ;;  %v9060_v36 = vld [vmem:[#allocation3 + $0x58] sm:$0xff]   ;;  %8499 = vst.msk [vmem:[%s11530_s6] sm:$0xff] %vm8498_vm0, %v8466_v29  ;;  %v8469_v37 = vadd.f32 %v8437_v26, %v8319_v31  ;;  %v8311_v38 = vadd.f32 %v11521_v14, %v8310_v28 }
 0x5b8   : > { %6658 = vst.msk [vmem:[#allocation3 + $0x64] sm:$0xf] %vm2578_vm2, %v6588_v32  ;;  %6659 = vst.msk [vmem:[#allocation3 + $0x68] sm:$0xf] %vm2578_vm2, %v6590_v33  ;;  %8998 = vmatmul.mubr.msk.bf16.gmra.mxu1 %vm4173_vm12, %v9060_v36  ;;  %v8444_v32 = vld [vmem:[%s9187_s23 + $0x50] sm:$0xff] }
 0x5b9   : > { %8502 = vst.msk [vmem:[%s11530_s6 + $0x18] sm:$0xff] %vm8498_vm0, %v8469_v37  ;;  %v8467_v24 = vadd.f32 %v8435_v10, %v8311_v38  ;;  %v8442_v37 = vld [vmem:[%s9187_s23 + $0x40] sm:$0xff] }
 0x5bb   : > { %v6592_v27 = vpop.permute.xlu1 %6591  ;;  %v6922_v39 = vpop.permute.xlu0 %6921  ;;  %8500 = vst.msk [vmem:[%s11530_s6 + $0x8] sm:$0xff] %vm8498_vm0, %v8467_v24 }
 0x5bc   : > { %6660 = vst.msk [vmem:[#allocation3 + $0x6c] sm:$0xf] %vm2578_vm2, %v6592_v27 }
 0x5bd   : > { %6993 = vst.msk [vmem:[#allocation3 + $0x60] sm:$0xf] %vm2915_vm3, %v6922_v39  ;;  %v8445_v39 = vld [vmem:[%s9187_s23 + $0x58] sm:$0xff] }
 0x5bf   : > { %v6924_v34 = vpop.permute.xlu1 %6923  ;;  %v6926_v42 = vpop.permute.xlu0 %6925 }
 0x5c0   : > { %6994 = vst.msk [vmem:[#allocation3 + $0x64] sm:$0xf] %vm2915_vm3, %v6924_v34  ;;  %6995 = vst.msk [vmem:[#allocation3 + $0x68] sm:$0xf] %vm2915_vm3, %v6926_v42 }
 0x5c3   : > { %v6928_v3 = vpop.permute.xlu1 %6927  ;;  %v7114_v16 = vpop.permute.xlu0 %7113 }
 0x5c4   : > { %6996 = vst.msk [vmem:[#allocation3 + $0x6c] sm:$0xf] %vm2915_vm3, %v6928_v3 }
 0x5c5   : > { %7185 = vst.msk [vmem:[#allocation3 + $0x60] sm:$0xf] %vm3109_vm5, %v7114_v16 }
 0x5c7   : > { %v7116_v43 = vpop.permute.xlu1 %7115  ;;  %v7118_v44 = vpop.permute.xlu0 %7117 }
 0x5c8   : > { %7186 = vst.msk [vmem:[#allocation3 + $0x64] sm:$0xf] %vm3109_vm5, %v7116_v43  ;;  %7187 = vst.msk [vmem:[#allocation3 + $0x68] sm:$0xf] %vm3109_vm5, %v7118_v44  ;;  %v8443_v44 = vld [vmem:[%s9187_s23 + $0x48] sm:$0xff] }
 0x5cb   : > { %v7120_v45 = vpop.permute.xlu1 %7119  ;;  %v7674_v56 = vpop.permute.xlu0 %7673 }
 0x5cc   : > { %7188 = vst.msk [vmem:[#allocation3 + $0x6c] sm:$0xf] %vm3109_vm5, %v7120_v45 }
 0x5cd   : > { %7745 = vst.msk [vmem:[#allocation3 + $0x60] sm:$0xf] %vm3670_vm6, %v7674_v56 }
 0x5cf   : > { %v7676_v46 = vpop.permute.xlu1 %7675  ;;  %v7678_v47 = vpop.permute.xlu0 %7677 }
 0x5d0   : > { %7746 = vst.msk [vmem:[#allocation3 + $0x64] sm:$0xf] %vm3670_vm6, %v7676_v46  ;;  %7747 = vst.msk [vmem:[#allocation3 + $0x68] sm:$0xf] %vm3670_vm6, %v7678_v47 }
 0x5d3   : > { %v7680_v48 = vpop.permute.xlu1 %7679  ;;  %v8010_v49 = vpop.permute.xlu0 %8009 }
 0x5d4   : > { %7748 = vst.msk [vmem:[#allocation3 + $0x6c] sm:$0xf] %vm3670_vm6, %v7680_v48 }
 0x5d5   : > { %8081 = vst.msk [vmem:[#allocation3 + $0x60] sm:$0xf] %vm4007_vm11, %v8010_v49 }
 0x5d7   : > { %v8012_v50 = vpop.permute.xlu1 %8011  ;;  %v8014_v35 = vpop.permute.xlu0 %8013 }
 0x5d8   : > { %8082 = vst.msk [vmem:[#allocation3 + $0x64] sm:$0xf] %vm4007_vm11, %v8012_v50  ;;  %8083 = vst.msk [vmem:[#allocation3 + $0x68] sm:$0xf] %vm4007_vm11, %v8014_v35  ;;  %v8983_v57 = vpop.f32.mrf.mxu1  ;;  %v8448_v35 = vld [vmem:[%s9187_s23 + $0x70] sm:$0xff] }
 0x5d9   : > { %v8332_v40 = vadd.f32 %v8983_v57, %v11521_v14 }
 0x5da   : > { %v8323_v55 = vpop.f32.mrf.mxu1 }
 0x5db   : > { %v8016_v21 = vpop.permute.xlu1 %8015  ;;  %v6034_v51 = vpop.permute.xlu0 %6033  ;;  %v8472_v58 = vadd.f32 %v8440_v54, %v8332_v40  ;;  %v8324_v60 = vadd.f32 %v11521_v14, %v8323_v55  ;;  %v8446_v40 = vld [vmem:[%s9187_s23 + $0x60] sm:$0xff] }
 0x5dc   : > { %8084 = vst.msk [vmem:[#allocation3 + $0x6c] sm:$0xf] %vm4007_vm11, %v8016_v21  ;;  %v8984_v61 = vpop.f32.mrf.mxu1 }
 0x5dd   : > { %6101 = vst.msk [vmem:[#allocation3 + $0x70] sm:$0xf] %vm2017_vm1, %v6034_v51  ;;  %v8470_v0 = vadd.f32 %v8438_v59, %v8324_v60  ;;  %v8335_v30 = vadd.f32 %v8984_v61, %v11521_v14  ;;  %v8449_v59 = vld [vmem:[%s9187_s23 + $0x78] sm:$0xff] }
 0x5de   : > { %8505 = vst.msk [vmem:[%s11530_s6 + $0x30] sm:$0xff] %vm8498_vm0, %v8472_v58  ;;  %v8326_v5 = vpop.f32.mrf.mxu1 }
 0x5df   : > { %v6036_v1 = vpop.permute.xlu1 %6035  ;;  %v6038_v2 = vpop.permute.xlu0 %6037  ;;  %v9061_v4 = vld [vmem:[#allocation3 + $0x60] sm:$0xff]   ;;  %8503 = vst.msk [vmem:[%s11530_s6 + $0x20] sm:$0xff] %vm8498_vm0, %v8470_v0  ;;  %v8473_v41 = vadd.f32 %v8441_v62, %v8335_v30  ;;  %v8327_v7 = vadd.f32 %v11521_v14, %v8326_v5  ;;  %v8447_v62 = vld [vmem:[%s9187_s23 + $0x68] sm:$0xff] }
 0x5e0   : > { %6102 = vst.msk [vmem:[#allocation3 + $0x74] sm:$0xf] %vm2017_vm1, %v6036_v1  ;;  %6103 = vst.msk [vmem:[#allocation3 + $0x78] sm:$0xf] %vm2017_vm1, %v6038_v2  ;;  %9001 = vmatprep.mubr.msk.bf16.mxu1 %vm4173_vm12, %v9061_v4  ;;  %v8452_v4 = vld [vmem:[%s9187_s23 + $0x90] sm:$0xff] }
 0x5e1   : > { %8506 = vst.msk [vmem:[%s11530_s6 + $0x38] sm:$0xff] %vm8498_vm0, %v8473_v41  ;;  %v8471_v53 = vadd.f32 %v8439_v52, %v8327_v7  ;;  %v8450_v41 = vld [vmem:[%s9187_s23 + $0x80] sm:$0xff] }
 0x5e3   : > { %v6040_v63 = vpop.permute.xlu1 %6039  ;;  %v6594_v8 = vpop.permute.xlu0 %6593  ;;  %v9062_v9 = vld [vmem:[#allocation3 + $0x68] sm:$0xff]   ;;  %8504 = vst.msk [vmem:[%s11530_s6 + $0x28] sm:$0xff] %vm8498_vm0, %v8471_v53 }
 0x5e4   : > { %6104 = vst.msk [vmem:[#allocation3 + $0x7c] sm:$0xf] %vm2017_vm1, %v6040_v63  ;;  %9002 = vmatmul.mubr.msk.bf16.gmra.mxu1 %vm4173_vm12, %v9062_v9 }
 0x5e5   : > { %6661 = vst.msk [vmem:[#allocation3 + $0x70] sm:$0xf] %vm2578_vm2, %v6594_v8  ;;  %v8453_v8 = vld [vmem:[%s9187_s23 + $0x98] sm:$0xff] }
 0x5e7   : > { %v6596_v13 = vpop.permute.xlu1 %6595  ;;  %v6598_v6 = vpop.permute.xlu0 %6597 }
 0x5e8   : > { %6662 = vst.msk [vmem:[#allocation3 + $0x74] sm:$0xf] %vm2578_vm2, %v6596_v13  ;;  %6663 = vst.msk [vmem:[#allocation3 + $0x78] sm:$0xf] %vm2578_vm2, %v6598_v6 }
 0x5eb   : > { %v6600_v12 = vpop.permute.xlu1 %6599  ;;  %v6930_v15 = vpop.permute.xlu0 %6929 }
 0x5ec   : > { %6664 = vst.msk [vmem:[#allocation3 + $0x7c] sm:$0xf] %vm2578_vm2, %v6600_v12  ;;  %v8451_v12 = vld [vmem:[%s9187_s23 + $0x88] sm:$0xff] }
 0x5ed   : > { %6997 = vst.msk [vmem:[#allocation3 + $0x70] sm:$0xf] %vm2915_vm3, %v6930_v15 }
 0x5ef   : > { %v6932_v17 = vpop.permute.xlu1 %6931  ;;  %v6934_v18 = vpop.permute.xlu0 %6933 }
 0x5f0   : > { %6998 = vst.msk [vmem:[#allocation3 + $0x74] sm:$0xf] %vm2915_vm3, %v6932_v17  ;;  %6999 = vst.msk [vmem:[#allocation3 + $0x78] sm:$0xf] %vm2915_vm3, %v6934_v18 }
 0x5f3   : > { %v6936_v19 = vpop.permute.xlu1 %6935  ;;  %v7122_v20 = vpop.permute.xlu0 %7121 }
 0x5f4   : > { %7000 = vst.msk [vmem:[#allocation3 + $0x7c] sm:$0xf] %vm2915_vm3, %v6936_v19 }
 0x5f5   : > { %7189 = vst.msk [vmem:[#allocation3 + $0x70] sm:$0xf] %vm3109_vm5, %v7122_v20  ;;  %v8456_v20 = vld [vmem:[%s9187_s23 + $0xb0] sm:$0xff] }
 0x5f7   : > { %v7124_v22 = vpop.permute.xlu1 %7123  ;;  %v7126_v23 = vpop.permute.xlu0 %7125 }
 0x5f8   : > { %7190 = vst.msk [vmem:[#allocation3 + $0x74] sm:$0xf] %vm3109_vm5, %v7124_v22  ;;  %7191 = vst.msk [vmem:[#allocation3 + $0x78] sm:$0xf] %vm3109_vm5, %v7126_v23 }
 0x5fb   : > { %v7128_v11 = vpop.permute.xlu1 %7127  ;;  %v7682_v25 = vpop.permute.xlu0 %7681 }
 0x5fc   : > { %7192 = vst.msk [vmem:[#allocation3 + $0x7c] sm:$0xf] %vm3109_vm5, %v7128_v11  ;;  %v8454_v11 = vld [vmem:[%s9187_s23 + $0xa0] sm:$0xff] }
 0x5fd   : > { %7749 = vst.msk [vmem:[#allocation3 + $0x70] sm:$0xf] %vm3670_vm6, %v7682_v25 }
 0x5ff   : > { %v7684_v26 = vpop.permute.xlu1 %7683  ;;  %v7686_v29 = vpop.permute.xlu0 %7685 }
 0x600   : > { %7750 = vst.msk [vmem:[#allocation3 + $0x74] sm:$0xf] %vm3670_vm6, %v7684_v26  ;;  %7751 = vst.msk [vmem:[#allocation3 + $0x78] sm:$0xf] %vm3670_vm6, %v7686_v29  ;;  %v8987_v31 = vpop.f32.mrf.mxu1 }
 0x601   : > { %v8348_v33 = vadd.f32 %v8987_v31, %v11521_v14  ;;  %v8457_v31 = vld [vmem:[%s9187_s23 + $0xb8] sm:$0xff] }
 0x602   : > { %v8339_v10 = vpop.f32.mrf.mxu1 }
 0x603   : > { %v7688_v36 = vpop.permute.xlu1 %7687  ;;  %v8018_v28 = vpop.permute.xlu0 %8017  ;;  %v8476_v38 = vadd.f32 %v8444_v32, %v8348_v33  ;;  %v8340_v24 = vadd.f32 %v11521_v14, %v8339_v10 }
 0x604   : > { %7752 = vst.msk [vmem:[#allocation3 + $0x7c] sm:$0xf] %vm3670_vm6, %v7688_v36  ;;  %v8988_v27 = vpop.f32.mrf.mxu1 }
 0x605   : > { %8085 = vst.msk [vmem:[#allocation3 + $0x70] sm:$0xf] %vm4007_vm11, %v8018_v28  ;;  %v8474_v34 = vadd.f32 %v8442_v37, %v8340_v24  ;;  %v8351_v42 = vadd.f32 %v8988_v27, %v11521_v14  ;;  %v8455_v28 = vld [vmem:[%s9187_s23 + $0xa8] sm:$0xff]  ;;  %v8460_v27 = vld [vmem:[%s9187_s23 + $0xd0] sm:$0xff] }
 0x606   : > { %8509 = vst.msk [vmem:[%s11530_s6 + $0x50] sm:$0xff] %vm8498_vm0, %v8476_v38  ;;  %v8342_v43 = vpop.f32.mrf.mxu1 }
 0x607   : > { %v8020_v3 = vpop.permute.xlu1 %8019  ;;  %v8022_v16 = vpop.permute.xlu0 %8021  ;;  %8507 = vst.msk [vmem:[%s11530_s6 + $0x40] sm:$0xff] %vm8498_vm0, %v8474_v34  ;;  %v8477_v45 = vadd.f32 %v8445_v39, %v8351_v42  ;;  %v8343_v56 = vadd.f32 %v11521_v14, %v8342_v43  ;;  %v8458_v42 = vld [vmem:[%s9187_s23 + $0xc0] sm:$0xff] }
 0x608   : > { %8086 = vst.msk [vmem:[#allocation3 + $0x74] sm:$0xf] %vm4007_vm11, %v8020_v3  ;;  %8087 = vst.msk [vmem:[#allocation3 + $0x78] sm:$0xf] %vm4007_vm11, %v8022_v16 }
 0x609   : > { %8510 = vst.msk [vmem:[%s11530_s6 + $0x58] sm:$0xff] %vm8498_vm0, %v8477_v45  ;;  %v8475_v46 = vadd.f32 %v8443_v44, %v8343_v56  ;;  %v8461_v44 = vld [vmem:[%s9187_s23 + $0xd8] sm:$0xff] }
 0x60b   : > { %v8024_v47 = vpop.permute.xlu1 %8023  ;;  %8508 = vst.msk [vmem:[%s11530_s6 + $0x48] sm:$0xff] %vm8498_vm0, %v8475_v46 }
 0x60c   : > { %8088 = vst.msk [vmem:[#allocation3 + $0x7c] sm:$0xf] %vm4007_vm11, %v8024_v47  ;;  %v8459_v47 = vld [vmem:[%s9187_s23 + $0xc8] sm:$0xff] }
 0x60f   : > { %v9063_v48 = vld [vmem:[#allocation3 + $0x70] sm:$0xff]  }
 0x610   : > { %9005 = vmatprep.mubr.msk.bf16.mxu1 %vm4173_vm12, %v9063_v48 }
 0x613   : > { %v9064_v49 = vld [vmem:[#allocation3 + $0x78] sm:$0xff]  }
 0x614   : > { %9006 = vmatmul.mubr.msk.bf16.gmra.mxu1 %vm4173_vm12, %v9064_v49 }
 0x628   : > { %v8991_v50 = vpop.f32.mrf.mxu1 }
 0x629   : > { %v8364_v57 = vadd.f32 %v8991_v50, %v11521_v14 }
 0x62a   : > { %v8355_v54 = vpop.f32.mrf.mxu1 }
 0x62b   : > { %v8480_v21 = vadd.f32 %v8448_v35, %v8364_v57  ;;  %v8356_v51 = vadd.f32 %v11521_v14, %v8355_v54  ;;  %v8464_v57 = vld [vmem:[%s9187_s23 + $0xf0] sm:$0xff] }
 0x62c   : > { %v8992_v55 = vpop.f32.mrf.mxu1 }
 0x62d   : > { %8513 = vst.msk [vmem:[%s11530_s6 + $0x70] sm:$0xff] %vm8498_vm0, %v8480_v21  ;;  %v8478_v58 = vadd.f32 %v8446_v40, %v8356_v51  ;;  %v8367_v60 = vadd.f32 %v8992_v55, %v11521_v14  ;;  %v8462_v21 = vld [vmem:[%s9187_s23 + $0xe0] sm:$0xff] }
 0x62e   : > { %v8358_v61 = vpop.f32.mrf.mxu1 }
 0x62f   : > { %8511 = vst.msk [vmem:[%s11530_s6 + $0x60] sm:$0xff] %vm8498_vm0, %v8478_v58  ;;  %v8481_v0 = vadd.f32 %v8449_v59, %v8367_v60  ;;  %v8359_v30 = vadd.f32 %v11521_v14, %v8358_v61  ;;  %v8465_v58 = vld [vmem:[%s9187_s23 + $0xf8] sm:$0xff] }
 0x631   : > { %8514 = vst.msk [vmem:[%s11530_s6 + $0x78] sm:$0xff] %vm8498_vm0, %v8481_v0  ;;  %v8479_v1 = vadd.f32 %v8447_v62, %v8359_v30  ;;  %v8463_v0 = vld [vmem:[%s9187_s23 + $0xe8] sm:$0xff] }
 0x633   : > { %8512 = vst.msk [vmem:[%s11530_s6 + $0x68] sm:$0xff] %vm8498_vm0, %v8479_v1 }
 0x650   : > { %v8995_v2 = vpop.f32.mrf.mxu1 }
 0x651   : > { %v8380_v5 = vadd.f32 %v8995_v2, %v11521_v14 }
 0x652   : > { %v8371_v52 = vpop.f32.mrf.mxu1 }
 0x653   : > { %v8484_v7 = vadd.f32 %v8452_v4, %v8380_v5  ;;  %v8372_v53 = vadd.f32 %v11521_v14, %v8371_v52 }
 0x654   : > { %v8996_v63 = vpop.f32.mrf.mxu1 }
 0x655   : > { %8517 = vst.msk [vmem:[%s11530_s6 + $0x90] sm:$0xff] %vm8498_vm0, %v8484_v7  ;;  %v8482_v9 = vadd.f32 %v8450_v41, %v8372_v53  ;;  %v8383_v13 = vadd.f32 %v8996_v63, %v11521_v14 }
 0x656   : > { %v8374_v6 = vpop.f32.mrf.mxu1 }
 0x657   : > { %8515 = vst.msk [vmem:[%s11530_s6 + $0x80] sm:$0xff] %vm8498_vm0, %v8482_v9  ;;  %v8485_v15 = vadd.f32 %v8453_v8, %v8383_v13  ;;  %v8375_v17 = vadd.f32 %v11521_v14, %v8374_v6 }
 0x659   : > { %8518 = vst.msk [vmem:[%s11530_s6 + $0x98] sm:$0xff] %vm8498_vm0, %v8485_v15  ;;  %v8483_v18 = vadd.f32 %v8451_v12, %v8375_v17 }
 0x65b   : > { %8516 = vst.msk [vmem:[%s11530_s6 + $0x88] sm:$0xff] %vm8498_vm0, %v8483_v18 }
 0x678   : > { %v8999_v19 = vpop.f32.mrf.mxu1 }
 0x679   : > { %v8396_v22 = vadd.f32 %v8999_v19, %v11521_v14 }
 0x67a   : > { %v8387_v23 = vpop.f32.mrf.mxu1 }
 0x67b   : > { %v8488_v25 = vadd.f32 %v8456_v20, %v8396_v22  ;;  %v8388_v26 = vadd.f32 %v11521_v14, %v8387_v23 }
 0x67c   : > { %v9000_v29 = vpop.f32.mrf.mxu1 }
 0x67d   : > { %8521 = vst.msk [vmem:[%s11530_s6 + $0xb0] sm:$0xff] %vm8498_vm0, %v8488_v25  ;;  %v8486_v32 = vadd.f32 %v8454_v11, %v8388_v26  ;;  %v8399_v33 = vadd.f32 %v9000_v29, %v11521_v14 }
 0x67e   : > { %v8390_v36 = vpop.f32.mrf.mxu1 }
 0x67f   : > { %8519 = vst.msk [vmem:[%s11530_s6 + $0xa0] sm:$0xff] %vm8498_vm0, %v8486_v32  ;;  %v8489_v10 = vadd.f32 %v8457_v31, %v8399_v33  ;;  %v8391_v37 = vadd.f32 %v11521_v14, %v8390_v36 }
 0x681   : > { %8522 = vst.msk [vmem:[%s11530_s6 + $0xb8] sm:$0xff] %vm8498_vm0, %v8489_v10  ;;  %v8487_v38 = vadd.f32 %v8455_v28, %v8391_v37 }
 0x683   : > { %8520 = vst.msk [vmem:[%s11530_s6 + $0xa8] sm:$0xff] %vm8498_vm0, %v8487_v38 }
 0x6a4   : > { %v9003_v24 = vpop.f32.mrf.mxu1 }
 0x6a5   : > { %v8412_v39 = vadd.f32 %v9003_v24, %v11521_v14 }
 0x6a6   : > { %v8403_v34 = vpop.f32.mrf.mxu1 }
 0x6a7   : > { %v8492_v3 = vadd.f32 %v8460_v27, %v8412_v39  ;;  %v8404_v16 = vadd.f32 %v11521_v14, %v8403_v34 }
 0x6a8   : > { %v9004_v43 = vpop.f32.mrf.mxu1 }
 0x6a9   : > { %8525 = vst.msk [vmem:[%s11530_s6 + $0xd0] sm:$0xff] %vm8498_vm0, %v8492_v3  ;;  %v8490_v45 = vadd.f32 %v8458_v42, %v8404_v16  ;;  %v8415_v56 = vadd.f32 %v9004_v43, %v11521_v14 }
 0x6aa   : > { %v8406_v46 = vpop.f32.mrf.mxu1 }
 0x6ab   : > { %8523 = vst.msk [vmem:[%s11530_s6 + $0xc0] sm:$0xff] %vm8498_vm0, %v8490_v45  ;;  %v8493_v48 = vadd.f32 %v8461_v44, %v8415_v56  ;;  %v8407_v49 = vadd.f32 %v11521_v14, %v8406_v46 }
 0x6ad   : > { %8526 = vst.msk [vmem:[%s11530_s6 + $0xd8] sm:$0xff] %vm8498_vm0, %v8493_v48  ;;  %v8491_v50 = vadd.f32 %v8459_v47, %v8407_v49 }
 0x6af   : > { %8524 = vst.msk [vmem:[%s11530_s6 + $0xc8] sm:$0xff] %vm8498_vm0, %v8491_v50 }
 0x6d4   : > { %v9007_v35 = vpop.f32.mrf.mxu1 }
 0x6d5   : > { %v8428_v54 = vadd.f32 %v9007_v35, %v11521_v14 }
 0x6d6   : > { %v8419_v40 = vpop.f32.mrf.mxu1 }
 0x6d7   : > { %v8496_v51 = vadd.f32 %v8464_v57, %v8428_v54  ;;  %v8420_v55 = vadd.f32 %v11521_v14, %v8419_v40 }
 0x6d8   : > { %v9008_v59 = vpop.f32.mrf.mxu1 }
 0x6d9   : > { %8529 = vst.msk [vmem:[%s11530_s6 + $0xf0] sm:$0xff] %vm8498_vm0, %v8496_v51  ;;  %v8494_v60 = vadd.f32 %v8462_v21, %v8420_v55  ;;  %v8431_v61 = vadd.f32 %v9008_v59, %v11521_v14 }
 0x6da   : > { %v8422_v62 = vpop.f32.mrf.mxu1 }
 0x6db   : > { %8527 = vst.msk [vmem:[%s11530_s6 + $0xe0] sm:$0xff] %vm8498_vm0, %v8494_v60  ;;  %v8497_v30 = vadd.f32 %v8465_v58, %v8431_v61  ;;  %v8423_v1 = vadd.f32 %v11521_v14, %v8422_v62 }
 0x6dd   : > { %8530 = vst.msk [vmem:[%s11530_s6 + $0xf8] sm:$0xff] %vm8498_vm0, %v8497_v30  ;;  %v8495_v2 = vadd.f32 %v8463_v0, %v8423_v1 }
 0x6df   : > { %8528 = vst.msk [vmem:[%s11530_s6 + $0xe8] sm:$0xff] %vm8498_vm0, %v8495_v2 }
 0x6e0 PF: > { %s15_s18 = sadd.s32 1, %s9072_s18  }
 0x6e1   : > { %p12_p4 = scmp.ge.s32.totalorder %s15_s18, 4  }
 0x6e3   :  { %14 = sbr.rel (!%p12_p4) target bundleno = 1 (0x1), region = 72 }

</bundles_post_ra>
